<compile_context>
chip_gen: v5e
topology: v5e:2x2
jax: 0.10.0
libtpu: 0.0.40
codegen_flags: <defaults>
</compile_context>

<pallas_src>
import jax
import jax.numpy as jnp
from jax.experimental import pallas as pl
from jax.experimental.pallas import tpu as pltpu

_LANE = 128


def _round_up(x, m):
    return ((x + m - 1) // m) * m


# ----------------------------- Pallas kernel --------------------------------

def _basic_block_kernel(xpad_ref, w1_ref, b1_ref, w2_ref, b2_ref, o_ref,
                        y1pad_ref):
    """Fused conv1+bn1+relu -> conv2+bn2+identity+relu for one image.

    xpad_ref : (H+2, W+2, Cp)   bf16, spatially zero-padded, channel-padded
    w1_ref   : (9, Cp, Pp)      bf16, BN1 scale folded into columns
    b1_ref   : (1, Pp)          f32
    w2_ref   : (9, Pp, Pp)      bf16, BN2 scale folded into columns
    b2_ref   : (1, Pp)          f32
    o_ref    : (H*W, Pp)        f32
    y1pad_ref: (H+2, W+2, Pp)   bf16 VMEM scratch (zero-haloed y1)
    """
    hp2, wp2, c_in = xpad_ref.shape
    h, w = hp2 - 2, wp2 - 2
    hw = h * w
    c_out = o_ref.shape[-1]

    # ---- conv1 (BN1 scale folded) + bias + ReLU ----------------------------
    acc = jnp.zeros((hw, c_out), jnp.float32)
    for kh in range(3):
        for kw in range(3):
            patch = xpad_ref[pl.ds(kh, h), pl.ds(kw, w), :].reshape(hw, c_in)
            acc = acc + jnp.dot(patch, w1_ref[kh * 3 + kw],
                                preferred_element_type=jnp.float32)
    y1 = jnp.maximum(acc + b1_ref[...], 0.0)

    # Stage y1 with a zero halo in VMEM (never touches HBM).
    y1pad_ref[...] = jnp.zeros_like(y1pad_ref)
    y1pad_ref[pl.ds(1, h), pl.ds(1, w), :] = (
        y1.reshape(h, w, c_out).astype(y1pad_ref.dtype))

    # ---- conv2 (BN2 scale folded) + bias + residual + ReLU -----------------
    acc2 = jnp.zeros((hw, c_out), jnp.float32)
    for kh in range(3):
        for kw in range(3):
            patch = y1pad_ref[pl.ds(kh, h), pl.ds(kw, w), :].reshape(hw, c_out)
            acc2 = acc2 + jnp.dot(patch, w2_ref[kh * 3 + kw],
                                  preferred_element_type=jnp.float32)
    identity = xpad_ref[pl.ds(1, h), pl.ds(1, w), :].reshape(hw, c_in)
    y2 = acc2 + b2_ref[...] + identity.astype(jnp.float32)
    o_ref[...] = jnp.maximum(y2, 0.0).astype(o_ref.dtype)


# ------------------------------ JAX wrapper ----------------------------------

def _fold_bn_into_weight(w_oihw, gamma, beta, mean, var, cin_pad, cout_pad,
                         eps, compute_dtype):
    """(Cout,Cin,3,3) + BN stats -> ((9,Cin_pad,Cout_pad) bf16, (1,Cout_pad) f32)."""
    cout, cin = w_oihw.shape[0], w_oihw.shape[1]
    scale = gamma / jnp.sqrt(var + eps)                      # (Cout,)
    bias = beta - mean * scale                               # (Cout,)
    wm = jnp.transpose(w_oihw, (2, 3, 1, 0)).reshape(9, cin, cout)
    wm = wm * scale[None, None, :]                           # fold BN scale
    wm = jnp.pad(wm, ((0, 0), (0, cin_pad - cin), (0, cout_pad - cout)))
    bias = jnp.pad(bias, (0, cout_pad - cout)).reshape(1, cout_pad)
    return wm.astype(compute_dtype), bias.astype(jnp.float32)


def basic_block_forward(x_nchw, params, *, eps=1e-5,
                        compute_dtype=jnp.bfloat16):
    """BasicBlock.forward with stride=1, downsample=None (module defaults)."""
    n, cin, h, w = x_nchw.shape
    planes = params["conv1_w"].shape[0]
    assert params["conv1_w"].shape[1] == cin
    assert cin == planes, "residual add without downsample needs inplanes==planes"

    cin_p = _round_up(cin, _LANE)
    pln_p = _round_up(planes, _LANE)
    hw = h * w

    # NCHW -> NHWC; zero-pad spatial halo (3x3, pad=1) and channels to lane width.
    x_nhwc = jnp.transpose(x_nchw, (0, 2, 3, 1))
    xpad = jnp.pad(x_nhwc, ((0, 0), (1, 1), (1, 1), (0, cin_p - cin)))
    xpad = xpad.astype(compute_dtype)

    w1, b1 = _fold_bn_into_weight(params["conv1_w"], params["bn1_gamma"],
                                  params["bn1_beta"], params["bn1_mean"],
                                  params["bn1_var"], cin_p, pln_p, eps,
                                  compute_dtype)
    w2, b2 = _fold_bn_into_weight(params["conv2_w"], params["bn2_gamma"],
                                  params["bn2_beta"], params["bn2_mean"],
                                  params["bn2_var"], pln_p, pln_p, eps,
                                  compute_dtype)

    out = pl.pallas_call(
        _basic_block_kernel,
        out_shape=jax.ShapeDtypeStruct((n, hw, pln_p), jnp.float32),
        grid=(n,),
        in_specs=[
            pl.BlockSpec((None, h + 2, w + 2, cin_p), lambda i: (i, 0, 0, 0)),
            pl.BlockSpec((9, cin_p, pln_p), lambda i: (0, 0, 0)),
            pl.BlockSpec((1, pln_p), lambda i: (0, 0)),
            pl.BlockSpec((9, pln_p, pln_p), lambda i: (0, 0, 0)),
            pl.BlockSpec((1, pln_p), lambda i: (0, 0)),
        ],
        out_specs=pl.BlockSpec((None, hw, pln_p), lambda i: (i, 0, 0)),
        scratch_shapes=[pltpu.VMEM((h + 2, w + 2, pln_p), compute_dtype)],
        compiler_params=pltpu.CompilerParams(
            dimension_semantics=("parallel",)),
    )(xpad, w1, b1, w2, b2)

    out = out[:, :, :planes].reshape(n, h, w, planes)
    return jnp.transpose(out, (0, 3, 1, 2))


# -------------------------- references for checking --------------------------

def _reference_f32(x, params, eps=1e-5):
    """True (f32) BasicBlock forward."""
    def conv(z, wt):
        return jax.lax.conv_general_dilated(
            z, wt, (1, 1), ((1, 1), (1, 1)),
            dimension_numbers=("NCHW", "OIHW", "NCHW"))

    def bn(z, g, b, m, v):
        g, b = g.reshape(1, -1, 1, 1), b.reshape(1, -1, 1, 1)
        m, v = m.reshape(1, -1, 1, 1), v.reshape(1, -1, 1, 1)
        return (z - m) / jnp.sqrt(v + eps) * g + b

    out = jax.nn.relu(bn(conv(x, params["conv1_w"]), params["bn1_gamma"],
                         params["bn1_beta"], params["bn1_mean"], params["bn1_var"]))
    out = bn(conv(out, params["conv2_w"]), params["bn2_gamma"],
             params["bn2_beta"], params["bn2_mean"], params["bn2_var"])
    return jax.nn.relu(out + x)


def _reference_bf16_matched(x, params, eps=1e-5):
    """Reference that mirrors the kernel's bf16 rounding points (f32 math
    otherwise) -- tight check of the kernel's indexing / fusion logic."""
    def q(a):
        return a.astype(jnp.bfloat16).astype(jnp.float32)

    def fold(wt, g, b, m, v):
        s = g / jnp.sqrt(v + eps)
        whwio = jnp.transpose(wt, (2, 3, 1, 0)) * s        # (3,3,Cin,Cout)
        return q(whwio), (b - m * s)

    def conv(z, whwio):
        return jax.lax.conv_general_dilated(
            z, whwio, (1, 1), ((1, 1), (1, 1)),
            dimension_numbers=("NHWC", "HWIO", "NHWC"))

    xq = q(jnp.transpose(x, (0, 2, 3, 1)))
    w1, b1 = fold(params["conv1_w"], params["bn1_gamma"], params["bn1_beta"],
                  params["bn1_mean"], params["bn1_var"])
    w2, b2 = fold(params["conv2_w"], params["bn2_gamma"], params["bn2_beta"],
                  params["bn2_mean"], params["bn2_var"])
    y1 = q(jax.nn.relu(conv(xq, w1) + b1))
    y2 = conv(y1, w2) + b2 + xq
    return jnp.transpose(jax.nn.relu(y2), (0, 3, 1, 2))


# ---------------------------------- main -------------------------------------

if __name__ == "__main__":
    inplanes = planes = 4
    N, H, W = 2, 16, 16

    key = jax.random.PRNGKey(0)
    ks = jax.random.split(key, 12)

    params = {
        "conv1_w": 0.1 * jax.random.normal(ks[0], (planes, inplanes, 3, 3), jnp.float32),
        "conv2_w": 0.1 * jax.random.normal(ks[1], (planes, planes, 3, 3), jnp.float32),
        "bn1_gamma": 1.0 + 0.1 * jax.random.normal(ks[2], (planes,), jnp.float32),
        "bn1_beta": 0.1 * jax.random.normal(ks[3], (planes,), jnp.float32),
        "bn1_mean": 0.1 * jax.random.normal(ks[4], (planes,), jnp.float32),
        "bn1_var": jax.random.uniform(ks[5], (planes,), jnp.float32, 0.5, 1.5),
        "bn2_gamma": 1.0 + 0.1 * jax.random.normal(ks[6], (planes,), jnp.float32),
        "bn2_beta": 0.1 * jax.random.normal(ks[7], (planes,), jnp.float32),
        "bn2_mean": 0.1 * jax.random.normal(ks[8], (planes,), jnp.float32),
        "bn2_var": jax.random.uniform(ks[9], (planes,), jnp.float32, 0.5, 1.5),
    }

    x = jax.random.normal(ks[10], (N, inplanes, H, W), jnp.float32)

    out = jax.block_until_ready(basic_block_forward(x, params))

    # Tight check: kernel logic vs a reference with matched bf16 rounding points.
    ref_q = jax.block_until_ready(_reference_bf16_matched(x, params))
    if out.shape != ref_q.shape or not jnp.allclose(out, ref_q, atol=2e-2, rtol=2e-2):
        raise AssertionError(
            "Pallas BasicBlock mismatch vs bf16-matched reference (max abs err %e)"
            % float(jnp.max(jnp.abs(out - ref_q))))

    # Loose check: module semantics vs the true f32 reference (bf16 MXU inputs
    # introduce ~1e-2-scale differences; layout/indexing bugs would be O(1)).
    ref = jax.block_until_ready(_reference_f32(x, params))
    if not jnp.allclose(out, ref, atol=1e-1, rtol=1e-1):
        raise AssertionError(
            "Pallas BasicBlock mismatch vs f32 reference (max abs err %e)"
            % float(jnp.max(jnp.abs(out - ref))))

    print("KERNEL_OK")
</pallas_src>

<mosaic_0001>
module attributes {stable_mosaic.version = 11 : i64} {
  func.func @_basic_block_kernel(%arg0: i32, %arg1: memref<1x18x18x128xbf16, #tpu.memory_space<vmem>>, %arg2: memref<9x128x128xbf16, #tpu.memory_space<vmem>>, %arg3: memref<1x128xf32, #tpu.memory_space<vmem>>, %arg4: memref<9x128x128xbf16, #tpu.memory_space<vmem>>, %arg5: memref<1x128xf32, #tpu.memory_space<vmem>>, %arg6: memref<1x256x128xf32, #tpu.memory_space<vmem>>, %arg7: memref<18x18x128xbf16, #tpu.memory_space<vmem>>) attributes {dimension_semantics = [#tpu.dimension_semantics<parallel>], iteration_bounds = array<i64: 2>, scalar_prefetch = 0 : i64, scratch_operands = 1 : i64, tpu.core_type = #tpu.core_type<tc>, window_params = [{transform_indices = @transform_0, window_bounds = array<i64: 1, 18, 18, 128>}, {pipeline_mode = #tpu.pipeline_mode<synchronous>, transform_indices = @transform_1, window_bounds = array<i64: 9, 128, 128>}, {pipeline_mode = #tpu.pipeline_mode<synchronous>, transform_indices = @transform_2, window_bounds = array<i64: 1, 128>}, {pipeline_mode = #tpu.pipeline_mode<synchronous>, transform_indices = @transform_3, window_bounds = array<i64: 9, 128, 128>}, {pipeline_mode = #tpu.pipeline_mode<synchronous>, transform_indices = @transform_4, window_bounds = array<i64: 1, 128>}, {transform_indices = @transform_5, window_bounds = array<i64: 1, 256, 128>}]} {
    %cst = arith.constant 0.000000e+00 : f32
    %0 = vector.broadcast %cst : f32 to vector<256x128xf32>
    %c0 = arith.constant 0 : index
    %c0_0 = arith.constant 0 : index
    %c0_1 = arith.constant 0 : index
    %c0_2 = arith.constant 0 : index
    %1 = vector.load %arg1[%c0, %c0_0, %c0_1, %c0_2] : memref<1x18x18x128xbf16, #tpu.memory_space<vmem>>, vector<1x16x16x128xbf16>
    %2 = vector.shape_cast %1 : vector<1x16x16x128xbf16> to vector<16x16x128xbf16>
    %3 = vector.shape_cast %2 : vector<16x16x128xbf16> to vector<256x128xbf16>
    %c0_3 = arith.constant 0 : index
    %c0_4 = arith.constant 0 : index
    %c0_5 = arith.constant 0 : index
    %4 = vector.load %arg2[%c0_3, %c0_4, %c0_5] : memref<9x128x128xbf16, #tpu.memory_space<vmem>>, vector<1x128x128xbf16>
    %5 = vector.shape_cast %4 : vector<1x128x128xbf16> to vector<128x128xbf16>
    %cst_6 = arith.constant dense<0.000000e+00> : vector<256x128xf32>
    %6 = tpu.matmul %3, %5, %cst_6 {dimension_numbers = #tpu.dot_dimension_numbers<[1], [0], [0], [1], [0, 0, 1, 1], [], []>} : vector<256x128xbf16>, vector<128x128xbf16>, vector<256x128xf32> -> vector<256x128xf32>
    %7 = arith.addf %0, %6 : vector<256x128xf32>
    %c0_7 = arith.constant 0 : index
    %c0_8 = arith.constant 0 : index
    %c1 = arith.constant 1 : index
    %c0_9 = arith.constant 0 : index
    %8 = vector.load %arg1[%c0_7, %c0_8, %c1, %c0_9] : memref<1x18x18x128xbf16, #tpu.memory_space<vmem>>, vector<1x16x16x128xbf16>
    %9 = vector.shape_cast %8 : vector<1x16x16x128xbf16> to vector<16x16x128xbf16>
    %10 = vector.shape_cast %9 : vector<16x16x128xbf16> to vector<256x128xbf16>
    %c1_10 = arith.constant 1 : index
    %c0_11 = arith.constant 0 : index
    %c0_12 = arith.constant 0 : index
    %11 = vector.load %arg2[%c1_10, %c0_11, %c0_12] : memref<9x128x128xbf16, #tpu.memory_space<vmem>>, vector<1x128x128xbf16>
    %12 = vector.shape_cast %11 : vector<1x128x128xbf16> to vector<128x128xbf16>
    %cst_13 = arith.constant dense<0.000000e+00> : vector<256x128xf32>
    %13 = tpu.matmul %10, %12, %cst_13 {dimension_numbers = #tpu.dot_dimension_numbers<[1], [0], [0], [1], [0, 0, 1, 1], [], []>} : vector<256x128xbf16>, vector<128x128xbf16>, vector<256x128xf32> -> vector<256x128xf32>
    %14 = arith.addf %7, %13 : vector<256x128xf32>
    %c0_14 = arith.constant 0 : index
    %c0_15 = arith.constant 0 : index
    %c2 = arith.constant 2 : index
    %c0_16 = arith.constant 0 : index
    %15 = vector.load %arg1[%c0_14, %c0_15, %c2, %c0_16] : memref<1x18x18x128xbf16, #tpu.memory_space<vmem>>, vector<1x16x16x128xbf16>
    %16 = vector.shape_cast %15 : vector<1x16x16x128xbf16> to vector<16x16x128xbf16>
    %17 = vector.shape_cast %16 : vector<16x16x128xbf16> to vector<256x128xbf16>
    %c2_17 = arith.constant 2 : index
    %c0_18 = arith.constant 0 : index
    %c0_19 = arith.constant 0 : index
    %18 = vector.load %arg2[%c2_17, %c0_18, %c0_19] : memref<9x128x128xbf16, #tpu.memory_space<vmem>>, vector<1x128x128xbf16>
    %19 = vector.shape_cast %18 : vector<1x128x128xbf16> to vector<128x128xbf16>
    %cst_20 = arith.constant dense<0.000000e+00> : vector<256x128xf32>
    %20 = tpu.matmul %17, %19, %cst_20 {dimension_numbers = #tpu.dot_dimension_numbers<[1], [0], [0], [1], [0, 0, 1, 1], [], []>} : vector<256x128xbf16>, vector<128x128xbf16>, vector<256x128xf32> -> vector<256x128xf32>
    %21 = arith.addf %14, %20 : vector<256x128xf32>
    %c0_21 = arith.constant 0 : index
    %c1_22 = arith.constant 1 : index
    %c0_23 = arith.constant 0 : index
    %c0_24 = arith.constant 0 : index
    %22 = vector.load %arg1[%c0_21, %c1_22, %c0_23, %c0_24] : memref<1x18x18x128xbf16, #tpu.memory_space<vmem>>, vector<1x16x16x128xbf16>
    %23 = vector.shape_cast %22 : vector<1x16x16x128xbf16> to vector<16x16x128xbf16>
    %24 = vector.shape_cast %23 : vector<16x16x128xbf16> to vector<256x128xbf16>
    %c3 = arith.constant 3 : index
    %c0_25 = arith.constant 0 : index
    %c0_26 = arith.constant 0 : index
    %25 = vector.load %arg2[%c3, %c0_25, %c0_26] : memref<9x128x128xbf16, #tpu.memory_space<vmem>>, vector<1x128x128xbf16>
    %26 = vector.shape_cast %25 : vector<1x128x128xbf16> to vector<128x128xbf16>
    %cst_27 = arith.constant dense<0.000000e+00> : vector<256x128xf32>
    %27 = tpu.matmul %24, %26, %cst_27 {dimension_numbers = #tpu.dot_dimension_numbers<[1], [0], [0], [1], [0, 0, 1, 1], [], []>} : vector<256x128xbf16>, vector<128x128xbf16>, vector<256x128xf32> -> vector<256x128xf32>
    %28 = arith.addf %21, %27 : vector<256x128xf32>
    %c0_28 = arith.constant 0 : index
    %c1_29 = arith.constant 1 : index
    %c1_30 = arith.constant 1 : index
    %c0_31 = arith.constant 0 : index
    %29 = vector.load %arg1[%c0_28, %c1_29, %c1_30, %c0_31] : memref<1x18x18x128xbf16, #tpu.memory_space<vmem>>, vector<1x16x16x128xbf16>
    %30 = vector.shape_cast %29 : vector<1x16x16x128xbf16> to vector<16x16x128xbf16>
    %31 = vector.shape_cast %30 : vector<16x16x128xbf16> to vector<256x128xbf16>
    %c4 = arith.constant 4 : index
    %c0_32 = arith.constant 0 : index
    %c0_33 = arith.constant 0 : index
    %32 = vector.load %arg2[%c4, %c0_32, %c0_33] : memref<9x128x128xbf16, #tpu.memory_space<vmem>>, vector<1x128x128xbf16>
    %33 = vector.shape_cast %32 : vector<1x128x128xbf16> to vector<128x128xbf16>
    %cst_34 = arith.constant dense<0.000000e+00> : vector<256x128xf32>
    %34 = tpu.matmul %31, %33, %cst_34 {dimension_numbers = #tpu.dot_dimension_numbers<[1], [0], [0], [1], [0, 0, 1, 1], [], []>} : vector<256x128xbf16>, vector<128x128xbf16>, vector<256x128xf32> -> vector<256x128xf32>
    %35 = arith.addf %28, %34 : vector<256x128xf32>
    %c0_35 = arith.constant 0 : index
    %c1_36 = arith.constant 1 : index
    %c2_37 = arith.constant 2 : index
    %c0_38 = arith.constant 0 : index
    %36 = vector.load %arg1[%c0_35, %c1_36, %c2_37, %c0_38] : memref<1x18x18x128xbf16, #tpu.memory_space<vmem>>, vector<1x16x16x128xbf16>
    %37 = vector.shape_cast %36 : vector<1x16x16x128xbf16> to vector<16x16x128xbf16>
    %38 = vector.shape_cast %37 : vector<16x16x128xbf16> to vector<256x128xbf16>
    %c5 = arith.constant 5 : index
    %c0_39 = arith.constant 0 : index
    %c0_40 = arith.constant 0 : index
    %39 = vector.load %arg2[%c5, %c0_39, %c0_40] : memref<9x128x128xbf16, #tpu.memory_space<vmem>>, vector<1x128x128xbf16>
    %40 = vector.shape_cast %39 : vector<1x128x128xbf16> to vector<128x128xbf16>
    %cst_41 = arith.constant dense<0.000000e+00> : vector<256x128xf32>
    %41 = tpu.matmul %38, %40, %cst_41 {dimension_numbers = #tpu.dot_dimension_numbers<[1], [0], [0], [1], [0, 0, 1, 1], [], []>} : vector<256x128xbf16>, vector<128x128xbf16>, vector<256x128xf32> -> vector<256x128xf32>
    %42 = arith.addf %35, %41 : vector<256x128xf32>
    %c0_42 = arith.constant 0 : index
    %c2_43 = arith.constant 2 : index
    %c0_44 = arith.constant 0 : index
    %c0_45 = arith.constant 0 : index
    %43 = vector.load %arg1[%c0_42, %c2_43, %c0_44, %c0_45] : memref<1x18x18x128xbf16, #tpu.memory_space<vmem>>, vector<1x16x16x128xbf16>
    %44 = vector.shape_cast %43 : vector<1x16x16x128xbf16> to vector<16x16x128xbf16>
    %45 = vector.shape_cast %44 : vector<16x16x128xbf16> to vector<256x128xbf16>
    %c6 = arith.constant 6 : index
    %c0_46 = arith.constant 0 : index
    %c0_47 = arith.constant 0 : index
    %46 = vector.load %arg2[%c6, %c0_46, %c0_47] : memref<9x128x128xbf16, #tpu.memory_space<vmem>>, vector<1x128x128xbf16>
    %47 = vector.shape_cast %46 : vector<1x128x128xbf16> to vector<128x128xbf16>
    %cst_48 = arith.constant dense<0.000000e+00> : vector<256x128xf32>
    %48 = tpu.matmul %45, %47, %cst_48 {dimension_numbers = #tpu.dot_dimension_numbers<[1], [0], [0], [1], [0, 0, 1, 1], [], []>} : vector<256x128xbf16>, vector<128x128xbf16>, vector<256x128xf32> -> vector<256x128xf32>
    %49 = arith.addf %42, %48 : vector<256x128xf32>
    %c0_49 = arith.constant 0 : index
    %c2_50 = arith.constant 2 : index
    %c1_51 = arith.constant 1 : index
    %c0_52 = arith.constant 0 : index
    %50 = vector.load %arg1[%c0_49, %c2_50, %c1_51, %c0_52] : memref<1x18x18x128xbf16, #tpu.memory_space<vmem>>, vector<1x16x16x128xbf16>
    %51 = vector.shape_cast %50 : vector<1x16x16x128xbf16> to vector<16x16x128xbf16>
    %52 = vector.shape_cast %51 : vector<16x16x128xbf16> to vector<256x128xbf16>
    %c7 = arith.constant 7 : index
    %c0_53 = arith.constant 0 : index
    %c0_54 = arith.constant 0 : index
    %53 = vector.load %arg2[%c7, %c0_53, %c0_54] : memref<9x128x128xbf16, #tpu.memory_space<vmem>>, vector<1x128x128xbf16>
    %54 = vector.shape_cast %53 : vector<1x128x128xbf16> to vector<128x128xbf16>
    %cst_55 = arith.constant dense<0.000000e+00> : vector<256x128xf32>
    %55 = tpu.matmul %52, %54, %cst_55 {dimension_numbers = #tpu.dot_dimension_numbers<[1], [0], [0], [1], [0, 0, 1, 1], [], []>} : vector<256x128xbf16>, vector<128x128xbf16>, vector<256x128xf32> -> vector<256x128xf32>
    %56 = arith.addf %49, %55 : vector<256x128xf32>
    %c0_56 = arith.constant 0 : index
    %c2_57 = arith.constant 2 : index
    %c2_58 = arith.constant 2 : index
    %c0_59 = arith.constant 0 : index
    %57 = vector.load %arg1[%c0_56, %c2_57, %c2_58, %c0_59] : memref<1x18x18x128xbf16, #tpu.memory_space<vmem>>, vector<1x16x16x128xbf16>
    %58 = vector.shape_cast %57 : vector<1x16x16x128xbf16> to vector<16x16x128xbf16>
    %59 = vector.shape_cast %58 : vector<16x16x128xbf16> to vector<256x128xbf16>
    %c8 = arith.constant 8 : index
    %c0_60 = arith.constant 0 : index
    %c0_61 = arith.constant 0 : index
    %60 = vector.load %arg2[%c8, %c0_60, %c0_61] : memref<9x128x128xbf16, #tpu.memory_space<vmem>>, vector<1x128x128xbf16>
    %61 = vector.shape_cast %60 : vector<1x128x128xbf16> to vector<128x128xbf16>
    %cst_62 = arith.constant dense<0.000000e+00> : vector<256x128xf32>
    %62 = tpu.matmul %59, %61, %cst_62 {dimension_numbers = #tpu.dot_dimension_numbers<[1], [0], [0], [1], [0, 0, 1, 1], [], []>} : vector<256x128xbf16>, vector<128x128xbf16>, vector<256x128xf32> -> vector<256x128xf32>
    %63 = arith.addf %56, %62 : vector<256x128xf32>
    %c0_63 = arith.constant 0 : index
    %c0_64 = arith.constant 0 : index
    %64 = vector.load %arg3[%c0_63, %c0_64] : memref<1x128xf32, #tpu.memory_space<vmem>>, vector<1x128xf32>
    %65 = vector.broadcast %64 : vector<1x128xf32> to vector<256x128xf32>
    %66 = arith.addf %63, %65 : vector<256x128xf32>
    %cst_65 = arith.constant 0.000000e+00 : f32
    %67 = vector.broadcast %cst_65 : f32 to vector<256x128xf32>
    %68 = arith.maximumf %66, %67 : vector<256x128xf32>
    %cst_66 = arith.constant 0.000000e+00 : bf16
    %69 = vector.broadcast %cst_66 : bf16 to vector<18x18x128xbf16>
    %c0_67 = arith.constant 0 : index
    %c0_68 = arith.constant 0 : index
    %c0_69 = arith.constant 0 : index
    %70 = vector.load %arg7[%c0_67, %c0_68, %c0_69] : memref<18x18x128xbf16, #tpu.memory_space<vmem>>, vector<18x18x128xbf16>
    tpu.vector_store %arg7[%c0_67, %c0_68, %c0_69], %69 {strides = array<i32>} : memref<18x18x128xbf16, #tpu.memory_space<vmem>>, vector<18x18x128xbf16>,
    %71 = vector.shape_cast %68 : vector<256x128xf32> to vector<16x16x128xf32>
    %72 = arith.truncf %71 : vector<16x16x128xf32> to vector<16x16x128xbf16>
    %c1_70 = arith.constant 1 : index
    %c1_71 = arith.constant 1 : index
    %c0_72 = arith.constant 0 : index
    %73 = vector.load %arg7[%c1_70, %c1_71, %c0_72] : memref<18x18x128xbf16, #tpu.memory_space<vmem>>, vector<16x16x128xbf16>
    tpu.vector_store %arg7[%c1_70, %c1_71, %c0_72], %72 {strides = array<i32>} : memref<18x18x128xbf16, #tpu.memory_space<vmem>>, vector<16x16x128xbf16>,
    %cst_73 = arith.constant 0.000000e+00 : f32
    %74 = vector.broadcast %cst_73 : f32 to vector<256x128xf32>
    %c0_74 = arith.constant 0 : index
    %c0_75 = arith.constant 0 : index
    %c0_76 = arith.constant 0 : index
    %75 = vector.load %arg7[%c0_74, %c0_75, %c0_76] : memref<18x18x128xbf16, #tpu.memory_space<vmem>>, vector<16x16x128xbf16>
    %76 = vector.shape_cast %75 : vector<16x16x128xbf16> to vector<256x128xbf16>
    %c0_77 = arith.constant 0 : index
    %c0_78 = arith.constant 0 : index
    %c0_79 = arith.constant 0 : index
    %77 = vector.load %arg4[%c0_77, %c0_78, %c0_79] : memref<9x128x128xbf16, #tpu.memory_space<vmem>>, vector<1x128x128xbf16>
    %78 = vector.shape_cast %77 : vector<1x128x128xbf16> to vector<128x128xbf16>
    %cst_80 = arith.constant dense<0.000000e+00> : vector<256x128xf32>
    %79 = tpu.matmul %76, %78, %cst_80 {dimension_numbers = #tpu.dot_dimension_numbers<[1], [0], [0], [1], [0, 0, 1, 1], [], []>} : vector<256x128xbf16>, vector<128x128xbf16>, vector<256x128xf32> -> vector<256x128xf32>
    %80 = arith.addf %74, %79 : vector<256x128xf32>
    %c0_81 = arith.constant 0 : index
    %c1_82 = arith.constant 1 : index
    %c0_83 = arith.constant 0 : index
    %81 = vector.load %arg7[%c0_81, %c1_82, %c0_83] : memref<18x18x128xbf16, #tpu.memory_space<vmem>>, vector<16x16x128xbf16>
    %82 = vector.shape_cast %81 : vector<16x16x128xbf16> to vector<256x128xbf16>
    %c1_84 = arith.constant 1 : index
    %c0_85 = arith.constant 0 : index
    %c0_86 = arith.constant 0 : index
    %83 = vector.load %arg4[%c1_84, %c0_85, %c0_86] : memref<9x128x128xbf16, #tpu.memory_space<vmem>>, vector<1x128x128xbf16>
    %84 = vector.shape_cast %83 : vector<1x128x128xbf16> to vector<128x128xbf16>
    %cst_87 = arith.constant dense<0.000000e+00> : vector<256x128xf32>
    %85 = tpu.matmul %82, %84, %cst_87 {dimension_numbers = #tpu.dot_dimension_numbers<[1], [0], [0], [1], [0, 0, 1, 1], [], []>} : vector<256x128xbf16>, vector<128x128xbf16>, vector<256x128xf32> -> vector<256x128xf32>
    %86 = arith.addf %80, %85 : vector<256x128xf32>
    %c0_88 = arith.constant 0 : index
    %c2_89 = arith.constant 2 : index
    %c0_90 = arith.constant 0 : index
    %87 = vector.load %arg7[%c0_88, %c2_89, %c0_90] : memref<18x18x128xbf16, #tpu.memory_space<vmem>>, vector<16x16x128xbf16>
    %88 = vector.shape_cast %87 : vector<16x16x128xbf16> to vector<256x128xbf16>
    %c2_91 = arith.constant 2 : index
    %c0_92 = arith.constant 0 : index
    %c0_93 = arith.constant 0 : index
    %89 = vector.load %arg4[%c2_91, %c0_92, %c0_93] : memref<9x128x128xbf16, #tpu.memory_space<vmem>>, vector<1x128x128xbf16>
    %90 = vector.shape_cast %89 : vector<1x128x128xbf16> to vector<128x128xbf16>
    %cst_94 = arith.constant dense<0.000000e+00> : vector<256x128xf32>
    %91 = tpu.matmul %88, %90, %cst_94 {dimension_numbers = #tpu.dot_dimension_numbers<[1], [0], [0], [1], [0, 0, 1, 1], [], []>} : vector<256x128xbf16>, vector<128x128xbf16>, vector<256x128xf32> -> vector<256x128xf32>
    %92 = arith.addf %86, %91 : vector<256x128xf32>
    %c1_95 = arith.constant 1 : index
    %c0_96 = arith.constant 0 : index
    %c0_97 = arith.constant 0 : index
    %93 = vector.load %arg7[%c1_95, %c0_96, %c0_97] : memref<18x18x128xbf16, #tpu.memory_space<vmem>>, vector<16x16x128xbf16>
    %94 = vector.shape_cast %93 : vector<16x16x128xbf16> to vector<256x128xbf16>
    %c3_98 = arith.constant 3 : index
    %c0_99 = arith.constant 0 : index
    %c0_100 = arith.constant 0 : index
    %95 = vector.load %arg4[%c3_98, %c0_99, %c0_100] : memref<9x128x128xbf16, #tpu.memory_space<vmem>>, vector<1x128x128xbf16>
    %96 = vector.shape_cast %95 : vector<1x128x128xbf16> to vector<128x128xbf16>
    %cst_101 = arith.constant dense<0.000000e+00> : vector<256x128xf32>
    %97 = tpu.matmul %94, %96, %cst_101 {dimension_numbers = #tpu.dot_dimension_numbers<[1], [0], [0], [1], [0, 0, 1, 1], [], []>} : vector<256x128xbf16>, vector<128x128xbf16>, vector<256x128xf32> -> vector<256x128xf32>
    %98 = arith.addf %92, %97 : vector<256x128xf32>
    %c1_102 = arith.constant 1 : index
    %c1_103 = arith.constant 1 : index
    %c0_104 = arith.constant 0 : index
    %99 = vector.load %arg7[%c1_102, %c1_103, %c0_104] : memref<18x18x128xbf16, #tpu.memory_space<vmem>>, vector<16x16x128xbf16>
    %100 = vector.shape_cast %99 : vector<16x16x128xbf16> to vector<256x128xbf16>
    %c4_105 = arith.constant 4 : index
    %c0_106 = arith.constant 0 : index
    %c0_107 = arith.constant 0 : index
    %101 = vector.load %arg4[%c4_105, %c0_106, %c0_107] : memref<9x128x128xbf16, #tpu.memory_space<vmem>>, vector<1x128x128xbf16>
    %102 = vector.shape_cast %101 : vector<1x128x128xbf16> to vector<128x128xbf16>
    %cst_108 = arith.constant dense<0.000000e+00> : vector<256x128xf32>
    %103 = tpu.matmul %100, %102, %cst_108 {dimension_numbers = #tpu.dot_dimension_numbers<[1], [0], [0], [1], [0, 0, 1, 1], [], []>} : vector<256x128xbf16>, vector<128x128xbf16>, vector<256x128xf32> -> vector<256x128xf32>
    %104 = arith.addf %98, %103 : vector<256x128xf32>
    %c1_109 = arith.constant 1 : index
    %c2_110 = arith.constant 2 : index
    %c0_111 = arith.constant 0 : index
    %105 = vector.load %arg7[%c1_109, %c2_110, %c0_111] : memref<18x18x128xbf16, #tpu.memory_space<vmem>>, vector<16x16x128xbf16>
    %106 = vector.shape_cast %105 : vector<16x16x128xbf16> to vector<256x128xbf16>
    %c5_112 = arith.constant 5 : index
    %c0_113 = arith.constant 0 : index
    %c0_114 = arith.constant 0 : index
    %107 = vector.load %arg4[%c5_112, %c0_113, %c0_114] : memref<9x128x128xbf16, #tpu.memory_space<vmem>>, vector<1x128x128xbf16>
    %108 = vector.shape_cast %107 : vector<1x128x128xbf16> to vector<128x128xbf16>
    %cst_115 = arith.constant dense<0.000000e+00> : vector<256x128xf32>
    %109 = tpu.matmul %106, %108, %cst_115 {dimension_numbers = #tpu.dot_dimension_numbers<[1], [0], [0], [1], [0, 0, 1, 1], [], []>} : vector<256x128xbf16>, vector<128x128xbf16>, vector<256x128xf32> -> vector<256x128xf32>
    %110 = arith.addf %104, %109 : vector<256x128xf32>
    %c2_116 = arith.constant 2 : index
    %c0_117 = arith.constant 0 : index
    %c0_118 = arith.constant 0 : index
    %111 = vector.load %arg7[%c2_116, %c0_117, %c0_118] : memref<18x18x128xbf16, #tpu.memory_space<vmem>>, vector<16x16x128xbf16>
    %112 = vector.shape_cast %111 : vector<16x16x128xbf16> to vector<256x128xbf16>
    %c6_119 = arith.constant 6 : index
    %c0_120 = arith.constant 0 : index
    %c0_121 = arith.constant 0 : index
    %113 = vector.load %arg4[%c6_119, %c0_120, %c0_121] : memref<9x128x128xbf16, #tpu.memory_space<vmem>>, vector<1x128x128xbf16>
    %114 = vector.shape_cast %113 : vector<1x128x128xbf16> to vector<128x128xbf16>
    %cst_122 = arith.constant dense<0.000000e+00> : vector<256x128xf32>
    %115 = tpu.matmul %112, %114, %cst_122 {dimension_numbers = #tpu.dot_dimension_numbers<[1], [0], [0], [1], [0, 0, 1, 1], [], []>} : vector<256x128xbf16>, vector<128x128xbf16>, vector<256x128xf32> -> vector<256x128xf32>
    %116 = arith.addf %110, %115 : vector<256x128xf32>
    %c2_123 = arith.constant 2 : index
    %c1_124 = arith.constant 1 : index
    %c0_125 = arith.constant 0 : index
    %117 = vector.load %arg7[%c2_123, %c1_124, %c0_125] : memref<18x18x128xbf16, #tpu.memory_space<vmem>>, vector<16x16x128xbf16>
    %118 = vector.shape_cast %117 : vector<16x16x128xbf16> to vector<256x128xbf16>
    %c7_126 = arith.constant 7 : index
    %c0_127 = arith.constant 0 : index
    %c0_128 = arith.constant 0 : index
    %119 = vector.load %arg4[%c7_126, %c0_127, %c0_128] : memref<9x128x128xbf16, #tpu.memory_space<vmem>>, vector<1x128x128xbf16>
    %120 = vector.shape_cast %119 : vector<1x128x128xbf16> to vector<128x128xbf16>
    %cst_129 = arith.constant dense<0.000000e+00> : vector<256x128xf32>
    %121 = tpu.matmul %118, %120, %cst_129 {dimension_numbers = #tpu.dot_dimension_numbers<[1], [0], [0], [1], [0, 0, 1, 1], [], []>} : vector<256x128xbf16>, vector<128x128xbf16>, vector<256x128xf32> -> vector<256x128xf32>
    %122 = arith.addf %116, %121 : vector<256x128xf32>
    %c2_130 = arith.constant 2 : index
    %c2_131 = arith.constant 2 : index
    %c0_132 = arith.constant 0 : index
    %123 = vector.load %arg7[%c2_130, %c2_131, %c0_132] : memref<18x18x128xbf16, #tpu.memory_space<vmem>>, vector<16x16x128xbf16>
    %124 = vector.shape_cast %123 : vector<16x16x128xbf16> to vector<256x128xbf16>
    %c8_133 = arith.constant 8 : index
    %c0_134 = arith.constant 0 : index
    %c0_135 = arith.constant 0 : index
    %125 = vector.load %arg4[%c8_133, %c0_134, %c0_135] : memref<9x128x128xbf16, #tpu.memory_space<vmem>>, vector<1x128x128xbf16>
    %126 = vector.shape_cast %125 : vector<1x128x128xbf16> to vector<128x128xbf16>
    %cst_136 = arith.constant dense<0.000000e+00> : vector<256x128xf32>
    %127 = tpu.matmul %124, %126, %cst_136 {dimension_numbers = #tpu.dot_dimension_numbers<[1], [0], [0], [1], [0, 0, 1, 1], [], []>} : vector<256x128xbf16>, vector<128x128xbf16>, vector<256x128xf32> -> vector<256x128xf32>
    %128 = arith.addf %122, %127 : vector<256x128xf32>
    %c0_137 = arith.constant 0 : index
    %c1_138 = arith.constant 1 : index
    %c1_139 = arith.constant 1 : index
    %c0_140 = arith.constant 0 : index
    %129 = vector.load %arg1[%c0_137, %c1_138, %c1_139, %c0_140] : memref<1x18x18x128xbf16, #tpu.memory_space<vmem>>, vector<1x16x16x128xbf16>
    %130 = vector.shape_cast %129 : vector<1x16x16x128xbf16> to vector<16x16x128xbf16>
    %131 = vector.shape_cast %130 : vector<16x16x128xbf16> to vector<256x128xbf16>
    %c0_141 = arith.constant 0 : index
    %c0_142 = arith.constant 0 : index
    %132 = vector.load %arg5[%c0_141, %c0_142] : memref<1x128xf32, #tpu.memory_space<vmem>>, vector<1x128xf32>
    %133 = vector.broadcast %132 : vector<1x128xf32> to vector<256x128xf32>
    %134 = arith.addf %128, %133 : vector<256x128xf32>
    %135 = arith.extf %131 : vector<256x128xbf16> to vector<256x128xf32>
    %136 = arith.addf %134, %135 : vector<256x128xf32>
    %cst_143 = arith.constant 0.000000e+00 : f32
    %137 = vector.broadcast %cst_143 : f32 to vector<256x128xf32>
    %138 = arith.maximumf %136, %137 : vector<256x128xf32>
    %c0_144 = arith.constant 0 : index
    %c0_145 = arith.constant 0 : index
    %c0_146 = arith.constant 0 : index
    %139 = vector.load %arg6[%c0_144, %c0_145, %c0_146] : memref<1x256x128xf32, #tpu.memory_space<vmem>>, vector<1x256x128xf32>
    %140 = vector.shape_cast %139 : vector<1x256x128xf32> to vector<256x128xf32>
    %141 = vector.shape_cast %138 : vector<256x128xf32> to vector<1x256x128xf32>
    tpu.vector_store %arg6[%c0_144, %c0_145, %c0_146], %141 {strides = array<i32>} : memref<1x256x128xf32, #tpu.memory_space<vmem>>, vector<1x256x128xf32>,
    return
  }
  func.func @transform_0(%arg0: i32) -> (i32, i32, i32, i32) {
    %c0_i32 = arith.constant 0 : i32
    %c0_i32_0 = arith.constant 0 : i32
    %c0_i32_1 = arith.constant 0 : i32
    %c0_i32_2 = arith.constant 0 : i32
    return %arg0, %c0_i32, %c0_i32_0, %c0_i32_1 : i32, i32, i32, i32
  }
  func.func @transform_1(%arg0: i32) -> (i32, i32, i32) {
    %c0_i32 = arith.constant 0 : i32
    %c0_i32_0 = arith.constant 0 : i32
    %c0_i32_1 = arith.constant 0 : i32
    %c0_i32_2 = arith.constant 0 : i32
    return %c0_i32, %c0_i32_0, %c0_i32_1 : i32, i32, i32
  }
  func.func @transform_2(%arg0: i32) -> (i32, i32) {
    %c0_i32 = arith.constant 0 : i32
    %c0_i32_0 = arith.constant 0 : i32
    %c0_i32_1 = arith.constant 0 : i32
    return %c0_i32, %c0_i32_0 : i32, i32
  }
  func.func @transform_3(%arg0: i32) -> (i32, i32, i32) {
    %c0_i32 = arith.constant 0 : i32
    %c0_i32_0 = arith.constant 0 : i32
    %c0_i32_1 = arith.constant 0 : i32
    %c0_i32_2 = arith.constant 0 : i32
    return %c0_i32, %c0_i32_0, %c0_i32_1 : i32, i32, i32
  }
  func.func @transform_4(%arg0: i32) -> (i32, i32) {
    %c0_i32 = arith.constant 0 : i32
    %c0_i32_0 = arith.constant 0 : i32
    %c0_i32_1 = arith.constant 0 : i32
    return %c0_i32, %c0_i32_0 : i32, i32
  }
  func.func @transform_5(%arg0: i32) -> (i32, i32, i32) {
    %c0_i32 = arith.constant 0 : i32
    %c0_i32_0 = arith.constant 0 : i32
    %c0_i32_1 = arith.constant 0 : i32
    return %arg0, %c0_i32, %c0_i32_0 : i32, i32, i32
  }
}

</mosaic_0001>

<bundles_post_ra>
// kernel: tpu_custom_call.1
= control target key start
LH: loop header
LB: loop body
LE: loop exit
PB: predicated region body
PF: predicated region fallthrough
CT: control target
= control target key end

     0   :  { %10 = vsyncpa [#allocation4], 0  ;;  %s15456_s0 = inlined_call_operand.vmem [shape: bf16[2,18,18,128], index: 0, kind: input, shape index: {}]   ;;  %s15457_s1 = inlined_call_operand.vmem [shape: bf16[9,128,128], index: 1, kind: input, shape index: {}]   ;;  %s15458_s2 = inlined_call_operand.vmem [shape: f32[1,128], index: 2, kind: input, shape index: {}]   ;;  %s15459_s3 = inlined_call_operand.hbm [shape: bf16[9,128,128], index: 3, kind: input, shape index: {}]   ;;  %s15460_s4 = inlined_call_operand.vmem [shape: f32[1,128], index: 4, kind: input, shape index: {}]   ;;  %s15461_s5 = inlined_call_operand.hbm [shape: f32[2,256,128], index: 5, kind: output, shape index: {}]  }
   0x1   :  { %11 = vsyncpa [#allocation5], 0 }
   0x2   :  { %13 = vsyncpa [#allocation5 + $0x1], 0  ;;  %s11784_s18 = smov 0   ;;  %s11786_s19 = smov 0  }
   0x3   :  { %s11788_s20 = smov 0   ;;  %s11790_s21 = smov 0  }
   0x4 LB: > { %s11805_s22 = sadd.s32 4294967295, %s11746_s21   ;;  %s9869_s23 = sadd.s32 4294967294, %s11746_s21   ;;  %s11746_s21 = sphi %s11790_s21, %s15684_s21   ;;  %s11742_s20 = sphi %s11788_s20, %s15683_s20   ;;  %s11738_s19 = sphi %s11786_s19, %s15682_s19   ;;  %s11734_s18 = sphi %s11784_s18, %s15681_s18  }
   0x5   : > { %s11809_s24 = sadd.s32 1, %s11746_s21   ;;  %s136_s25 = sadd.s32 1, %s11742_s20 }
   0x6   : > { %s133_s26 = ssub.s32 %s11746_s21, %s11809_s24  ;;  %p146_p0 = scmp.ne.s32.totalorder %s11742_s20, %s11738_s19 }
   0x7   : > { %p134_p1 = scmp.eq.s32.totalorder %s133_s26, 0  ;;  %p147_p2 = scmp.eq.s32.totalorder %s11805_s22, 1 }
   0x8   : > { %p152_p3 = scmp.ne.s32.totalorder %s11738_s19, %s11734_s18  ;;  %p153_p4 = scmp.eq.s32.totalorder %s9869_s23, 1 }
   0x9   : > { %s11820_s27 = scalar_select %p134_p1, %s11742_s20, %s136_s25  }
   0xa   : > { %p11822_p5 = por %p147_p2, %p146_p0  ;;  %p11826_p6 = por %p153_p4, %p152_p3 }
   0xb   : > { %p9870_p7 = scmp.ge.s32.totalorder %s11746_s21, 1  ;;  %p160_p8 = scmp.lt.s32.totalorder %s11746_s21, 3 }
   0xc   : > { %p11578_p9 = scmp.eq.s32.totalorder %s11805_s22, 0  ;;  %s177_s7 = sshll.u32 %s15459_s3, 4  ;;  %s178_s7 = int_to_ptr.hbm [resolvable:$true] %s177_s7 }
   0xd   : > { %p161_p10 = pnand %p9870_p7, %p160_p8  ;;  %s11748_s8 = smov [#allocation3]  }
   0xe   : > { %s179_s9 = sshll.u32 %s11748_s8, 4  ;;  %s11749_s10 = smov 64   ;;  %s180_s9 = int_to_ptr.vmem [resolvable:$true] %s179_s9 }
   0xf   : > { %p11570_p11 = pneg %p161_p10  ;;  %s11750_s11 = smov 4  }
  0x10   : > { %206 = sbr.rel (%p161_p10) target bundleno = 1504 (0x5e0), region = 40 }
  0x11   : > { %p11571_p12 = pnand %p11578_p9, %p11570_p11 }
  0x13   : > { %11573 = dma.hbm_to_vmem [thread:$0]  (!%p11571_p12), %s178_s7, 9216, %s180_s9, [#allocation4], %s11749_s10, %s11749_s10, %s11750_s11  }
  0x15   : > { %11725 = dma.done.wait (%p11578_p9), [#allocation4], 9216  }
  0x16   : > { %11727 = vsyncadd (%p11578_p9), [#allocation4], 4294958080  ;;  %p235_p13 = scmp.lt.s32.totalorder %s11805_s22, 1  ;;  %v11337_v0 = vld [vmem:[%s15457_s1 + $0x78] sm:$0xff]  ;;  %v11336_v2 = vld [vmem:[%s15457_s1 + $0x70] sm:$0xff]  ;;  %vm1191_vm3 = vcmask 1042432  }
  0x17   : > { %v11329_v1 = vld [vmem:[%s15457_s1 + $0x38] sm:$0xff]  ;;  %821 = vmatpush.bf16.msra.mxu0 %v11337_v0  ;;  %11547 = vmatpush.bf16.msra.mxu2 %v11337_v0  ;;  %v11328_v3 = vld [vmem:[%s15457_s1 + $0x30] sm:$0xff]  ;;  %v11335_v6 = vld [vmem:[%s15457_s1 + $0x68] sm:$0xff]  ;;  %vm305_vm0 = vsmask.f32 3328  ;;  %vm1192_vm4 = vcmask 1046532  }
  0x18   : > { %s236_s12 = scalar_select %p235_p13, %s11805_s22, 1  ;;  %11555 = vmatpush.bf16.msra.mxu3 %v11329_v1  ;;  %1054 = vmatpush.bf16.msra.mxu1 %v11329_v1  ;;  %v11327_v11 = vld [vmem:[%s15457_s1 + $0x28] sm:$0xff]  ;;  %v11334_v22 = vld [vmem:[%s15457_s1 + $0x60] sm:$0xff]  ;;  %v11333_v34 = vld [vmem:[%s15457_s1 + $0x58] sm:$0xff]  ;;  %vm306_vm1 = vsmask.f32 7440 }
  0x19   : > { %v11326_v24 = vld [vmem:[%s15457_s1 + $0x20] sm:$0xff]  ;;  %v11325_v37 = vld [vmem:[%s15457_s1 + $0x18] sm:$0xff]  ;;  %vm11888_vm2 = vmor %vm305_vm0, %vm306_vm1  ;;  %vm4880_vm6 = vcmask 1043456   ;;  %vm4881_vm7 = vsmask.f32 7938  ;;  %vm4887_vm10 = vcmask 1040384  }
  0x1a   : > { %s11563_s13 = smul.u32 216, %s236_s12  ;;  %v11332_v45 = vld [vmem:[%s15457_s1 + $0x50] sm:$0xff]  ;;  %v11331_v59 = vld [vmem:[%s15457_s1 + $0x48] sm:$0xff]  ;;  %vm12191_vm5 = vmor %vm1191_vm3, %vm1192_vm4  ;;  %vm4556_vm8 = vsmask.f32 256  ;;  %s232_s23 = sand.u32 1, %s11738_s19  }
  0x1b   : > { %822 = vmatpush.bf16.msra.mxu0 %v11336_v2  ;;  %11548 = vmatpush.bf16.msra.mxu2 %v11336_v2  ;;  %v11324_v49 = vld [vmem:[%s15457_s1 + $0x10] sm:$0xff]  ;;  %v11323_v0 = vld [vmem:[%s15457_s1 + $0x8] sm:$0xff]  ;;  %vm4557_vm9 = vsmask.f32 4368  ;;  %vm13104_vm11 = vmand %vm4880_vm6, %vm4881_vm7  ;;  %s9875_s25 = sshll.u32 %s232_s23, 8  ;;  %s11700_s17 = scalar_lea.hbm %s15461_s5, 512 }
  0x1c   : > { %s11856_s6 = scalar_lea.vmem %s15456_s0, %s11563_s13  ;;  %11556 = vmatpush.bf16.msra.mxu3 %v11328_v3  ;;  %1055 = vmatpush.bf16.msra.mxu1 %v11328_v3  ;;  %vm13152_vm12 = vmor %vm4556_vm8, %vm4557_vm9  ;;  %s15083_s26 = scalar_lea.vmem [#allocation6], %s9875_s25 }
  0x1d   : > { %v241_v4 = vld [vmem:[%s11856_s6] sm:$0xf]  ;;  %v242_v5 = vld [vmem:[%s11856_s6 + $0x4] sm:$0xf]  ;;  %v289_v17 = vld [vmem:[%s11856_s6 + $0x8] sm:$0x1] }
  0x1e   : > { %v309_v7 = vshrl.u32 %v241_v4, 16  ;;  %v312_v8 = vshll.u32 %v241_v4, 16  ;;  %v318_v9 = vshll.u32 %v242_v5, 16  ;;  %v322_v10 = vshrl.u32 %v242_v5, 16  ;;  %v257_v12 = vld [vmem:[%s11856_s6 + $0x60] sm:$0xf]  ;;  %vm13161_vm13 = vmand %vm4887_vm10, %vm4556_vm8 }
  0x1f   : > { %v258_v13 = vld [vmem:[%s11856_s6 + $0x64] sm:$0xf]  ;;  %v501_v19 = vshrl.u32 %v257_v12, 16  ;;  %v504_v20 = vshll.u32 %v257_v12, 16  ;;  %823 = vmatpush.bf16.msra.mxu0 %v11335_v6  ;;  %11549 = vmatpush.bf16.msra.mxu2 %v11335_v6  ;;  %v297_v25 = vld [vmem:[%s11856_s6 + $0x68] sm:$0x1] }
  0x20   : > { %v311_v14 = vrot.slane %v309_v7, 4  ;;  %v314_v15 = vrot.slane %v312_v8, 5  ;;  %v11871_v16 = vrot.slane %v318_v9, 5  ;;  %v324_v18 = vrot.slane %v322_v10, 4  ;;  %11557 = vmatpush.bf16.msra.mxu3 %v11327_v11  ;;  %1056 = vmatpush.bf16.msra.mxu1 %v11327_v11  ;;  %v243_v43 = vld [vmem:[%s11856_s6 + $0xc] sm:$0xf] }
  0x21   : > { %v510_v21 = vshll.u32 %v258_v13, 16  ;;  %v514_v23 = vshrl.u32 %v258_v13, 16  ;;  %v503_v26 = vrot.slane %v501_v19, 4  ;;  %v506_v27 = vrot.slane %v504_v20, 5  ;;  %v244_v44 = vld [vmem:[%s11856_s6 + $0x10] sm:$0xf] }
  0x22   : > { %v315_v29 = vor.u32 %v314_v15, %v311_v14  ;;  %v328_v30 = vshll.u32 %v289_v17, 16  ;;  %v325_v32 = vor.u32 %v324_v18, %v11871_v16  ;;  %v520_v36 = vshll.u32 %v297_v25, 16  ;;  %v259_v48 = vld [vmem:[%s11856_s6 + $0x6c] sm:$0xf]  ;;  %v260_v50 = vld [vmem:[%s11856_s6 + $0x70] sm:$0xf] }
  0x23   : > { %v512_v28 = vrot.slane %v510_v21, 5  ;;  %v516_v31 = vrot.slane %v514_v23, 4  ;;  %v507_v33 = vor.u32 %v506_v27, %v503_v26  ;;  %824 = vmatpush.bf16.msra.mxu0 %v11334_v22  ;;  %11550 = vmatpush.bf16.msra.mxu2 %v11334_v22  ;;  %v333_v52 = vshrl.u32 %v243_v43, 16  ;;  %v11918_v7 = vld [vmem:[%s11856_s6 + $0x14] sm:$0x1]  ;;  %v11330_v10 = vld [vmem:[%s15457_s1 + $0x40] sm:$0xff] }
  0x24   : > { %11558 = vmatpush.bf16.msra.mxu3 %v11326_v24  ;;  %1057 = vmatpush.bf16.msra.mxu1 %v11326_v24  ;;  %v316_v38 = vrot.slane %v315_v29, 4  ;;  %v330_v39 = vrot.slane %v328_v30, 5  ;;  %v326_v41 = vrot.slane %v325_v32, 4  ;;  %v522_v47 = vrot.slane %v520_v36, 5  ;;  %v11322_v15 = vld [vmem:[%s15457_s1] sm:$0xff]  ;;  %v11345_v17 = vld [vmem:[%s15457_s1 + $0xb8] sm:$0xff] }
  0x25   : > { %v517_v35 = vor.u32 %v516_v31, %v512_v28  ;;  %v508_v42 = vrot.slane %v507_v33, 4  ;;  %v336_v53 = vshll.u32 %v243_v43, 16  ;;  %v342_v54 = vshll.u32 %v244_v44, 16  ;;  %v11369_v18 = vld [vmem:[%s15457_s1 + $0xf8] sm:$0xff]  ;;  %v11314_v24 = vld [vmem:[%s11856_s6 + $0x60] sm:$0xff]  ;;  %v11344_v31 = vld [vmem:[%s15457_s1 + $0xb0] sm:$0xff] }
  0x26   : > { %v321_v51 = vsel %vm11888_vm2, %v316_v38, %v11871_v16  ;;  %v331_v55 = vsel %vm11888_vm2, %v326_v41, %v330_v39  ;;  %v346_v57 = vshrl.u32 %v244_v44, 16  ;;  %v525_v58 = vshrl.u32 %v259_v48, 16  ;;  %v298_v16 = vld [vmem:[%s11856_s6 + $0x74] sm:$0x1]  ;;  %v11306_v25 = vld [vmem:[%s11856_s6] sm:$0xff]  ;;  %v11377_v30 = vld [vmem:[%s15457_s1 + $0x138] sm:$0xff] }
  0x27   : > { %825 = vmatpush.bf16.msra.mxu0 %v11333_v34  ;;  %11551 = vmatpush.bf16.msra.mxu2 %v11333_v34  ;;  %v518_v46 = vrot.slane %v517_v35, 4  ;;  %v513_v56 = vsel %vm11888_vm2, %v508_v42, %v512_v28  ;;  %v528_v61 = vshll.u32 %v259_v48, 16  ;;  %v534_v62 = vshll.u32 %v260_v50, 16  ;;  %v245_v29 = vld [vmem:[%s11856_s6 + $0x18] sm:$0xf]  ;;  %v11368_v32 = vld [vmem:[%s15457_s1 + $0xf0] sm:$0xff] }
  0x28   : > { %11559 = vmatpush.bf16.msra.mxu3 %v11325_v37  ;;  %1058 = vmatpush.bf16.msra.mxu1 %v11325_v37  ;;  %v538_v63 = vshrl.u32 %v260_v50, 16  ;;  %v709_v1 = vunpack.c.l.b16 %v321_v51  ;;  %v710_v2 = vunpack.c.l.b16 %v331_v55  ;;  %v335_v3 = vrot.slane %v333_v52, 4  ;;  %v11953_v33 = vld [vmem:[%s11856_s6 + $0x1c] sm:$0xf]  ;;  %v261_v34 = vld [vmem:[%s11856_s6 + $0x78] sm:$0xf] }
  0x29   : > { %v523_v60 = vsel %vm11888_vm2, %v518_v46, %v522_v47  ;;  %v338_v4 = vrot.slane %v336_v53, 5  ;;  %v725_v5 = vunpack.c.l.b16 %v513_v56  ;;  %v11920_v8 = vrot.slane %v342_v54, 5  ;;  %v262_v39 = vld [vmem:[%s11856_s6 + $0x7c] sm:$0xf]  ;;  %v11343_v52 = vld [vmem:[%s15457_s1 + $0xa8] sm:$0xff]  ;;  %s9792_s11 = sshll.u32 %s15083_s26, 4  ;;  %s9793_s11 = int_to_ptr.vmem [resolvable:$true] %s9792_s11 }
  0x2a   : > { %v726_v6 = vunpack.c.l.b16 %v523_v60  ;;  %v348_v9 = vrot.slane %v346_v57, 4  ;;  %v527_v11 = vrot.slane %v525_v58, 4  ;;  %v530_v12 = vrot.slane %v528_v61, 5  ;;  %v11367_v53 = vld [vmem:[%s15457_s1 + $0xe8] sm:$0xff] }
  0x2b   : > { %826 = vmatpush.bf16.msra.mxu0 %v11332_v45  ;;  %11552 = vmatpush.bf16.msra.mxu2 %v11332_v45  ;;  %v11925_v13 = vrot.slane %v534_v62, 5  ;;  %v540_v14 = vrot.slane %v538_v63, 4  ;;  %v352_v19 = vshll.u32 %v11918_v7, 16  ;;  %v741_v20 = vpack.c.b16 %v710_v2, %v709_v1  ;;  %v11376_v45 = vld [vmem:[%s15457_s1 + $0x130] sm:$0xff]  ;;  %v11982_v1 = vld [vmem:[%s11856_s6 + $0x20] sm:$0x1] }
  0x2c   : > { %11560 = vmatpush.bf16.msra.mxu3 %v11324_v49  ;;  %1059 = vmatpush.bf16.msra.mxu1 %v11324_v49  ;;  %v749_v21 = vpack.c.b16 %v726_v6, %v725_v5  ;;  %v339_v22 = vor.u32 %v338_v4, %v335_v3  ;;  %v349_v23 = vor.u32 %v348_v9, %v11920_v8  ;;  %v544_v28 = vshll.u32 %v298_v16, 16  ;;  %v299_v9 = vld [vmem:[%s11856_s6 + $0x80] sm:$0x1] }
  0x2d   : > { %v531_v26 = vor.u32 %v530_v12, %v527_v11  ;;  %v541_v27 = vor.u32 %v540_v14, %v11925_v13  ;;  %v354_v37 = vrot.slane %v352_v19, 5  ;;  %v357_v38 = vshrl.u32 %v245_v29, 16  ;;  %v11307_v19 = vld [vmem:[%s11856_s6 + $0xc] sm:$0xff] }
  0x2e   : > { %v340_v35 = vrot.slane %v339_v22, 4  ;;  %v350_v36 = vrot.slane %v349_v23, 4  ;;  %v546_v43 = vrot.slane %v544_v28, 5  ;;  %v360_v44 = vshll.u32 %v245_v29, 16  ;;  %v263_v28 = vld [vmem:[%s11856_s6 + $0x84] sm:$0xf] }
  0x2f   : > { %827 = vmatpush.bf16.msra.mxu0 %v11331_v59  ;;  %11553 = vmatpush.bf16.msra.mxu2 %v11331_v59  ;;  %v532_v41 = vrot.slane %v531_v26, 4  ;;  %v542_v42 = vrot.slane %v541_v27, 4  ;;  %v366_v46 = vshll.u32 %v11953_v33, 16  ;;  %v370_v47 = vshrl.u32 %v11953_v33, 16  ;;  %v247_v26 = vld [vmem:[%s11856_s6 + $0x24] sm:$0xf] }
  0x30   : > { %11561 = vmatpush.bf16.msra.mxu3 %v11323_v0  ;;  %1060 = vmatpush.bf16.msra.mxu1 %v11323_v0  ;;  %v549_v48 = vshrl.u32 %v261_v34, 16  ;;  %v552_v49 = vshll.u32 %v261_v34, 16  ;;  %v558_v50 = vshll.u32 %v262_v39, 16  ;;  %v562_v51 = vshrl.u32 %v262_v39, 16  ;;  %v11375_v0 = vld [vmem:[%s15457_s1 + $0x128] sm:$0xff] }
  0x31   : > { %v345_v54 = vsel %vm11888_vm2, %v340_v35, %v11920_v8  ;;  %v355_v55 = vsel %vm11888_vm2, %v350_v36, %v354_v37  ;;  %v537_v56 = vsel %vm11888_vm2, %v532_v41, %v11925_v13  ;;  %v547_v57 = vsel %vm11888_vm2, %v542_v42, %v546_v43  ;;  %v11990_v27 = vld [vmem:[%s11856_s6 + $0x28] sm:$0xf]  ;;  %v11374_v37 = vld [vmem:[%s15457_s1 + $0x120] sm:$0xff] }
  0x32   : > { %v359_v58 = vrot.slane %v357_v38, 4  ;;  %v362_v59 = vrot.slane %v360_v44, 5  ;;  %v368_v60 = vrot.slane %v366_v46, 5  ;;  %v372_v61 = vrot.slane %v370_v47, 4  ;;  %v264_v29 = vld [vmem:[%s11856_s6 + $0x88] sm:$0xf] }
  0x33   : > { %828 = vmatpush.bf16.msra.mxu0 %v11330_v10  ;;  %11554 = vmatpush.bf16.msra.mxu2 %v11330_v10  ;;  %v551_v62 = vrot.slane %v549_v48, 4  ;;  %v554_v63 = vrot.slane %v552_v49, 5  ;;  %v560_v2 = vrot.slane %v558_v50, 5  ;;  %v564_v3 = vrot.slane %v562_v51, 4 }
  0x34   : > { %11562 = vmatpush.bf16.msra.mxu3 %v11322_v15  ;;  %1061 = vmatpush.bf16.msra.mxu1 %v11322_v15  ;;  %v711_v4 = vunpack.c.l.b16 %v345_v54  ;;  %v712_v5 = vunpack.c.l.b16 %v355_v55  ;;  %v727_v6 = vunpack.c.l.b16 %v537_v56  ;;  %v728_v8 = vunpack.c.l.b16 %v547_v57  ;;  %v12014_v55 = vld [vmem:[%s11856_s6 + $0x2c] sm:$0x1] }
  0x35   : > { %v363_v10 = vor.u32 %v362_v59, %v359_v58  ;;  %v373_v11 = vor.u32 %v372_v61, %v368_v60  ;;  %v376_v12 = vshll.u32 %v11982_v1, 16  ;;  %v555_v13 = vor.u32 %v554_v63, %v551_v62 }
  0x36   : > { %829 = vmatmul.bf16.vlgmr.msra.gmra.mxu0 %v741_v20  ;;  %869 = vmatmul.bf16.vlgmr.msra.gmra.mxu2 %v749_v21  ;;  %v565_v14 = vor.u32 %v564_v3, %v560_v2  ;;  %v568_v15 = vshll.u32 %v299_v9, 16  ;;  %v742_v16 = vpack.c.b16 %v712_v5, %v711_v4  ;;  %v381_v36 = vshrl.u32 %v247_v26, 16  ;;  %v249_v9 = vld [vmem:[%s11856_s6 + $0x30] sm:$0xf] }
  0x37   : > { %1435 = vmatpush.bf16.msrb.mxu2 %v11345_v17  ;;  %1102 = vmatmul.bf16.vlgmr.msra.gmra.mxu3 %v11314_v24  ;;  %v750_v17 = vpack.c.b16 %v728_v8, %v727_v6  ;;  %v364_v20 = vrot.slane %v363_v10, 4  ;;  %v374_v21 = vrot.slane %v373_v11, 4  ;;  %v378_v22 = vrot.slane %v376_v12, 5  ;;  %v11316_v6 = vld [vmem:[%s11856_s6 + $0x78] sm:$0xff]  ;;  %v250_v10 = vld [vmem:[%s11856_s6 + $0x34] sm:$0xf] }
  0x38   : > { %1750 = vmatpush.bf16.msrb.mxu3 %v11369_v18  ;;  %1062 = vmatmul.bf16.vlgmr.msra.gmra.mxu1 %v11306_v25  ;;  %v11315_v18 = vld [vmem:[%s11856_s6 + $0x6c] sm:$0xff]  ;;  %v556_v23 = vrot.slane %v555_v13, 4  ;;  %v566_v24 = vrot.slane %v565_v14, 4  ;;  %v570_v25 = vrot.slane %v568_v15, 5  ;;  %v384_v39 = vshll.u32 %v247_v26, 16  ;;  %v11308_v8 = vld [vmem:[%s11856_s6 + $0x18] sm:$0xff] }
  0x39   : > { %2432 = vmatpush.bf16.msrb.mxu0 %v11377_v30  ;;  %v11342_v30 = vld [vmem:[%s15457_s1 + $0xa0] sm:$0xff]  ;;  %v379_v34 = vsel %vm11888_vm2, %v374_v21, %v378_v22  ;;  %v390_v41 = vshll.u32 %v11990_v27, 16  ;;  %v394_v42 = vshrl.u32 %v11990_v27, 16  ;;  %v573_v43 = vshrl.u32 %v263_v28, 16  ;;  %v265_v13 = vld [vmem:[%s11856_s6 + $0x90] sm:$0xf] }
  0x3a   : > { %v561_v35 = vsel %vm11888_vm2, %v556_v23, %v560_v2  ;;  %v571_v38 = vsel %vm11888_vm2, %v566_v24, %v570_v25  ;;  %v576_v44 = vshll.u32 %v263_v28, 16  ;;  %v586_v46 = vshrl.u32 %v264_v29, 16  ;;  %v266_v14 = vld [vmem:[%s11856_s6 + $0x94] sm:$0xf]  ;;  %v11341_v23 = vld [vmem:[%s15457_s1 + $0x98] sm:$0xff] }
  0x3b   : > { %1436 = vmatpush.bf16.msrb.mxu2 %v11344_v31  ;;  %v11366_v31 = vld [vmem:[%s15457_s1 + $0xe0] sm:$0xff]  ;;  %v714_v48 = vunpack.c.l.b16 %v379_v34  ;;  %v729_v49 = vunpack.c.l.b16 %v561_v35  ;;  %v730_v50 = vunpack.c.l.b16 %v571_v38  ;;  %v383_v51 = vrot.slane %v381_v36, 4  ;;  %v11365_v24 = vld [vmem:[%s15457_s1 + $0xd8] sm:$0xff] }
  0x3c   : > { %1751 = vmatpush.bf16.msrb.mxu3 %v11368_v32  ;;  %v369_v32 = vsel %vm11888_vm2, %v364_v20, %v368_v60  ;;  %v396_v54 = vrot.slane %v394_v42, 4  ;;  %v575_v56 = vrot.slane %v573_v43, 4  ;;  %v578_v57 = vrot.slane %v576_v44, 5  ;;  %v300_v60 = vld [vmem:[%s11856_s6 + $0x8c] sm:$0x1] }
  0x3d   : > { %2433 = vmatpush.bf16.msrb.mxu0 %v11376_v45  ;;  %v582_v45 = vshll.u32 %v264_v29, 16  ;;  %v713_v47 = vunpack.c.l.b16 %v369_v32  ;;  %v588_v59 = vrot.slane %v586_v46, 4  ;;  %v751_v62 = vpack.c.b16 %v730_v50, %v729_v49  ;;  %v301_v46 = vld [vmem:[%s11856_s6 + $0x98] sm:$0x1] }
  0x3e   : > { %v579_v3 = vor.u32 %v578_v57, %v575_v56  ;;  %v592_v5 = vshll.u32 %v300_v60, 16  ;;  %v408_v20 = vshll.u32 %v249_v9, 16  ;;  %v414_v21 = vshll.u32 %v250_v10, 16  ;;  %v11317_v60 = vld [vmem:[%s11856_s6 + $0x84] sm:$0xff] }
  0x3f   : > { %1437 = vmatpush.bf16.msrb.mxu2 %v11343_v52  ;;  %v386_v52 = vrot.slane %v384_v39, 5  ;;  %v584_v58 = vrot.slane %v582_v45, 5  ;;  %v743_v61 = vpack.c.b16 %v714_v48, %v713_v47  ;;  %v418_v22 = vshrl.u32 %v250_v10, 16  ;;  %v11340_v10 = vld [vmem:[%s15457_s1 + $0x90] sm:$0xff] }
  0x40   : > { %1752 = vmatpush.bf16.msrb.mxu3 %v11367_v53  ;;  %v392_v53 = vrot.slane %v390_v41, 5  ;;  %v597_v25 = vshrl.u32 %v265_v13, 16  ;;  %v600_v26 = vshll.u32 %v265_v13, 16  ;;  %v606_v28 = vshll.u32 %v266_v14, 16  ;;  %v12042_v41 = vld [vmem:[%s11856_s6 + $0x38] sm:$0x1] }
  0x41   : > { %2434 = vmatpush.bf16.msrb.mxu0 %v11375_v0  ;;  %v387_v63 = vor.u32 %v386_v52, %v383_v51  ;;  %v400_v0 = vshll.u32 %v12014_v55, 16  ;;  %v589_v4 = vor.u32 %v588_v59, %v584_v58  ;;  %v610_v29 = vshrl.u32 %v266_v14, 16 }
  0x42   : > { %v397_v2 = vor.u32 %v396_v54, %v392_v53  ;;  %v416_v38 = vrot.slane %v414_v21, 5  ;;  %v420_v39 = vrot.slane %v418_v22, 4  ;;  %v599_v42 = vrot.slane %v597_v25, 4 }
  0x43   : > { %1438 = vmatpush.bf16.msrb.mxu2 %v11342_v30  ;;  %v388_v11 = vrot.slane %v387_v63, 4  ;;  %v402_v12 = vrot.slane %v400_v0, 5  ;;  %v11373_v30 = vld [vmem:[%s15457_s1 + $0x118] sm:$0xff]  ;;  %v602_v43 = vrot.slane %v600_v26, 5  ;;  %v608_v44 = vrot.slane %v606_v28, 5 }
  0x44   : > { %1753 = vmatpush.bf16.msrb.mxu3 %v11366_v31  ;;  %v398_v15 = vrot.slane %v397_v2, 4  ;;  %v612_v45 = vrot.slane %v610_v29, 4  ;;  %v424_v52 = vshll.u32 %v12042_v41, 16  ;;  %v616_v57 = vshll.u32 %v301_v46, 16 }
  0x45   : > { %2435 = vmatpush.bf16.msrb.mxu0 %v11374_v37  ;;  %v393_v31 = vsel %vm11888_vm2, %v388_v11, %v392_v53  ;;  %v410_v37 = vrot.slane %v408_v20, 5  ;;  %v421_v53 = vor.u32 %v420_v39, %v416_v38  ;;  %v603_v54 = vor.u32 %v602_v43, %v599_v42  ;;  %v11364_v11 = vld [vmem:[%s15457_s1 + $0xd0] sm:$0xff]  ;;  %v302_v42 = vld [vmem:[%s11856_s6 + $0xa4] sm:$0x1] }
  0x46   : > { %834 = vmatmul.bf16.gmra.mxu0 %v742_v16  ;;  %874 = vmatmul.bf16.gmra.mxu2 %v750_v17  ;;  %v580_v16 = vrot.slane %v579_v3, 4  ;;  %v590_v17 = vrot.slane %v589_v4, 4  ;;  %v403_v32 = vsel %vm11888_vm2, %v398_v15, %v402_v12  ;;  %v715_v47 = vunpack.c.l.b16 %v393_v31 }
  0x47   : > { %1107 = vmatmul.bf16.gmra.mxu3 %v11315_v18  ;;  %v594_v18 = vrot.slane %v592_v5, 5  ;;  %1439 = vmatpush.bf16.msrb.mxu2 %v11341_v23  ;;  %v716_v48 = vunpack.c.l.b16 %v403_v32  ;;  %v613_v56 = vor.u32 %v612_v45, %v608_v44  ;;  %v426_v63 = vrot.slane %v424_v52, 5  ;;  %v251_v5 = vld [vmem:[%s11856_s6 + $0x3c] sm:$0xf]  ;;  %v11310_v52 = vld [vmem:[%s11856_s6 + $0x30] sm:$0xff] }
  0x48   : > { %1067 = vmatmul.bf16.gmra.mxu1 %v11307_v19  ;;  %v405_v19 = vshrl.u32 %v249_v9, 16  ;;  %1754 = vmatpush.bf16.msrb.mxu3 %v11365_v24  ;;  %v585_v34 = vsel %vm11888_vm2, %v580_v16, %v584_v58  ;;  %v422_v0 = vrot.slane %v421_v53, 4  ;;  %v604_v2 = vrot.slane %v603_v54, 4  ;;  %v268_v9 = vld [vmem:[%s11856_s6 + $0xa0] sm:$0xf]  ;;  %v11372_v16 = vld [vmem:[%s15457_s1 + $0x110] sm:$0xff] }
  0x49   : > { %v595_v35 = vsel %vm11888_vm2, %v590_v17, %v594_v18  ;;  %2436 = vmatpush.bf16.msrb.mxu0 %v11373_v30  ;;  %v731_v49 = vunpack.c.l.b16 %v585_v34  ;;  %v744_v58 = vpack.c.b16 %v716_v48, %v715_v47  ;;  %v614_v3 = vrot.slane %v613_v56, 4  ;;  %v253_v53 = vld [vmem:[%s11856_s6 + $0x48] sm:$0xf]  ;;  %v254_v54 = vld [vmem:[%s11856_s6 + $0x4c] sm:$0xf] }
  0x4a   : > { %v407_v36 = vrot.slane %v405_v19, 4  ;;  %v732_v50 = vunpack.c.l.b16 %v595_v35  ;;  %v618_v4 = vrot.slane %v616_v57, 5  ;;  %v427_v13 = vsel %vm11888_vm2, %v422_v0, %v426_v63  ;;  %v12074_v35 = vld [vmem:[%s11856_s6 + $0x44] sm:$0x1] }
  0x4b   : > { %v609_v14 = vsel %vm11888_vm2, %v604_v2, %v608_v44  ;;  %v429_v17 = vshrl.u32 %v251_v5, 16  ;;  %v432_v18 = vshll.u32 %v251_v5, 16  ;;  %1440 = vmatpush.bf16.msrb.mxu2 %v11340_v10  ;;  %v630_v23 = vshll.u32 %v268_v9, 16  ;;  %v11339_v5 = vld [vmem:[%s15457_s1 + $0x88] sm:$0xff] }
  0x4c   : > { %v411_v51 = vor.u32 %v410_v37, %v407_v36  ;;  %v752_v59 = vpack.c.b16 %v732_v50, %v731_v49  ;;  %v619_v15 = vsel %vm11888_vm2, %v614_v3, %v618_v4  ;;  %1755 = vmatpush.bf16.msrb.mxu3 %v11364_v11  ;;  %v634_v24 = vshrl.u32 %v268_v9, 16 }
  0x4d   : > { %2437 = vmatpush.bf16.msrb.mxu0 %v11372_v16  ;;  %v718_v26 = vunpack.c.l.b16 %v427_v13  ;;  %v733_v28 = vunpack.c.l.b16 %v609_v14  ;;  %v734_v29 = vunpack.c.l.b16 %v619_v15  ;;  %v431_v30 = vrot.slane %v429_v17, 4  ;;  %v11371_v13 = vld [vmem:[%s15457_s1 + $0x108] sm:$0xff]  ;;  %v11385_v14 = vld [vmem:[%s15457_s1 + $0x178] sm:$0xff] }
  0x4e   : > { %v434_v31 = vrot.slane %v432_v18, 5  ;;  %v636_v39 = vrot.slane %v634_v24, 4  ;;  %v448_v46 = vshll.u32 %v12074_v35, 16  ;;  %v640_v50 = vshll.u32 %v302_v42, 16  ;;  %2858 = vmatpush.bf16.msrb.mxu1 %v11385_v14 }
  0x4f   : > { %v753_v44 = vpack.c.b16 %v734_v29, %v733_v28  ;;  %v453_v0 = vshrl.u32 %v253_v53, 16  ;;  %v456_v2 = vshll.u32 %v253_v53, 16  ;;  %v462_v3 = vshll.u32 %v254_v54, 16  ;;  %1441 = vmatpush.bf16.msrb.mxu2 %v11339_v5  ;;  %v303_v29 = vld [vmem:[%s11856_s6 + $0xb0] sm:$0x1] }
  0x50   : > { %v435_v45 = vor.u32 %v434_v31, %v431_v30  ;;  %v450_v57 = vrot.slane %v448_v46, 5  ;;  %v642_v63 = vrot.slane %v640_v50, 5  ;;  %v466_v4 = vshrl.u32 %v254_v54, 16  ;;  %v11319_v46 = vld [vmem:[%s11856_s6 + $0x9c] sm:$0xff]  ;;  %v255_v54 = vld [vmem:[%s11856_s6 + $0x54] sm:$0xf] }
  0x51   : > { %2438 = vmatpush.bf16.msrb.mxu0 %v11371_v13  ;;  %v477_v5 = vshrl.u32 %v255_v54, 16 }
  0x52   : > { %v436_v56 = vrot.slane %v435_v45, 4 }
  0x56   : > { %839 = vmatmul.bf16.gmra.mxu0 %v743_v61  ;;  %879 = vmatmul.bf16.gmra.mxu2 %v751_v62  ;;  %v11309_v61 = vld [vmem:[%s11856_s6 + $0x24] sm:$0xff]  ;;  %v412_v62 = vrot.slane %v411_v51, 4  ;;  %v11318_v51 = vld [vmem:[%s11856_s6 + $0x90] sm:$0xff] }
  0x57   : > { %1112 = vmatmul.bf16.gmra.mxu3 %v11316_v6  ;;  %v12050_v6 = vld [vmem:[%s11856_s6 + $0x40] sm:$0xf] }
  0x58   : > { %1072 = vmatmul.bf16.gmra.mxu1 %v11308_v8  ;;  %v267_v8 = vld [vmem:[%s11856_s6 + $0x9c] sm:$0xf]  ;;  %v417_v12 = vsel %vm11888_vm2, %v412_v62, %v416_v38  ;;  %v438_v19 = vshll.u32 %v12050_v6, 16  ;;  %v442_v20 = vshrl.u32 %v12050_v6, 16  ;;  %v632_v38 = vrot.slane %v630_v23, 5 }
  0x59   : > { %v621_v21 = vshrl.u32 %v267_v8, 16  ;;  %v624_v22 = vshll.u32 %v267_v8, 16  ;;  %v717_v25 = vunpack.c.l.b16 %v417_v12  ;;  %v11363_v8 = vld [vmem:[%s15457_s1 + $0xc8] sm:$0xff]  ;;  %v12105_v23 = vld [vmem:[%s11856_s6 + $0x50] sm:$0x1] }
  0x5a   : > { %v440_v32 = vrot.slane %v438_v19, 5  ;;  %v444_v34 = vrot.slane %v442_v20, 4  ;;  %v637_v49 = vor.u32 %v636_v39, %v632_v38  ;;  %1756 = vmatpush.bf16.msrb.mxu3 %v11363_v8  ;;  %v455_v19 = vrot.slane %v453_v0, 4 }
  0x5b   : > { %v623_v36 = vrot.slane %v621_v21, 4  ;;  %v626_v37 = vrot.slane %v624_v22, 5  ;;  %v745_v43 = vpack.c.b16 %v718_v26, %v717_v25  ;;  %v458_v20 = vrot.slane %v456_v2, 5 }
  0x5c   : > { %v445_v47 = vor.u32 %v444_v34, %v440_v32  ;;  %v638_v62 = vrot.slane %v637_v49, 4  ;;  %v441_v15 = vsel %vm11888_vm2, %v436_v56, %v440_v32  ;;  %v464_v21 = vrot.slane %v462_v3, 5  ;;  %v256_v56 = vld [vmem:[%s11856_s6 + $0x58] sm:$0xf]  ;;  %v11383_v3 = vld [vmem:[%s15457_s1 + $0x168] sm:$0xff] }
  0x5d   : > { %v627_v48 = vor.u32 %v626_v37, %v623_v36  ;;  %v468_v22 = vrot.slane %v466_v4, 4  ;;  %v719_v30 = vunpack.c.l.b16 %v441_v15  ;;  %v459_v36 = vor.u32 %v458_v20, %v455_v19  ;;  %v11370_v4 = vld [vmem:[%s15457_s1 + $0x100] sm:$0xff] }
  0x5e   : > { %v643_v18 = vsel %vm11888_vm2, %v638_v62, %v642_v63  ;;  %v472_v37 = vshll.u32 %v12105_v23, 16  ;;  %v480_v8 = vshll.u32 %v255_v54, 16  ;;  %2439 = vmatpush.bf16.msrb.mxu0 %v11370_v4  ;;  %v11382_v19 = vld [vmem:[%s15457_s1 + $0x160] sm:$0xff]  ;;  %v479_v20 = vrot.slane %v477_v5, 4  ;;  %v11409_v54 = vld [vmem:[%s15457_s1 + $0x1b8] sm:$0xff] }
  0x5f   : > { %v736_v34 = vunpack.c.l.b16 %v643_v18  ;;  %v11378_v5 = vld [vmem:[%s15457_s1 + $0x140] sm:$0xff] }
  0x60   : > { %v474_v49 = vrot.slane %v472_v37, 5 }
  0x66   : > { %844 = vmatmul.bf16.gmra.mxu0 %v744_v58  ;;  %884 = vmatmul.bf16.gmra.mxu2 %v752_v59  ;;  %v269_v58 = vld [vmem:[%s11856_s6 + $0xa8] sm:$0xf]  ;;  %v270_v59 = vld [vmem:[%s11856_s6 + $0xac] sm:$0xf] }
  0x67   : > { %1117 = vmatmul.bf16.gmra.mxu3 %v11317_v60  ;;  %v446_v60 = vrot.slane %v445_v47, 4  ;;  %v645_v9 = vshrl.u32 %v269_v58, 16  ;;  %v648_v10 = vshll.u32 %v269_v58, 16  ;;  %v654_v11 = vshll.u32 %v270_v59, 16  ;;  %v11311_v47 = vld [vmem:[%s11856_s6 + $0x3c] sm:$0xff]  ;;  %v11384_v58 = vld [vmem:[%s15457_s1 + $0x170] sm:$0xff] }
  0x68   : > { %1077 = vmatmul.bf16.gmra.mxu1 %v11309_v61  ;;  %v628_v61 = vrot.slane %v627_v48, 4  ;;  %v658_v12 = vshrl.u32 %v270_v59, 16  ;;  %v460_v48 = vrot.slane %v459_v36, 4  ;;  %v272_v59 = vld [vmem:[%s11856_s6 + $0xb8] sm:$0xf] }
  0x69   : > { %v451_v16 = vsel %vm11888_vm2, %v446_v60, %v450_v57  ;;  %v647_v24 = vrot.slane %v645_v9, 4  ;;  %v650_v25 = vrot.slane %v648_v10, 5  ;;  %v656_v26 = vrot.slane %v654_v11, 5  ;;  %v271_v57 = vld [vmem:[%s11856_s6 + $0xb4] sm:$0xf]  ;;  %v11338_v60 = vld [vmem:[%s15457_s1 + $0x80] sm:$0xff]  ;;  %2859 = vmatpush.bf16.msrb.mxu1 %v11384_v58 }
  0x6a   : > { %v633_v17 = vsel %vm11888_vm2, %v628_v61, %v632_v38  ;;  %v660_v28 = vrot.slane %v658_v12, 4  ;;  %v720_v31 = vunpack.c.l.b16 %v451_v16  ;;  %v469_v38 = vor.u32 %v468_v22, %v464_v21  ;;  %v11362_v61 = vld [vmem:[%s15457_s1 + $0xc0] sm:$0xff]  ;;  %1442 = vmatpush.bf16.msrb.mxu2 %v11338_v60  ;;  %v12162_v58 = vld [vmem:[%s11856_s6 + $0x10] sm:$0xf] }
  0x6b   : > { %v735_v32 = vunpack.c.l.b16 %v633_v17  ;;  %v651_v39 = vor.u32 %v650_v25, %v647_v24  ;;  %v465_v62 = vsel %vm11888_vm2, %v460_v48, %v464_v21  ;;  %v486_v9 = vshll.u32 %v256_v56, 16  ;;  %1757 = vmatpush.bf16.msrb.mxu3 %v11362_v61  ;;  %v12142_v25 = vld [vmem:[%s11856_s6 + $0x5c] sm:$0x1] }
  0x6c   : > { %v661_v42 = vor.u32 %v660_v28, %v656_v26  ;;  %v470_v50 = vrot.slane %v469_v38, 4  ;;  %v490_v10 = vshrl.u32 %v256_v56, 16  ;;  %v669_v11 = vshrl.u32 %v271_v57, 16  ;;  %v11417_v56 = vld [vmem:[%s15457_s1 + $0x1f8] sm:$0xff] }
  0x6d   : > { %v754_v45 = vpack.c.b16 %v736_v34, %v735_v32  ;;  %v672_v12 = vshll.u32 %v271_v57, 16  ;;  %v678_v13 = vshll.u32 %v272_v59, 16  ;;  %v682_v14 = vshrl.u32 %v272_v59, 16  ;;  %2860 = vmatpush.bf16.msrb.mxu1 %v11383_v3  ;;  %v10229_v57 = vld [vmem:[%s11856_s6 + $0xc] sm:$0xf] }
  0x6e   : > { %v475_v63 = vsel %vm11888_vm2, %v470_v50, %v474_v49  ;;  %v721_v15 = vunpack.c.l.b16 %v465_v62  ;;  %v482_v21 = vrot.slane %v480_v8, 5  ;;  %v488_v22 = vrot.slane %v486_v9, 5  ;;  %3173 = vmatpush.bf16.msra.mxu2 %v11409_v54  ;;  %v11425_v8 = vld [vmem:[%s15457_s1 + $0x238] sm:$0xff] }
  0x6f   : > { %v722_v16 = vunpack.c.l.b16 %v475_v63  ;;  %v492_v24 = vrot.slane %v490_v10, 4  ;;  %v674_v28 = vrot.slane %v672_v12, 5  ;;  %v496_v37 = vshll.u32 %v12142_v25, 16  ;;  %3855 = vmatpush.bf16.msra.mxu3 %v11417_v56  ;;  %v11379_v63 = vld [vmem:[%s15457_s1 + $0x148] sm:$0xff]  ;;  %4281 = vmatpush.bf16.msra.mxu0 %v11425_v8 }
  0x70   : > { %v483_v36 = vor.u32 %v482_v21, %v479_v20  ;;  %v1929_v3 = vshll.u32 %v12162_v58, 16  ;;  %v1933_v4 = vshrl.u32 %v12162_v58, 16  ;;  %v11621_v20 = vld [vmem:[%s11856_s6 + $0x4] sm:$0xf] }
  0x71   : > { %2861 = vmatpush.bf16.msrb.mxu1 %v11382_v19  ;;  %v747_v32 = vpack.c.b16 %v722_v16, %v721_v15  ;;  %v493_v38 = vor.u32 %v492_v24, %v488_v22  ;;  %v498_v48 = vrot.slane %v496_v37, 5  ;;  %v1196_v21 = vrot.slane %v11621_v20, 5  ;;  %v11313_v24 = vld [vmem:[%s11856_s6 + $0x54] sm:$0xff]  ;;  %v11622_v37 = vld [vmem:[%s11856_s6 + $0x8] sm:$0x1] }
  0x72   : > { %v1931_v15 = vrot.slane %v1929_v3, 5  ;;  %v1935_v16 = vrot.slane %v1933_v4, 4 }
  0x73   : > { %v494_v49 = vrot.slane %v493_v38, 4  ;;  %v1199_v38 = vrot.slane %v11622_v37, 5  ;;  %v10235_v37 = vld [vmem:[%s11856_s6 + $0x24] sm:$0xf] }
  0x75   : > { %v499_v60 = vsel %vm11888_vm2, %v494_v49, %v498_v48  ;;  %v12197_v49 = vld [vmem:[%s11856_s6 + $0x1c] sm:$0xf] }
  0x76   : > { %849 = vmatmul.bf16.gmra.mxu0 %v745_v43  ;;  %889 = vmatmul.bf16.gmra.mxu2 %v753_v44  ;;  %v664_v43 = vshll.u32 %v303_v29, 16  ;;  %v746_v44 = vpack.c.b16 %v720_v31, %v719_v30  ;;  %v680_v29 = vrot.slane %v678_v13, 5  ;;  %v684_v30 = vrot.slane %v682_v14, 4  ;;  %v304_v31 = vld [vmem:[%s11856_s6 + $0xbc] sm:$0x1] }
  0x77   : > { %1122 = vmatmul.bf16.gmra.mxu3 %v11318_v51  ;;  %v652_v51 = vrot.slane %v651_v39, 4  ;;  %v724_v10 = vunpack.c.l.b16 %v499_v60 }
  0x78   : > { %1082 = vmatmul.bf16.gmra.mxu1 %v11310_v52  ;;  %v662_v52 = vrot.slane %v661_v42, 4  ;;  %v666_v53 = vrot.slane %v664_v43, 5  ;;  %v685_v42 = vor.u32 %v684_v30, %v680_v29  ;;  %v688_v43 = vshll.u32 %v304_v31, 16 }
  0x79   : > { %v657_v0 = vsel %vm11888_vm2, %v652_v51, %v656_v26  ;;  %v671_v26 = vrot.slane %v669_v11, 4  ;;  %v2619_v31 = vrot.slane %v12162_v58, 5  ;;  %v1957_v58 = vshrl.u32 %v12197_v49, 16 }
  0x7a   : > { %v667_v2 = vsel %vm11888_vm2, %v662_v52, %v666_v53  ;;  %v737_v17 = vunpack.c.l.b16 %v657_v0  ;;  %v686_v51 = vrot.slane %v685_v42, 4  ;;  %v690_v52 = vrot.slane %v688_v43, 5  ;;  %v11380_v53 = vld [vmem:[%s15457_s1 + $0x150] sm:$0xff] }
  0x7b   : > { %v738_v18 = vunpack.c.l.b16 %v667_v2  ;;  %v675_v39 = vor.u32 %v674_v28, %v671_v26  ;;  %v1920_v0 = vshrl.u32 %v10229_v57, 16  ;;  %v1923_v2 = vshll.u32 %v10229_v57, 16  ;;  %v1143_v26 = vld [vmem:[%s11856_s6] sm:$0xe] }
  0x7c   : > { %v691_v62 = vsel %vm11888_vm2, %v686_v51, %v690_v52  ;;  %v1953_v57 = vshll.u32 %v12197_v49, 16 }
  0x7d   : > { %v755_v34 = vpack.c.b16 %v738_v18, %v737_v17  ;;  %v676_v50 = vrot.slane %v675_v39, 4  ;;  %v740_v12 = vunpack.c.l.b16 %v691_v62  ;;  %v1922_v13 = vrot.slane %v1920_v0, 4  ;;  %v10231_v17 = vld [vmem:[%s11856_s6 + $0x14] sm:$0x1]  ;;  %v11276_v39 = vld [vmem:[%s11856_s6 + $0x68] sm:$0x1] }
  0x7e   : > { %v1925_v14 = vrot.slane %v1923_v2, 5  ;;  %v1939_v30 = vshll.u32 %v10231_v17, 16  ;;  %v2622_v48 = vrot.slane %v10231_v17, 5  ;;  %v1955_v8 = vrot.slane %v1953_v57, 5 }
  0x7f   : > { %v681_v61 = vsel %vm11888_vm2, %v676_v50, %v680_v29  ;;  %v1936_v29 = vor.u32 %v1935_v16, %v1931_v15 }
  0x80   : > { %v739_v11 = vunpack.c.l.b16 %v681_v61  ;;  %v1926_v28 = vor.u32 %v1925_v14, %v1922_v13  ;;  %v1144_v13 = vld [vmem:[%s11856_s6 + $0xc] sm:$0xe]  ;;  %v11623_v14 = vld [vmem:[%s11856_s6 + $0x10] sm:$0xf] }
  0x81   : > { %v1937_v43 = vrot.slane %v1936_v29, 4  ;;  %v10326_v29 = vld [vmem:[%s11856_s6 + $0x18] sm:$0xe] }
  0x82   : > { %v756_v19 = vpack.c.b16 %v740_v12, %v739_v11  ;;  %v1927_v42 = vrot.slane %v1926_v28, 4  ;;  %v10022_v28 = vrot.slane %v1144_v13, 9  ;;  %v10237_v13 = vld [vmem:[%s11856_s6 + $0x2c] sm:$0x1] }
  0x84   : > { %v1932_v54 = vsel %vm11888_vm2, %v1927_v42, %v1931_v15  ;;  %v1203_v15 = vrot.slane %v11623_v14, 5  ;;  %v11416_v42 = vld [vmem:[%s15457_s1 + $0x1f0] sm:$0xff] }
  0x85   : > { %3856 = vmatpush.bf16.msra.mxu3 %v11416_v42 }
  0x86   : > { %854 = vmatmul.bf16.gmra.mxu0 %v746_v44  ;;  %894 = vmatmul.bf16.gmra.mxu2 %v754_v45  ;;  %v11381_v44 = vld [vmem:[%s15457_s1 + $0x158] sm:$0xff]  ;;  %v11320_v45 = vld [vmem:[%s11856_s6 + $0xa8] sm:$0xff] }
  0x87   : > { %1127 = vmatmul.bf16.gmra.mxu3 %v11319_v46  ;;  %v11312_v46 = vld [vmem:[%s11856_s6 + $0x48] sm:$0xff]  ;;  %2862 = vmatpush.bf16.msrb.mxu1 %v11381_v44  ;;  %v1941_v44 = vrot.slane %v1939_v30, 5  ;;  %v1205_v30 = vrot.slane %v1203_v15, 4 }
  0x88   : > { %1087 = vmatmul.bf16.gmra.mxu1 %v11311_v47  ;;  %v484_v47 = vrot.slane %v483_v36, 4  ;;  %v1198_v36 = vrot.slane %v1196_v21, 4 }
  0x89   : > { %v1942_v56 = vsel %vm11888_vm2, %v1937_v43, %v1941_v44  ;;  %v10342_v43 = vrot.slane %v10326_v29, 9 }
  0x8a   : > { %v489_v59 = vsel %vm11888_vm2, %v484_v47, %v488_v22  ;;  %v11321_v22 = vld [vmem:[%s11856_s6 + $0xb4] sm:$0xff]  ;;  %v2621_v47 = vrot.slane %v2619_v31, 4  ;;  %v1200_v51 = vsel %vm12191_vm5, %v1198_v36, %v1199_v38  ;;  %v2321_v0 = vunpack.c.l.b16 %v1942_v56 }
  0x8b   : > { %2863 = vmatpush.bf16.msrb.mxu1 %v11380_v53  ;;  %v723_v9 = vunpack.c.l.b16 %v489_v59  ;;  %v1324_v62 = vunpack.c.l.b16 %v1200_v51  ;;  %v11408_v38 = vld [vmem:[%s15457_s1 + $0x1b0] sm:$0xff]  ;;  %v1968_v51 = vshrl.u32 %v10235_v37, 16 }
  0x8c   : > { %v2623_v60 = vsel %vm12191_vm5, %v2621_v47, %v2622_v48  ;;  %v1204_v47 = vsel %vm12191_vm5, %v10022_v28, %v1203_v15  ;;  %3174 = vmatpush.bf16.msra.mxu2 %v11408_v38  ;;  %v1213_v38 = vrot.slane %v11982_v1, 5 }
  0x8d   : > { %v748_v18 = vpack.c.b16 %v724_v10, %v723_v9  ;;  %v1959_v9 = vrot.slane %v1957_v58, 4  ;;  %v10234_v10 = vld [vmem:[%s11856_s6 + $0x20] sm:$0x1] }
  0x8f   : > { %2864 = vmatpush.bf16.msrb.mxu1 %v11379_v63  ;;  %v2320_v63 = vunpack.c.l.b16 %v1932_v54  ;;  %v1960_v20 = vor.u32 %v1959_v9, %v1955_v8 }
  0x91   : > { %v2352_v12 = vpack.c.b16 %v2321_v0, %v2320_v63  ;;  %v1325_v63 = vunpack.c.l.b16 %v1204_v47 }
  0x93   : > { %2865 = vmatpush.bf16.msrb.mxu1 %v11378_v5  ;;  %v2747_v5 = vunpack.c.l.b16 %v2623_v60 }
  0x96   : > { %859 = vmatmul.bf16.gmra.mxu0 %v747_v32  ;;  %899 = vmatmul.bf16.gmra.mxu2 %v755_v34  ;;  %v10325_v32 = vld [vmem:[%s11856_s6 + $0xc] sm:$0xe]  ;;  %v10021_v34 = vrot.slane %v1143_v26, 9 }
  0x97   : > { %1132 = vmatmul.bf16.gmra.mxu3 %v11320_v45  ;;  %v10232_v45 = vld [vmem:[%s11856_s6 + $0x18] sm:$0xf] }
  0x98   : > { %1092 = vmatmul.bf16.gmra.mxu1 %v11312_v46  ;;  %v10341_v46 = vrot.slane %v10325_v32, 9  ;;  %v1197_v50 = vsel %vm12191_vm5, %v10021_v34, %v1196_v21  ;;  %v1944_v52 = vshrl.u32 %v10232_v45, 16  ;;  %v1947_v53 = vshll.u32 %v10232_v45, 16 }
  0x99   : > { %v1323_v61 = vunpack.c.l.b16 %v1197_v50  ;;  %v1963_v21 = vshll.u32 %v10234_v10, 16  ;;  %v1961_v34 = vrot.slane %v1960_v20, 4  ;;  %v2629_v45 = vrot.slane %v10234_v10, 5 }
  0x9a   : > { %v2620_v59 = vsel %vm12191_vm5, %v10341_v46, %v2619_v31  ;;  %v1946_v2 = vrot.slane %v1944_v52, 4  ;;  %v1949_v3 = vrot.slane %v1947_v53, 5  ;;  %v1206_v31 = vrot.slane %v11918_v7, 5  ;;  %v12230_v46 = vld [vmem:[%s11856_s6 + $0x28] sm:$0xf] }
  0x9b   : > { %v2746_v4 = vunpack.c.l.b16 %v2620_v59  ;;  %v1355_v11 = vpack.c.b16 %v1324_v62, %v1323_v61  ;;  %v1965_v36 = vrot.slane %v1963_v21, 5  ;;  %v1971_v52 = vshll.u32 %v10235_v37, 16  ;;  %v10327_v37 = vld [vmem:[%s11856_s6 + $0x24] sm:$0xe] }
  0x9c   : > { %v1950_v16 = vor.u32 %v1949_v3, %v1946_v2  ;;  %v1977_v57 = vshll.u32 %v12230_v46, 16  ;;  %v1981_v58 = vshrl.u32 %v12230_v46, 16  ;;  %v11424_v2 = vld [vmem:[%s15457_s1 + $0x230] sm:$0xff] }
  0x9d   : > { %v1966_v56 = vsel %vm11888_vm2, %v1961_v34, %v1965_v36  ;;  %4282 = vmatpush.bf16.msra.mxu0 %v11424_v2 }
  0x9e   : > { %v1951_v32 = vrot.slane %v1950_v16, 4 }
  0xa0   : > { %v1956_v50 = vsel %vm11888_vm2, %v1951_v32, %v1955_v8  ;;  %v1973_v8 = vrot.slane %v1971_v52, 5  ;;  %v2633_v32 = vrot.slane %v12230_v46, 5  ;;  %v12266_v46 = vld [vmem:[%s11856_s6 + $0x34] sm:$0xf] }
  0xa1   : > { %v2322_v3 = vunpack.c.l.b16 %v1956_v50 }
  0xa2   : > { %v2635_v47 = vrot.slane %v2633_v32, 4 }
  0xa6   : > { %864 = vmatmul.bf16.gmra.mxu0 %v748_v18  ;;  %904 = vmatmul.bf16.gmra.mxu2 %v756_v19  ;;  %v11346_v18 = vld [vmem:[%s11856_s6 + $0xc] sm:$0xff]  ;;  %v2778_v19 = vpack.c.b16 %v2747_v5, %v2746_v4  ;;  %v2323_v4 = vunpack.c.l.b16 %v1966_v56  ;;  %v1970_v5 = vrot.slane %v1968_v51, 4 }
  0xa7   : > { %1137 = vmatmul.bf16.gmra.mxu3 %v11321_v22 }
  0xa8   : > { %1097 = vmatmul.bf16.gmra.mxu1 %v11313_v24  ;;  %v2626_v24 = vrot.slane %v12197_v49, 5  ;;  %v1207_v49 = vsel %vm12191_vm5, %v1205_v30, %v1206_v31  ;;  %v1974_v20 = vor.u32 %v1973_v8, %v1970_v5  ;;  %v1987_v30 = vshll.u32 %v10237_v13, 16 }
  0xa9   : > { %v1326_v0 = vunpack.c.l.b16 %v1207_v49 }
  0xaa   : > { %v2628_v44 = vrot.slane %v2626_v24, 4  ;;  %v2627_v60 = vsel %vm12191_vm5, %v10342_v43, %v2626_v24  ;;  %v11347_v24 = vld [vmem:[%s11856_s6 + $0x18] sm:$0xff]  ;;  %v1975_v42 = vrot.slane %v1974_v20, 4 }
  0xab   : > { %v2748_v9 = vunpack.c.l.b16 %v2627_v60  ;;  %v1356_v16 = vpack.c.b16 %v1326_v0, %v1325_v63  ;;  %v2001_v60 = vshll.u32 %v12266_v46, 16 }
  0xac   : > { %v2630_v61 = vsel %vm12191_vm5, %v2628_v44, %v2629_v45  ;;  %v1989_v44 = vrot.slane %v1987_v30, 5  ;;  %v10238_v45 = vld [vmem:[%s11856_s6 + $0x30] sm:$0xf] }
  0xad   : > { %v2749_v10 = vunpack.c.l.b16 %v2630_v61  ;;  %v1995_v56 = vshll.u32 %v10238_v45, 16  ;;  %v2005_v61 = vshrl.u32 %v12266_v46, 16 }
  0xaf   : > { %v2779_v28 = vpack.c.b16 %v2749_v10, %v2748_v9 }
  0xb3   : > { %v830_v17 = vpop.f32.mrf.mxu0 }
  0xb5   : > { %v1063_v22 = vpop.f32.mrf.mxu1 }
  0xb6   : > { %v12218_v26 = vadd.f32 %v1063_v22, %v830_v17  ;;  %1443 = vmatmul.bf16.vlgmr.msrb.gmra.mxu2 %v1355_v11  ;;  %2440 = vmatmul.bf16.vlgmr.msrb.gmra.mxu0 %v2352_v12  ;;  %v1979_v11 = vrot.slane %v1977_v57, 5  ;;  %v1983_v12 = vrot.slane %v1981_v58, 4  ;;  %v2353_v17 = vpack.c.b16 %v2323_v4, %v2322_v3 }
  0xb7   : > { %1758 = vmatmul.bf16.vlgmr.msrb.gmra.mxu3 %v11346_v18  ;;  %v1145_v18 = vld [vmem:[%s11856_s6 + $0x18] sm:$0xe] }
  0xb8   : > { %2866 = vmatmul.bf16.vlgmr.msrb.gmra.mxu1 %v2778_v19  ;;  %v1210_v19 = vrot.slane %v11953_v33, 5  ;;  %v1984_v29 = vor.u32 %v1983_v12, %v1979_v11  ;;  %v10023_v36 = vrot.slane %v1145_v18, 9  ;;  %v1980_v1 = vsel %vm11888_vm2, %v1975_v42, %v1979_v11 }
  0xb9   : > { %v870_v7 = vpop.f32.mrf.mxu2  ;;  %v2324_v8 = vunpack.c.l.b16 %v1980_v1  ;;  %v1997_v11 = vrot.slane %v1995_v56, 5 }
  0xba   : > { %v1103_v48 = vpop.f32.mrf.mxu3  ;;  %v1212_v33 = vrot.slane %v1210_v19, 4  ;;  %v1985_v43 = vrot.slane %v1984_v29, 4  ;;  %v1211_v50 = vsel %vm12191_vm5, %v10023_v36, %v1210_v19 }
  0xbb   : > { %v12238_v53 = vadd.f32 %v1103_v48, %v870_v7  ;;  %v832_v54 = vpop.f32.mrf.mxu0  ;;  %v10343_v7 = vrot.slane %v10327_v37, 9  ;;  %v2636_v48 = vrot.slane %v10237_v13, 5  ;;  %v1327_v4 = vunpack.c.l.b16 %v1211_v50  ;;  %v11415_v50 = vld [vmem:[%s15457_s1 + $0x1e8] sm:$0xff] }
  0xbc   : > { %v1214_v52 = vsel %vm12191_vm5, %v1212_v33, %v1213_v38  ;;  %v2640_v38 = vrot.slane %v12266_v46, 5  ;;  %v11407_v46 = vld [vmem:[%s15457_s1 + $0x1a8] sm:$0xff]  ;;  %3857 = vmatpush.bf16.msra.mxu3 %v11415_v50 }
  0xbd   : > { %v1065_v59 = vpop.f32.mrf.mxu1  ;;  %v2634_v0 = vsel %vm12191_vm5, %v10343_v7, %v2633_v32  ;;  %v2637_v2 = vsel %vm12191_vm5, %v2635_v47, %v2636_v48  ;;  %v1328_v5 = vunpack.c.l.b16 %v1214_v52  ;;  %3175 = vmatpush.bf16.msra.mxu2 %v11407_v46 }
  0xbe   : > { %v12248_v62 = vadd.f32 %v1065_v59, %v832_v54  ;;  %v1992_v54 = vshrl.u32 %v10238_v45, 16  ;;  %v1990_v59 = vsel %vm11888_vm2, %v1985_v43, %v1989_v44  ;;  %v2750_v12 = vunpack.c.l.b16 %v2634_v0  ;;  %v10328_v44 = vld [vmem:[%s11856_s6 + $0x30] sm:$0xe] }
  0xbf   : > { %v2325_v9 = vunpack.c.l.b16 %v1990_v59  ;;  %v2751_v13 = vunpack.c.l.b16 %v2637_v2  ;;  %v1357_v19 = vpack.c.b16 %v1328_v5, %v1327_v4  ;;  %v1220_v45 = vrot.slane %v12014_v55, 5 }
  0xc0   : > { %v1994_v10 = vrot.slane %v1992_v54, 4  ;;  %v2642_v52 = vrot.slane %v2640_v38, 4  ;;  %v12305_v54 = vld [vmem:[%s11856_s6 + $0x40] sm:$0xf] }
  0xc1   : > { %v872_v14 = vpop.f32.mrf.mxu2  ;;  %v2354_v20 = vpack.c.b16 %v2325_v9, %v2324_v8  ;;  %v2780_v32 = vpack.c.b16 %v2751_v13, %v2750_v12  ;;  %v2025_v5 = vshll.u32 %v12305_v54, 16  ;;  %v2029_v8 = vshrl.u32 %v12305_v54, 16 }
  0xc2   : > { %v1105_v15 = vpop.f32.mrf.mxu3  ;;  %v2647_v50 = vrot.slane %v12305_v54, 5  ;;  %v12341_v54 = vld [vmem:[%s11856_s6 + $0x4c] sm:$0xf] }
  0xc3   : > { %v12256_v21 = vadd.f32 %v1105_v15, %v872_v14  ;;  %v835_v22 = vpop.f32.mrf.mxu0  ;;  %v2003_v14 = vrot.slane %v2001_v60, 5  ;;  %v2007_v15 = vrot.slane %v2005_v61, 4 }
  0xc5   : > { %v1068_v31 = vpop.f32.mrf.mxu1  ;;  %v2008_v36 = vor.u32 %v2007_v15, %v2003_v14  ;;  %v11423_v15 = vld [vmem:[%s15457_s1 + $0x228] sm:$0xff] }
  0xc6   : > { %v12260_v34 = vadd.f32 %v1068_v31, %v835_v22  ;;  %1448 = vmatmul.bf16.gmra.mxu2 %v1356_v16  ;;  %2445 = vmatmul.bf16.gmra.mxu0 %v2353_v17  ;;  %v10240_v16 = vld [vmem:[%s11856_s6 + $0x38] sm:$0x1]  ;;  %v1146_v22 = vld [vmem:[%s11856_s6 + $0x24] sm:$0xe] }
  0xc7   : > { %1763 = vmatmul.bf16.gmra.mxu3 %v11347_v24  ;;  %v1217_v24 = vrot.slane %v11990_v27, 5  ;;  %v11348_v31 = vld [vmem:[%s11856_s6 + $0x24] sm:$0xff]  ;;  %v2011_v37 = vshll.u32 %v10240_v16, 16  ;;  %v10024_v43 = vrot.slane %v1146_v22, 9  ;;  %v2009_v47 = vrot.slane %v2008_v36, 4  ;;  %4283 = vmatpush.bf16.msra.mxu0 %v11423_v15 }
  0xc8   : > { %2871 = vmatmul.bf16.gmra.mxu1 %v2779_v28  ;;  %v1998_v28 = vor.u32 %v1997_v11, %v1994_v10  ;;  %v2643_v1 = vrot.slane %v10240_v16, 5 }
  0xc9   : > { %v875_v49 = vpop.f32.mrf.mxu2  ;;  %v1219_v27 = vrot.slane %v1217_v24, 4  ;;  %v2013_v48 = vrot.slane %v2011_v37, 5  ;;  %v1218_v56 = vsel %vm12191_vm5, %v10024_v43, %v1217_v24  ;;  %v2027_v24 = vrot.slane %v2025_v5, 5 }
  0xca   : > { %v1108_v51 = vpop.f32.mrf.mxu3  ;;  %v1999_v7 = vrot.slane %v1998_v28, 4  ;;  %v2644_v11 = vsel %vm12191_vm5, %v2642_v52, %v2643_v1  ;;  %v1329_v13 = vunpack.c.l.b16 %v1218_v56  ;;  %v2031_v28 = vrot.slane %v2029_v8, 4  ;;  %v10329_v1 = vld [vmem:[%s11856_s6 + $0x3c] sm:$0xe] }
  0xcb   : > { %v12274_v57 = vadd.f32 %v1108_v51, %v875_v49  ;;  %v837_v58 = vpop.f32.mrf.mxu0  ;;  %v10241_v49 = vld [vmem:[%s11856_s6 + $0x3c] sm:$0xf]  ;;  %v10344_v51 = vrot.slane %v10328_v44, 9  ;;  %v1221_v59 = vsel %vm12191_vm5, %v1219_v27, %v1220_v45  ;;  %v2014_v4 = vsel %vm11888_vm2, %v2009_v47, %v2013_v48 }
  0xcc   : > { %v2004_v60 = vsel %vm11888_vm2, %v1999_v7, %v2003_v14  ;;  %v2016_v61 = vshrl.u32 %v10241_v49, 16  ;;  %v1330_v14 = vunpack.c.l.b16 %v1221_v59  ;;  %v2753_v22 = vunpack.c.l.b16 %v2644_v11  ;;  %v11349_v7 = vld [vmem:[%s11856_s6 + $0x30] sm:$0xff] }
  0xcd   : > { %v1070_v63 = vpop.f32.mrf.mxu1  ;;  %v2641_v10 = vsel %vm12191_vm5, %v10344_v51, %v2640_v38  ;;  %v2326_v16 = vunpack.c.l.b16 %v2004_v60  ;;  %v11624_v38 = vld [vmem:[%s11856_s6 + $0x34] sm:$0xf]  ;;  %v2032_v48 = vor.u32 %v2031_v28, %v2027_v24  ;;  %v1227_v56 = vrot.slane %v12042_v41, 5 }
  0xce   : > { %v12284_v3 = vadd.f32 %v1070_v63, %v837_v58  ;;  %v2019_v63 = vshll.u32 %v10241_v49, 16  ;;  %v1358_v36 = vpack.c.b16 %v1330_v14, %v1329_v13  ;;  %v1224_v43 = vrot.slane %v11624_v38, 5 }
  0xcf   : > { %v2033_v59 = vrot.slane %v2032_v48, 4 }
  0xd1   : > { %v877_v17 = vpop.f32.mrf.mxu2 }
  0xd2   : > { %v1110_v18 = vpop.f32.mrf.mxu3 }
  0xd3   : > { %v12289_v29 = vadd.f32 %v1110_v18, %v877_v17  ;;  %v840_v30 = vpop.f32.mrf.mxu0  ;;  %v2327_v17 = vunpack.c.l.b16 %v2014_v4  ;;  %v2018_v18 = vrot.slane %v2016_v61, 4  ;;  %v10244_v61 = vld [vmem:[%s11856_s6 + $0x48] sm:$0xf] }
  0xd4   : > { %v2040_v11 = vshrl.u32 %v10244_v61, 16  ;;  %v2043_v13 = vshll.u32 %v10244_v61, 16 }
  0xd5   : > { %v1073_v33 = vpop.f32.mrf.mxu1  ;;  %v2355_v37 = vpack.c.b16 %v2327_v17, %v2326_v16  ;;  %v2049_v17 = vshll.u32 %v12341_v54, 16 }
  0xd6   : > { %v12293_v42 = vadd.f32 %v1073_v33, %v840_v30  ;;  %1453 = vmatmul.bf16.gmra.mxu2 %v1357_v19  ;;  %2450 = vmatmul.bf16.gmra.mxu0 %v2354_v20  ;;  %v2021_v19 = vrot.slane %v2019_v63, 5  ;;  %v2752_v20 = vunpack.c.l.b16 %v2641_v10  ;;  %v10243_v30 = vld [vmem:[%s11856_s6 + $0x44] sm:$0x1]  ;;  %v1147_v33 = vld [vmem:[%s11856_s6 + $0x30] sm:$0xe]  ;;  %v10345_v63 = vrot.slane %v10329_v1, 9 }
  0xd7   : > { %1768 = vmatmul.bf16.gmra.mxu3 %v11348_v31  ;;  %v2035_v49 = vshll.u32 %v10243_v30, 16  ;;  %v10025_v52 = vrot.slane %v1147_v33, 9  ;;  %v2650_v4 = vrot.slane %v10243_v30, 5 }
  0xd8   : > { %2876 = vmatmul.bf16.gmra.mxu1 %v2780_v32  ;;  %v2022_v44 = vor.u32 %v2021_v19, %v2018_v18  ;;  %v2781_v47 = vpack.c.b16 %v2753_v22, %v2752_v20  ;;  %v2053_v18 = vshrl.u32 %v12341_v54, 16  ;;  %v2648_v20 = vsel %vm12191_vm5, %v10345_v63, %v2647_v50 }
  0xd9   : > { %v880_v55 = vpop.f32.mrf.mxu2  ;;  %v2037_v60 = vrot.slane %v2035_v49, 5  ;;  %v1225_v8 = vsel %vm12191_vm5, %v10025_v52, %v1224_v43  ;;  %v2754_v33 = vunpack.c.l.b16 %v2648_v20  ;;  %v2654_v63 = vrot.slane %v12341_v54, 5  ;;  %v11406_v54 = vld [vmem:[%s15457_s1 + $0x1a0] sm:$0xff] }
  0xda   : > { %v1113_v58 = vpop.f32.mrf.mxu3  ;;  %v1331_v28 = vunpack.c.l.b16 %v1225_v8  ;;  %v1234_v8 = vrot.slane %v12074_v35, 5  ;;  %3176 = vmatpush.bf16.msra.mxu2 %v11406_v54 }
  0xdb   : > { %v12313_v0 = vadd.f32 %v1113_v58, %v880_v55  ;;  %v842_v2 = vpop.f32.mrf.mxu0  ;;  %v1226_v55 = vrot.slane %v1224_v43, 4  ;;  %v2023_v58 = vrot.slane %v2022_v44, 4  ;;  %v2038_v16 = vsel %vm11888_vm2, %v2033_v59, %v2037_v60 }
  0xdc   : > { %v2051_v43 = vrot.slane %v2049_v17, 5  ;;  %v2055_v44 = vrot.slane %v2053_v18, 4  ;;  %v12380_v18 = vld [vmem:[%s11856_s6 + $0x58] sm:$0xf] }
  0xdd   : > { %v1075_v9 = vpop.f32.mrf.mxu1  ;;  %v1228_v10 = vsel %vm12191_vm5, %v1226_v55, %v1227_v56  ;;  %v2028_v41 = vsel %vm11888_vm2, %v2023_v58, %v2027_v24  ;;  %v11350_v56 = vld [vmem:[%s11856_s6 + $0x3c] sm:$0xff] }
  0xde   : > { %v12323_v12 = vadd.f32 %v1075_v9, %v842_v2  ;;  %v2649_v2 = vrot.slane %v2647_v50, 4  ;;  %v1332_v30 = vunpack.c.l.b16 %v1228_v10  ;;  %v1231_v50 = vrot.slane %v12050_v6, 5 }
  0xdf   : > { %v2056_v59 = vor.u32 %v2055_v44, %v2051_v43 }
  0xe0   : > { %v2651_v22 = vsel %vm12191_vm5, %v2649_v2, %v2650_v4  ;;  %v1359_v48 = vpack.c.b16 %v1332_v30, %v1331_v28  ;;  %v1233_v6 = vrot.slane %v1231_v50, 4 }
  0xe1   : > { %v882_v31 = vpop.f32.mrf.mxu2  ;;  %v2755_v38 = vunpack.c.l.b16 %v2651_v22  ;;  %v2057_v10 = vrot.slane %v2056_v59, 4 }
  0xe2   : > { %v1115_v32 = vpop.f32.mrf.mxu3  ;;  %v1235_v22 = vsel %vm12191_vm5, %v1233_v6, %v1234_v8  ;;  %v1149_v8 = vld [vmem:[%s11856_s6 + $0x48] sm:$0xe] }
  0xe3   : > { %v12331_v27 = vadd.f32 %v1115_v32, %v882_v31  ;;  %v845_v45 = vpop.f32.mrf.mxu0  ;;  %v2328_v31 = vunpack.c.l.b16 %v2028_v41  ;;  %v2329_v32 = vunpack.c.l.b16 %v2038_v16  ;;  %v2782_v58 = vpack.c.b16 %v2755_v38, %v2754_v33 }
  0xe4   : > { %v2656_v16 = vrot.slane %v2654_v63, 4  ;;  %v2073_v33 = vshll.u32 %v12380_v18, 16  ;;  %v2077_v38 = vshrl.u32 %v12380_v18, 16 }
  0xe5   : > { %v1078_v46 = vpop.f32.mrf.mxu1  ;;  %v2356_v49 = vpack.c.b16 %v2329_v32, %v2328_v31 }
  0xe6   : > { %v12335_v51 = vadd.f32 %v1078_v46, %v845_v45  ;;  %1458 = vmatmul.bf16.gmra.mxu2 %v1358_v36  ;;  %2455 = vmatmul.bf16.gmra.mxu0 %v2355_v37  ;;  %v2042_v36 = vrot.slane %v2040_v11, 4  ;;  %v2045_v37 = vrot.slane %v2043_v13, 5  ;;  %v10246_v45 = vld [vmem:[%s11856_s6 + $0x50] sm:$0x1]  ;;  %v1148_v46 = vld [vmem:[%s11856_s6 + $0x3c] sm:$0xe] }
  0xe7   : > { %1773 = vmatmul.bf16.gmra.mxu3 %v11349_v7  ;;  %v2059_v60 = vshll.u32 %v10246_v45, 16  ;;  %v10026_v4 = vrot.slane %v1148_v46, 9  ;;  %v10247_v11 = vld [vmem:[%s11856_s6 + $0x54] sm:$0xf]  ;;  %v11414_v13 = vld [vmem:[%s15457_s1 + $0x1e0] sm:$0xff]  ;;  %v2657_v17 = vrot.slane %v10246_v45, 5 }
  0xe8   : > { %2881 = vmatmul.bf16.gmra.mxu1 %v2781_v47  ;;  %v2046_v52 = vor.u32 %v2045_v37, %v2042_v36  ;;  %3858 = vmatpush.bf16.msra.mxu3 %v11414_v13  ;;  %v2064_v30 = vshrl.u32 %v10247_v11, 16  ;;  %v2067_v31 = vshll.u32 %v10247_v11, 16  ;;  %v2075_v59 = vrot.slane %v2073_v33, 5  ;;  %v11351_v13 = vld [vmem:[%s11856_s6 + $0x48] sm:$0xff] }
  0xe9   : > { %v885_v5 = vpop.f32.mrf.mxu2  ;;  %v2061_v41 = vrot.slane %v2059_v60, 5  ;;  %v2079_v60 = vrot.slane %v2077_v38, 4  ;;  %v10250_v38 = vld [vmem:[%s11856_s6 + $0x60] sm:$0xf] }
  0xea   : > { %v1118_v9 = vpop.f32.mrf.mxu3 }
  0xeb   : > { %v12349_v14 = vadd.f32 %v1118_v9, %v885_v5  ;;  %v847_v15 = vpop.f32.mrf.mxu0  ;;  %v10330_v5 = vld [vmem:[%s11856_s6 + $0x48] sm:$0xe]  ;;  %v2047_v9 = vrot.slane %v2046_v52, 4  ;;  %v2062_v37 = vsel %vm11888_vm2, %v2057_v10, %v2061_v41  ;;  %v2066_v52 = vrot.slane %v2064_v30, 4 }
  0xed   : > { %v1080_v19 = vpop.f32.mrf.mxu1  ;;  %v2052_v28 = vsel %vm11888_vm2, %v2047_v9, %v2051_v43  ;;  %v2658_v43 = vsel %vm12191_vm5, %v2656_v16, %v2657_v17  ;;  %v11625_v9 = vld [vmem:[%s11856_s6 + $0x4c] sm:$0xf]  ;;  %v2080_v16 = vor.u32 %v2079_v60, %v2075_v59 }
  0xee   : > { %v12359_v24 = vadd.f32 %v1080_v19, %v847_v15  ;;  %v10346_v15 = vrot.slane %v10330_v5, 9  ;;  %v1232_v19 = vsel %vm12191_vm5, %v10026_v4, %v1231_v50  ;;  %v2330_v46 = vunpack.c.l.b16 %v2052_v28  ;;  %v10331_v28 = vld [vmem:[%s11856_s6 + $0x54] sm:$0xe] }
  0xef   : > { %v2331_v50 = vunpack.c.l.b16 %v2062_v37  ;;  %v1238_v10 = vrot.slane %v11625_v9, 5  ;;  %v2081_v37 = vrot.slane %v2080_v16, 4 }
  0xf0   : > { %v2655_v45 = vsel %vm12191_vm5, %v10346_v15, %v2654_v63 }
  0xf1   : > { %v887_v7 = vpop.f32.mrf.mxu2  ;;  %v2357_v6 = vpack.c.b16 %v2331_v50, %v2330_v46  ;;  %v1240_v30 = vrot.slane %v1238_v10, 4  ;;  %v2088_v50 = vshrl.u32 %v10250_v38, 16 }
  0xf2   : > { %v1120_v47 = vpop.f32.mrf.mxu3 }
  0xf3   : > { %v12364_v1 = vadd.f32 %v1120_v47, %v887_v7  ;;  %v850_v55 = vpop.f32.mrf.mxu0  ;;  %v1333_v47 = vunpack.c.l.b16 %v1232_v19  ;;  %v2661_v19 = vrot.slane %v12380_v18, 5  ;;  %v12416_v18 = vld [vmem:[%s11856_s6 + $0x64] sm:$0xf] }
  0xf4   : > { %v2097_v60 = vshll.u32 %v12416_v18, 16 }
  0xf5   : > { %v1083_v61 = vpop.f32.mrf.mxu1 }
  0xf6   : > { %v12368_v2 = vadd.f32 %v1083_v61, %v850_v55  ;;  %1463 = vmatmul.bf16.gmra.mxu2 %v1359_v48  ;;  %2460 = vmatmul.bf16.gmra.mxu0 %v2356_v49  ;;  %v1334_v48 = vunpack.c.l.b16 %v1235_v22  ;;  %v11422_v49 = vld [vmem:[%s15457_s1 + $0x220] sm:$0xff]  ;;  %v2069_v55 = vrot.slane %v2067_v31, 5  ;;  %v10249_v61 = vld [vmem:[%s11856_s6 + $0x5c] sm:$0x1]  ;;  %v10027_v22 = vrot.slane %v1149_v8, 9 }
  0xf7   : > { %1778 = vmatmul.bf16.gmra.mxu3 %v11350_v56  ;;  %v2756_v56 = vunpack.c.l.b16 %v2655_v45  ;;  %4284 = vmatpush.bf16.msra.mxu0 %v11422_v49  ;;  %v2083_v17 = vshll.u32 %v10249_v61, 16  ;;  %v1241_v31 = vrot.slane %v12105_v23, 5  ;;  %v2663_v45 = vrot.slane %v2661_v19, 4 }
  0xf8   : > { %2886 = vmatmul.bf16.gmra.mxu1 %v2782_v58  ;;  %v2757_v58 = vunpack.c.l.b16 %v2658_v43  ;;  %v1360_v5 = vpack.c.b16 %v1334_v48, %v1333_v47  ;;  %v2070_v41 = vor.u32 %v2069_v55, %v2066_v52  ;;  %v2664_v43 = vrot.slane %v10249_v61, 5 }
  0xf9   : > { %v890_v35 = vpop.f32.mrf.mxu2  ;;  %v2085_v33 = vrot.slane %v2083_v17, 5  ;;  %v1239_v48 = vsel %vm12191_vm5, %v10027_v22, %v1238_v10  ;;  %v1242_v46 = vsel %vm12191_vm5, %v1240_v30, %v1241_v31  ;;  %v2091_v52 = vshll.u32 %v10250_v38, 16  ;;  %v1150_v31 = vld [vmem:[%s11856_s6 + $0x54] sm:$0xe] }
  0xfa   : > { %v1123_v20 = vpop.f32.mrf.mxu3  ;;  %v2783_v15 = vpack.c.b16 %v2757_v58, %v2756_v56  ;;  %v2101_v61 = vshrl.u32 %v12416_v18, 16  ;;  %v1336_v8 = vunpack.c.l.b16 %v1242_v46  ;;  %v2099_v16 = vrot.slane %v2097_v60, 5 }
  0xfb   : > { %v12388_v32 = vadd.f32 %v1123_v20, %v890_v35  ;;  %v852_v36 = vpop.f32.mrf.mxu0  ;;  %v2086_v58 = vsel %vm11888_vm2, %v2081_v37, %v2085_v33  ;;  %v2668_v46 = vrot.slane %v12416_v18, 5  ;;  %v11405_v18 = vld [vmem:[%s15457_s1 + $0x198] sm:$0xff] }
  0xfc   : > { %v2333_v10 = vunpack.c.l.b16 %v2086_v58  ;;  %v2103_v17 = vrot.slane %v2101_v61, 4  ;;  %v1248_v58 = vrot.slane %v12142_v25, 5  ;;  %3177 = vmatpush.bf16.msra.mxu2 %v11405_v18 }
  0xfd   : > { %v1085_v44 = vpop.f32.mrf.mxu1 }
  0xfe   : > { %v12398_v7 = vadd.f32 %v1085_v44, %v852_v36  ;;  %v2071_v36 = vrot.slane %v2070_v41, 4  ;;  %v10347_v44 = vrot.slane %v10331_v28, 9  ;;  %v2090_v41 = vrot.slane %v2088_v50, 4 }
  0xff   : > { %v10028_v50 = vrot.slane %v1150_v31, 9 }
 0x100   : > { %v2076_v23 = vsel %vm11888_vm2, %v2071_v36, %v2075_v59  ;;  %v2665_v59 = vsel %vm12191_vm5, %v2663_v45, %v2664_v43  ;;  %v11626_v36 = vld [vmem:[%s11856_s6 + $0x58] sm:$0xf] }
 0x101   : > { %v892_v63 = vpop.f32.mrf.mxu2  ;;  %v2332_v9 = vunpack.c.l.b16 %v2076_v23  ;;  %v1245_v37 = vrot.slane %v11626_v36, 5  ;;  %v11352_v45 = vld [vmem:[%s11856_s6 + $0x54] sm:$0xff] }
 0x102   : > { %v1125_v4 = vpop.f32.mrf.mxu3 }
 0x103   : > { %v12406_v11 = vadd.f32 %v1125_v4, %v892_v63  ;;  %v855_v54 = vpop.f32.mrf.mxu0  ;;  %v2662_v4 = vsel %vm12191_vm5, %v10347_v44, %v2661_v19  ;;  %v2358_v30 = vpack.c.b16 %v2333_v10, %v2332_v9  ;;  %v12455_v10 = vld [vmem:[%s11856_s6 + $0x70] sm:$0xf] }
 0x104   : > { %v2125_v31 = vshrl.u32 %v12455_v10, 16 }
 0x105   : > { %v1088_v35 = vpop.f32.mrf.mxu1 }
 0x106   : > { %v12410_v20 = vadd.f32 %v1088_v35, %v855_v54  ;;  %1468 = vmatmul.bf16.gmra.mxu2 %v1360_v5  ;;  %2465 = vmatmul.bf16.gmra.mxu0 %v2357_v6  ;;  %v1335_v6 = vunpack.c.l.b16 %v1239_v48  ;;  %v2093_v54 = vrot.slane %v2091_v52, 5  ;;  %v10252_v35 = vld [vmem:[%s11856_s6 + $0x68] sm:$0x1]  ;;  %v10332_v52 = vld [vmem:[%s11856_s6 + $0x60] sm:$0xe] }
 0x107   : > { %1783 = vmatmul.bf16.gmra.mxu3 %v11351_v13  ;;  %v2758_v13 = vunpack.c.l.b16 %v2662_v4  ;;  %v2107_v48 = vshll.u32 %v10252_v35, 16  ;;  %v10253_v4 = vld [vmem:[%s11856_s6 + $0x6c] sm:$0xf]  ;;  %v2671_v9 = vrot.slane %v10252_v35, 5 }
 0x108   : > { %2891 = vmatmul.bf16.gmra.mxu1 %v2783_v15  ;;  %v2759_v15 = vunpack.c.l.b16 %v2665_v59  ;;  %v1361_v28 = vpack.c.b16 %v1336_v8, %v1335_v6  ;;  %v2094_v33 = vor.u32 %v2093_v54, %v2090_v41  ;;  %v11413_v59 = vld [vmem:[%s15457_s1 + $0x1d8] sm:$0xff]  ;;  %v10348_v6 = vrot.slane %v10332_v52, 9 }
 0x109   : > { %v895_v47 = vpop.f32.mrf.mxu2  ;;  %v2670_v8 = vrot.slane %v2668_v46, 4  ;;  %v1246_v41 = vsel %vm12191_vm5, %v10028_v50, %v1245_v37  ;;  %3859 = vmatpush.bf16.msra.mxu3 %v11413_v59  ;;  %v1151_v59 = vld [vmem:[%s11856_s6 + $0x60] sm:$0xe] }
 0x10a   : > { %v1128_v49 = vpop.f32.mrf.mxu3  ;;  %v2784_v43 = vpack.c.b16 %v2759_v15, %v2758_v13  ;;  %v2095_v60 = vrot.slane %v2094_v33, 4 }
 0x10b   : > { %v12424_v55 = vadd.f32 %v1128_v49, %v895_v47  ;;  %v857_v56 = vpop.f32.mrf.mxu0  ;;  %v2104_v47 = vor.u32 %v2103_v17, %v2099_v16  ;;  %v2112_v17 = vshrl.u32 %v10253_v4, 16 }
 0x10c   : > { %v2100_v15 = vsel %vm11888_vm2, %v2095_v60, %v2099_v16  ;;  %v2672_v16 = vsel %vm12191_vm5, %v2670_v8, %v2671_v9  ;;  %v10255_v60 = vld [vmem:[%s11856_s6 + $0x74] sm:$0x1] }
 0x10d   : > { %v1090_v63 = vpop.f32.mrf.mxu1  ;;  %v2105_v61 = vrot.slane %v2104_v47, 4  ;;  %v2761_v52 = vunpack.c.l.b16 %v2672_v16 }
 0x10e   : > { %v12434_v5 = vadd.f32 %v1090_v63, %v857_v56  ;;  %v1247_v56 = vrot.slane %v1245_v37, 4  ;;  %v2109_v63 = vrot.slane %v2107_v48, 5  ;;  %v2669_v37 = vsel %vm12191_vm5, %v10348_v6, %v2668_v46  ;;  %v11421_v46 = vld [vmem:[%s15457_s1 + $0x218] sm:$0xff]  ;;  %v11627_v6 = vld [vmem:[%s11856_s6 + $0x64] sm:$0xf] }
 0x10f   : > { %v2114_v48 = vrot.slane %v2112_v17, 4  ;;  %v2760_v50 = vunpack.c.l.b16 %v2669_v37  ;;  %v1252_v8 = vrot.slane %v11627_v6, 5  ;;  %4285 = vmatpush.bf16.msra.mxu0 %v11421_v46  ;;  %v2131_v17 = vshll.u32 %v10255_v60, 16  ;;  %v11628_v37 = vld [vmem:[%s11856_s6 + $0x68] sm:$0x1] }
 0x110   : > { %v1249_v13 = vsel %vm12191_vm5, %v1247_v56, %v1248_v58  ;;  %v2127_v58 = vrot.slane %v2125_v31, 4  ;;  %v10333_v31 = vld [vmem:[%s11856_s6 + $0x6c] sm:$0xe]  ;;  %v1255_v16 = vrot.slane %v11628_v37, 5 }
 0x111   : > { %v897_v19 = vpop.f32.mrf.mxu2 }
 0x112   : > { %v1130_v22 = vpop.f32.mrf.mxu3 }
 0x113   : > { %v12439_v38 = vadd.f32 %v1130_v22, %v897_v19  ;;  %v860_v44 = vpop.f32.mrf.mxu0  ;;  %v2115_v19 = vshll.u32 %v10253_v4, 16 }
 0x115   : > { %v1093_v49 = vpop.f32.mrf.mxu1 }
 0x116   : > { %v12443_v23 = vadd.f32 %v1093_v49, %v860_v44  ;;  %1473 = vmatmul.bf16.gmra.mxu2 %v1361_v28  ;;  %2470 = vmatmul.bf16.gmra.mxu0 %v2358_v30  ;;  %v2110_v28 = vsel %vm11888_vm2, %v2105_v61, %v2109_v63  ;;  %v2121_v30 = vshll.u32 %v12455_v10, 16  ;;  %v1337_v44 = vunpack.c.l.b16 %v1246_v41 }
 0x117   : > { %1788 = vmatmul.bf16.gmra.mxu3 %v11352_v45  ;;  %v1338_v45 = vunpack.c.l.b16 %v1249_v13  ;;  %v2335_v47 = vunpack.c.l.b16 %v2110_v28  ;;  %v2117_v49 = vrot.slane %v2115_v19, 5  ;;  %v2785_v13 = vpack.c.b16 %v2761_v52, %v2760_v50 }
 0x118   : > { %2896 = vmatmul.bf16.gmra.mxu1 %v2784_v43  ;;  %v2334_v43 = vunpack.c.l.b16 %v2100_v15  ;;  %v2123_v56 = vrot.slane %v2121_v30, 5  ;;  %v10029_v30 = vrot.slane %v1151_v59, 9  ;;  %v2678_v50 = vrot.slane %v10255_v60, 5 }
 0x119   : > { %v900_v25 = vpop.f32.mrf.mxu2  ;;  %v1362_v4 = vpack.c.b16 %v1338_v45, %v1337_v44  ;;  %v2118_v9 = vor.u32 %v2117_v49, %v2114_v48  ;;  %v10349_v48 = vrot.slane %v10333_v31, 9 }
 0x11a   : > { %v1133_v54 = vpop.f32.mrf.mxu3  ;;  %v2359_v18 = vpack.c.b16 %v2335_v47, %v2334_v43  ;;  %v2128_v15 = vor.u32 %v2127_v58, %v2123_v56  ;;  %v2133_v43 = vrot.slane %v2131_v17, 5  ;;  %v10256_v47 = vld [vmem:[%s11856_s6 + $0x78] sm:$0xf]  ;;  %v1253_v58 = vsel %vm12191_vm5, %v10029_v30, %v1252_v8 }
 0x11b   : > { %v12463_v22 = vadd.f32 %v1133_v54, %v900_v25  ;;  %v862_v35 = vpop.f32.mrf.mxu0  ;;  %v11353_v54 = vld [vmem:[%s11856_s6 + $0x60] sm:$0xff]  ;;  %v2119_v44 = vrot.slane %v2118_v9, 4 }
 0x11c   : > { %v2129_v45 = vrot.slane %v2128_v15, 4  ;;  %v1339_v15 = vunpack.c.l.b16 %v1253_v58  ;;  %v1152_v58 = vld [vmem:[%s11856_s6 + $0x6c] sm:$0xe] }
 0x11d   : > { %v1095_v36 = vpop.f32.mrf.mxu1 }
 0x11e   : > { %v12473_v33 = vadd.f32 %v1095_v36, %v862_v35  ;;  %v2675_v35 = vrot.slane %v12455_v10, 5  ;;  %v1254_v36 = vrot.slane %v1252_v8, 4  ;;  %v12491_v10 = vld [vmem:[%s11856_s6 + $0x7c] sm:$0xf]  ;;  %v2134_v60 = vsel %vm11888_vm2, %v2129_v45, %v2133_v43  ;;  %v10258_v43 = vld [vmem:[%s11856_s6 + $0x80] sm:$0x1] }
 0x11f   : > { %v2145_v9 = vshll.u32 %v12491_v10, 16  ;;  %v2149_v8 = vshrl.u32 %v12491_v10, 16  ;;  %v2337_v30 = vunpack.c.l.b16 %v2134_v60  ;;  %v2155_v60 = vshll.u32 %v10258_v43, 16 }
 0x120   : > { %v2677_v49 = vrot.slane %v2675_v35, 4 }
 0x121   : > { %v902_v61 = vpop.f32.mrf.mxu2  ;;  %v2151_v45 = vrot.slane %v2149_v8, 4  ;;  %v2682_v8 = vrot.slane %v12491_v10, 5 }
 0x122   : > { %v1135_v63 = vpop.f32.mrf.mxu3 }
 0x123   : > { %v12481_v25 = vadd.f32 %v1135_v63, %v902_v61  ;;  %v865_v41 = vpop.f32.mrf.mxu0  ;;  %v1256_v61 = vsel %vm12191_vm5, %v1254_v36, %v1255_v16  ;;  %v2124_v63 = vsel %vm11888_vm2, %v2119_v44, %v2123_v56  ;;  %v2679_v56 = vsel %vm12191_vm5, %v2677_v49, %v2678_v50 }
 0x124   : > { %v1340_v17 = vunpack.c.l.b16 %v1256_v61  ;;  %v2763_v16 = vunpack.c.l.b16 %v2679_v56  ;;  %v2147_v44 = vrot.slane %v2145_v9, 5  ;;  %v11630_v56 = vld [vmem:[%s11856_s6 + $0x74] sm:$0x1]  ;;  %v2684_v10 = vrot.slane %v2682_v8, 4 }
 0x125   : > { %v1098_v19 = vpop.f32.mrf.mxu1 }
 0x126   : > { %v12485_v28 = vadd.f32 %v1098_v19, %v865_v41  ;;  %1478 = vmatmul.bf16.gmra.mxu2 %v1362_v4  ;;  %2475 = vmatmul.bf16.gmra.mxu0 %v2359_v18  ;;  %v2136_v4 = vshrl.u32 %v10256_v47, 16  ;;  %v2139_v18 = vshll.u32 %v10256_v47, 16  ;;  %v2336_v19 = vunpack.c.l.b16 %v2124_v63 }
 0x127   : > { %1793 = vmatmul.bf16.gmra.mxu3 %v11353_v54  ;;  %v2676_v54 = vsel %vm12191_vm5, %v10349_v48, %v2675_v35  ;;  %v11629_v35 = vld [vmem:[%s11856_s6 + $0x70] sm:$0xf]  ;;  %v1363_v50 = vpack.c.b16 %v1340_v17, %v1339_v15  ;;  %v1262_v15 = vrot.slane %v11630_v56, 5  ;;  %v10334_v17 = vld [vmem:[%s11856_s6 + $0x78] sm:$0xe] }
 0x128   : > { %2901 = vmatmul.bf16.gmra.mxu1 %v2785_v13  ;;  %v2138_v31 = vrot.slane %v2136_v4, 4  ;;  %v2141_v36 = vrot.slane %v2139_v18, 5  ;;  %v2762_v37 = vunpack.c.l.b16 %v2676_v54  ;;  %v1259_v48 = vrot.slane %v11629_v35, 5  ;;  %v11354_v4 = vld [vmem:[%s11856_s6 + $0x6c] sm:$0xff] }
 0x129   : > { %v905_v52 = vpop.f32.mrf.mxu2  ;;  %v11412_v35 = vld [vmem:[%s15457_s1 + $0x1d0] sm:$0xff] }
 0x12a   : > { %v1138_v46 = vpop.f32.mrf.mxu3  ;;  %v2786_v18 = vpack.c.b16 %v2763_v16, %v2762_v37  ;;  %v1261_v54 = vrot.slane %v1259_v48, 4  ;;  %v11404_v37 = vld [vmem:[%s15457_s1 + $0x190] sm:$0xff]  ;;  %v10350_v16 = vrot.slane %v10334_v17, 9  ;;  %3860 = vmatpush.bf16.msra.mxu3 %v11412_v35 }
 0x12b   : > { %v12499_v59 = vadd.f32 %v1138_v46, %v905_v52  ;;  %v867_v6 = vpop.f32.mrf.mxu0  ;;  %v2360_v52 = vpack.c.b16 %v2337_v30, %v2336_v19  ;;  %v2142_v46 = vor.u32 %v2141_v36, %v2138_v31  ;;  %v2157_v31 = vrot.slane %v2155_v60, 5  ;;  %v10259_v36 = vld [vmem:[%s11856_s6 + $0x84] sm:$0xf]  ;;  %3178 = vmatpush.bf16.msra.mxu2 %v11404_v37 }
 0x12d   : > { %v1100_v41 = vpop.f32.mrf.mxu1  ;;  %v2143_v19 = vrot.slane %v2142_v46, 4 }
 0x12e   : > { %v12509_v13 = vadd.f32 %v1100_v41, %v867_v6  ;;  %v2152_v6 = vor.u32 %v2151_v45, %v2147_v44  ;;  %v10030_v41 = vrot.slane %v1152_v58, 9  ;;  %v2685_v45 = vrot.slane %v10258_v43, 5 }
 0x12f   : > { %v2148_v43 = vsel %vm11888_vm2, %v2143_v19, %v2147_v44 }
 0x130   : > { %v2153_v30 = vrot.slane %v2152_v6, 4  ;;  %v2686_v44 = vsel %vm12191_vm5, %v2684_v10, %v2685_v45  ;;  %v11420_v10 = vld [vmem:[%s15457_s1 + $0x210] sm:$0xff] }
 0x131   : > { %v907_v47 = vpop.f32.mrf.mxu2  ;;  %4286 = vmatpush.bf16.msra.mxu0 %v11420_v10 }
 0x132   : > { %v1140_v49 = vpop.f32.mrf.mxu3  ;;  %v2158_v60 = vsel %vm11888_vm2, %v2153_v30, %v2157_v31 }
 0x133   : > { %v12514_v61 = vadd.f32 %v1140_v49, %v907_v47  ;;  %v2441_v63 = vpop.f32.mrf.mxu0  ;;  %v12525_v47 = vld [vmem:[%s11856_s6 + $0x88] sm:$0xf]  ;;  %v2339_v30 = vunpack.c.l.b16 %v2158_v60  ;;  %v1153_v60 = vld [vmem:[%s11856_s6 + $0x78] sm:$0xe] }
 0x134   : > { %v2169_v56 = vshll.u32 %v12525_v47, 16 }
 0x135   : > { %15469 = vst [vmem:[#allocation9_spill] sm:$0xff] %v12514_v61  ;;  %v2867_v9 = vpop.f32.mrf.mxu1  ;;  %v10261_v61 = vld [vmem:[%s11856_s6 + $0x8c] sm:$0x1] }
 0x136   : > { %1483 = vmatmul.bf16.gmra.mxu2 %v1363_v50  ;;  %2480 = vmatmul.bf16.gmra.mxu0 %v2360_v52  ;;  %v1260_v50 = vsel %vm12191_vm5, %v10030_v41, %v1259_v48  ;;  %v1263_v52 = vsel %vm12191_vm5, %v1261_v54, %v1262_v15  ;;  %v2173_v48 = vshrl.u32 %v12525_v47, 16  ;;  %v11457_v15 = vld [vmem:[#allocation3 + $0x78] sm:$0xff] }
 0x137   : > { %1798 = vmatmul.bf16.gmra.mxu3 %v11354_v4  ;;  %v2160_v4 = vshrl.u32 %v10259_v36, 16  ;;  %v1341_v17 = vunpack.c.l.b16 %v1260_v50  ;;  %v1342_v19 = vunpack.c.l.b16 %v1263_v52  ;;  %5574 = vmatpush.bf16.msra.mxu1 %v11457_v15  ;;  %v11631_v50 = vld [vmem:[%s11856_s6 + $0x7c] sm:$0xf] }
 0x138   : > { %2906 = vmatmul.bf16.gmra.mxu1 %v2786_v18  ;;  %v2163_v18 = vshll.u32 %v10259_v36, 16  ;;  %v2338_v36 = vunpack.c.l.b16 %v2148_v43 }
 0x139   : > { %v1444_v49 = vpop.f32.mrf.mxu2  ;;  %v2162_v31 = vrot.slane %v2160_v4, 4  ;;  %v1364_v4 = vpack.c.b16 %v1342_v19, %v1341_v17  ;;  %v10335_v19 = vld [vmem:[%s11856_s6 + $0x84] sm:$0xe] }
 0x13a   : > { %v1524_v58 = vadd.f32 %v1444_v49, %v12218_v26  ;;  %v1759_v46 = vpop.f32.mrf.mxu3  ;;  %v2683_v26 = vsel %vm12191_vm5, %v10350_v16, %v2682_v8  ;;  %v2165_v35 = vrot.slane %v2163_v18, 5  ;;  %v2175_v8 = vrot.slane %v2173_v48, 4  ;;  %v11355_v48 = vld [vmem:[%s11856_s6 + $0x78] sm:$0xff] }
 0x13b   : > { %v2443_v6 = vpop.f32.mrf.mxu0  ;;  %v2764_v49 = vunpack.c.l.b16 %v2683_v26  ;;  %v2361_v18 = vpack.c.b16 %v2339_v30, %v2338_v36 }
 0x13c   : > { %v1839_v41 = vadd.f32 %v1759_v46, %v1524_v58  ;;  %v2765_v58 = vunpack.c.l.b16 %v2686_v44  ;;  %v2171_v46 = vrot.slane %v2169_v56, 5  ;;  %v2166_v56 = vor.u32 %v2165_v35, %v2162_v31 }
 0x13d   : > { %v2869_v54 = vpop.f32.mrf.mxu1  ;;  %v2179_v44 = vshll.u32 %v10261_v61, 16 }
 0x13e   : > { %v2521_v37 = vadd.f32 %v2441_v63, %v1839_v41  ;;  %v1266_v63 = vrot.slane %v11631_v50, 5  ;;  %v2787_v41 = vpack.c.b16 %v2765_v58, %v2764_v49  ;;  %v2176_v26 = vor.u32 %v2175_v8, %v2171_v46  ;;  %v10262_v49 = vld [vmem:[%s11856_s6 + $0x90] sm:$0xf] }
 0x13f   : > { %v2689_v50 = vrot.slane %v12525_v47, 5  ;;  %v2167_v30 = vrot.slane %v2166_v56, 4  ;;  %v2181_v35 = vrot.slane %v2179_v44, 5  ;;  %v10351_v8 = vrot.slane %v10335_v19, 9 }
 0x140   : > { %v12545_v16 = vadd.f32 %v2867_v9, %v2521_v37  ;;  %v2177_v31 = vrot.slane %v2176_v26, 4  ;;  %v2692_v47 = vrot.slane %v10261_v61, 5 }
 0x141   : > { %v1446_v45 = vpop.f32.mrf.mxu2  ;;  %v2691_v10 = vrot.slane %v2689_v50, 4  ;;  %v2172_v56 = vsel %vm11888_vm2, %v2167_v30, %v2171_v46 }
 0x142   : > { %15470 = vst [vmem:[#allocation10_spill] sm:$0xff] %v12545_v16  ;;  %v1525_v52 = vadd.f32 %v1446_v45, %v12248_v62  ;;  %v1761_v43 = vpop.f32.mrf.mxu3  ;;  %v10031_v16 = vrot.slane %v1153_v60, 9  ;;  %v1268_v62 = vrot.slane %v1266_v63, 4  ;;  %v11632_v45 = vld [vmem:[%s11856_s6 + $0x80] sm:$0x1]  ;;  %v2182_v61 = vsel %vm11888_vm2, %v2177_v31, %v2181_v35 }
 0x143   : > { %v2446_v9 = vpop.f32.mrf.mxu0  ;;  %v1269_v17 = vrot.slane %v11632_v45, 5  ;;  %v2693_v46 = vsel %vm12191_vm5, %v2691_v10, %v2692_v47  ;;  %v2340_v45 = vunpack.c.l.b16 %v2172_v56  ;;  %v2341_v19 = vunpack.c.l.b16 %v2182_v61  ;;  %v1154_v56 = vld [vmem:[%s11856_s6 + $0x84] sm:$0xe] }
 0x144   : > { %v1840_v15 = vadd.f32 %v1761_v43, %v1525_v52  ;;  %v12562_v52 = vld [vmem:[%s11856_s6 + $0x94] sm:$0xf]  ;;  %v1267_v60 = vsel %vm12191_vm5, %v10031_v16, %v1266_v63  ;;  %v2767_v35 = vunpack.c.l.b16 %v2693_v46  ;;  %v11356_v61 = vld [vmem:[%s11856_s6 + $0x84] sm:$0xff] }
 0x145   : > { %v2872_v37 = vpop.f32.mrf.mxu1  ;;  %v2193_v26 = vshll.u32 %v12562_v52, 16  ;;  %v2197_v44 = vshrl.u32 %v12562_v52, 16  ;;  %v2696_v46 = vrot.slane %v12562_v52, 5 }
 0x146   : > { %1488 = vmatmul.bf16.gmra.mxu2 %v1364_v4  ;;  %2485 = vmatmul.bf16.gmra.mxu0 %v2361_v18  ;;  %v2522_v36 = vadd.f32 %v2443_v6, %v1840_v15  ;;  %v1270_v6 = vsel %vm12191_vm5, %v1268_v62, %v1269_v17  ;;  %v1343_v15 = vunpack.c.l.b16 %v1267_v60 }
 0x147   : > { %1803 = vmatmul.bf16.gmra.mxu3 %v11355_v48  ;;  %v2187_v48 = vshll.u32 %v10262_v49, 16  ;;  %v1344_v62 = vunpack.c.l.b16 %v1270_v6  ;;  %v2362_v6 = vpack.c.b16 %v2341_v19, %v2340_v45 }
 0x148   : > { %2911 = vmatmul.bf16.gmra.mxu1 %v2787_v41  ;;  %v12559_v58 = vadd.f32 %v2869_v54, %v2522_v36  ;;  %v2184_v54 = vshrl.u32 %v10262_v49, 16  ;;  %v12579_v49 = vrot.slane %v2193_v26, 5 }
 0x149   : > { %v1449_v43 = vpop.f32.mrf.mxu2  ;;  %v2189_v30 = vrot.slane %v2187_v48, 5  ;;  %v1365_v60 = vpack.c.b16 %v1344_v62, %v1343_v15  ;;  %v10336_v15 = vld [vmem:[%s11856_s6 + $0x90] sm:$0xe] }
 0x14a   : > { %v1526_v4 = vadd.f32 %v1449_v43, %v12260_v34  ;;  %v1764_v18 = vpop.f32.mrf.mxu3  ;;  %v2690_v34 = vsel %vm12191_vm5, %v10351_v8, %v2689_v50  ;;  %v2186_v36 = vrot.slane %v2184_v54, 4  ;;  %v2199_v43 = vrot.slane %v2197_v44, 4  ;;  %v10264_v50 = vld [vmem:[%s11856_s6 + $0x98] sm:$0x1] }
 0x14b   : > { %v2448_v41 = vpop.f32.mrf.mxu0  ;;  %v2766_v31 = vunpack.c.l.b16 %v2690_v34 }
 0x14c   : > { %v1841_v16 = vadd.f32 %v1764_v18, %v1526_v4  ;;  %v11633_v18 = vld [vmem:[%s11856_s6 + $0x88] sm:$0xf]  ;;  %v2190_v54 = vor.u32 %v2189_v30, %v2186_v36  ;;  %v2200_v44 = vor.u32 %v2199_v43, %v12579_v49  ;;  %v10265_v30 = vld [vmem:[%s11856_s6 + $0x9c] sm:$0xf]  ;;  %v2698_v43 = vrot.slane %v2696_v46, 4 }
 0x14d   : > { %v2874_v63 = vpop.f32.mrf.mxu1  ;;  %v1273_v10 = vrot.slane %v11633_v18, 5  ;;  %v2788_v26 = vpack.c.b16 %v2767_v35, %v2766_v31  ;;  %v11403_v31 = vld [vmem:[%s15457_s1 + $0x188] sm:$0xff]  ;;  %v10352_v35 = vrot.slane %v10336_v15, 9 }
 0x14e   : > { %v2523_v17 = vadd.f32 %v2446_v9, %v1841_v16  ;;  %v2191_v45 = vrot.slane %v2190_v54, 4  ;;  %v2201_v19 = vrot.slane %v2200_v44, 4  ;;  %3179 = vmatpush.bf16.msra.mxu2 %v11403_v31 }
 0x150   : > { %v12581_v4 = vadd.f32 %v2872_v37, %v2523_v17  ;;  %v2203_v37 = vshll.u32 %v10264_v50, 16  ;;  %v10032_v17 = vrot.slane %v1154_v56, 9 }
 0x151   : > { %v1451_v8 = vpop.f32.mrf.mxu2 }
 0x152   : > { %v1527_v47 = vadd.f32 %v1451_v8, %v12284_v3  ;;  %v1766_v9 = vpop.f32.mrf.mxu3  ;;  %v1275_v3 = vrot.slane %v1273_v10, 4  ;;  %v11634_v8 = vld [vmem:[%s11856_s6 + $0x8c] sm:$0x1]  ;;  %v2205_v36 = vrot.slane %v2203_v37, 5 }
 0x153   : > { %v2451_v48 = vpop.f32.mrf.mxu0  ;;  %v1276_v18 = vrot.slane %v11634_v8, 5  ;;  %v11456_v8 = vld [vmem:[#allocation3 + $0x70] sm:$0xff] }
 0x154   : > { %v1842_v16 = vadd.f32 %v1766_v9, %v1527_v47  ;;  %v2699_v47 = vrot.slane %v10264_v50, 5  ;;  %v12599_v9 = vld [vmem:[%s11856_s6 + $0xa0] sm:$0xf]  ;;  %v2196_v50 = vsel %vm11888_vm2, %v2191_v45, %v12579_v49  ;;  %v2206_v37 = vsel %vm11888_vm2, %v2201_v19, %v2205_v36  ;;  %5575 = vmatpush.bf16.msra.mxu1 %v11456_v8 }
 0x155   : > { %v2877_v34 = vpop.f32.mrf.mxu1  ;;  %v1277_v56 = vsel %vm12191_vm5, %v1275_v3, %v1276_v18  ;;  %v2343_v19 = vunpack.c.l.b16 %v2206_v37 }
 0x156   : > { %1493 = vmatmul.bf16.gmra.mxu2 %v1365_v60  ;;  %2490 = vmatmul.bf16.gmra.mxu0 %v2362_v6  ;;  %v2524_v62 = vadd.f32 %v2448_v41, %v1842_v16  ;;  %v11411_v41 = vld [vmem:[%s15457_s1 + $0x1c8] sm:$0xff]  ;;  %v1274_v6 = vsel %vm12191_vm5, %v10032_v17, %v1273_v10  ;;  %v2217_v10 = vshll.u32 %v12599_v9, 16  ;;  %v2221_v16 = vshrl.u32 %v12599_v9, 16 }
 0x157   : > { %1808 = vmatmul.bf16.gmra.mxu3 %v11356_v61  ;;  %v2208_v61 = vshrl.u32 %v10265_v30, 16  ;;  %v2700_v49 = vsel %vm12191_vm5, %v2698_v43, %v2699_v47  ;;  %v1345_v18 = vunpack.c.l.b16 %v1274_v6  ;;  %v1346_v15 = vunpack.c.l.b16 %v1277_v56  ;;  %v11419_v43 = vld [vmem:[%s15457_s1 + $0x208] sm:$0xff]  ;;  %v11635_v6 = vld [vmem:[%s11856_s6 + $0x94] sm:$0xf] }
 0x158   : > { %2916 = vmatmul.bf16.gmra.mxu1 %v2788_v26  ;;  %v12596_v52 = vadd.f32 %v2874_v63, %v2524_v62  ;;  %v2211_v26 = vshll.u32 %v10265_v30, 16  ;;  %3861 = vmatpush.bf16.msra.mxu3 %v11411_v41  ;;  %v2342_v62 = vunpack.c.l.b16 %v2196_v50  ;;  %v2769_v41 = vunpack.c.l.b16 %v2700_v49 }
 0x159   : > { %v1454_v60 = vpop.f32.mrf.mxu2  ;;  %v2210_v36 = vrot.slane %v2208_v61, 4  ;;  %v1366_v50 = vpack.c.b16 %v1346_v15, %v1345_v18  ;;  %4287 = vmatpush.bf16.msra.mxu0 %v11419_v43  ;;  %v10337_v15 = vld [vmem:[%s11856_s6 + $0x9c] sm:$0xe] }
 0x15a   : > { %v1528_v63 = vadd.f32 %v1454_v60, %v12293_v42  ;;  %v1769_v54 = vpop.f32.mrf.mxu3  ;;  %v2697_v42 = vsel %vm12191_vm5, %v10352_v35, %v2696_v46  ;;  %v2213_v30 = vrot.slane %v2211_v26, 5  ;;  %v2219_v60 = vrot.slane %v2217_v10, 5  ;;  %v1155_v26 = vld [vmem:[%s11856_s6 + $0x90] sm:$0xe] }
 0x15b   : > { %v2453_v44 = vpop.f32.mrf.mxu0  ;;  %v2768_v31 = vunpack.c.l.b16 %v2697_v42  ;;  %v2223_v46 = vrot.slane %v2221_v16, 4  ;;  %v2363_v61 = vpack.c.b16 %v2343_v19, %v2342_v62  ;;  %v11357_v10 = vld [vmem:[%s11856_s6 + $0x90] sm:$0xff] }
 0x15c   : > { %v1843_v17 = vadd.f32 %v1769_v54, %v1528_v63  ;;  %v10267_v63 = vld [vmem:[%s11856_s6 + $0xa4] sm:$0x1]  ;;  %v2214_v37 = vor.u32 %v2213_v30, %v2210_v36 }
 0x15d   : > { %v2879_v3 = vpop.f32.mrf.mxu1  ;;  %v2789_v16 = vpack.c.b16 %v2769_v41, %v2768_v31  ;;  %v2227_v42 = vshll.u32 %v10267_v63, 16  ;;  %v10268_v31 = vld [vmem:[%s11856_s6 + $0xa8] sm:$0xf] }
 0x15e   : > { %v2525_v45 = vadd.f32 %v2451_v48, %v1843_v17  ;;  %v1280_v48 = vrot.slane %v11635_v6, 5  ;;  %v2224_v17 = vor.u32 %v2223_v46, %v2219_v60  ;;  %v10033_v6 = vrot.slane %v1155_v26, 9 }
 0x15f   : > { %v2215_v19 = vrot.slane %v2214_v37, 4  ;;  %v2229_v30 = vrot.slane %v2227_v42, 5  ;;  %v10353_v46 = vrot.slane %v10337_v15, 9 }
 0x160   : > { %v12620_v35 = vadd.f32 %v2877_v34, %v2525_v45  ;;  %v2703_v45 = vrot.slane %v12599_v9, 5  ;;  %v2225_v36 = vrot.slane %v2224_v17, 4  ;;  %v2706_v9 = vrot.slane %v10267_v63, 5 }
 0x161   : > { %v1456_v47 = vpop.f32.mrf.mxu2  ;;  %v1281_v26 = vsel %vm12191_vm5, %v10033_v6, %v1280_v48  ;;  %v2220_v37 = vsel %vm11888_vm2, %v2215_v19, %v2219_v60 }
 0x162   : > { %v1529_v56 = vadd.f32 %v1456_v47, %v12323_v12  ;;  %v1771_v54 = vpop.f32.mrf.mxu3  ;;  %v1282_v12 = vrot.slane %v1280_v48, 4  ;;  %v11636_v47 = vld [vmem:[%s11856_s6 + $0x98] sm:$0x1]  ;;  %v2705_v43 = vrot.slane %v2703_v45, 4  ;;  %v2230_v63 = vsel %vm11888_vm2, %v2225_v36, %v2229_v30 }
 0x163   : > { %v2456_v34 = vpop.f32.mrf.mxu0  ;;  %v1283_v18 = vrot.slane %v11636_v47, 5  ;;  %v1347_v6 = vunpack.c.l.b16 %v1281_v26  ;;  %v2344_v47 = vunpack.c.l.b16 %v2220_v37  ;;  %v2345_v15 = vunpack.c.l.b16 %v2230_v63  ;;  %v1156_v37 = vld [vmem:[%s11856_s6 + $0x9c] sm:$0xe] }
 0x164   : > { %v1844_v49 = vadd.f32 %v1771_v54, %v1529_v56  ;;  %v12637_v56 = vld [vmem:[%s11856_s6 + $0xac] sm:$0xf]  ;;  %v2707_v60 = vsel %vm12191_vm5, %v2705_v43, %v2706_v9  ;;  %v11358_v63 = vld [vmem:[%s11856_s6 + $0x9c] sm:$0xff] }
 0x165   : > { %v2882_v8 = vpop.f32.mrf.mxu1  ;;  %v2241_v17 = vshll.u32 %v12637_v56, 16  ;;  %v2245_v42 = vshrl.u32 %v12637_v56, 16  ;;  %v2771_v30 = vunpack.c.l.b16 %v2707_v60  ;;  %v2710_v60 = vrot.slane %v12637_v56, 5 }
 0x166   : > { %1498 = vmatmul.bf16.gmra.mxu2 %v1366_v50  ;;  %2495 = vmatmul.bf16.gmra.mxu0 %v2363_v61  ;;  %v2526_v62 = vadd.f32 %v2453_v44, %v1844_v49  ;;  %v1284_v44 = vsel %vm12191_vm5, %v1282_v12, %v1283_v18 }
 0x167   : > { %1813 = vmatmul.bf16.gmra.mxu3 %v11357_v10  ;;  %v2235_v10 = vshll.u32 %v10268_v31, 16  ;;  %v1348_v12 = vunpack.c.l.b16 %v1284_v44  ;;  %v2364_v44 = vpack.c.b16 %v2345_v15, %v2344_v47 }
 0x168   : > { %2921 = vmatmul.bf16.gmra.mxu1 %v2789_v16  ;;  %v12634_v41 = vadd.f32 %v2879_v3, %v2526_v62  ;;  %v2232_v3 = vshrl.u32 %v10268_v31, 16  ;;  %v12654_v31 = vrot.slane %v2241_v17, 5 }
 0x169   : > { %v1459_v54 = vpop.f32.mrf.mxu2  ;;  %v2237_v19 = vrot.slane %v2235_v10, 5  ;;  %v1367_v26 = vpack.c.b16 %v1348_v12, %v1347_v6  ;;  %v10338_v6 = vld [vmem:[%s11856_s6 + $0xa8] sm:$0xe] }
 0x16a   : > { %v1530_v50 = vadd.f32 %v1459_v54, %v12335_v51  ;;  %v1774_v61 = vpop.f32.mrf.mxu3  ;;  %v2704_v51 = vsel %vm12191_vm5, %v10353_v46, %v2703_v45  ;;  %v2234_v62 = vrot.slane %v2232_v3, 4  ;;  %v2247_v54 = vrot.slane %v2245_v42, 4  ;;  %v10270_v45 = vld [vmem:[%s11856_s6 + $0xb0] sm:$0x1] }
 0x16b   : > { %v2458_v16 = vpop.f32.mrf.mxu0  ;;  %v2770_v36 = vunpack.c.l.b16 %v2704_v51 }
 0x16c   : > { %v1845_v48 = vadd.f32 %v1774_v61, %v1530_v50  ;;  %v11637_v61 = vld [vmem:[%s11856_s6 + $0xa0] sm:$0xf]  ;;  %v2238_v3 = vor.u32 %v2237_v19, %v2234_v62  ;;  %v2248_v42 = vor.u32 %v2247_v54, %v12654_v31  ;;  %v10271_v19 = vld [vmem:[%s11856_s6 + $0xb4] sm:$0xf]  ;;  %v2712_v54 = vrot.slane %v2710_v60, 4 }
 0x16d   : > { %v2884_v49 = vpop.f32.mrf.mxu1  ;;  %v1287_v43 = vrot.slane %v11637_v61, 5  ;;  %v2790_v17 = vpack.c.b16 %v2771_v30, %v2770_v36  ;;  %v11402_v36 = vld [vmem:[%s15457_s1 + $0x180] sm:$0xff]  ;;  %v10354_v30 = vrot.slane %v10338_v6, 9 }
 0x16e   : > { %v2527_v18 = vadd.f32 %v2456_v34, %v1845_v48  ;;  %v2239_v47 = vrot.slane %v2238_v3, 4  ;;  %v2249_v15 = vrot.slane %v2248_v42, 4  ;;  %3180 = vmatpush.bf16.msra.mxu2 %v11402_v36 }
 0x170   : > { %v12656_v50 = vadd.f32 %v2882_v8, %v2527_v18  ;;  %v2251_v8 = vshll.u32 %v10270_v45, 16  ;;  %v10034_v18 = vrot.slane %v1156_v37, 9 }
 0x171   : > { %v1461_v46 = vpop.f32.mrf.mxu2 }
 0x172   : > { %v1531_v9 = vadd.f32 %v1461_v46, %v12359_v24  ;;  %v1776_v34 = vpop.f32.mrf.mxu3  ;;  %v1289_v24 = vrot.slane %v1287_v43, 4  ;;  %v11638_v46 = vld [vmem:[%s11856_s6 + $0xa4] sm:$0x1]  ;;  %v2253_v62 = vrot.slane %v2251_v8, 5 }
 0x173   : > { %v2461_v10 = vpop.f32.mrf.mxu0  ;;  %v1290_v61 = vrot.slane %v11638_v46, 5  ;;  %v11455_v46 = vld [vmem:[#allocation3 + $0x68] sm:$0xff] }
 0x174   : > { %v1846_v48 = vadd.f32 %v1776_v34, %v1531_v9  ;;  %v2713_v9 = vrot.slane %v10270_v45, 5  ;;  %v12674_v34 = vld [vmem:[%s11856_s6 + $0xb8] sm:$0xf]  ;;  %v2244_v45 = vsel %vm11888_vm2, %v2239_v47, %v12654_v31  ;;  %v2254_v8 = vsel %vm11888_vm2, %v2249_v15, %v2253_v62  ;;  %5576 = vmatpush.bf16.msra.mxu1 %v11455_v46 }
 0x175   : > { %v2887_v51 = vpop.f32.mrf.mxu1  ;;  %v1291_v37 = vsel %vm12191_vm5, %v1289_v24, %v1290_v61  ;;  %v2347_v15 = vunpack.c.l.b16 %v2254_v8 }
 0x176   : > { %1503 = vmatmul.bf16.gmra.mxu2 %v1367_v26  ;;  %2500 = vmatmul.bf16.gmra.mxu0 %v2364_v44  ;;  %v2528_v12 = vadd.f32 %v2458_v16, %v1846_v48  ;;  %v11410_v16 = vld [vmem:[%s15457_s1 + $0x1c0] sm:$0xff]  ;;  %v1288_v44 = vsel %vm12191_vm5, %v10034_v18, %v1287_v43  ;;  %v2265_v43 = vshll.u32 %v12674_v34, 16  ;;  %v2269_v48 = vshrl.u32 %v12674_v34, 16 }
 0x177   : > { %1818 = vmatmul.bf16.gmra.mxu3 %v11358_v63  ;;  %v2256_v63 = vshrl.u32 %v10271_v19, 16  ;;  %v2714_v31 = vsel %vm12191_vm5, %v2712_v54, %v2713_v9  ;;  %v1349_v61 = vunpack.c.l.b16 %v1288_v44  ;;  %v1350_v6 = vunpack.c.l.b16 %v1291_v37  ;;  %v11418_v54 = vld [vmem:[%s15457_s1 + $0x200] sm:$0xff]  ;;  %v11639_v44 = vld [vmem:[%s11856_s6 + $0xac] sm:$0xf] }
 0x178   : > { %2926 = vmatmul.bf16.gmra.mxu1 %v2790_v17  ;;  %v12671_v56 = vadd.f32 %v2884_v49, %v2528_v12  ;;  %v2259_v17 = vshll.u32 %v10271_v19, 16  ;;  %3862 = vmatpush.bf16.msra.mxu3 %v11410_v16  ;;  %v2346_v12 = vunpack.c.l.b16 %v2244_v45  ;;  %v2773_v16 = vunpack.c.l.b16 %v2714_v31 }
 0x179   : > { %v1464_v26 = vpop.f32.mrf.mxu2  ;;  %v2258_v62 = vrot.slane %v2256_v63, 4  ;;  %v1368_v45 = vpack.c.b16 %v1350_v6, %v1349_v61  ;;  %4288 = vmatpush.bf16.msra.mxu0 %v11418_v54  ;;  %v10339_v6 = vld [vmem:[%s11856_s6 + $0xb4] sm:$0xe] }
 0x17a   : > { %v1532_v49 = vadd.f32 %v1464_v26, %v12368_v2  ;;  %v1779_v3 = vpop.f32.mrf.mxu3  ;;  %v2711_v2 = vsel %vm12191_vm5, %v10354_v30, %v2710_v60  ;;  %v2261_v19 = vrot.slane %v2259_v17, 5  ;;  %v2267_v26 = vrot.slane %v2265_v43, 5  ;;  %v1157_v17 = vld [vmem:[%s11856_s6 + $0xa8] sm:$0xe] }
 0x17b   : > { %v2463_v42 = vpop.f32.mrf.mxu0  ;;  %v2772_v36 = vunpack.c.l.b16 %v2711_v2  ;;  %v2271_v60 = vrot.slane %v2269_v48, 4  ;;  %v2365_v63 = vpack.c.b16 %v2347_v15, %v2346_v12  ;;  %v11359_v43 = vld [vmem:[%s11856_s6 + $0xa8] sm:$0xff] }
 0x17c   : > { %v1847_v18 = vadd.f32 %v1779_v3, %v1532_v49  ;;  %v10273_v49 = vld [vmem:[%s11856_s6 + $0xbc] sm:$0x1]  ;;  %v2262_v8 = vor.u32 %v2261_v19, %v2258_v62 }
 0x17d   : > { %v12691_v24 = vpop.f32.mrf.mxu1  ;;  %v2791_v48 = vpack.c.b16 %v2773_v16, %v2772_v36  ;;  %v2275_v2 = vshll.u32 %v10273_v49, 16  ;;  %v10274_v36 = vld [vmem:[%s11856_s6 + $0xc0] sm:$0xf]  ;;  %v10355_v16 = vrot.slane %v10339_v6, 9  ;;  %v2720_v54 = vrot.slane %v10273_v49, 5 }
 0x17e   : > { %v2529_v47 = vadd.f32 %v2461_v10, %v1847_v18  ;;  %v1294_v10 = vrot.slane %v11639_v44, 5  ;;  %v2272_v18 = vor.u32 %v2271_v60, %v2267_v26  ;;  %v10035_v44 = vrot.slane %v1157_v17, 9 }
 0x17f   : > { %v2263_v15 = vrot.slane %v2262_v8, 4  ;;  %v2277_v19 = vrot.slane %v2275_v2, 5  ;;  %v2280_v8 = vshrl.u32 %v10274_v36, 16 }
 0x180   : > { %v12697_v30 = vadd.f32 %v2887_v51, %v2529_v47  ;;  %v2717_v47 = vrot.slane %v12674_v34, 5  ;;  %v2273_v62 = vrot.slane %v2272_v18, 4  ;;  %v12714_v34 = vld [vmem:[%s11856_s6 + $0xc4] sm:$0xf] }
 0x181   : > { %v1466_v9 = vpop.f32.mrf.mxu2  ;;  %v2268_v17 = vsel %vm11888_vm2, %v2263_v15, %v2267_v26  ;;  %v2289_v18 = vshll.u32 %v12714_v34, 16  ;;  %v2293_v2 = vshrl.u32 %v12714_v34, 16  ;;  %v2282_v15 = vrot.slane %v2280_v8, 4 }
 0x182   : > { %15471 = vst [vmem:[#allocation11_spill] sm:$0xff] %v12697_v30  ;;  %v1533_v37 = vadd.f32 %v1466_v9, %v12398_v7  ;;  %v1781_v3 = vpop.f32.mrf.mxu3  ;;  %v1296_v7 = vrot.slane %v1294_v10, 4  ;;  %v11640_v9 = vld [vmem:[%s11856_s6 + $0xb0] sm:$0x1]  ;;  %v2719_v60 = vrot.slane %v2717_v47, 4  ;;  %v2278_v49 = vsel %vm11888_vm2, %v2273_v62, %v2277_v19 }
 0x183   : > { %v2466_v51 = vpop.f32.mrf.mxu0  ;;  %v1297_v61 = vrot.slane %v11640_v9, 5  ;;  %v2348_v9 = vunpack.c.l.b16 %v2268_v17  ;;  %v2349_v6 = vunpack.c.l.b16 %v2278_v49 }
 0x184   : > { %v1848_v31 = vadd.f32 %v1781_v3, %v1533_v37  ;;  %v1295_v3 = vsel %vm12191_vm5, %v10035_v44, %v1294_v10  ;;  %v2721_v26 = vsel %vm12191_vm5, %v2719_v60, %v2720_v54 }
 0x185   : > { %v2892_v46 = vpop.f32.mrf.mxu1  ;;  %v1351_v44 = vunpack.c.l.b16 %v1295_v3  ;;  %v2366_v3 = vpack.c.b16 %v2349_v6, %v2348_v9 }
 0x186   : > { %1508 = vmatmul.bf16.gmra.mxu2 %v1368_v45  ;;  %2505 = vmatmul.bf16.gmra.mxu0 %v2365_v63  ;;  %v12710_v12 = vadd.f32 %v2463_v42, %v1848_v31  ;;  %v1298_v45 = vsel %vm12191_vm5, %v1296_v7, %v1297_v61 }
 0x187   : > { %1823 = vmatmul.bf16.gmra.mxu3 %v11359_v43  ;;  %v2283_v43 = vshll.u32 %v10274_v36, 16  ;;  %v1352_v7 = vunpack.c.l.b16 %v1298_v45  ;;  %v2775_v36 = vunpack.c.l.b16 %v2721_v26  ;;  %v1158_v45 = vld [vmem:[%s11856_s6 + $0xb4] sm:$0xe] }
 0x188   : > { %2931 = vmatmul.bf16.gmra.mxu1 %v2791_v48 }
 0x189   : > { %v1469_v37 = vpop.f32.mrf.mxu2  ;;  %v2285_v62 = vrot.slane %v2283_v43, 5  ;;  %v11360_v43 = vld [vmem:[%s11856_s6 + $0xb4] sm:$0xff] }
 0x18a   : > { %v1534_v42 = vadd.f32 %v1469_v37, %v12410_v20  ;;  %v1784_v63 = vpop.f32.mrf.mxu3  ;;  %v2718_v20 = vsel %vm12191_vm5, %v10355_v16, %v2717_v47  ;;  %v2291_v37 = vrot.slane %v2289_v18, 5  ;;  %v10276_v47 = vld [vmem:[%s11856_s6 + $0xc8] sm:$0x1] }
 0x18b   : > { %v2468_v48 = vpop.f32.mrf.mxu0  ;;  %v2774_v19 = vunpack.c.l.b16 %v2718_v20  ;;  %v2286_v17 = vor.u32 %v2285_v62, %v2282_v15  ;;  %v2724_v20 = vrot.slane %v12714_v34, 5  ;;  %v10549_v62 = vld [vmem:[%s11856_s6 + $0x18] sm:$0xf]  ;;  %v12747_v34 = vld [vmem:[%s11856_s6 + $0x1c] sm:$0xf] }
 0x18c   : > { %v1849_v10 = vadd.f32 %v1784_v63, %v1534_v42  ;;  %v2295_v42 = vrot.slane %v2293_v2, 4  ;;  %v2299_v2 = vshll.u32 %v10276_v47, 16 }
 0x18d   : > { %v12727_v31 = vpop.f32.mrf.mxu1  ;;  %v2792_v49 = vpack.c.b16 %v2775_v36, %v2774_v19  ;;  %v2287_v9 = vrot.slane %v2286_v17, 4  ;;  %v2726_v36 = vrot.slane %v2724_v20, 4  ;;  %v3346_v17 = vshll.u32 %v10549_v62, 16 }
 0x18e   : > { %15472 = vst [vmem:[#allocation12_spill] sm:$0xff] %v12727_v31  ;;  %v2531_v61 = vadd.f32 %v2466_v51, %v1849_v10  ;;  %v11641_v31 = vld [vmem:[%s11856_s6 + $0xb8] sm:$0xf]  ;;  %v1369_v51 = vpack.c.b16 %v1352_v7, %v1351_v44  ;;  %v2296_v18 = vor.u32 %v2295_v42, %v2291_v37  ;;  %v10340_v44 = vld [vmem:[%s11856_s6 + $0xc0] sm:$0xe]  ;;  %v2301_v15 = vrot.slane %v2299_v2, 5 }
 0x18f   : > { %v1301_v30 = vrot.slane %v11641_v31, 5  ;;  %v10036_v31 = vrot.slane %v1158_v45, 9  ;;  %v10356_v19 = vrot.slane %v10340_v44, 9  ;;  %v2727_v42 = vrot.slane %v10276_v47, 5 }
 0x190   : > { %v12733_v63 = vadd.f32 %v2892_v46, %v2531_v61  ;;  %v2297_v6 = vrot.slane %v2296_v18, 4  ;;  %v3343_v45 = vshrl.u32 %v10549_v62, 16  ;;  %v3356_v18 = vshrl.u32 %v12747_v34, 16 }
 0x191   : > { %v1471_v16 = vpop.f32.mrf.mxu2  ;;  %v1303_v26 = vrot.slane %v1301_v30, 4 }
 0x192   : > { %v1535_v60 = vadd.f32 %v1471_v16, %v12434_v5  ;;  %v1786_v54 = vpop.f32.mrf.mxu3  ;;  %v11642_v5 = vld [vmem:[%s11856_s6 + $0xbc] sm:$0x1]  ;;  %v2302_v47 = vsel %vm11888_vm2, %v2297_v6, %v2301_v15  ;;  %v3348_v6 = vrot.slane %v3346_v17, 5 }
 0x193   : > { %v2471_v8 = vpop.f32.mrf.mxu0  ;;  %v1304_v61 = vrot.slane %v11642_v5, 5  ;;  %v2351_v44 = vunpack.c.l.b16 %v2302_v47 }
 0x194   : > { %v1850_v46 = vadd.f32 %v1786_v54, %v1535_v60  ;;  %v1302_v60 = vsel %vm12191_vm5, %v10036_v31, %v1301_v30 }
 0x195   : > { %v2897_v10 = vpop.f32.mrf.mxu1  ;;  %v1305_v54 = vsel %vm12191_vm5, %v1303_v26, %v1304_v61  ;;  %v1353_v31 = vunpack.c.l.b16 %v1302_v60 }
 0x196   : > { %1513 = vmatmul.bf16.gmra.mxu2 %v1369_v51  ;;  %2510 = vmatmul.bf16.gmra.mxu0 %v2366_v3  ;;  %v12743_v7 = vadd.f32 %v2468_v48, %v1850_v46  ;;  %v2292_v3 = vsel %vm11888_vm2, %v2287_v9, %v2291_v37  ;;  %v2728_v37 = vsel %vm12191_vm5, %v2726_v36, %v2727_v42  ;;  %v11454_v46 = vld [vmem:[#allocation3 + $0x60] sm:$0xff]  ;;  %v1354_v26 = vunpack.c.l.b16 %v1305_v54 }
 0x197   : > { %1828 = vmatmul.bf16.gmra.mxu3 %v11360_v43  ;;  %v2350_v5 = vunpack.c.l.b16 %v2292_v3  ;;  %v3345_v9 = vrot.slane %v3343_v45, 4  ;;  %5577 = vmatpush.bf16.msra.mxu1 %v11454_v46  ;;  %v2777_v62 = vunpack.c.l.b16 %v2728_v37  ;;  %v11361_v45 = vld [vmem:[%s11856_s6 + $0xc0] sm:$0xff]  ;;  %v4042_v37 = vrot.slane %v12747_v34, 5 }
 0x198   : > { %2936 = vmatmul.bf16.gmra.mxu1 %v2792_v49  ;;  %v3352_v49 = vshll.u32 %v12747_v34, 16  ;;  %v1370_v60 = vpack.c.b16 %v1354_v26, %v1353_v31 }
 0x199   : > { %v1474_v16 = vpop.f32.mrf.mxu2  ;;  %v2367_v54 = vpack.c.b16 %v2351_v44, %v2350_v5  ;;  %v3349_v17 = vor.u32 %v3348_v6, %v3345_v9  ;;  %v4044_v5 = vrot.slane %v4042_v37, 4  ;;  %v10552_v44 = vld [vmem:[%s11856_s6 + $0x24] sm:$0xf]  ;;  %v10553_v6 = vld [vmem:[%s11856_s6 + $0x28] sm:$0xf] }
 0x19a   : > { %v1536_v48 = vadd.f32 %v1474_v16, %v12443_v23  ;;  %v1789_v51 = vpop.f32.mrf.mxu3  ;;  %v2725_v23 = vsel %vm12191_vm5, %v10356_v19, %v2724_v20  ;;  %v10551_v16 = vld [vmem:[%s11856_s6 + $0x20] sm:$0x1] }
 0x19b   : > { %v2473_v43 = vpop.f32.mrf.mxu0  ;;  %v2776_v15 = vunpack.c.l.b16 %v2725_v23  ;;  %v10645_v23 = vld [vmem:[%s11856_s6 + $0x18] sm:$0xe]  ;;  %v3350_v31 = vrot.slane %v3349_v17, 4 }
 0x19c   : > { %v1851_v30 = vadd.f32 %v1789_v51, %v1536_v48  ;;  %v3354_v48 = vrot.slane %v3352_v49, 5  ;;  %v3358_v51 = vrot.slane %v3356_v18, 4  ;;  %v10661_v46 = vrot.slane %v10645_v23, 9 }
 0x19d   : > { %v12760_v2 = vpop.f32.mrf.mxu1  ;;  %v2793_v47 = vpack.c.b16 %v2777_v62, %v2776_v15 }
 0x19e   : > { %v2533_v61 = vadd.f32 %v2471_v8, %v1851_v30  ;;  %v3362_v8 = vshll.u32 %v10551_v16, 16  ;;  %v3359_v30 = vor.u32 %v3358_v51, %v3354_v48  ;;  %v4043_v62 = vsel %vm12191_vm5, %v10661_v46, %v4042_v37 }
 0x1a0   : > { %v12767_v20 = vadd.f32 %v2897_v10, %v2533_v61  ;;  %v3360_v26 = vrot.slane %v3359_v30, 4  ;;  %v4045_v61 = vrot.slane %v10551_v16, 5  ;;  %v3367_v16 = vshrl.u32 %v10552_v44, 16 }
 0x1a1   : > { %v1476_v19 = vpop.f32.mrf.mxu2 }
 0x1a2   : > { %v1537_v36 = vadd.f32 %v1476_v19, %v12473_v33  ;;  %v1791_v42 = vpop.f32.mrf.mxu3  ;;  %v3364_v33 = vrot.slane %v3362_v8, 5  ;;  %v3380_v8 = vshrl.u32 %v10553_v6, 16  ;;  %v3369_v23 = vrot.slane %v3367_v16, 4 }
 0x1a3   : > { %v2476_v3 = vpop.f32.mrf.mxu0 }
 0x1a4   : > { %v1852_v49 = vadd.f32 %v1791_v42, %v1537_v36  ;;  %v3365_v19 = vsel %vm11888_vm2, %v3360_v26, %v3364_v33  ;;  %v4046_v36 = vsel %vm12191_vm5, %v4044_v5, %v4045_v61  ;;  %v3382_v46 = vrot.slane %v3380_v8, 4  ;;  %v10554_v26 = vld [vmem:[%s11856_s6 + $0x2c] sm:$0x1]  ;;  %v10555_v8 = vld [vmem:[%s11856_s6 + $0x30] sm:$0xf] }
 0x1a5   : > { %v2902_v10 = vpop.f32.mrf.mxu1  ;;  %v4170_v17 = vunpack.c.l.b16 %v4046_v36  ;;  %v3744_v30 = vunpack.c.l.b16 %v3365_v19  ;;  %v3386_v16 = vshll.u32 %v10554_v26, 16 }
 0x1a6   : > { %1518 = vmatmul.bf16.gmra.mxu2 %v1370_v60  ;;  %2515 = vmatmul.bf16.gmra.mxu0 %v2367_v54  ;;  %v12773_v18 = vadd.f32 %v2473_v43, %v1852_v49  ;;  %v3355_v43 = vsel %vm11888_vm2, %v3350_v31, %v3354_v48  ;;  %v3376_v54 = vshll.u32 %v10553_v6, 16 }
 0x1a7   : > { %1833 = vmatmul.bf16.gmra.mxu3 %v11361_v45  ;;  %v3743_v48 = vunpack.c.l.b16 %v3355_v43 }
 0x1a8   : > { %2941 = vmatmul.bf16.gmra.mxu1 %v2793_v47  ;;  %v4169_v47 = vunpack.c.l.b16 %v4043_v62  ;;  %v3378_v33 = vrot.slane %v3376_v54, 5  ;;  %v4049_v62 = vrot.slane %v10553_v6, 5  ;;  %v4052_v54 = vrot.slane %v10554_v26, 5 }
 0x1a9   : > { %v1479_v9 = vpop.f32.mrf.mxu2 }
 0x1aa   : > { %v1538_v34 = vadd.f32 %v1479_v9, %v12485_v28  ;;  %v1794_v15 = vpop.f32.mrf.mxu3  ;;  %v3370_v28 = vshll.u32 %v10552_v44, 16  ;;  %v11386_v44 = vld [vmem:[%s11856_s6 + $0x18] sm:$0xff]  ;;  %v4201_v9 = vpack.c.b16 %v4170_v17, %v4169_v47  ;;  %v3383_v36 = vor.u32 %v3382_v46, %v3378_v33 }
 0x1ab   : > { %v2478_v51 = vpop.f32.mrf.mxu0  ;;  %v3388_v17 = vrot.slane %v3386_v16, 5  ;;  %v3394_v46 = vshll.u32 %v10555_v8, 16 }
 0x1ac   : > { %v1853_v42 = vadd.f32 %v1794_v15, %v1538_v34  ;;  %v3372_v49 = vrot.slane %v3370_v28, 5  ;;  %v10646_v15 = vld [vmem:[%s11856_s6 + $0x24] sm:$0xe]  ;;  %v3384_v47 = vrot.slane %v3383_v36, 4 }
 0x1ad   : > { %v12786_v60 = vpop.f32.mrf.mxu1  ;;  %v10662_v28 = vrot.slane %v10646_v15, 9  ;;  %v11453_v15 = vld [vmem:[#allocation3 + $0x58] sm:$0xff]  ;;  %v3396_v16 = vrot.slane %v3394_v46, 5 }
 0x1ae   : > { %v2535_v45 = vadd.f32 %v2476_v3, %v1853_v42  ;;  %v3775_v3 = vpack.c.b16 %v3744_v30, %v3743_v48  ;;  %v10556_v48 = vld [vmem:[%s11856_s6 + $0x34] sm:$0xf]  ;;  %5578 = vmatpush.bf16.msra.mxu1 %v11453_v15 }
 0x1af   : > { %v3400_v26 = vshll.u32 %v10556_v48, 16 }
 0x1b0   : > { %v12788_v37 = vadd.f32 %v2902_v10, %v2535_v45  ;;  %v3373_v10 = vor.u32 %v3372_v49, %v3369_v23  ;;  %v4050_v23 = vsel %vm12191_vm5, %v10662_v28, %v4049_v62  ;;  %v3391_v49 = vshrl.u32 %v10555_v8, 16 }
 0x1b1   : > { %v1481_v31 = vpop.f32.mrf.mxu2  ;;  %v3402_v8 = vrot.slane %v3400_v26, 5 }
 0x1b2   : > { %v1539_v5 = vadd.f32 %v1481_v31, %v12509_v13  ;;  %v1796_v61 = vpop.f32.mrf.mxu3  ;;  %v4051_v13 = vrot.slane %v4049_v62, 4  ;;  %v3374_v45 = vrot.slane %v3373_v10, 4  ;;  %v4171_v62 = vunpack.c.l.b16 %v4050_v23 }
 0x1b3   : > { %v2481_v34 = vpop.f32.mrf.mxu0  ;;  %v3393_v36 = vrot.slane %v3391_v49, 4 }
 0x1b4   : > { %v1854_v43 = vadd.f32 %v1796_v61, %v1539_v5  ;;  %v4053_v5 = vsel %vm12191_vm5, %v4051_v13, %v4052_v54  ;;  %v3404_v61 = vshrl.u32 %v10556_v48, 16  ;;  %v10557_v54 = vld [vmem:[%s11856_s6 + $0x38] sm:$0x1] }
 0x1b5   : > { %v2907_v19 = vpop.f32.mrf.mxu1  ;;  %v4172_v10 = vunpack.c.l.b16 %v4053_v5  ;;  %v3397_v23 = vor.u32 %v3396_v16, %v3393_v36  ;;  %v10558_v36 = vld [vmem:[%s11856_s6 + $0x3c] sm:$0xf] }
 0x1b6   : > { %3181 = vmatmul.bf16.vlgmr.msra.gmra.mxu2 %v11386_v44  ;;  %4289 = vmatmul.bf16.vlgmr.msra.gmra.mxu0 %v4201_v9  ;;  %v12794_v42 = vadd.f32 %v2478_v51, %v1854_v43  ;;  %v3379_v9 = vsel %vm11888_vm2, %v3374_v45, %v3378_v33 }
 0x1b7   : > { %3863 = vmatmul.bf16.vlgmr.msra.gmra.mxu3 %v3775_v3  ;;  %v3745_v28 = vunpack.c.l.b16 %v3379_v9 }
 0x1b9   : > { %v1484_v6 = vpop.f32.mrf.mxu2 }
 0x1ba   : > { %v1540_v30 = vadd.f32 %v1484_v6, %v12238_v53  ;;  %v1799_v31 = vpop.f32.mrf.mxu3  ;;  %v3389_v53 = vsel %vm11888_vm2, %v3384_v47, %v3388_v17  ;;  %v3406_v6 = vrot.slane %v3404_v61, 4  ;;  %v3398_v61 = vrot.slane %v3397_v23, 4 }
 0x1bb   : > { %v2483_v51 = vpop.f32.mrf.mxu0  ;;  %v3746_v13 = vunpack.c.l.b16 %v3389_v53  ;;  %v10647_v53 = vld [vmem:[%s11856_s6 + $0x30] sm:$0xe] }
 0x1bc   : > { %v1855_v44 = vadd.f32 %v1799_v31, %v1540_v30  ;;  %v11387_v30 = vld [vmem:[%s11856_s6 + $0x24] sm:$0xff]  ;;  %v4202_v31 = vpack.c.b16 %v4172_v10, %v4171_v62  ;;  %v3407_v46 = vor.u32 %v3406_v6, %v3402_v8  ;;  %v10663_v62 = vrot.slane %v10647_v53, 9 }
 0x1bd   : > { %v12807_v3 = vpop.f32.mrf.mxu1  ;;  %v3776_v49 = vpack.c.b16 %v3746_v13, %v3745_v28  ;;  %v4059_v10 = vrot.slane %v10557_v54, 5  ;;  %v10559_v28 = vld [vmem:[%s11856_s6 + $0x40] sm:$0xf]  ;;  %v3403_v6 = vsel %vm11888_vm2, %v3398_v61, %v3402_v8 }
 0x1be   : > { %v2537_v43 = vadd.f32 %v2481_v34, %v1855_v44  ;;  %v3410_v34 = vshll.u32 %v10557_v54, 16  ;;  %v4056_v44 = vrot.slane %v10556_v48, 5  ;;  %v3408_v15 = vrot.slane %v3407_v46, 4 }
 0x1bf   : > { %v3415_v54 = vshrl.u32 %v10558_v36, 16  ;;  %v3424_v23 = vshll.u32 %v10559_v28, 16 }
 0x1c0   : > { %v12810_v33 = vadd.f32 %v2907_v19, %v2537_v43  ;;  %v4058_v43 = vrot.slane %v4056_v44, 4 }
 0x1c1   : > { %v1486_v45 = vpop.f32.mrf.mxu2  ;;  %v3417_v61 = vrot.slane %v3415_v54, 4 }
 0x1c2   : > { %v1541_v47 = vadd.f32 %v1486_v45, %v12256_v21  ;;  %v1801_v17 = vpop.f32.mrf.mxu3  ;;  %v3412_v21 = vrot.slane %v3410_v34, 5  ;;  %v3428_v34 = vshrl.u32 %v10559_v28, 16 }
 0x1c3   : > { %v2486_v5 = vpop.f32.mrf.mxu0 }
 0x1c4   : > { %v1856_v9 = vadd.f32 %v1801_v17, %v1541_v47  ;;  %v4057_v47 = vsel %vm12191_vm5, %v10663_v62, %v4056_v44  ;;  %v4060_v17 = vsel %vm12191_vm5, %v4058_v43, %v4059_v10  ;;  %v3430_v62 = vrot.slane %v3428_v34, 4  ;;  %v10560_v10 = vld [vmem:[%s11856_s6 + $0x44] sm:$0x1] }
 0x1c5   : > { %v2912_v26 = vpop.f32.mrf.mxu1  ;;  %v4174_v46 = vunpack.c.l.b16 %v4060_v17  ;;  %v4063_v17 = vrot.slane %v10559_v28, 5  ;;  %v4066_v34 = vrot.slane %v10560_v10, 5 }
 0x1c6   : > { %3186 = vmatmul.bf16.gmra.mxu2 %v11387_v30  ;;  %4294 = vmatmul.bf16.gmra.mxu0 %v4202_v31  ;;  %v12815_v19 = vadd.f32 %v2483_v51, %v1856_v9  ;;  %v3413_v51 = vsel %vm11888_vm2, %v3408_v15, %v3412_v21  ;;  %v3747_v9 = vunpack.c.l.b16 %v3403_v6  ;;  %v3426_v15 = vrot.slane %v3424_v23, 5 }
 0x1c7   : > { %3868 = vmatmul.bf16.gmra.mxu3 %v3776_v49  ;;  %v4173_v49 = vunpack.c.l.b16 %v4057_v47  ;;  %v3748_v53 = vunpack.c.l.b16 %v3413_v51  ;;  %v10648_v47 = vld [vmem:[%s11856_s6 + $0x3c] sm:$0xe] }
 0x1c8   : > { %v3431_v54 = vor.u32 %v3430_v62, %v3426_v15  ;;  %v10664_v23 = vrot.slane %v10648_v47, 9 }
 0x1c9   : > { %v1489_v16 = vpop.f32.mrf.mxu2 }
 0x1ca   : > { %v1542_v48 = vadd.f32 %v1489_v16, %v12274_v57  ;;  %v1804_v13 = vpop.f32.mrf.mxu3  ;;  %v3418_v57 = vshll.u32 %v10558_v36, 16 }
 0x1cb   : > { %v2488_v45 = vpop.f32.mrf.mxu0 }
 0x1cc   : > { %v1857_v30 = vadd.f32 %v1804_v13, %v1542_v48  ;;  %v3420_v21 = vrot.slane %v3418_v57, 5  ;;  %v11388_v48 = vld [vmem:[%s11856_s6 + $0x30] sm:$0xff]  ;;  %v4203_v13 = vpack.c.b16 %v4174_v46, %v4173_v49  ;;  %v3432_v46 = vrot.slane %v3431_v54, 4 }
 0x1cd   : > { %v12828_v31 = vpop.f32.mrf.mxu1 }
 0x1ce   : > { %15473 = vst [vmem:[#allocation13_spill] sm:$0xff] %v12828_v31  ;;  %v2539_v8 = vadd.f32 %v2486_v5, %v1857_v30  ;;  %v3777_v5 = vpack.c.b16 %v3748_v53, %v3747_v9  ;;  %v3434_v30 = vshll.u32 %v10560_v10, 16  ;;  %v10562_v53 = vld [vmem:[%s11856_s6 + $0x4c] sm:$0xf] }
 0x1cf   : > { %v3448_v10 = vshll.u32 %v10562_v53, 16 }
 0x1d0   : > { %v12830_v44 = vadd.f32 %v2912_v26, %v2539_v8  ;;  %v3421_v26 = vor.u32 %v3420_v21, %v3417_v61  ;;  %v10561_v8 = vld [vmem:[%s11856_s6 + $0x48] sm:$0xf]  ;;  %v3436_v9 = vrot.slane %v3434_v30, 5  ;;  %v4064_v61 = vsel %vm12191_vm5, %v10664_v23, %v4063_v17 }
 0x1d1   : > { %v1491_v43 = vpop.f32.mrf.mxu2  ;;  %v3439_v21 = vshrl.u32 %v10561_v8, 16  ;;  %v3442_v62 = vshll.u32 %v10561_v8, 16  ;;  %v10563_v8 = vld [vmem:[%s11856_s6 + $0x50] sm:$0x1] }
 0x1d2   : > { %v1543_v16 = vadd.f32 %v1491_v43, %v12289_v29  ;;  %v1806_v36 = vpop.f32.mrf.mxu3  ;;  %v4065_v29 = vrot.slane %v4063_v17, 4  ;;  %v3422_v49 = vrot.slane %v3421_v26, 4  ;;  %v4175_v17 = vunpack.c.l.b16 %v4064_v61 }
 0x1d3   : > { %v2491_v31 = vpop.f32.mrf.mxu0  ;;  %v3441_v30 = vrot.slane %v3439_v21, 4  ;;  %v3444_v23 = vrot.slane %v3442_v62, 5 }
 0x1d4   : > { %v1858_v6 = vadd.f32 %v1806_v36, %v1543_v16  ;;  %v4067_v36 = vsel %vm12191_vm5, %v4065_v29, %v4066_v34 }
 0x1d5   : > { %v2917_v51 = vpop.f32.mrf.mxu1  ;;  %v4176_v54 = vunpack.c.l.b16 %v4067_v36  ;;  %v3445_v61 = vor.u32 %v3444_v23, %v3441_v30  ;;  %v10564_v30 = vld [vmem:[%s11856_s6 + $0x54] sm:$0xf] }
 0x1d6   : > { %3191 = vmatmul.bf16.gmra.mxu2 %v11388_v48  ;;  %4299 = vmatmul.bf16.gmra.mxu0 %v4203_v13  ;;  %v12836_v57 = vadd.f32 %v2488_v45, %v1858_v6  ;;  %v3452_v48 = vshrl.u32 %v10562_v53, 16  ;;  %v11452_v6 = vld [vmem:[#allocation3 + $0x50] sm:$0xff] }
 0x1d7   : > { %3873 = vmatmul.bf16.gmra.mxu3 %v3777_v5  ;;  %v3427_v5 = vsel %vm11888_vm2, %v3422_v49, %v3426_v15  ;;  %5579 = vmatpush.bf16.msra.mxu1 %v11452_v6 }
 0x1d8   : > { %v3749_v29 = vunpack.c.l.b16 %v3427_v5 }
 0x1d9   : > { %v1494_v28 = vpop.f32.mrf.mxu2 }
 0x1da   : > { %v1544_v43 = vadd.f32 %v1494_v28, %v12313_v0  ;;  %v1809_v16 = vpop.f32.mrf.mxu3  ;;  %v3437_v0 = vsel %vm11888_vm2, %v3432_v46, %v3436_v9  ;;  %v3450_v28 = vrot.slane %v3448_v10, 5 }
 0x1db   : > { %v2493_v45 = vpop.f32.mrf.mxu0  ;;  %v3750_v34 = vunpack.c.l.b16 %v3437_v0  ;;  %v10649_v0 = vld [vmem:[%s11856_s6 + $0x48] sm:$0xe] }
 0x1dc   : > { %v1859_v13 = vadd.f32 %v1809_v16, %v1544_v43  ;;  %v3454_v43 = vrot.slane %v3452_v48, 4  ;;  %v11389_v16 = vld [vmem:[%s11856_s6 + $0x3c] sm:$0xff]  ;;  %v3446_v48 = vrot.slane %v3445_v61, 4 }
 0x1dd   : > { %v12849_v47 = vpop.f32.mrf.mxu1  ;;  %v3778_v21 = vpack.c.b16 %v3750_v34, %v3749_v29  ;;  %v10565_v29 = vld [vmem:[%s11856_s6 + $0x58] sm:$0xf] }
 0x1de   : > { %15474 = vst [vmem:[#allocation14_spill] sm:$0xff] %v12849_v47  ;;  %v2541_v26 = vadd.f32 %v2491_v31, %v1859_v13  ;;  %v4204_v47 = vpack.c.b16 %v4176_v54, %v4175_v17  ;;  %v3458_v31 = vshll.u32 %v10563_v8, 16  ;;  %v3455_v62 = vor.u32 %v3454_v43, %v3450_v28 }
 0x1df   : > { %v4070_v13 = vrot.slane %v10562_v53, 5  ;;  %v10665_v17 = vrot.slane %v10649_v0, 9  ;;  %v4073_v54 = vrot.slane %v10563_v8, 5  ;;  %v3451_v43 = vsel %vm11888_vm2, %v3446_v48, %v3450_v28 }
 0x1e0   : > { %v12852_v15 = vadd.f32 %v2917_v51, %v2541_v26  ;;  %v3456_v6 = vrot.slane %v3455_v62, 4  ;;  %v3463_v8 = vshrl.u32 %v10564_v30, 16  ;;  %v3472_v61 = vshll.u32 %v10565_v29, 16 }
 0x1e1   : > { %v1496_v49 = vpop.f32.mrf.mxu2  ;;  %v4072_v26 = vrot.slane %v4070_v13, 4 }
 0x1e2   : > { %v1545_v46 = vadd.f32 %v1496_v49, %v12331_v27  ;;  %v1811_v9 = vpop.f32.mrf.mxu3  ;;  %v3460_v27 = vrot.slane %v3458_v31, 5  ;;  %v3476_v31 = vshrl.u32 %v10565_v29, 16  ;;  %v3465_v48 = vrot.slane %v3463_v8, 4 }
 0x1e3   : > { %v2496_v36 = vpop.f32.mrf.mxu0 }
 0x1e4   : > { %v1860_v5 = vadd.f32 %v1811_v9, %v1545_v46  ;;  %v4074_v46 = vsel %vm12191_vm5, %v4072_v26, %v4073_v54  ;;  %v10566_v54 = vld [vmem:[%s11856_s6 + $0x5c] sm:$0x1] }
 0x1e5   : > { %v2922_v10 = vpop.f32.mrf.mxu1  ;;  %v4178_v62 = vunpack.c.l.b16 %v4074_v46  ;;  %v4077_v46 = vrot.slane %v10565_v29, 5 }
 0x1e6   : > { %3196 = vmatmul.bf16.gmra.mxu2 %v11389_v16  ;;  %4304 = vmatmul.bf16.gmra.mxu0 %v4204_v47  ;;  %v12857_v51 = vadd.f32 %v2493_v45, %v1860_v5  ;;  %v3461_v45 = vsel %vm11888_vm2, %v3456_v6, %v3460_v27  ;;  %v4071_v47 = vsel %vm12191_vm5, %v10665_v17, %v4070_v13  ;;  %v3751_v5 = vunpack.c.l.b16 %v3451_v43 }
 0x1e7   : > { %3878 = vmatmul.bf16.gmra.mxu3 %v3778_v21  ;;  %v4177_v21 = vunpack.c.l.b16 %v4071_v47  ;;  %v3752_v0 = vunpack.c.l.b16 %v3461_v45  ;;  %v3474_v6 = vrot.slane %v3472_v61, 5  ;;  %v3478_v17 = vrot.slane %v3476_v31, 4  ;;  %v10650_v47 = vld [vmem:[%s11856_s6 + $0x54] sm:$0xe] }
 0x1e8   : > { %v10666_v61 = vrot.slane %v10650_v47, 9  ;;  %v4080_v31 = vrot.slane %v10566_v54, 5 }
 0x1e9   : > { %v1499_v23 = vpop.f32.mrf.mxu2  ;;  %v3479_v8 = vor.u32 %v3478_v17, %v3474_v6 }
 0x1ea   : > { %v1546_v53 = vadd.f32 %v1499_v23, %v12349_v14  ;;  %v1814_v34 = vpop.f32.mrf.mxu3  ;;  %v3466_v14 = vshll.u32 %v10564_v30, 16 }
 0x1eb   : > { %v2498_v49 = vpop.f32.mrf.mxu0 }
 0x1ec   : > { %v1861_v9 = vadd.f32 %v1814_v34, %v1546_v53  ;;  %v3468_v27 = vrot.slane %v3466_v14, 5  ;;  %v11390_v53 = vld [vmem:[%s11856_s6 + $0x48] sm:$0xff]  ;;  %v4205_v34 = vpack.c.b16 %v4178_v62, %v4177_v21  ;;  %v3480_v62 = vrot.slane %v3479_v8, 4 }
 0x1ed   : > { %v12870_v16 = vpop.f32.mrf.mxu1 }
 0x1ee   : > { %15475 = vst [vmem:[#allocation15_spill] sm:$0xff] %v12870_v16  ;;  %v2543_v28 = vadd.f32 %v2496_v36, %v1861_v9  ;;  %v3779_v36 = vpack.c.b16 %v3752_v0, %v3751_v5  ;;  %v3482_v9 = vshll.u32 %v10566_v54, 16  ;;  %v10568_v0 = vld [vmem:[%s11856_s6 + $0x64] sm:$0xf] }
 0x1ef   : > { %v3496_v54 = vshll.u32 %v10568_v0, 16 }
 0x1f0   : > { %v12872_v13 = vadd.f32 %v2922_v10, %v2543_v28  ;;  %v3469_v10 = vor.u32 %v3468_v27, %v3465_v48  ;;  %v10567_v28 = vld [vmem:[%s11856_s6 + $0x60] sm:$0xf]  ;;  %v3484_v5 = vrot.slane %v3482_v9, 5  ;;  %v4078_v48 = vsel %vm12191_vm5, %v10666_v61, %v4077_v46 }
 0x1f1   : > { %v1501_v26 = vpop.f32.mrf.mxu2  ;;  %v3487_v27 = vshrl.u32 %v10567_v28, 16  ;;  %v3490_v17 = vshll.u32 %v10567_v28, 16  ;;  %v10569_v28 = vld [vmem:[%s11856_s6 + $0x68] sm:$0x1] }
 0x1f2   : > { %15476 = vst [vmem:[#allocation16_spill] sm:$0xff] %v12872_v13  ;;  %v1547_v23 = vadd.f32 %v1501_v26, %v12364_v1  ;;  %v1816_v30 = vpop.f32.mrf.mxu3  ;;  %v4079_v1 = vrot.slane %v4077_v46, 4  ;;  %v3470_v21 = vrot.slane %v3469_v10, 4  ;;  %v4179_v46 = vunpack.c.l.b16 %v4078_v48 }
 0x1f3   : > { %v2501_v16 = vpop.f32.mrf.mxu0  ;;  %v3489_v9 = vrot.slane %v3487_v27, 4  ;;  %v3492_v61 = vrot.slane %v3490_v17, 5 }
 0x1f4   : > { %v1862_v43 = vadd.f32 %v1816_v30, %v1547_v23  ;;  %v4081_v30 = vsel %vm12191_vm5, %v4079_v1, %v4080_v31 }
 0x1f5   : > { %v2927_v45 = vpop.f32.mrf.mxu1  ;;  %v4180_v8 = vunpack.c.l.b16 %v4081_v30  ;;  %v3493_v48 = vor.u32 %v3492_v61, %v3489_v9  ;;  %v10570_v9 = vld [vmem:[%s11856_s6 + $0x6c] sm:$0xf] }
 0x1f6   : > { %3201 = vmatmul.bf16.gmra.mxu2 %v11390_v53  ;;  %4309 = vmatmul.bf16.gmra.mxu0 %v4205_v34  ;;  %v12878_v14 = vadd.f32 %v2498_v49, %v1862_v43  ;;  %v3500_v53 = vshrl.u32 %v10568_v0, 16  ;;  %v11451_v43 = vld [vmem:[#allocation3 + $0x48] sm:$0xff] }
 0x1f7   : > { %3883 = vmatmul.bf16.gmra.mxu3 %v3779_v36  ;;  %v3475_v36 = vsel %vm11888_vm2, %v3470_v21, %v3474_v6  ;;  %5580 = vmatpush.bf16.msra.mxu1 %v11451_v43 }
 0x1f8   : > { %15477 = vst [vmem:[#allocation17_spill] sm:$0xff] %v12878_v14  ;;  %v3753_v1 = vunpack.c.l.b16 %v3475_v36 }
 0x1f9   : > { %v1504_v29 = vpop.f32.mrf.mxu2 }
 0x1fa   : > { %v1548_v26 = vadd.f32 %v1504_v29, %v12388_v32  ;;  %v1819_v23 = vpop.f32.mrf.mxu3  ;;  %v3485_v32 = vsel %vm11888_vm2, %v3480_v62, %v3484_v5  ;;  %v3498_v29 = vrot.slane %v3496_v54, 5 }
 0x1fb   : > { %v2503_v49 = vpop.f32.mrf.mxu0  ;;  %v3754_v31 = vunpack.c.l.b16 %v3485_v32  ;;  %v10651_v32 = vld [vmem:[%s11856_s6 + $0x60] sm:$0xe] }
 0x1fc   : > { %v1863_v34 = vadd.f32 %v1819_v23, %v1548_v26  ;;  %v3502_v26 = vrot.slane %v3500_v53, 4  ;;  %v11391_v23 = vld [vmem:[%s11856_s6 + $0x54] sm:$0xff]  ;;  %v3494_v53 = vrot.slane %v3493_v48, 4 }
 0x1fd   : > { %v12891_v47 = vpop.f32.mrf.mxu1  ;;  %v3780_v27 = vpack.c.b16 %v3754_v31, %v3753_v1  ;;  %v10571_v1 = vld [vmem:[%s11856_s6 + $0x70] sm:$0xf] }
 0x1fe   : > { %15478 = vst [vmem:[#allocation18_spill] sm:$0xff] %v12891_v47  ;;  %v2545_v10 = vadd.f32 %v2501_v16, %v1863_v34  ;;  %v4206_v47 = vpack.c.b16 %v4180_v8, %v4179_v46  ;;  %v3506_v16 = vshll.u32 %v10569_v28, 16  ;;  %v3503_v17 = vor.u32 %v3502_v26, %v3498_v29 }
 0x1ff   : > { %v4084_v34 = vrot.slane %v10568_v0, 5  ;;  %v10667_v46 = vrot.slane %v10651_v32, 9  ;;  %v4087_v8 = vrot.slane %v10569_v28, 5  ;;  %v3499_v26 = vsel %vm11888_vm2, %v3494_v53, %v3498_v29 }
 0x200   : > { %v12894_v6 = vadd.f32 %v2927_v45, %v2545_v10  ;;  %v3504_v43 = vrot.slane %v3503_v17, 4  ;;  %v3511_v28 = vshrl.u32 %v10570_v9, 16  ;;  %v3520_v48 = vshll.u32 %v10571_v1, 16 }
 0x201   : > { %v1506_v21 = vpop.f32.mrf.mxu2  ;;  %v4086_v10 = vrot.slane %v4084_v34, 4  ;;  %v3755_v17 = vunpack.c.l.b16 %v3499_v26 }
 0x202   : > { %15479 = vst [vmem:[#allocation19_spill] sm:$0xff] %v12894_v6  ;;  %v1549_v62 = vadd.f32 %v1506_v21, %v12406_v11  ;;  %v1821_v5 = vpop.f32.mrf.mxu3  ;;  %v3508_v11 = vrot.slane %v3506_v16, 5  ;;  %v3513_v53 = vrot.slane %v3511_v28, 4 }
 0x203   : > { %v2506_v30 = vpop.f32.mrf.mxu0 }
 0x204   : > { %v1864_v36 = vadd.f32 %v1821_v5, %v1549_v62  ;;  %v4088_v62 = vsel %vm12191_vm5, %v4086_v10, %v4087_v8  ;;  %v10572_v8 = vld [vmem:[%s11856_s6 + $0x74] sm:$0x1] }
 0x205   : > { %v2932_v54 = vpop.f32.mrf.mxu1  ;;  %v4182_v29 = vunpack.c.l.b16 %v4088_v62 }
 0x206   : > { %3206 = vmatmul.bf16.gmra.mxu2 %v11391_v23  ;;  %4314 = vmatmul.bf16.gmra.mxu0 %v4206_v47  ;;  %v12899_v45 = vadd.f32 %v2503_v49, %v1864_v36  ;;  %v3509_v49 = vsel %vm11888_vm2, %v3504_v43, %v3508_v11  ;;  %v4085_v47 = vsel %vm12191_vm5, %v10667_v46, %v4084_v34  ;;  %v3514_v23 = vshll.u32 %v10570_v9, 16 }
 0x207   : > { %3888 = vmatmul.bf16.gmra.mxu3 %v3780_v27  ;;  %v4181_v27 = vunpack.c.l.b16 %v4085_v47  ;;  %v3756_v36 = vunpack.c.l.b16 %v3509_v49  ;;  %v3522_v43 = vrot.slane %v3520_v48, 5  ;;  %v10652_v49 = vld [vmem:[%s11856_s6 + $0x6c] sm:$0xe]  ;;  %v4091_v47 = vrot.slane %v10571_v1, 5 }
 0x208   : > { %15480 = vst [vmem:[#allocation20_spill] sm:$0xff] %v12899_v45  ;;  %v3516_v11 = vrot.slane %v3514_v23, 5  ;;  %v10573_v23 = vld [vmem:[%s11856_s6 + $0x78] sm:$0xf]  ;;  %v11396_v45 = vld [vmem:[%s11856_s6 + $0x90] sm:$0xff] }
 0x209   : > { %v1509_v61 = vpop.f32.mrf.mxu2  ;;  %v3781_v26 = vpack.c.b16 %v3756_v36, %v3755_v17 }
 0x20a   : > { %v1550_v0 = vadd.f32 %v1509_v61, %v12424_v55  ;;  %v1824_v31 = vpop.f32.mrf.mxu3  ;;  %v3524_v55 = vshrl.u32 %v10571_v1, 16  ;;  %v3517_v28 = vor.u32 %v3516_v11, %v3513_v53 }
 0x20b   : > { %v2508_v21 = vpop.f32.mrf.mxu0 }
 0x20c   : > { %v1865_v5 = vadd.f32 %v1824_v31, %v1550_v0  ;;  %v3526_v46 = vrot.slane %v3524_v55, 4  ;;  %v4207_v0 = vpack.c.b16 %v4182_v29, %v4181_v27  ;;  %v10668_v55 = vrot.slane %v10652_v49, 9 }
 0x20d   : > { %v12912_v32 = vpop.f32.mrf.mxu1  ;;  %v3535_v27 = vshrl.u32 %v10573_v23, 16  ;;  %v3538_v29 = vshll.u32 %v10573_v23, 16  ;;  %v3518_v17 = vrot.slane %v3517_v28, 4 }
 0x20e   : > { %v2547_v16 = vadd.f32 %v2506_v30, %v1865_v5  ;;  %15481 = vst [vmem:[#allocation21_spill] sm:$0xff] %v12912_v32  ;;  %v11392_v30 = vld [vmem:[%s11856_s6 + $0x60] sm:$0xff]  ;;  %v3530_v5 = vshll.u32 %v10572_v8, 16 }
 0x20f   : > { %v3540_v49 = vrot.slane %v3538_v29, 5  ;;  %v3523_v28 = vsel %vm11888_vm2, %v3518_v17, %v3522_v43 }
 0x210   : > { %v12914_v34 = vadd.f32 %v2932_v54, %v2547_v16  ;;  %v3527_v54 = vor.u32 %v3526_v46, %v3522_v43  ;;  %v12924_v16 = vld [vmem:[%s11856_s6 + $0x7c] sm:$0xf]  ;;  %v3532_v1 = vrot.slane %v3530_v5, 5 }
 0x211   : > { %v1511_v10 = vpop.f32.mrf.mxu2  ;;  %v3544_v11 = vshll.u32 %v12924_v16, 16  ;;  %v3548_v46 = vshrl.u32 %v12924_v16, 16  ;;  %v4098_v29 = vrot.slane %v12924_v16, 5 }
 0x212   : > { %15482 = vst [vmem:[#allocation22_spill] sm:$0xff] %v12914_v34  ;;  %v1551_v9 = vadd.f32 %v1511_v10, %v12439_v38  ;;  %v1826_v61 = vpop.f32.mrf.mxu3  ;;  %v4093_v38 = vrot.slane %v4091_v47, 4  ;;  %v4094_v10 = vrot.slane %v10572_v8, 5  ;;  %v3528_v36 = vrot.slane %v3527_v54, 4 }
 0x213   : > { %v2511_v31 = vpop.f32.mrf.mxu0  ;;  %v12937_v5 = vrot.slane %v3544_v11, 5 }
 0x214   : > { %v1866_v62 = vadd.f32 %v1826_v61, %v1551_v9  ;;  %v4095_v8 = vsel %vm12191_vm5, %v4093_v38, %v4094_v10  ;;  %v3533_v54 = vsel %vm11888_vm2, %v3528_v36, %v3532_v1  ;;  %v3757_v38 = vunpack.c.l.b16 %v3523_v28  ;;  %v10653_v1 = vld [vmem:[%s11856_s6 + $0x78] sm:$0xe] }
 0x215   : > { %v2937_v53 = vpop.f32.mrf.mxu1  ;;  %v4184_v32 = vunpack.c.l.b16 %v4095_v8  ;;  %v3758_v10 = vunpack.c.l.b16 %v3533_v54 }
 0x216   : > { %3211 = vmatmul.bf16.gmra.mxu2 %v11392_v30  ;;  %4319 = vmatmul.bf16.gmra.mxu0 %v4207_v0  ;;  %v12921_v48 = vadd.f32 %v2508_v21, %v1866_v62  ;;  %v4092_v0 = vsel %vm12191_vm5, %v10668_v55, %v4091_v47  ;;  %v10575_v47 = vld [vmem:[%s11856_s6 + $0x80] sm:$0x1]  ;;  %v11751_v55 = vmov 0  }
 0x217   : > { %3893 = vmatmul.bf16.gmra.mxu3 %v3781_v26  ;;  %v3537_v26 = vrot.slane %v3535_v27, 4  ;;  %4473 = vst [vmem:[#allocation2 + $0xc] sm:$0xf] %v11751_v55  ;;  %v3554_v36 = vshll.u32 %v10575_v47, 16  ;;  %v4101_v28 = vrot.slane %v10575_v47, 5 }
 0x218   : > { %15483 = vst [vmem:[#allocation23_spill] sm:$0xff] %v12921_v48  ;;  %v13066_v48 = vld [vmem:[%s11856_s6 + $0xa4] sm:$0x1] }
 0x219   : > { %v1514_v9 = vpop.f32.mrf.mxu2  ;;  %v3541_v27 = vor.u32 %v3540_v49, %v3537_v26  ;;  %4470 = vst [vmem:[#allocation2] sm:$0xf] %v11751_v55  ;;  %v10669_v49 = vrot.slane %v10653_v1, 9  ;;  %v3556_v54 = vrot.slane %v3554_v36, 5 }
 0x21a   : > { %v1552_v21 = vadd.f32 %v1514_v9, %v12463_v22  ;;  %v1829_v61 = vpop.f32.mrf.mxu3  ;;  %v3550_v22 = vrot.slane %v3548_v46, 4  ;;  %v4183_v9 = vunpack.c.l.b16 %v4092_v0  ;;  %4471 = vst [vmem:[#allocation2 + $0x4] sm:$0xf] %v11751_v55  ;;  %v3782_v0 = vpack.c.b16 %v3758_v10, %v3757_v38 }
 0x21b   : > { %v2513_v30 = vpop.f32.mrf.mxu0  ;;  %4472 = vst [vmem:[#allocation2 + $0x8] sm:$0x1] %v11751_v55  ;;  %v3542_v8 = vrot.slane %v3541_v27, 4  ;;  %v4099_v27 = vsel %vm12191_vm5, %v10669_v49, %v4098_v29 }
 0x21c   : > { %v1867_v62 = vadd.f32 %v1829_v61, %v1552_v21  ;;  %v3551_v17 = vor.u32 %v3550_v22, %v12937_v5  ;;  %v11393_v21 = vld [vmem:[%s11856_s6 + $0x6c] sm:$0xff]  ;;  %v4208_v61 = vpack.c.b16 %v4184_v32, %v4183_v9  ;;  %4474 = vst [vmem:[#allocation2 + $0x10] sm:$0xf] %v11751_v55  ;;  %v10576_v32 = vld [vmem:[%s11856_s6 + $0x84] sm:$0xf] }
 0x21d   : > { %v12952_v16 = vpop.f32.mrf.mxu1  ;;  %4475 = vst [vmem:[#allocation2 + $0x14] sm:$0x1] %v11751_v55  ;;  %v3559_v1 = vshrl.u32 %v10576_v32, 16 }
 0x21e   : > { %v2549_v23 = vadd.f32 %v2511_v31, %v1867_v62  ;;  %15485 = vst [vmem:[#allocation25_spill] sm:$0xff] %v12952_v16  ;;  %v4100_v62 = vrot.slane %v4098_v29, 4  ;;  %v3547_v29 = vsel %vm11888_vm2, %v3542_v8, %v12937_v5 }
 0x21f   : > { %4476 = vst [vmem:[#allocation2 + $0x18] sm:$0xf] %v11751_v55 }
 0x220   : > { %v12942_v43 = vadd.f32 %v2937_v53, %v2549_v23  ;;  %4477 = vst [vmem:[#allocation2 + $0x1c] sm:$0xf] %v11751_v55  ;;  %v12962_v23 = vld [vmem:[%s11856_s6 + $0x88] sm:$0xf]  ;;  %v4997_v9 = vld [vmem:[#allocation2] sm:$0xf] }
 0x221   : > { %v1516_v31 = vpop.f32.mrf.mxu2  ;;  %4478 = vst [vmem:[#allocation2 + $0x20] sm:$0x1] %v11751_v55  ;;  %v4998_v47 = vld [vmem:[#allocation2 + $0x4] sm:$0xf]  ;;  %v5062_v38 = vshrl.u32 %v4997_v9, 16  ;;  %v5065_v10 = vshll.u32 %v4997_v9, 16 }
 0x222   : > { %15484 = vst [vmem:[#allocation24_spill] sm:$0xff] %v12942_v43  ;;  %v1553_v11 = vadd.f32 %v1516_v31, %v12481_v25  ;;  %v1831_v46 = vpop.f32.mrf.mxu3  ;;  %v3552_v25 = vrot.slane %v3551_v17, 4  ;;  %v4102_v31 = vsel %vm12191_vm5, %v4100_v62, %v4101_v28  ;;  %v5075_v17 = vshrl.u32 %v4998_v47, 16  ;;  %v5045_v9 = vld [vmem:[#allocation2 + $0x8] sm:$0x1] }
 0x223   : > { %v2516_v53 = vpop.f32.mrf.mxu0  ;;  %4479 = vst [vmem:[#allocation2 + $0x24] sm:$0xf] %v11751_v55  ;;  %v5081_v5 = vshll.u32 %v5045_v9, 16  ;;  %v3759_v43 = vunpack.c.l.b16 %v3547_v29  ;;  %v10579_v29 = vld [vmem:[%s11856_s6 + $0x90] sm:$0xf] }
 0x224   : > { %v1868_v26 = vadd.f32 %v1831_v46, %v1553_v11  ;;  %4480 = vst [vmem:[#allocation2 + $0x28] sm:$0xf] %v11751_v55  ;;  %v3562_v11 = vshll.u32 %v10576_v32, 16  ;;  %v5064_v46 = vrot.slane %v5062_v38, 4  ;;  %v3557_v28 = vsel %vm11888_vm2, %v3552_v25, %v3556_v54 }
 0x225   : > { %4481 = vst [vmem:[#allocation2 + $0x2c] sm:$0x1] %v11751_v55  ;;  %v3572_v32 = vshrl.u32 %v12962_v23, 16  ;;  %v2942_v8 = vpop.f32.mrf.mxu1 }
 0x226   : > { %3216 = vmatmul.bf16.gmra.mxu2 %v11393_v21  ;;  %4324 = vmatmul.bf16.gmra.mxu0 %v4208_v61  ;;  %v12958_v22 = vadd.f32 %v2513_v30, %v1868_v26  ;;  %v5071_v30 = vshll.u32 %v4998_v47, 16  ;;  %v5067_v21 = vrot.slane %v5065_v10, 5  ;;  %v3568_v26 = vshll.u32 %v12962_v23, 16  ;;  %4482 = vst [vmem:[#allocation2 + $0x30] sm:$0xf] %v11751_v55 }
 0x227   : > { %3898 = vmatmul.bf16.gmra.mxu3 %v3782_v0  ;;  %v4185_v10 = vunpack.c.l.b16 %v4099_v27  ;;  %4483 = vst [vmem:[#allocation2 + $0x34] sm:$0xf] %v11751_v55  ;;  %v3564_v16 = vrot.slane %v3562_v11, 5  ;;  %v5083_v27 = vrot.slane %v5081_v5, 5 }
 0x228   : > { %15486 = vst [vmem:[#allocation26_spill] sm:$0xff] %v12958_v22  ;;  %v5073_v49 = vrot.slane %v5071_v30, 5  ;;  %v5068_v47 = vor.u32 %v5067_v21, %v5064_v46  ;;  %v3561_v30 = vrot.slane %v3559_v1, 4  ;;  %v12985_v46 = vrot.slane %v3568_v26, 5  ;;  %v12989_v21 = vld [vmem:[%s11856_s6 + $0x8c] sm:$0x1] }
 0x229   : > { %v1519_v36 = vpop.f32.mrf.mxu2  ;;  %4484 = vst [vmem:[#allocation2 + $0x38] sm:$0x1] %v11751_v55  ;;  %v3578_v5 = vshll.u32 %v12989_v21, 16 }
 0x22a   : > { %v1554_v61 = vadd.f32 %v1519_v36, %v12499_v59  ;;  %v1834_v0 = vpop.f32.mrf.mxu3  ;;  %v5077_v59 = vrot.slane %v5075_v17, 4  ;;  %v4186_v36 = vunpack.c.l.b16 %v4102_v31  ;;  %v5069_v25 = vrot.slane %v5068_v47, 4  ;;  %4485 = vst [vmem:[#allocation2 + $0x3c] sm:$0xf] %v11751_v55  ;;  %v11450_v17 = vld [vmem:[#allocation3 + $0x40] sm:$0xff] }
 0x22b   : > { %v12976_v62 = vpop.f32.mrf.mxu0  ;;  %v3760_v31 = vunpack.c.l.b16 %v3557_v28  ;;  %4486 = vst [vmem:[#allocation2 + $0x40] sm:$0xf] %v11751_v55  ;;  %5581 = vmatpush.bf16.msra.mxu1 %v11450_v17  ;;  %v3565_v9 = vor.u32 %v3564_v16, %v3561_v30  ;;  %v13001_v47 = vld [vmem:[%s11856_s6 + $0x94] sm:$0xf]  ;;  %v10654_v30 = vld [vmem:[%s11856_s6 + $0x84] sm:$0xe] }
 0x22c   : > { %v1869_v38 = vadd.f32 %v1834_v0, %v1554_v61  ;;  %v5078_v54 = vor.u32 %v5077_v59, %v5073_v49  ;;  %v3574_v61 = vrot.slane %v3572_v32, 4  ;;  %v5074_v1 = vsel %vm11888_vm2, %v5069_v25, %v5073_v49  ;;  %4487 = vst [vmem:[#allocation2 + $0x44] sm:$0x1] %v11751_v55  ;;  %v15488_v49 = vld [vmem:[#allocation9_spill] sm:$0xff] }
 0x22d   : > { %v5462_v0 = vunpack.c.l.b16 %v5074_v1  ;;  %v4209_v28 = vpack.c.b16 %v4186_v36, %v4185_v10  ;;  %4488 = vst [vmem:[#allocation2 + $0x48] sm:$0xf] %v11751_v55  ;;  %v3783_v25 = vpack.c.b16 %v3760_v31, %v3759_v43  ;;  %v3586_v17 = vshll.u32 %v10579_v29, 16 }
 0x22e   : > { %v2551_v22 = vadd.f32 %v2516_v53, %v1869_v38  ;;  %v5079_v53 = vrot.slane %v5078_v54, 4  ;;  %v11394_v38 = vld [vmem:[%s11856_s6 + $0x78] sm:$0xff]  ;;  %4489 = vst [vmem:[#allocation2 + $0x4c] sm:$0xf] %v11751_v55  ;;  %v3575_v16 = vor.u32 %v3574_v61, %v12985_v46  ;;  %v3583_v54 = vshrl.u32 %v10579_v29, 16 }
 0x22f   : > { %4490 = vst [vmem:[#allocation2 + $0x50] sm:$0x1] %v11751_v55  ;;  %v10670_v31 = vrot.slane %v10654_v30, 9  ;;  %v4108_v29 = vrot.slane %v12989_v21, 5  ;;  %v15490_v21 = vld [vmem:[#allocation10_spill] sm:$0xff] }
 0x230   : > { %v12993_v11 = vadd.f32 %v2942_v8, %v2551_v22  ;;  %v5084_v32 = vsel %vm11888_vm2, %v5079_v53, %v5083_v27  ;;  %v4105_v8 = vrot.slane %v12962_v23, 5  ;;  %4491 = vst [vmem:[#allocation2 + $0x54] sm:$0xf] %v11751_v55  ;;  %v3592_v53 = vshll.u32 %v13001_v47, 16  ;;  %v10582_v30 = vld [vmem:[%s11856_s6 + $0x9c] sm:$0xf] }
 0x231   : > { %v1521_v26 = vpop.f32.mrf.mxu2  ;;  %v5463_v10 = vunpack.c.l.b16 %v5084_v32  ;;  %4492 = vst [vmem:[#allocation2 + $0x58] sm:$0xf] %v11751_v55  ;;  %v3566_v23 = vrot.slane %v3565_v9, 4  ;;  %v3580_v32 = vrot.slane %v3578_v5, 5  ;;  %v3585_v9 = vrot.slane %v3583_v54, 4 }
 0x232   : > { %15487 = vst [vmem:[#allocation27_spill] sm:$0xff] %v12993_v11  ;;  %v1555_v59 = vadd.f32 %v1521_v26, %v15488_v49  ;;  %v1836_v22 = vpop.f32.mrf.mxu3  ;;  %v3596_v26 = vshrl.u32 %v13001_v47, 16  ;;  %v4107_v61 = vrot.slane %v4105_v8, 4  ;;  %v3588_v49 = vrot.slane %v3586_v17, 5  ;;  %v13032_v5 = vld [vmem:[%s15458_s2] ss:$0 sm:$0xff] }
 0x233   : > { %v4290_v36 = vpop.f32.mrf.mxu0  ;;  %v5494_v1 = vpack.c.b16 %v5463_v10, %v5462_v0  ;;  %4493 = vst [vmem:[#allocation2 + $0x5c] sm:$0x1] %v11751_v55  ;;  %v3576_v0 = vrot.slane %v3575_v16, 4  ;;  %v3571_v17 = vsel %vm11888_vm2, %v3566_v23, %v12985_v46  ;;  %v11449_v23 = vld [vmem:[#allocation3 + $0x38] sm:$0xff] }
 0x234   : > { %v1870_v27 = vadd.f32 %v1836_v22, %v1555_v59  ;;  %4494 = vst [vmem:[#allocation2 + $0x60] sm:$0xf] %v11751_v55  ;;  %v3598_v59 = vrot.slane %v3596_v26, 4  ;;  %v4109_v16 = vsel %vm12191_vm5, %v4107_v61, %v4108_v29  ;;  %v10655_v61 = vld [vmem:[%s11856_s6 + $0x90] sm:$0xe]  ;;  %v4112_v29 = vrot.slane %v13001_v47, 5  ;;  %5807 = vmatpush.bf16.msrb.mxu2 %v11449_v23 }
 0x235   : > { %5582 = vmatmul.bf16.vlgmr.msra.gmra.mxu1 %v5494_v1  ;;  %4495 = vst [vmem:[#allocation2 + $0x64] sm:$0xf] %v11751_v55  ;;  %v4188_v46 = vunpack.c.l.b16 %v4109_v16 }
 0x236   : > { %3221 = vmatmul.bf16.gmra.mxu2 %v11394_v38  ;;  %4329 = vmatmul.bf16.gmra.mxu0 %v4209_v28  ;;  %v13016_v43 = vadd.f32 %v12976_v62, %v1870_v27  ;;  %v13023_v28 = vld [vmem:[%s11856_s6 + $0x98] sm:$0x1]  ;;  %v13025_v62 = vrot.slane %v3592_v53, 5  ;;  %4496 = vst [vmem:[#allocation2 + $0x68] sm:$0x1] %v11751_v55  ;;  %v3589_v27 = vor.u32 %v3588_v49, %v3585_v9  ;;  %v11465_v9 = vld [vmem:[#allocation3 + $0xb8] sm:$0xff] }
 0x237   : > { %3903 = vmatmul.bf16.gmra.mxu3 %v3783_v25  ;;  %4497 = vst [vmem:[#allocation2 + $0x6c] sm:$0xf] %v11751_v55  ;;  %v4106_v25 = vsel %vm12191_vm5, %v10670_v31, %v4105_v8  ;;  %v3602_v1 = vshll.u32 %v13023_v28, 16  ;;  %v13048_v53 = vld [vmem:[%s11856_s6 + $0xa0] sm:$0xf]  ;;  %v3581_v8 = vsel %vm11888_vm2, %v3576_v0, %v3580_v32  ;;  %v3607_v49 = vshrl.u32 %v10582_v30, 16 }
 0x238   : > { %15489 = vst [vmem:[#allocation9_spill] sm:$0xff] %v13016_v43  ;;  %v3599_v31 = vor.u32 %v3598_v59, %v13025_v62  ;;  %v3620_v0 = vshrl.u32 %v13048_v53, 16  ;;  %v3762_v47 = vunpack.c.l.b16 %v3581_v8  ;;  %6185 = vmatpush.bf16.msrb.mxu3 %v11465_v9  ;;  %v3590_v32 = vrot.slane %v3589_v27, 4 }
 0x239   : > { %v3182_v22 = vpop.f32.mrf.mxu2  ;;  %4498 = vst [vmem:[#allocation2 + $0x70] sm:$0xf] %v11751_v55  ;;  %v3604_v59 = vrot.slane %v3602_v1, 5  ;;  %v3609_v8 = vrot.slane %v3607_v49, 4 }
 0x23a   : > { %v3262_v38 = vadd.f32 %v3182_v22, %v15490_v21  ;;  %v3864_v10 = vpop.f32.mrf.mxu3  ;;  %4499 = vst [vmem:[#allocation2 + $0x74] sm:$0x1] %v11751_v55  ;;  %v4187_v22 = vunpack.c.l.b16 %v4106_v25  ;;  %v3610_v21 = vshll.u32 %v10582_v30, 16  ;;  %v10671_v25 = vrot.slane %v10655_v61, 9  ;;  %v11395_v61 = vld [vmem:[%s11856_s6 + $0x84] sm:$0xff] }
 0x23b   : > { %v13041_v54 = vpop.f32.mrf.mxu0  ;;  %4500 = vst [vmem:[#allocation2 + $0x78] sm:$0xf] %v11751_v55  ;;  %v4114_v30 = vrot.slane %v4112_v29, 4 }
 0x23c   : > { %v3944_v26 = vadd.f32 %v3864_v10, %v3262_v38  ;;  %4501 = vst [vmem:[#allocation2 + $0x7c] sm:$0xf] %v11751_v55  ;;  %v3761_v38 = vunpack.c.l.b16 %v3571_v17  ;;  %v3616_v10 = vshll.u32 %v13048_v53, 16  ;;  %v4115_v17 = vrot.slane %v13023_v28, 5 }
 0x23d   : > { %4502 = vst [vmem:[#allocation2 + $0x80] sm:$0x1] %v11751_v55  ;;  %v4210_v11 = vpack.c.b16 %v4188_v46, %v4187_v22  ;;  %v3612_v23 = vrot.slane %v3610_v21, 5  ;;  %v3595_v46 = vsel %vm11888_vm2, %v3590_v32, %v13025_v62  ;;  %v3626_v62 = vshll.u32 %v13066_v48, 16 }
 0x23e   : > { %v4370_v43 = vadd.f32 %v4290_v36, %v3944_v26  ;;  %4503 = vst [vmem:[#allocation2 + $0x84] sm:$0xf] %v11751_v55  ;;  %v3600_v36 = vrot.slane %v3599_v31, 4  ;;  %v13071_v9 = vrot.slane %v3616_v10, 5  ;;  %v3622_v31 = vrot.slane %v3620_v0, 4 }
 0x23f   : > { %4504 = vst [vmem:[#allocation2 + $0x88] sm:$0xf] %v11751_v55  ;;  %v3784_v22 = vpack.c.b16 %v3762_v47, %v3761_v38  ;;  %v4113_v10 = vsel %vm12191_vm5, %v10671_v25, %v4112_v29  ;;  %v4116_v38 = vsel %vm12191_vm5, %v4114_v30, %v4115_v17  ;;  %v3613_v0 = vor.u32 %v3612_v23, %v3609_v8  ;;  %v11489_v29 = vld [vmem:[#allocation3 + $0xf8] sm:$0xff]  ;;  %v4883_v8 = vld [vmem:[#allocation2 + $0xc] sm:$0xf] }
 0x240   : > { %v4406_v16 = vadd.f32 %v13032_v5, %v4370_v43  ;;  %4505 = vst [vmem:[#allocation2 + $0x8c] sm:$0x1] %v11751_v55  ;;  %v3605_v21 = vsel %vm11888_vm2, %v3600_v36, %v3604_v59  ;;  %v4119_v47 = vrot.slane %v13048_v53, 5  ;;  %v3623_v25 = vor.u32 %v3622_v31, %v13071_v9  ;;  %6499 = vmatpush.bf16.msrb.mxu0 %v11489_v29 }
 0x241   : > { %v3184_v26 = vpop.f32.mrf.mxu2  ;;  %4506 = vst [vmem:[#allocation2 + $0x90] sm:$0xf] %v11751_v55  ;;  %v13094_v36 = vunpack.c.l.b16 %v3595_v46  ;;  %v13096_v30 = vunpack.c.l.b16 %v3605_v21  ;;  %v4189_v53 = vunpack.c.l.b16 %v4113_v10 }
 0x242   : > { %v4438_v27 = vmax.f32 %v4406_v16, 0.0  ;;  %v3263_v1 = vadd.f32 %v3184_v26, %v12559_v58  ;;  %v3866_v43 = vpop.f32.mrf.mxu3  ;;  %4507 = vst [vmem:[#allocation2 + $0x94] sm:$0xf] %v11751_v55  ;;  %v10656_v16 = vld [vmem:[%s11856_s6 + $0x9c] sm:$0xe]  ;;  %v4121_v31 = vrot.slane %v4119_v47, 4 }
 0x243   : > { %v13074_v28 = vpop.f32.mrf.mxu0  ;;  %4508 = vst [vmem:[#allocation2 + $0x98] sm:$0x1] %v11751_v55  ;;  %v13116_v21 = vrot.slane %v3623_v25, 4 }
 0x244   : > { %v4524_v49 = vpack.c.bf16 %v4438_v27, %v4438_v27  ;;  %v3945_v58 = vadd.f32 %v3866_v43, %v3263_v1  ;;  %4509 = vst [vmem:[#allocation2 + $0x9c] sm:$0xf] %v11751_v55  ;;  %v13109_v1 = vrot.slane %v3613_v0, 4  ;;  %v13111_v43 = vrot.slane %v3626_v62, 5  ;;  %v10585_v0 = vld [vmem:[%s11856_s6 + $0xa8] sm:$0xf] }
 0x245   : > { %4510 = vst [vmem:[#allocation2 + $0xa0] sm:$0xf] %v11751_v55  ;;  %v13125_v62 = vld [vmem:[%s11856_s6 + $0xac] sm:$0xf]  ;;  %v3631_v29 = vshrl.u32 %v10585_v0, 16 }
 0x246   : > { %v4560_v32 = vshrl.u32 %v4524_v49, 16  ;;  %v4371_v59 = vadd.f32 %v13041_v54, %v3945_v58  ;;  %3226 = vmatmul.bf16.gmra.mxu2 %v11395_v61  ;;  %4334 = vmatmul.bf16.gmra.mxu0 %v4210_v11  ;;  %v4563_v26 = vshll.u32 %v4524_v49, 16  ;;  %4511 = vst [vmem:[#allocation2 + $0xa4] sm:$0x1] %v11751_v55  ;;  %v4190_v54 = vunpack.c.l.b16 %v4116_v38 }
 0x247   : > { %3908 = vmatmul.bf16.gmra.mxu3 %v3784_v22  ;;  %4512 = vst [vmem:[#allocation2 + $0xa8] sm:$0xf] %v11751_v55  ;;  %v10672_v61 = vrot.slane %v10656_v16, 9  ;;  %v11497_v16 = vld [vmem:[#allocation3 + $0x138] sm:$0xff] }
 0x248   : > { %v13098_v17 = vrot.slane %v4560_v32, 7  ;;  %v4407_v11 = vadd.f32 %v13032_v5, %v4371_v59  ;;  %4513 = vst [vmem:[#allocation2 + $0xac] sm:$0xf] %v11751_v55  ;;  %v4211_v25 = vpack.c.b16 %v4190_v54, %v4189_v53  ;;  %7181 = vmatpush.bf16.msrb.mxu1 %v11497_v16  ;;  %v3619_v53 = vsel %vm11888_vm2, %v13109_v1, %v13071_v9 }
 0x249   : > { %v3187_v27 = vpop.f32.mrf.mxu2  ;;  %4514 = vst [vmem:[#allocation2 + $0xb0] sm:$0x1] %v11751_v55  ;;  %v13142_v54 = vsel %vm12191_vm5, %v10672_v61, %v4119_v47 }
 0x24a   : > { %v4565_v22 = vor.u32 %v4563_v26, %v13098_v17  ;;  %v4439_v46 = vmax.f32 %v4407_v11, 0.0  ;;  %v3264_v49 = vadd.f32 %v3187_v27, %v12581_v4  ;;  %v3869_v58 = vpop.f32.mrf.mxu3  ;;  %4515 = vst [vmem:[#allocation2 + $0xb4] sm:$0xf] %v11751_v55  ;;  %v3634_v26 = vshll.u32 %v10585_v0, 16 }
 0x24b   : > { %v13119_v10 = vpop.f32.mrf.mxu0  ;;  %v3640_v11 = vshll.u32 %v13125_v62, 16  ;;  %v3644_v27 = vshrl.u32 %v13125_v62, 16  ;;  %4516 = vst [vmem:[#allocation2 + $0xb8] sm:$0xf] %v11751_v55  ;;  %v4566_v61 = vrot.slane %v13098_v17, 4 }
 0x24c   : > { %v4884_v32 = vsel %vm13104_vm11, %v4565_v22, %v4883_v8  ;;  %v4525_v59 = vpack.c.bf16 %v4439_v46, %v4439_v46  ;;  %v3946_v4 = vadd.f32 %v3869_v58, %v3264_v49  ;;  %v4122_v8 = vrot.slane %v13066_v48, 5  ;;  %4517 = vst [vmem:[#allocation2 + $0xbc] sm:$0x1] %v11751_v55  ;;  %v4889_v46 = vld [vmem:[#allocation2 + $0x14] sm:$0x1] }
 0x24d   : > { %4885 = vst [vmem:[#allocation2 + $0xc] sm:$0xf] %v4884_v32  ;;  %v3633_v22 = vrot.slane %v3631_v29, 4  ;;  %v13145_v49 = vld [vmem:[%s11856_s6 + $0xb0] sm:$0x1]  ;;  %v13147_v58 = vrot.slane %v3640_v11, 5 }
 0x24e   : > { %v4568_v38 = vshrl.u32 %v4525_v59, 16  ;;  %v4372_v34 = vadd.f32 %v13074_v28, %v3946_v4  ;;  %v3636_v28 = vrot.slane %v3634_v26, 5  ;;  %4518 = vst [vmem:[#allocation2 + $0xc0] sm:$0xf] %v11751_v55  ;;  %v4571_v9 = vshll.u32 %v4525_v59, 16 }
 0x24f   : > { %v3646_v47 = vrot.slane %v3644_v27, 4  ;;  %4519 = vst [vmem:[#allocation2 + $0xc4] sm:$0xf] %v11751_v55  ;;  %v10657_v29 = vld [vmem:[%s11856_s6 + $0xa8] sm:$0xe]  ;;  %v4123_v14 = vsel %vm12191_vm5, %v4121_v31, %v4122_v8  ;;  %v4126_v8 = vrot.slane %v13125_v62, 5 }
 0x250   : > { %v4570_v0 = vrot.slane %v4568_v38, 7  ;;  %v4408_v1 = vadd.f32 %v13032_v5, %v4372_v34  ;;  %v3629_v38 = vsel %vm11888_vm2, %v13116_v21, %v13111_v43  ;;  %v3637_v59 = vor.u32 %v3636_v28, %v3633_v22  ;;  %4520 = vst [vmem:[#allocation2 + $0xc8] sm:$0x1] %v11751_v55 }
 0x251   : > { %v3189_v4 = vpop.f32.mrf.mxu2  ;;  %v3650_v34 = vshll.u32 %v13145_v49, 16  ;;  %4521 = vst [vmem:[#allocation2 + $0xcc] sm:$0xf] %v11751_v55  ;;  %v3647_v21 = vor.u32 %v3646_v47, %v13147_v58  ;;  %v10673_v22 = vrot.slane %v10657_v29, 9 }
 0x252   : > { %v4573_v17 = vor.u32 %v4571_v9, %v4570_v0  ;;  %v4575_v16 = vrot.slane %v4570_v0, 4  ;;  %v4440_v26 = vmax.f32 %v4408_v1, 0.0  ;;  %v3265_v11 = vadd.f32 %v3189_v4, %v12596_v52  ;;  %v3871_v27 = vpop.f32.mrf.mxu3  ;;  %4522 = vst [vmem:[#allocation2 + $0xd0] sm:$0xf] %v11751_v55 }
 0x253   : > { %v4300_v6 = vpop.f32.mrf.mxu0  ;;  %v3638_v43 = vrot.slane %v3637_v59, 4  ;;  %4523 = vst [vmem:[#allocation2 + $0xd4] sm:$0x1] %v11751_v55  ;;  %v3652_v31 = vrot.slane %v3650_v34, 5  ;;  %v3648_v29 = vrot.slane %v3647_v21, 4  ;;  %v13191_v55 = vunpack.c.l.b16 %v3629_v38 }
 0x254   : > { %v4574_v28 = vsel %vm13152_vm12, %v4566_v61, %v4573_v17  ;;  %v4890_v52 = vsel %vm13161_vm13, %v4575_v16, %v4889_v46  ;;  %v4526_v0 = vpack.c.bf16 %v4440_v26, %v4440_v26  ;;  %v3947_v9 = vadd.f32 %v3871_v27, %v3265_v11  ;;  %v4999_v1 = vld [vmem:[#allocation2 + $0xc] sm:$0xf] }
 0x255   : > { %v5086_v4 = vshrl.u32 %v4999_v1, 16  ;;  %v5089_v13 = vshll.u32 %v4999_v1, 16  ;;  %4886 = vst [vmem:[#allocation2 + $0x10] sm:$0xf] %v4574_v28  ;;  %v13186_v61 = vunpack.c.l.b16 %v3619_v53  ;;  %v15497_v46 = vpack.c.b16 %v13096_v30, %v13094_v36  ;;  %v4892_v36 = vld [vmem:[#allocation2 + $0x18] sm:$0xf] }
 0x256   : > { %v4577_v47 = vshrl.u32 %v4526_v0, 16  ;;  %v4373_v59 = vadd.f32 %v13119_v10, %v3947_v9  ;;  %3231 = vmatmul.bf16.gmra.mxu2 %v11396_v45  ;;  %4339 = vmatmul.bf16.gmra.mxu0 %v4211_v25  ;;  %4891 = vst [vmem:[#allocation2 + $0x14] sm:$0x1] %v4890_v52  ;;  %v4191_v34 = vunpack.c.l.b16 %v13142_v54  ;;  %v4192_v17 = vunpack.c.l.b16 %v4123_v14  ;;  %v10588_v1 = vld [vmem:[%s11856_s6 + $0xb4] sm:$0xf] }
 0x257   : > { %3913 = vmatmul.bf16.gmra.mxu3 %v15497_v46  ;;  %v3643_v62 = vsel %vm11888_vm2, %v3638_v43, %v13147_v58  ;;  %v4580_v45 = vshll.u32 %v4526_v0, 16  ;;  %v13202_v53 = vsel %vm12191_vm5, %v10673_v22, %v4126_v8  ;;  %v5088_v38 = vrot.slane %v5086_v4, 4 }
 0x258   : > { %v13197_v10 = vrot.slane %v4577_v47, 7  ;;  %v4409_v25 = vadd.f32 %v13032_v5, %v4373_v59  ;;  %v5091_v16 = vrot.slane %v5089_v13, 5  ;;  %v3653_v14 = vsel %vm11888_vm2, %v3648_v29, %v3652_v31  ;;  %v11448_v31 = vld [vmem:[#allocation3 + $0x30] sm:$0xff] }
 0x259   : > { %v3192_v30 = vpop.f32.mrf.mxu2  ;;  %v4128_v54 = vrot.slane %v4126_v8, 4  ;;  %v4129_v43 = vrot.slane %v13145_v49, 5  ;;  %v3786_v22 = vpack.c.b16 %v13191_v55, %v13186_v61  ;;  %v4212_v28 = vpack.c.b16 %v4192_v17, %v4191_v34  ;;  %v11464_v49 = vld [vmem:[#allocation3 + $0xb0] sm:$0xff]  ;;  %5808 = vmatpush.bf16.msrb.mxu2 %v11448_v31 }
 0x25a   : > { %v4582_v58 = vor.u32 %v4580_v45, %v13197_v10  ;;  %v4441_v26 = vmax.f32 %v4409_v25, 0.0  ;;  %v3266_v11 = vadd.f32 %v3192_v30, %v12620_v35  ;;  %v3874_v27 = vpop.f32.mrf.mxu3  ;;  %v4583_v52 = vrot.slane %v13197_v10, 4  ;;  %v13228_v45 = vld [vmem:[%s11856_s6 + $0xb8] sm:$0xf]  ;;  %6186 = vmatpush.bf16.msrb.mxu3 %v11464_v49 }
 0x25b   : > { %v4302_v21 = vpop.f32.mrf.mxu0  ;;  %v5092_v35 = vor.u32 %v5091_v16, %v5088_v38  ;;  %v13217_v8 = vunpack.c.l.b16 %v3643_v62  ;;  %v13219_v47 = vunpack.c.l.b16 %v3653_v14  ;;  %v13225_v10 = vsel %vm12191_vm5, %v4128_v54, %v4129_v43 }
 0x25c   : > { %v4893_v13 = vsel %vm13104_vm11, %v4582_v58, %v4892_v36  ;;  %v4527_v0 = vpack.c.bf16 %v4441_v26, %v4441_v26  ;;  %v3948_v9 = vadd.f32 %v3874_v27, %v3266_v11  ;;  %v13215_v4 = vld [vmem:[#allocation2 + $0x10] sm:$0xf]  ;;  %v3655_v30 = vshrl.u32 %v10588_v1, 16  ;;  %v4896_v58 = vld [vmem:[#allocation2 + $0x20] sm:$0x1] }
 0x25d   : > { %4894 = vst [vmem:[#allocation2 + $0x18] sm:$0xf] %v4893_v13  ;;  %v5046_v34 = vld [vmem:[#allocation2 + $0x14] sm:$0x1]  ;;  %v5095_v17 = vshll.u32 %v13215_v4, 16  ;;  %v5099_v36 = vshrl.u32 %v13215_v4, 16 }
 0x25e   : > { %v4585_v29 = vshrl.u32 %v4527_v0, 16  ;;  %v4374_v46 = vadd.f32 %v4300_v6, %v3948_v9  ;;  %v4588_v25 = vshll.u32 %v4527_v0, 16  ;;  %v5105_v62 = vshll.u32 %v5046_v34, 16  ;;  %v11397_v34 = vld [vmem:[%s11856_s6 + $0x9c] sm:$0xff] }
 0x25f   : > { %v5097_v16 = vrot.slane %v5095_v17, 5  ;;  %v3658_v14 = vshll.u32 %v10588_v1, 16  ;;  %v5093_v11 = vrot.slane %v5092_v35, 4  ;;  %v5101_v54 = vrot.slane %v5099_v36, 4 }
 0x260   : > { %v4587_v38 = vrot.slane %v4585_v29, 7  ;;  %v4410_v6 = vadd.f32 %v13032_v5, %v4374_v46  ;;  %v3657_v27 = vrot.slane %v3655_v30, 4  ;;  %v3664_v43 = vshll.u32 %v13228_v45, 16 }
 0x261   : > { %v3194_v26 = vpop.f32.mrf.mxu2  ;;  %v5102_v46 = vor.u32 %v5101_v54, %v5097_v16  ;;  %v5107_v17 = vrot.slane %v5105_v62, 5  ;;  %v4194_v1 = vunpack.c.l.b16 %v13225_v10  ;;  %v3660_v59 = vrot.slane %v3658_v14, 5  ;;  %v13245_v54 = vld [vmem:[%s11856_s6 + $0xbc] sm:$0x1] }
 0x262   : > { %v4590_v13 = vor.u32 %v4588_v25, %v4587_v38  ;;  %v4592_v0 = vrot.slane %v4587_v38, 4  ;;  %v4442_v9 = vmax.f32 %v4410_v6, 0.0  ;;  %v3267_v31 = vadd.f32 %v3194_v26, %v12634_v41  ;;  %v3876_v49 = vpop.f32.mrf.mxu3 }
 0x263   : > { %v13235_v29 = vpop.f32.mrf.mxu0  ;;  %v5098_v41 = vsel %vm11888_vm2, %v5093_v11, %v5097_v16  ;;  %v5103_v6 = vrot.slane %v5102_v46, 4  ;;  %v3661_v62 = vor.u32 %v3660_v59, %v3657_v27  ;;  %v3668_v59 = vshrl.u32 %v13228_v45, 16 }
 0x264   : > { %v4591_v35 = vsel %vm13152_vm12, %v4583_v52, %v4590_v13  ;;  %v4897_v25 = vsel %vm13161_vm13, %v4592_v0, %v4896_v58  ;;  %v4528_v36 = vpack.c.bf16 %v4442_v9, %v4442_v9  ;;  %v3949_v30 = vadd.f32 %v3876_v49, %v3267_v31  ;;  %v5001_v38 = vld [vmem:[#allocation2 + $0x18] sm:$0xf]  ;;  %v11488_v52 = vld [vmem:[#allocation3 + $0xf0] sm:$0xff]  ;;  %v10658_v31 = vld [vmem:[%s11856_s6 + $0xb4] sm:$0xe] }
 0x265   : > { %4895 = vst [vmem:[#allocation2 + $0x1c] sm:$0xf] %v4591_v35  ;;  %v5110_v26 = vshrl.u32 %v5001_v38, 16  ;;  %v5113_v58 = vshll.u32 %v5001_v38, 16  ;;  %v3666_v13 = vrot.slane %v3664_v43, 5  ;;  %v5108_v16 = vsel %vm11888_vm2, %v5103_v6, %v5107_v17  ;;  %6500 = vmatpush.bf16.msrb.mxu0 %v11488_v52 }
 0x266   : > { %4898 = vst [vmem:[#allocation2 + $0x20] sm:$0x1] %v4897_v25  ;;  %v4594_v10 = vshrl.u32 %v4528_v36, 16  ;;  %v4375_v14 = vadd.f32 %v4302_v21, %v3949_v30  ;;  %3236 = vmatmul.bf16.gmra.mxu2 %v11397_v34  ;;  %4344 = vmatmul.bf16.gmra.mxu0 %v4212_v28  ;;  %v4597_v0 = vshll.u32 %v4528_v36, 16  ;;  %v5465_v9 = vunpack.c.l.b16 %v5108_v16  ;;  %v4899_v43 = vld [vmem:[#allocation2 + $0x24] sm:$0xf] }
 0x267   : > { %3918 = vmatmul.bf16.gmra.mxu3 %v3786_v22  ;;  %v5112_v11 = vrot.slane %v5110_v26, 4  ;;  %v5115_v28 = vrot.slane %v5113_v58, 5  ;;  %v5464_v34 = vunpack.c.l.b16 %v5098_v41  ;;  %v3662_v46 = vrot.slane %v3661_v62, 4 }
 0x268   : > { %v13253_v27 = vrot.slane %v4594_v10, 7  ;;  %v4411_v21 = vadd.f32 %v13032_v5, %v4375_v14  ;;  %v3670_v61 = vrot.slane %v3668_v59, 4  ;;  %v3674_v55 = vshll.u32 %v13245_v54, 16 }
 0x269   : > { %v3197_v49 = vpop.f32.mrf.mxu2  ;;  %v3787_v36 = vpack.c.b16 %v13219_v47, %v13217_v8  ;;  %v5495_v30 = vpack.c.b16 %v5465_v9, %v5464_v34  ;;  %v5116_v6 = vor.u32 %v5115_v28, %v5112_v11  ;;  %v10674_v10 = vrot.slane %v10658_v31, 9 }
 0x26a   : > { %v4599_v22 = vor.u32 %v4597_v0, %v13253_v27  ;;  %v4443_v17 = vmax.f32 %v4411_v21, 0.0  ;;  %v3268_v35 = vadd.f32 %v3197_v49, %v12656_v50  ;;  %v3879_v25 = vpop.f32.mrf.mxu3  ;;  %v3671_v26 = vor.u32 %v3670_v61, %v3666_v13 }
 0x26b   : > { %v4307_v38 = vpop.f32.mrf.mxu0  ;;  %v4600_v41 = vrot.slane %v13253_v27, 4  ;;  %5587 = vmatmul.bf16.gmra.mxu1 %v5495_v30  ;;  %v15498_v50 = vunpack.c.l.b16 %v13202_v53  ;;  %v3667_v59 = vsel %vm11888_vm2, %v3662_v46, %v3666_v13  ;;  %v3676_v27 = vrot.slane %v3674_v55, 5  ;;  %v4903_v46 = vld [vmem:[#allocation2 + $0x2c] sm:$0x1] }
 0x26c   : > { %v4900_v62 = vsel %vm13104_vm11, %v4599_v22, %v4899_v43  ;;  %v4529_v14 = vpack.c.bf16 %v4443_v17, %v4443_v17  ;;  %v3950_v52 = vadd.f32 %v3879_v25, %v3268_v35  ;;  %v13265_v58 = vld [vmem:[#allocation2 + $0x1c] sm:$0xf]  ;;  %v5117_v28 = vrot.slane %v5116_v6, 4  ;;  %v11496_v43 = vld [vmem:[#allocation3 + $0x130] sm:$0xff] }
 0x26d   : > { %4901 = vst [vmem:[#allocation2 + $0x24] sm:$0xf] %v4900_v62  ;;  %v4213_v0 = vpack.c.b16 %v4194_v1, %v15498_v50  ;;  %v13269_v16 = vld [vmem:[#allocation2 + $0x20] sm:$0x1]  ;;  %v5119_v11 = vshll.u32 %v13265_v58, 16  ;;  %v5123_v31 = vshrl.u32 %v13265_v58, 16  ;;  %7182 = vmatpush.bf16.msrb.mxu1 %v11496_v43  ;;  %v13283_v25 = vunpack.c.l.b16 %v3667_v59 }
 0x26e   : > { %v4602_v21 = vshrl.u32 %v4529_v14, 16  ;;  %v4376_v9 = vadd.f32 %v13235_v29, %v3950_v52  ;;  %v5129_v34 = vshll.u32 %v13269_v16, 16  ;;  %v3672_v53 = vrot.slane %v3671_v26, 4  ;;  %v11398_v52 = vld [vmem:[%s11856_s6 + $0xa8] sm:$0xff] }
 0x26f   : > { %v5121_v49 = vrot.slane %v5119_v11, 5  ;;  %v4133_v1 = vrot.slane %v13228_v45, 5  ;;  %v4605_v22 = vshll.u32 %v4529_v14, 16  ;;  %v5125_v13 = vrot.slane %v5123_v31, 4 }
 0x270   : > { %v4604_v61 = vrot.slane %v4602_v21, 7  ;;  %v4412_v17 = vadd.f32 %v13032_v5, %v4376_v9  ;;  %v3677_v35 = vsel %vm11888_vm2, %v3672_v53, %v3676_v27  ;;  %v4136_v30 = vrot.slane %v13245_v54, 5 }
 0x271   : > { %v3199_v55 = vpop.f32.mrf.mxu2  ;;  %v5122_v29 = vsel %vm11888_vm2, %v5117_v28, %v5121_v49  ;;  %v5126_v11 = vor.u32 %v5125_v13, %v5121_v49  ;;  %v5131_v21 = vrot.slane %v5129_v34, 5  ;;  %v4134_v9 = vsel %vm12191_vm5, %v10674_v10, %v4133_v1 }
 0x272   : > { %v4607_v45 = vor.u32 %v4605_v22, %v4604_v61  ;;  %v4609_v6 = vrot.slane %v4604_v61, 4  ;;  %v4444_v26 = vmax.f32 %v4412_v17, 0.0  ;;  %v3269_v62 = vadd.f32 %v3199_v55, %v12671_v56  ;;  %v3881_v14 = vpop.f32.mrf.mxu3  ;;  %v10591_v56 = vld [vmem:[%s11856_s6 + $0xc0] sm:$0xf] }
 0x273   : > { %v13288_v50 = vpop.f32.mrf.mxu0  ;;  %v4135_v27 = vrot.slane %v4133_v1, 4  ;;  %v5127_v53 = vrot.slane %v5126_v11, 4  ;;  %v5466_v61 = vunpack.c.l.b16 %v5122_v29  ;;  %v13297_v22 = vunpack.c.l.b16 %v3677_v35  ;;  %v15499_v11 = vld [vmem:[#allocation11_spill] sm:$0xff] }
 0x274   : > { %v4608_v59 = vsel %vm13152_vm12, %v4600_v41, %v4607_v45  ;;  %v4904_v54 = vsel %vm13161_vm13, %v4609_v6, %v4903_v46  ;;  %v4530_v28 = vpack.c.bf16 %v4444_v26, %v4444_v26  ;;  %v3951_v31 = vadd.f32 %v3881_v14, %v3269_v62  ;;  %v5003_v43 = vld [vmem:[#allocation2 + $0x24] sm:$0xf] }
 0x275   : > { %4902 = vst [vmem:[#allocation2 + $0x28] sm:$0xf] %v4608_v59  ;;  %v4137_v49 = vsel %vm12191_vm5, %v4135_v27, %v4136_v30  ;;  %v4195_v1 = vunpack.c.l.b16 %v4134_v9  ;;  %v5132_v17 = vsel %vm11888_vm2, %v5127_v53, %v5131_v21  ;;  %v5134_v13 = vshrl.u32 %v5003_v43, 16 }
 0x276   : > { %4905 = vst [vmem:[#allocation2 + $0x2c] sm:$0x1] %v4904_v54  ;;  %v4611_v10 = vshrl.u32 %v4530_v28, 16  ;;  %v4614_v34 = vshll.u32 %v4530_v28, 16  ;;  %v4377_v41 = vadd.f32 %v4307_v38, %v3951_v31  ;;  %3241 = vmatmul.bf16.gmra.mxu2 %v11398_v52  ;;  %4349 = vmatmul.bf16.gmra.mxu0 %v4213_v0  ;;  %v5137_v46 = vshll.u32 %v5003_v43, 16 }
 0x277   : > { %3923 = vmatmul.bf16.gmra.mxu3 %v3787_v36  ;;  %v3679_v55 = vshrl.u32 %v10591_v56, 16  ;;  %v5467_v30 = vunpack.c.l.b16 %v5132_v17  ;;  %v4196_v45 = vunpack.c.l.b16 %v4137_v49  ;;  %v13310_v38 = vld [vmem:[%s11856_s6 + $0xc4] sm:$0xf]  ;;  %v4906_v0 = vld [vmem:[#allocation2 + $0x30] sm:$0xf]  ;;  %v5136_v26 = vrot.slane %v5134_v13, 4 }
 0x278   : > { %v13306_v29 = vrot.slane %v4611_v10, 7  ;;  %v4413_v35 = vadd.f32 %v13032_v5, %v4377_v41  ;;  %v5139_v62 = vrot.slane %v5137_v46, 5  ;;  %v3682_v47 = vshll.u32 %v10591_v56, 16 }
 0x279   : > { %v3202_v6 = vpop.f32.mrf.mxu2  ;;  %v3681_v8 = vrot.slane %v3679_v55, 4  ;;  %v2956_v36 = vadd.f32 %v12691_v24, %v12710_v12  ;;  %v5496_v27 = vpack.c.b16 %v5467_v30, %v5466_v61  ;;  %v3688_v31 = vshll.u32 %v13310_v38, 16  ;;  %v13324_v24 = vld [vmem:[%s11856_s6 + $0xc8] sm:$0x1]  ;;  %v11447_v30 = vld [vmem:[#allocation3 + $0x28] sm:$0xff] }
 0x27a   : > { %v4616_v14 = vor.u32 %v4614_v34, %v13306_v29  ;;  %v4445_v52 = vmax.f32 %v4413_v35, 0.0  ;;  %v3270_v21 = vadd.f32 %v3202_v6, %v15499_v11  ;;  %v3884_v9 = vpop.f32.mrf.mxu3  ;;  %v5140_v54 = vor.u32 %v5139_v62, %v5136_v26  ;;  %5809 = vmatpush.bf16.msrb.mxu2 %v11447_v30 }
 0x27b   : > { %v13316_v59 = vpop.f32.mrf.mxu0  ;;  %v3684_v28 = vrot.slane %v3682_v47, 5  ;;  %v3692_v12 = vshrl.u32 %v13310_v38, 16  ;;  %5592 = vmatmul.bf16.gmra.mxu1 %v5496_v27  ;;  %v3788_v61 = vpack.c.b16 %v13297_v22, %v13283_v25  ;;  %v4214_v10 = vpack.c.b16 %v4196_v45, %v4195_v1  ;;  %v11487_v45 = vld [vmem:[#allocation3 + $0xe8] sm:$0xff] }
 0x27c   : > { %v4907_v43 = vsel %vm13104_vm11, %v4616_v14, %v4906_v0  ;;  %v4531_v56 = vpack.c.bf16 %v4445_v52, %v4445_v52  ;;  %v3952_v53 = vadd.f32 %v3884_v9, %v3270_v21  ;;  %v13321_v49 = vld [vmem:[#allocation2 + $0x28] sm:$0xf]  ;;  %v5141_v55 = vrot.slane %v5140_v54, 4  ;;  %v11463_v0 = vld [vmem:[#allocation3 + $0xa8] sm:$0xff]  ;;  %6501 = vmatpush.bf16.msrb.mxu0 %v11487_v45 }
 0x27d   : > { %4908 = vst [vmem:[#allocation2 + $0x30] sm:$0xf] %v4907_v43  ;;  %v5048_v34 = vld [vmem:[#allocation2 + $0x2c] sm:$0x1]  ;;  %v5143_v41 = vshll.u32 %v13321_v49, 16  ;;  %v3685_v17 = vor.u32 %v3684_v28, %v3681_v8  ;;  %v5147_v35 = vshrl.u32 %v13321_v49, 16  ;;  %6187 = vmatpush.bf16.msrb.mxu3 %v11463_v0 }
 0x27e   : > { %v4619_v13 = vshrl.u32 %v4531_v56, 16  ;;  %v4378_v46 = vadd.f32 %v13288_v50, %v3952_v53  ;;  %v4622_v6 = vshll.u32 %v4531_v56, 16  ;;  %v3690_v47 = vrot.slane %v3688_v31, 5  ;;  %v4910_v8 = vld [vmem:[#allocation2 + $0x38] sm:$0x1] }
 0x27f   : > { %v5145_v26 = vrot.slane %v5143_v41, 5  ;;  %v3686_v62 = vrot.slane %v3685_v17, 4  ;;  %v5149_v22 = vrot.slane %v5147_v35, 4  ;;  %v3694_v1 = vrot.slane %v3692_v12, 4  ;;  %v11399_v56 = vld [vmem:[%s11856_s6 + $0xb4] sm:$0xff] }
 0x280   : > { %v4621_v14 = vrot.slane %v4619_v13, 7  ;;  %v4414_v25 = vadd.f32 %v13032_v5, %v4378_v46  ;;  %v4617_v50 = vrot.slane %v13306_v29, 4  ;;  %v5153_v21 = vshll.u32 %v5048_v34, 16  ;;  %v10659_v13 = vld [vmem:[%s11856_s6 + $0xc0] sm:$0xe] }
 0x281   : > { %v3204_v52 = vpop.f32.mrf.mxu2  ;;  %v5146_v11 = vsel %vm11888_vm2, %v5141_v55, %v5145_v26  ;;  %v3698_v9 = vshll.u32 %v13324_v24, 16  ;;  %v5150_v12 = vor.u32 %v5149_v22, %v5145_v26  ;;  %v3691_v29 = vsel %vm11888_vm2, %v3686_v62, %v3690_v47 }
 0x282   : > { %v4624_v27 = vor.u32 %v4622_v6, %v4621_v14  ;;  %v4626_v54 = vrot.slane %v4621_v14, 4  ;;  %v4446_v28 = vmax.f32 %v4414_v25, 0.0  ;;  %v3271_v31 = vadd.f32 %v3204_v52, %v2956_v36  ;;  %v3886_v43 = vpop.f32.mrf.mxu3  ;;  %v11462_v52 = vld [vmem:[#allocation3 + $0xa0] sm:$0xff] }
 0x283   : > { %v13338_v53 = vpop.f32.mrf.mxu0  ;;  %v3695_v41 = vor.u32 %v3694_v1, %v3690_v47  ;;  %v3700_v17 = vrot.slane %v3698_v9, 5  ;;  %v5151_v35 = vrot.slane %v5150_v12, 4  ;;  %v5155_v30 = vrot.slane %v5153_v21, 5  ;;  %6188 = vmatpush.bf16.msrb.mxu3 %v11462_v52  ;;  %v11495_v52 = vld [vmem:[#allocation3 + $0x128] sm:$0xff] }
 0x284   : > { %v4625_v34 = vsel %vm13152_vm12, %v4617_v50, %v4624_v27  ;;  %v4911_v46 = vsel %vm13161_vm13, %v4626_v54, %v4910_v8  ;;  %v4532_v55 = vpack.c.bf16 %v4446_v28, %v4446_v28  ;;  %v3953_v36 = vadd.f32 %v3886_v43, %v3271_v31  ;;  %v5005_v25 = vld [vmem:[#allocation2 + $0x30] sm:$0xf]  ;;  %v11446_v8 = vld [vmem:[#allocation3 + $0x20] sm:$0xff]  ;;  %7183 = vmatpush.bf16.msrb.mxu1 %v11495_v52 }
 0x285   : > { %4909 = vst [vmem:[#allocation2 + $0x34] sm:$0xf] %v4625_v34  ;;  %v5468_v0 = vunpack.c.l.b16 %v5146_v11  ;;  %v3696_v6 = vrot.slane %v3695_v41, 4  ;;  %v13348_v47 = vunpack.c.l.b16 %v3691_v29  ;;  %v10675_v14 = vrot.slane %v10659_v13, 9  ;;  %5810 = vmatpush.bf16.msrb.mxu2 %v11446_v8  ;;  %v15500_v41 = vld [vmem:[#allocation12_spill] sm:$0xff] }
 0x286   : > { %4912 = vst [vmem:[#allocation2 + $0x38] sm:$0x1] %v4911_v46  ;;  %v4628_v26 = vshrl.u32 %v4532_v55, 16  ;;  %v4379_v62 = vadd.f32 %v13316_v59, %v3953_v36  ;;  %3246 = vmatmul.bf16.gmra.mxu2 %v11399_v56  ;;  %4354 = vmatmul.bf16.gmra.mxu0 %v4214_v10  ;;  %v5156_v22 = vsel %vm11888_vm2, %v5151_v35, %v5155_v30  ;;  %v4140_v45 = vrot.slane %v13310_v38, 5  ;;  %v11486_v59 = vld [vmem:[#allocation3 + $0xe0] sm:$0xff]  ;;  %v11461_v36 = vld [vmem:[#allocation3 + $0x98] sm:$0xff] }
 0x287   : > { %3928 = vmatmul.bf16.gmra.mxu3 %v3788_v61  ;;  %v3701_v1 = vsel %vm11888_vm2, %v3696_v6, %v3700_v17  ;;  %v4143_v50 = vrot.slane %v13324_v24, 5  ;;  %v4631_v10 = vshll.u32 %v4532_v55, 16  ;;  %v5469_v9 = vunpack.c.l.b16 %v5156_v22  ;;  %v4913_v61 = vld [vmem:[#allocation2 + $0x3c] sm:$0xf]  ;;  %6502 = vmatpush.bf16.msrb.mxu0 %v11486_v59  ;;  %v11485_v35 = vld [vmem:[#allocation3 + $0xd8] sm:$0xff] }
 0x288   : > { %v13356_v11 = vrot.slane %v4628_v26, 7  ;;  %v4415_v21 = vadd.f32 %v13032_v5, %v4379_v62  ;;  %v13359_v54 = vunpack.c.l.b16 %v3701_v1  ;;  %v4142_v28 = vrot.slane %v4140_v45, 4  ;;  %6189 = vmatpush.bf16.msrb.mxu3 %v11461_v36 }
 0x289   : > { %v3207_v27 = vpop.f32.mrf.mxu2  ;;  %v5158_v31 = vshrl.u32 %v5005_v25, 16  ;;  %v5161_v43 = vshll.u32 %v5005_v25, 16  ;;  %v4141_v29 = vsel %vm12191_vm5, %v10675_v14, %v4140_v45  ;;  %v2958_v17 = vadd.f32 %v15500_v41, %v12743_v7 }
 0x28a   : > { %v4633_v38 = vor.u32 %v4631_v10, %v13356_v11  ;;  %v4447_v24 = vmax.f32 %v4415_v21, 0.0  ;;  %v3272_v56 = vadd.f32 %v3207_v27, %v12733_v63  ;;  %v3889_v12 = vpop.f32.mrf.mxu3  ;;  %v13369_v13 = vadd.f32 %v12760_v2, %v12773_v18  ;;  %v11445_v63 = vld [vmem:[#allocation3 + $0x18] sm:$0xff]  ;;  %v10594_v2 = vld [vmem:[%s11856_s6 + $0xcc] sm:$0xf] }
 0x28b   : > { %v5497_v34 = vpack.c.b16 %v5469_v9, %v5468_v0  ;;  %v13371_v46 = vpop.f32.mrf.mxu0  ;;  %v4144_v55 = vsel %vm12191_vm5, %v4142_v28, %v4143_v50  ;;  %v4634_v30 = vrot.slane %v13356_v11, 4  ;;  %v4197_v18 = vunpack.c.l.b16 %v4141_v29  ;;  %5811 = vmatpush.bf16.msrb.mxu2 %v11445_v63  ;;  %6503 = vmatpush.bf16.msrb.mxu0 %v11485_v35  ;;  %v4917_v28 = vld [vmem:[#allocation2 + $0x44] sm:$0x1] }
 0x28c   : > { %v4914_v6 = vsel %vm13104_vm11, %v4633_v38, %v4913_v61  ;;  %v4533_v26 = vpack.c.bf16 %v4447_v24, %v4447_v24  ;;  %v3954_v7 = vadd.f32 %v3889_v12, %v3272_v56  ;;  %v13378_v62 = vld [vmem:[#allocation2 + $0x34] sm:$0xf]  ;;  %v4198_v0 = vunpack.c.l.b16 %v4144_v55  ;;  %v13392_v55 = vld [vmem:[%s11856_s6 + $0xd0] sm:$0xf] }
 0x28d   : > { %4915 = vst [vmem:[#allocation2 + $0x3c] sm:$0xf] %v4914_v6  ;;  %5597 = vmatmul.bf16.gmra.mxu1 %v5497_v34  ;;  %v13381_v14 = vld [vmem:[#allocation2 + $0x38] sm:$0x1]  ;;  %v5160_v25 = vrot.slane %v5158_v31, 4  ;;  %v5163_v22 = vrot.slane %v5161_v43, 5  ;;  %v3789_v8 = vpack.c.b16 %v13359_v54, %v13348_v47 }
 0x28e   : > { %v4636_v1 = vshrl.u32 %v4533_v26, 16  ;;  %v4639_v45 = vshll.u32 %v4533_v26, 16  ;;  %v4380_v50 = vadd.f32 %v13338_v53, %v3954_v7  ;;  %v5167_v11 = vshll.u32 %v13378_v62, 16  ;;  %v11400_v34 = vld [vmem:[%s11856_s6 + $0xc0] sm:$0xff]  ;;  %v11444_v26 = vld [vmem:[#allocation3 + $0x10] sm:$0xff] }
 0x28f   : > { %v5164_v59 = vor.u32 %v5163_v22, %v5160_v25  ;;  %v5171_v10 = vshrl.u32 %v13378_v62, 16  ;;  %v5177_v21 = vshll.u32 %v13381_v14, 16  ;;  %v3703_v53 = vshrl.u32 %v10594_v2, 16  ;;  %v11460_v7 = vld [vmem:[#allocation3 + $0x90] sm:$0xff]  ;;  %v13401_v22 = vld [vmem:[%s11856_s6 + $0xd4] sm:$0x1]  ;;  %5812 = vmatpush.bf16.msrb.mxu2 %v11444_v26 }
 0x290   : > { %v4638_v9 = vrot.slane %v4636_v1, 7  ;;  %v4416_v61 = vadd.f32 %v13032_v5, %v4380_v50  ;;  %v3706_v27 = vshll.u32 %v10594_v2, 16  ;;  %v4215_v54 = vpack.c.b16 %v4198_v0, %v4197_v18  ;;  %v11484_v2 = vld [vmem:[#allocation3 + $0xd0] sm:$0xff]  ;;  %6190 = vmatpush.bf16.msrb.mxu3 %v11460_v7 }
 0x291   : > { %v3209_v47 = vpop.f32.mrf.mxu2  ;;  %v5165_v31 = vrot.slane %v5164_v59, 4  ;;  %v5169_v43 = vrot.slane %v5167_v11, 5  ;;  %v5173_v38 = vrot.slane %v5171_v10, 4  ;;  %v5179_v36 = vrot.slane %v5177_v21, 5  ;;  %v10660_v59 = vld [vmem:[%s11856_s6 + $0xcc] sm:$0xe]  ;;  %6504 = vmatpush.bf16.msrb.mxu0 %v11484_v2 }
 0x292   : > { %v4641_v24 = vor.u32 %v4639_v45, %v4638_v9  ;;  %v4643_v56 = vrot.slane %v4638_v9, 4  ;;  %v4448_v12 = vmax.f32 %v4416_v61, 0.0  ;;  %v3273_v29 = vadd.f32 %v3209_v47, %v2958_v17  ;;  %v3891_v41 = vpop.f32.mrf.mxu3  ;;  %v11459_v47 = vld [vmem:[#allocation3 + $0x88] sm:$0xff] }
 0x293   : > { %v13394_v5 = vpop.f32.mrf.mxu0  ;;  %v5174_v63 = vor.u32 %v5173_v38, %v5169_v43  ;;  %v3705_v35 = vrot.slane %v3703_v53, 4  ;;  %v3708_v6 = vrot.slane %v3706_v27, 5  ;;  %v5170_v1 = vsel %vm11888_vm2, %v5165_v31, %v5169_v43  ;;  %v11483_v31 = vld [vmem:[#allocation3 + $0xc8] sm:$0xff] }
 0x294   : > { %v4642_v18 = vsel %vm13152_vm12, %v4634_v30, %v4641_v24  ;;  %v4918_v17 = vsel %vm13161_vm13, %v4643_v56, %v4917_v28  ;;  %v4534_v0 = vpack.c.bf16 %v4448_v12, %v4448_v12  ;;  %v3955_v25 = vadd.f32 %v3891_v41, %v3273_v29  ;;  %v11443_v28 = vld [vmem:[#allocation3 + $0x8] sm:$0xff]  ;;  %v4920_v24 = vld [vmem:[#allocation2 + $0x48] sm:$0xf]  ;;  %6191 = vmatpush.bf16.msrb.mxu3 %v11459_v47  ;;  %v5007_v7 = vld [vmem:[#allocation2 + $0x3c] sm:$0xf] }
 0x295   : > { %4916 = vst [vmem:[#allocation2 + $0x40] sm:$0xf] %v4642_v18  ;;  %v5175_v45 = vrot.slane %v5174_v63, 4  ;;  %v3709_v50 = vor.u32 %v3708_v6, %v3705_v35  ;;  %v3712_v52 = vshll.u32 %v13392_v55, 16  ;;  %v3716_v21 = vshrl.u32 %v13392_v55, 16  ;;  %5813 = vmatpush.bf16.msrb.mxu2 %v11443_v28  ;;  %6505 = vmatpush.bf16.msrb.mxu0 %v11483_v31 }
 0x296   : > { %4919 = vst [vmem:[#allocation2 + $0x44] sm:$0x1] %v4918_v17  ;;  %v4645_v30 = vshrl.u32 %v4534_v0, 16  ;;  %v4648_v11 = vshll.u32 %v4534_v0, 16  ;;  %v4381_v10 = vadd.f32 %v13371_v46, %v3955_v25  ;;  %3251 = vmatmul.bf16.gmra.mxu2 %v11400_v34  ;;  %4359 = vmatmul.bf16.gmra.mxu0 %v4215_v54  ;;  %v3722_v27 = vshll.u32 %v13401_v22, 16 }
 0x297   : > { %3933 = vmatmul.bf16.gmra.mxu3 %v3789_v8  ;;  %v5180_v9 = vsel %vm11888_vm2, %v5175_v45, %v5179_v36  ;;  %v3710_v61 = vrot.slane %v3709_v50, 4  ;;  %v3714_v53 = vrot.slane %v3712_v52, 5  ;;  %v13417_v46 = vld [vmem:[%s15458_s2] ss:$0 sm:$0xff]  ;;  %v3718_v38 = vrot.slane %v3716_v21, 4  ;;  %v11482_v45 = vld [vmem:[#allocation3 + $0xc0] sm:$0xff] }
 0x298   : > { %v13412_v43 = vrot.slane %v4645_v30, 7  ;;  %v4417_v8 = vadd.f32 %v13417_v46, %v4381_v10  ;;  %v5471_v54 = vunpack.c.l.b16 %v5180_v9  ;;  %v5470_v12 = vunpack.c.l.b16 %v5170_v1  ;;  %v11458_v1 = vld [vmem:[#allocation3 + $0x80] sm:$0xff] }
 0x299   : > { %v3212_v56 = vpop.f32.mrf.mxu2  ;;  %v3715_v29 = vsel %vm11888_vm2, %v3710_v61, %v3714_v53  ;;  %v10676_v41 = vrot.slane %v10660_v59, 9  ;;  %v4147_v34 = vrot.slane %v13392_v55, 5  ;;  %v3724_v26 = vrot.slane %v3722_v27, 5  ;;  %v11442_v55 = vld [vmem:[#allocation3] sm:$0xff]  ;;  %6192 = vmatpush.bf16.msrb.mxu3 %v11458_v1  ;;  %6506 = vmatpush.bf16.msrb.mxu0 %v11482_v45 }
 0x29a   : > { %v4650_v63 = vor.u32 %v4648_v11, %v13412_v43  ;;  %v4449_v36 = vmax.f32 %v4417_v8, 0.0  ;;  %v3274_v35 = vadd.f32 %v3212_v56, %v12767_v20  ;;  %v3894_v6 = vpop.f32.mrf.mxu3  ;;  %v4651_v2 = vrot.slane %v13412_v43, 4  ;;  %5814 = vmatpush.bf16.msrb.mxu2 %v11442_v55  ;;  %v4924_v56 = vld [vmem:[#allocation2 + $0x50] sm:$0x1] }
 0x29b   : > { %v5498_v18 = vpack.c.b16 %v5471_v54, %v5470_v12  ;;  %v13426_v17 = vpop.f32.mrf.mxu0  ;;  %v3719_v0 = vor.u32 %v3718_v38, %v3714_v53  ;;  %v4148_v25 = vsel %vm12191_vm5, %v10676_v41, %v4147_v34  ;;  %v4149_v59 = vrot.slane %v4147_v34, 4 }
 0x29c   : > { %v4921_v50 = vsel %vm13104_vm11, %v4650_v63, %v4920_v24  ;;  %v4535_v20 = vpack.c.bf16 %v4449_v36, %v4449_v36  ;;  %v3956_v52 = vadd.f32 %v3894_v6, %v3274_v35  ;;  %v13432_v30 = vld [vmem:[#allocation2 + $0x40] sm:$0xf]  ;;  %v3773_v10 = vunpack.c.l.b16 %v3715_v29 }
 0x29d   : > { %4922 = vst [vmem:[#allocation2 + $0x48] sm:$0xf] %v4921_v50  ;;  %5602 = vmatmul.bf16.gmra.mxu1 %v5498_v18  ;;  %v3720_v11 = vrot.slane %v3719_v0, 4  ;;  %v4150_v21 = vrot.slane %v13401_v22, 5  ;;  %v4199_v9 = vunpack.c.l.b16 %v4148_v25  ;;  %v5182_v28 = vshrl.u32 %v5007_v7, 16 }
 0x29e   : > { %v4653_v61 = vshrl.u32 %v4535_v20, 16  ;;  %v4656_v53 = vshll.u32 %v4535_v20, 16  ;;  %v4382_v27 = vadd.f32 %v13394_v5, %v3956_v52  ;;  %v5185_v43 = vshll.u32 %v5007_v7, 16  ;;  %v11401_v7 = vld [vmem:[%s11856_s6 + $0xcc] sm:$0xff]  ;;  %v13445_v18 = vld [vmem:[#allocation2 + $0x44] sm:$0x1] }
 0x29f   : > { %v3725_v47 = vsel %vm11888_vm2, %v3720_v11, %v3724_v26  ;;  %v4151_v31 = vsel %vm12191_vm5, %v4149_v59, %v4150_v21  ;;  %v5191_v8 = vshll.u32 %v13432_v30, 16  ;;  %v5184_v12 = vrot.slane %v5182_v28, 4  ;;  %v5896_v11 = vld [vmem:[#allocation2] sm:$0xe] }
 0x2a0   : > { %v4655_v22 = vrot.slane %v4653_v61, 7  ;;  %v4418_v54 = vadd.f32 %v13417_v46, %v4382_v27  ;;  %v3774_v38 = vunpack.c.l.b16 %v3725_v47  ;;  %v4200_v24 = vunpack.c.l.b16 %v4151_v31  ;;  %v11644_v31 = vld [vmem:[#allocation2 + $0x4] sm:$0xf] }
 0x2a1   : > { %v3214_v5 = vpop.f32.mrf.mxu2  ;;  %v5187_v29 = vrot.slane %v5185_v43, 5  ;;  %v5193_v41 = vrot.slane %v5191_v8, 5  ;;  %v5195_v34 = vshrl.u32 %v13432_v30, 16  ;;  %v5201_v21 = vshll.u32 %v13445_v18, 16 }
 0x2a2   : > { %v4658_v63 = vor.u32 %v4656_v53, %v4655_v22  ;;  %v4660_v36 = vrot.slane %v4655_v22, 4  ;;  %v4450_v35 = vmax.f32 %v4418_v54, 0.0  ;;  %v3275_v6 = vadd.f32 %v3214_v5, %v13369_v13  ;;  %v3896_v26 = vpop.f32.mrf.mxu3 }
 0x2a3   : > { %v4325_v0 = vpop.f32.mrf.mxu0  ;;  %v3790_v25 = vpack.c.b16 %v3774_v38, %v3773_v10  ;;  %v4216_v55 = vpack.c.b16 %v4200_v24, %v4199_v9  ;;  %v5188_v1 = vor.u32 %v5187_v29, %v5184_v12  ;;  %v5197_v45 = vrot.slane %v5195_v34, 4  ;;  %v11645_v38 = vld [vmem:[#allocation2 + $0x8] sm:$0x1] }
 0x2a4   : > { %v4659_v50 = vsel %vm13152_vm12, %v4651_v2, %v4658_v63  ;;  %v4925_v20 = vsel %vm13161_vm13, %v4660_v36, %v4924_v56  ;;  %v4536_v52 = vpack.c.bf16 %v4450_v35, %v4450_v35  ;;  %v3957_v59 = vadd.f32 %v3896_v26, %v3275_v6  ;;  %v5009_v61 = vld [vmem:[#allocation2 + $0x48] sm:$0xf]  ;;  %v4927_v56 = vld [vmem:[#allocation2 + $0x54] sm:$0xf] }
 0x2a5   : > { %4923 = vst [vmem:[#allocation2 + $0x4c] sm:$0xf] %v4659_v50  ;;  %v5198_v13 = vor.u32 %v5197_v45, %v5193_v41  ;;  %v5189_v27 = vrot.slane %v5188_v1, 4  ;;  %v5203_v28 = vrot.slane %v5201_v21, 5  ;;  %v10853_v47 = vrot.slane %v5896_v11, 9 }
 0x2a6   : > { %4926 = vst [vmem:[#allocation2 + $0x50] sm:$0x1] %v4925_v20  ;;  %v4662_v53 = vshrl.u32 %v4536_v52, 16  ;;  %v4665_v10 = vshll.u32 %v4536_v52, 16  ;;  %v4383_v9 = vadd.f32 %v13426_v17, %v3957_v59  ;;  %3256 = vmatmul.bf16.gmra.mxu2 %v11401_v7  ;;  %4364 = vmatmul.bf16.gmra.mxu0 %v4216_v55  ;;  %v5946_v43 = vrot.slane %v11644_v31, 5 }
 0x2a7   : > { %3938 = vmatmul.bf16.gmra.mxu3 %v3790_v25  ;;  %v5199_v2 = vrot.slane %v5198_v13, 4  ;;  %v5194_v54 = vsel %vm11888_vm2, %v5189_v27, %v5193_v41  ;;  %v5949_v24 = vrot.slane %v11645_v38, 5  ;;  %v5206_v29 = vshrl.u32 %v5009_v61, 16 }
 0x2a8   : > { %v4664_v8 = vrot.slane %v4662_v53, 7  ;;  %v4419_v22 = vadd.f32 %v13417_v46, %v4383_v9  ;;  %v5948_v12 = vrot.slane %v5946_v43, 4  ;;  %v5472_v6 = vunpack.c.l.b16 %v5194_v54  ;;  %v11494_v9 = vld [vmem:[#allocation3 + $0x120] sm:$0xff] }
 0x2a9   : > { %v3217_v5 = vpop.f32.mrf.mxu2  ;;  %v5204_v17 = vsel %vm11888_vm2, %v5199_v2, %v5203_v28  ;;  %v5947_v41 = vsel %vm12191_vm5, %v10853_v47, %v5946_v43  ;;  %v5209_v52 = vshll.u32 %v5009_v61, 16  ;;  %v2962_v11 = vadd.f32 %v12786_v60, %v12794_v42  ;;  %7184 = vmatpush.bf16.msrb.mxu1 %v11494_v9  ;;  %v4931_v54 = vld [vmem:[#allocation2 + $0x5c] sm:$0x1] }
 0x2aa   : > { %v4667_v34 = vor.u32 %v4665_v10, %v4664_v8  ;;  %v4451_v63 = vmax.f32 %v4419_v22, 0.0  ;;  %v3276_v36 = vadd.f32 %v3217_v5, %v12788_v37  ;;  %v3899_v35 = vpop.f32.mrf.mxu3  ;;  %v5473_v26 = vunpack.c.l.b16 %v5204_v17 }
 0x2ab   : > { %v4327_v7 = vpop.f32.mrf.mxu0  ;;  %v5950_v45 = vsel %vm12191_vm5, %v5948_v12, %v5949_v24  ;;  %v5208_v37 = vrot.slane %v5206_v29, 4  ;;  %v6073_v53 = vunpack.c.l.b16 %v5947_v41  ;;  %v5211_v2 = vrot.slane %v5209_v52, 5 }
 0x2ac   : > { %v4928_v25 = vsel %vm13104_vm11, %v4667_v34, %v4927_v56  ;;  %v4537_v55 = vpack.c.bf16 %v4451_v63, %v4451_v63  ;;  %v3958_v1 = vadd.f32 %v3899_v35, %v3276_v36  ;;  %v13465_v50 = vld [vmem:[#allocation2 + $0x4c] sm:$0xf]  ;;  %v5499_v20 = vpack.c.b16 %v5473_v26, %v5472_v6  ;;  %v11426_v34 = vld [vmem:[#allocation2] sm:$0xff] }
 0x2ad   : > { %4929 = vst [vmem:[#allocation2 + $0x54] sm:$0xf] %v4928_v25  ;;  %v5215_v59 = vshll.u32 %v13465_v50, 16  ;;  %v13470_v10 = vld [vmem:[#allocation2 + $0x50] sm:$0x1]  ;;  %v6074_v27 = vunpack.c.l.b16 %v5950_v45  ;;  %v5219_v47 = vshrl.u32 %v13465_v50, 16  ;;  %v5212_v42 = vor.u32 %v5211_v2, %v5208_v37 }
 0x2ae   : > { %v4670_v13 = vshrl.u32 %v4537_v55, 16  ;;  %v4384_v21 = vadd.f32 %v4325_v0, %v3958_v1  ;;  %5607 = vmatmul.bf16.gmra.mxu1 %v5499_v20  ;;  %v4668_v31 = vrot.slane %v4664_v8, 4  ;;  %v4673_v61 = vshll.u32 %v4537_v55, 16  ;;  %v11466_v55 = vld [vmem:[#allocation2 + $0xc] sm:$0xff] }
 0x2af   : > { %v5217_v28 = vrot.slane %v5215_v59, 5  ;;  %v5221_v0 = vrot.slane %v5219_v47, 4  ;;  %v5225_v38 = vshll.u32 %v13470_v10, 16  ;;  %v5953_v24 = vrot.slane %v13215_v4, 5  ;;  %v5897_v4 = vld [vmem:[#allocation2 + $0xc] sm:$0xe] }
 0x2b0   : > { %v4672_v43 = vrot.slane %v4670_v13, 7  ;;  %v4420_v22 = vadd.f32 %v13417_v46, %v4384_v21  ;;  %v6105_v63 = vpack.c.b16 %v6074_v27, %v6073_v53  ;;  %v5213_v36 = vrot.slane %v5212_v42, 4  ;;  %v11646_v21 = vld [vmem:[#allocation2 + $0x14] sm:$0x1] }
 0x2b1   : > { %v3219_v60 = vpop.f32.mrf.mxu2  ;;  %v5222_v35 = vor.u32 %v5221_v0, %v5217_v28  ;;  %v5227_v45 = vrot.slane %v5225_v38, 5  ;;  %v5955_v59 = vrot.slane %v5953_v24, 4  ;;  %v10854_v13 = vrot.slane %v5897_v4, 9 }
 0x2b2   : > { %v4675_v56 = vor.u32 %v4673_v61, %v4672_v43  ;;  %v4677_v5 = vrot.slane %v4672_v43, 4  ;;  %v4452_v17 = vmax.f32 %v4420_v22, 0.0  ;;  %v3277_v12 = vadd.f32 %v3219_v60, %v2962_v11  ;;  %v3901_v29 = vpop.f32.mrf.mxu3 }
 0x2b3   : > { %v4330_v8 = vpop.f32.mrf.mxu0  ;;  %v5223_v1 = vrot.slane %v5222_v35, 4  ;;  %v5218_v52 = vsel %vm11888_vm2, %v5213_v36, %v5217_v28  ;;  %v5956_v53 = vrot.slane %v11646_v21, 5  ;;  %v5954_v61 = vsel %vm12191_vm5, %v10854_v13, %v5953_v24  ;;  %v13487_v28 = vld [vmem:[#allocation2 + $0x18] sm:$0xe] }
 0x2b4   : > { %v4676_v6 = vsel %vm13152_vm12, %v4668_v31, %v4675_v56  ;;  %v4932_v26 = vsel %vm13161_vm13, %v4677_v5, %v4931_v54  ;;  %v4538_v41 = vpack.c.bf16 %v4452_v17, %v4452_v17  ;;  %v3959_v25 = vadd.f32 %v3901_v29, %v3277_v12  ;;  %v4934_v31 = vld [vmem:[#allocation2 + $0x60] sm:$0xf] }
 0x2b5   : > { %4930 = vst [vmem:[#allocation2 + $0x58] sm:$0xf] %v4676_v6  ;;  %v5228_v11 = vsel %vm11888_vm2, %v5223_v1, %v5227_v45  ;;  %v5474_v43 = vunpack.c.l.b16 %v5218_v52  ;;  %v5957_v0 = vsel %vm12191_vm5, %v5955_v59, %v5956_v53  ;;  %v10855_v29 = vrot.slane %v13487_v28, 9  ;;  %v13505_v52 = vld [vmem:[#allocation2 + $0x24] sm:$0xe] }
 0x2b6   : > { %4933 = vst [vmem:[#allocation2 + $0x5c] sm:$0x1] %v4932_v26  ;;  %v4679_v20 = vshrl.u32 %v4538_v41, 16  ;;  %v4385_v37 = vadd.f32 %v4327_v7, %v3959_v25  ;;  %5815 = vmatmul.bf16.vlgmr.msrb.gmra.mxu2 %v11426_v34  ;;  %6507 = vmatmul.bf16.vlgmr.msrb.gmra.mxu0 %v11466_v55  ;;  %v4682_v27 = vshll.u32 %v4538_v41, 16  ;;  %v5475_v47 = vunpack.c.l.b16 %v5228_v11 }
 0x2b7   : > { %6193 = vmatmul.bf16.vlgmr.msrb.gmra.mxu3 %v6105_v63  ;;  %v2964_v24 = vadd.f32 %v12807_v3, %v12815_v19  ;;  %v6075_v34 = vunpack.c.l.b16 %v5954_v61  ;;  %v6076_v63 = vunpack.c.l.b16 %v5957_v0  ;;  %v5960_v25 = vrot.slane %v13265_v58, 5  ;;  %v11427_v0 = vld [vmem:[#allocation2 + $0xc] sm:$0xff] }
 0x2b8   : > { %v4681_v9 = vrot.slane %v4679_v20, 7  ;;  %v4421_v2 = vadd.f32 %v13417_v46, %v4385_v37  ;;  %v5500_v38 = vpack.c.b16 %v5475_v47, %v5474_v43  ;;  %v5963_v61 = vrot.slane %v13269_v16, 5 }
 0x2b9   : > { %v3222_v7 = vpop.f32.mrf.mxu2  ;;  %v10856_v28 = vrot.slane %v13505_v52, 9 }
 0x2ba   : > { %v4684_v22 = vor.u32 %v4682_v27, %v4681_v9  ;;  %v4453_v54 = vmax.f32 %v4421_v2, 0.0  ;;  %v3278_v60 = vadd.f32 %v3222_v7, %v12810_v33  ;;  %v3904_v42 = vpop.f32.mrf.mxu3  ;;  %v5011_v33 = vld [vmem:[#allocation2 + $0x54] sm:$0xf]  ;;  %v4685_v55 = vrot.slane %v4681_v9, 4 }
 0x2bb   : > { %v4332_v56 = vpop.f32.mrf.mxu0  ;;  %v5230_v41 = vshrl.u32 %v5011_v33, 16  ;;  %v5233_v4 = vshll.u32 %v5011_v33, 16 }
 0x2bc   : > { %v4935_v5 = vsel %vm13104_vm11, %v4684_v22, %v4934_v31  ;;  %v4539_v17 = vpack.c.bf16 %v4453_v54, %v4453_v54  ;;  %v3960_v12 = vadd.f32 %v3904_v42, %v3278_v60  ;;  %v13497_v36 = vld [vmem:[#allocation2 + $0x58] sm:$0xf] }
 0x2bd   : > { %4936 = vst [vmem:[#allocation2 + $0x60] sm:$0xf] %v4935_v5  ;;  %v13499_v26 = vld [vmem:[#allocation2 + $0x5c] sm:$0x1]  ;;  %v5239_v1 = vshll.u32 %v13497_v36, 16  ;;  %v5243_v3 = vshrl.u32 %v13497_v36, 16  ;;  %v6106_v5 = vpack.c.b16 %v6076_v63, %v6075_v34 }
 0x2be   : > { %v4687_v35 = vshrl.u32 %v4539_v17, 16  ;;  %v4386_v6 = vadd.f32 %v4330_v8, %v3960_v12  ;;  %5612 = vmatmul.bf16.gmra.mxu1 %v5500_v38  ;;  %v4690_v45 = vshll.u32 %v4539_v17, 16  ;;  %v5232_v37 = vrot.slane %v5230_v41, 4  ;;  %v4938_v8 = vld [vmem:[#allocation2 + $0x68] sm:$0x1]  ;;  %v11467_v38 = vld [vmem:[#allocation2 + $0x18] sm:$0xff] }
 0x2bf   : > { %v5235_v11 = vrot.slane %v5233_v4, 5  ;;  %v5241_v13 = vrot.slane %v5239_v1, 5  ;;  %v5245_v21 = vrot.slane %v5243_v3, 4  ;;  %v5249_v58 = vshll.u32 %v13499_v26, 16  ;;  %v5900_v41 = vld [vmem:[#allocation2 + $0x30] sm:$0xe] }
 0x2c0   : > { %v4689_v19 = vrot.slane %v4687_v35, 7  ;;  %v4422_v20 = vadd.f32 %v13417_v46, %v4386_v6  ;;  %v13516_v35 = vsel %vm12191_vm5, %v10855_v29, %v5960_v25  ;;  %v5962_v6 = vrot.slane %v5960_v25, 4 }
 0x2c1   : > { %v3224_v59 = vpop.f32.mrf.mxu2  ;;  %v5236_v7 = vor.u32 %v5235_v11, %v5232_v37  ;;  %v5246_v43 = vor.u32 %v5245_v21, %v5241_v13  ;;  %v5967_v63 = vrot.slane %v13321_v49, 5  ;;  %v5974_v4 = vrot.slane %v13378_v62, 5 }
 0x2c2   : > { %v4692_v53 = vor.u32 %v4690_v45, %v4689_v19  ;;  %v4694_v9 = vrot.slane %v4689_v19, 4  ;;  %v4454_v27 = vmax.f32 %v4422_v20, 0.0  ;;  %v3279_v2 = vadd.f32 %v3224_v59, %v2964_v24  ;;  %v3906_v47 = vpop.f32.mrf.mxu3  ;;  %v4941_v19 = vld [vmem:[#allocation2 + $0x6c] sm:$0xf] }
 0x2c3   : > { %v4335_v31 = vpop.f32.mrf.mxu0  ;;  %v5237_v17 = vrot.slane %v5236_v7, 4  ;;  %v5247_v12 = vrot.slane %v5246_v43, 4  ;;  %v5251_v24 = vrot.slane %v5249_v58, 5  ;;  %v10857_v20 = vrot.slane %v5900_v41, 9  ;;  %v15501_v43 = vld [vmem:[#allocation13_spill] sm:$0xff]  ;;  %v13548_v41 = vpop.f32.mrf.mxu1 }
 0x2c4   : > { %v4693_v22 = vsel %vm13152_vm12, %v4685_v55, %v4692_v53  ;;  %v4939_v54 = vsel %vm13161_vm13, %v4694_v9, %v4938_v8  ;;  %v4540_v60 = vpack.c.bf16 %v4454_v27, %v4454_v27  ;;  %v3961_v42 = vadd.f32 %v3906_v47, %v3279_v2 }
 0x2c5   : > { %4937 = vst [vmem:[#allocation2 + $0x64] sm:$0xf] %v4693_v22  ;;  %v5242_v55 = vsel %vm11888_vm2, %v5237_v17, %v5241_v13  ;;  %v5252_v34 = vsel %vm11888_vm2, %v5247_v12, %v5251_v24  ;;  %v5976_v37 = vrot.slane %v5974_v4, 4  ;;  %v5977_v8 = vrot.slane %v13381_v14, 5  ;;  %v11493_v12 = vld [vmem:[#allocation3 + $0x118] sm:$0xff] }
 0x2c6   : > { %4940 = vst [vmem:[#allocation2 + $0x68] sm:$0x1] %v4939_v54  ;;  %v4696_v33 = vshrl.u32 %v4540_v60, 16  ;;  %v4387_v16 = vadd.f32 %v4332_v56, %v3961_v42  ;;  %5820 = vmatmul.bf16.gmra.mxu2 %v11427_v0  ;;  %6512 = vmatmul.bf16.gmra.mxu0 %v11467_v38  ;;  %v4699_v1 = vshll.u32 %v4540_v60, 16  ;;  %v5477_v29 = vunpack.c.l.b16 %v5252_v34  ;;  %v5013_v60 = vld [vmem:[#allocation2 + $0x60] sm:$0xf] }
 0x2c7   : > { %6198 = vmatmul.bf16.gmra.mxu3 %v6106_v5  ;;  %v5476_v45 = vunpack.c.l.b16 %v5242_v55  ;;  %v5964_v62 = vsel %vm12191_vm5, %v5962_v6, %v5963_v61  ;;  %v5975_v27 = vsel %vm12191_vm5, %v10857_v20, %v5974_v4  ;;  %v5978_v2 = vsel %vm12191_vm5, %v5976_v37, %v5977_v8  ;;  %7185 = vmatpush.bf16.msrb.mxu1 %v11493_v12  ;;  %v4945_v4 = vld [vmem:[#allocation2 + $0x74] sm:$0x1] }
 0x2c8   : > { %v13524_v56 = vrot.slane %v4696_v33, 7  ;;  %v4423_v3 = vadd.f32 %v13417_v46, %v4387_v16  ;;  %v2966_v22 = vadd.f32 %v15501_v43, %v12836_v57  ;;  %v6077_v61 = vunpack.c.l.b16 %v13516_v35 }
 0x2c9   : > { %v3227_v25 = vpop.f32.mrf.mxu2  ;;  %v5501_v53 = vpack.c.b16 %v5477_v29, %v5476_v45  ;;  %v6078_v54 = vunpack.c.l.b16 %v5964_v62  ;;  %v5254_v17 = vshrl.u32 %v5013_v60, 16  ;;  %v6081_v24 = vunpack.c.l.b16 %v5975_v27 }
 0x2ca   : > { %v4701_v59 = vor.u32 %v4699_v1, %v13524_v56  ;;  %v4455_v11 = vmax.f32 %v4423_v3, 0.0  ;;  %v3280_v13 = vadd.f32 %v3227_v25, %v12830_v44  ;;  %v3909_v21 = vpop.f32.mrf.mxu3  ;;  %v4702_v58 = vrot.slane %v13524_v56, 4 }
 0x2cb   : > { %v4337_v9 = vpop.f32.mrf.mxu0  ;;  %v6082_v44 = vunpack.c.l.b16 %v5978_v2  ;;  %v5257_v16 = vshll.u32 %v5013_v60, 16  ;;  %v5256_v34 = vrot.slane %v5254_v17, 4 }
 0x2cc   : > { %v4942_v14 = vsel %vm13104_vm11, %v4701_v59, %v4941_v19  ;;  %v4541_v47 = vpack.c.bf16 %v4455_v11, %v4455_v11  ;;  %v3962_v7 = vadd.f32 %v3909_v21, %v3280_v13  ;;  %v13542_v42 = vld [vmem:[#allocation2 + $0x64] sm:$0xf]  ;;  %v5901_v59 = vld [vmem:[#allocation2 + $0x3c] sm:$0xe]  ;;  %v6107_v13 = vpack.c.b16 %v6078_v54, %v6077_v61 }
 0x2cd   : > { %4943 = vst [vmem:[#allocation2 + $0x6c] sm:$0xf] %v4942_v14  ;;  %v13544_v5 = vld [vmem:[#allocation2 + $0x68] sm:$0x1]  ;;  %v5263_v6 = vshll.u32 %v13542_v42, 16  ;;  %v5267_v57 = vshrl.u32 %v13542_v42, 16 }
 0x2ce   : > { %v4704_v0 = vshrl.u32 %v4541_v47, 16  ;;  %v4388_v38 = vadd.f32 %v4335_v31, %v3962_v7  ;;  %v4707_v33 = vshll.u32 %v4541_v47, 16  ;;  %5617 = vmatmul.bf16.gmra.mxu1 %v5501_v53  ;;  %v13551_v31 = vpack.c.b16 %v6082_v44, %v6081_v24  ;;  %v11428_v7 = vld [vmem:[#allocation2 + $0x18] sm:$0xff]  ;;  %v11468_v44 = vld [vmem:[#allocation2 + $0x24] sm:$0xff] }
 0x2cf   : > { %v5259_v1 = vrot.slane %v5257_v16, 5  ;;  %v5265_v3 = vrot.slane %v5263_v6, 5  ;;  %v5269_v29 = vrot.slane %v5267_v57, 4  ;;  %v5273_v19 = vshll.u32 %v13544_v5, 16  ;;  %v13570_v16 = vpop.f32.mrf.mxu1 }
 0x2d0   : > { %v4706_v35 = vrot.slane %v4704_v0, 7  ;;  %v4424_v55 = vadd.f32 %v13417_v46, %v4388_v38  ;;  %v5981_v53 = vrot.slane %v13432_v30, 5  ;;  %v10858_v0 = vrot.slane %v5901_v59, 9 }
 0x2d1   : > { %v3229_v56 = vpop.f32.mrf.mxu2  ;;  %v5260_v21 = vor.u32 %v5259_v1, %v5256_v34  ;;  %v5270_v62 = vor.u32 %v5269_v29, %v5265_v3  ;;  %v5275_v60 = vrot.slane %v5273_v19, 5  ;;  %v5969_v30 = vrot.slane %v5967_v63, 4 }
 0x2d2   : > { %v4709_v25 = vor.u32 %v4707_v33, %v4706_v35  ;;  %v4711_v45 = vrot.slane %v4706_v35, 4  ;;  %v4456_v20 = vmax.f32 %v4424_v55, 0.0  ;;  %v3281_v37 = vadd.f32 %v3229_v56, %v2966_v22  ;;  %v3911_v8 = vpop.f32.mrf.mxu3  ;;  %v4948_v35 = vld [vmem:[#allocation2 + $0x78] sm:$0xf] }
 0x2d3   : > { %v4340_v11 = vpop.f32.mrf.mxu0  ;;  %v5261_v43 = vrot.slane %v5260_v21, 4  ;;  %v5271_v22 = vrot.slane %v5270_v62, 4  ;;  %v5982_v12 = vsel %vm12191_vm5, %v10858_v0, %v5981_v53  ;;  %v5984_v24 = vrot.slane %v13445_v18, 5  ;;  %v15502_v62 = vld [vmem:[#allocation14_spill] sm:$0xff] }
 0x2d4   : > { %v4710_v27 = vsel %vm13152_vm12, %v4702_v58, %v4709_v25  ;;  %v4946_v2 = vsel %vm13161_vm13, %v4711_v45, %v4945_v4  ;;  %v4542_v14 = vpack.c.bf16 %v4456_v20, %v4456_v20  ;;  %v3963_v47 = vadd.f32 %v3911_v8, %v3281_v37  ;;  %v11647_v4 = vld [vmem:[#allocation2 + $0x2c] sm:$0x1] }
 0x2d5   : > { %4944 = vst [vmem:[#allocation2 + $0x70] sm:$0xf] %v4710_v27  ;;  %v5983_v58 = vrot.slane %v5981_v53, 4  ;;  %v5266_v38 = vsel %vm11888_vm2, %v5261_v43, %v5265_v3  ;;  %v5276_v17 = vsel %vm11888_vm2, %v5271_v22, %v5275_v60  ;;  %v5970_v56 = vrot.slane %v11647_v4, 5  ;;  %v5015_v53 = vld [vmem:[#allocation2 + $0x6c] sm:$0xf] }
 0x2d6   : > { %4947 = vst [vmem:[#allocation2 + $0x74] sm:$0x1] %v4946_v2  ;;  %v4713_v61 = vshrl.u32 %v4542_v14, 16  ;;  %v4389_v54 = vadd.f32 %v4337_v9, %v3963_v47  ;;  %5825 = vmatmul.bf16.gmra.mxu2 %v11428_v7  ;;  %6517 = vmatmul.bf16.gmra.mxu0 %v11468_v44  ;;  %v4716_v9 = vshll.u32 %v4542_v14, 16  ;;  %v5479_v57 = vunpack.c.l.b16 %v5276_v17 }
 0x2d7   : > { %6203 = vmatmul.bf16.gmra.mxu3 %v6107_v13  ;;  %v5478_v34 = vunpack.c.l.b16 %v5266_v38  ;;  %v5985_v1 = vsel %vm12191_vm5, %v5983_v58, %v5984_v24  ;;  %v5968_v25 = vsel %vm12191_vm5, %v10856_v28, %v5967_v63  ;;  %v5971_v37 = vsel %vm12191_vm5, %v5969_v30, %v5970_v56  ;;  %v4952_v30 = vld [vmem:[#allocation2 + $0x80] sm:$0x1] }
 0x2d8   : > { %v13568_v33 = vrot.slane %v4713_v61, 7  ;;  %v4425_v6 = vadd.f32 %v13417_v46, %v4389_v54  ;;  %v6083_v8 = vunpack.c.l.b16 %v5982_v12  ;;  %v6084_v59 = vunpack.c.l.b16 %v5985_v1 }
 0x2d9   : > { %v3232_v55 = vpop.f32.mrf.mxu2  ;;  %v5502_v45 = vpack.c.b16 %v5479_v57, %v5478_v34  ;;  %v2968_v49 = vadd.f32 %v15502_v62, %v12857_v51  ;;  %v6079_v52 = vunpack.c.l.b16 %v5968_v25  ;;  %v6080_v14 = vunpack.c.l.b16 %v5971_v37  ;;  %v11469_v37 = vld [vmem:[#allocation2 + $0x30] sm:$0xff] }
 0x2da   : > { %v4718_v3 = vor.u32 %v4716_v9, %v13568_v33  ;;  %v4457_v29 = vmax.f32 %v4425_v6, 0.0  ;;  %v3282_v18 = vadd.f32 %v3232_v55, %v12852_v15  ;;  %v3914_v19 = vpop.f32.mrf.mxu3  ;;  %v13591_v28 = vpack.c.b16 %v6084_v59, %v6083_v8  ;;  %v13600_v9 = vpop.f32.mrf.mxu1  ;;  %v5902_v55 = vld [vmem:[#allocation2 + $0x48] sm:$0xe] }
 0x2db   : > { %v4342_v20 = vpop.f32.mrf.mxu0  ;;  %v5278_v7 = vshrl.u32 %v5015_v53, 16  ;;  %v4719_v44 = vrot.slane %v13568_v33, 4  ;;  %v5281_v43 = vshll.u32 %v5015_v53, 16  ;;  %v6108_v4 = vpack.c.b16 %v6080_v14, %v6079_v52 }
 0x2dc   : > { %v4949_v13 = vsel %vm13104_vm11, %v4718_v3, %v4948_v35  ;;  %v4543_v21 = vpack.c.bf16 %v4457_v29, %v4457_v29  ;;  %v3964_v15 = vadd.f32 %v3914_v19, %v3282_v18  ;;  %v13589_v27 = vld [vmem:[#allocation2 + $0x70] sm:$0xf]  ;;  %v5988_v3 = vrot.slane %v13465_v50, 5 }
 0x2dd   : > { %4950 = vst [vmem:[#allocation2 + $0x78] sm:$0xf] %v4949_v13  ;;  %v13593_v47 = vld [vmem:[#allocation2 + $0x74] sm:$0x1]  ;;  %v5287_v22 = vshll.u32 %v13589_v27, 16  ;;  %v5291_v51 = vshrl.u32 %v13589_v27, 16 }
 0x2de   : > { %v4721_v63 = vshrl.u32 %v4543_v21, 16  ;;  %v4390_v2 = vadd.f32 %v4340_v11, %v3964_v15  ;;  %5622 = vmatmul.bf16.gmra.mxu1 %v5502_v45  ;;  %v4724_v0 = vshll.u32 %v4543_v21, 16  ;;  %v5280_v54 = vrot.slane %v5278_v7, 4  ;;  %v11429_v45 = vld [vmem:[#allocation2 + $0x24] sm:$0xff] }
 0x2df   : > { %v5283_v11 = vrot.slane %v5281_v43, 5  ;;  %v5289_v38 = vrot.slane %v5287_v22, 5  ;;  %v5293_v17 = vrot.slane %v5291_v51, 4  ;;  %v5297_v12 = vshll.u32 %v13593_v47, 16 }
 0x2e0   : > { %v4723_v60 = vrot.slane %v4721_v63, 7  ;;  %v4426_v61 = vadd.f32 %v13417_v46, %v4390_v2  ;;  %v10859_v21 = vrot.slane %v5902_v55, 9  ;;  %v5990_v50 = vrot.slane %v5988_v3, 4  ;;  %v15504_v55 = vld [vmem:[#allocation17_spill] sm:$0xff] }
 0x2e1   : > { %v3234_v58 = vpop.f32.mrf.mxu2  ;;  %v5284_v56 = vor.u32 %v5283_v11, %v5280_v54  ;;  %v5294_v1 = vor.u32 %v5293_v17, %v5289_v38  ;;  %v5299_v13 = vrot.slane %v5297_v12, 5  ;;  %v5991_v63 = vrot.slane %v13470_v10, 5  ;;  %v15503_v54 = vld [vmem:[#allocation16_spill] sm:$0xff] }
 0x2e2   : > { %v4726_v24 = vor.u32 %v4724_v0, %v4723_v60  ;;  %v4728_v33 = vrot.slane %v4723_v60, 4  ;;  %v4458_v6 = vmax.f32 %v4426_v61, 0.0  ;;  %v3283_v57 = vadd.f32 %v3234_v58, %v2968_v49  ;;  %v3916_v35 = vpop.f32.mrf.mxu3 }
 0x2e3   : > { %v4345_v34 = vpop.f32.mrf.mxu0  ;;  %v5285_v8 = vrot.slane %v5284_v56, 4  ;;  %v5295_v59 = vrot.slane %v5294_v1, 4  ;;  %v5989_v53 = vsel %vm12191_vm5, %v10859_v21, %v5988_v3  ;;  %v5992_v51 = vsel %vm12191_vm5, %v5990_v50, %v5991_v63 }
 0x2e4   : > { %v4727_v29 = vsel %vm13152_vm12, %v4719_v44, %v4726_v24  ;;  %v4953_v18 = vsel %vm13161_vm13, %v4728_v33, %v4952_v30  ;;  %v4544_v19 = vpack.c.bf16 %v4458_v6, %v4458_v6  ;;  %v3965_v25 = vadd.f32 %v3916_v35, %v3283_v57  ;;  %v4955_v44 = vld [vmem:[#allocation2 + $0x84] sm:$0xf]  ;;  %v5017_v6 = vld [vmem:[#allocation2 + $0x78] sm:$0xf] }
 0x2e5   : > { %4951 = vst [vmem:[#allocation2 + $0x7c] sm:$0xf] %v4727_v29  ;;  %v5290_v49 = vsel %vm11888_vm2, %v5285_v8, %v5289_v38  ;;  %v5300_v52 = vsel %vm11888_vm2, %v5295_v59, %v5299_v13  ;;  %v6085_v38 = vunpack.c.l.b16 %v5989_v53  ;;  %v6086_v17 = vunpack.c.l.b16 %v5992_v51 }
 0x2e6   : > { %4954 = vst [vmem:[#allocation2 + $0x80] sm:$0x1] %v4953_v18  ;;  %v4730_v15 = vshrl.u32 %v4544_v19, 16  ;;  %v4391_v62 = vadd.f32 %v4342_v20, %v3965_v25  ;;  %5830 = vmatmul.bf16.gmra.mxu2 %v11429_v45  ;;  %6522 = vmatmul.bf16.gmra.mxu0 %v11469_v37  ;;  %v4733_v14 = vshll.u32 %v4544_v19, 16  ;;  %v5481_v20 = vunpack.c.l.b16 %v5300_v52  ;;  %v11492_v19 = vld [vmem:[#allocation3 + $0x110] sm:$0xff] }
 0x2e7   : > { %6208 = vmatmul.bf16.gmra.mxu3 %v6108_v4  ;;  %v5480_v22 = vunpack.c.l.b16 %v5290_v49  ;;  %v13624_v35 = vpack.c.b16 %v6086_v17, %v6085_v38  ;;  %v15505_v4 = vld [vmem:[#allocation15_spill] sm:$0xff]  ;;  %v5302_v18 = vshrl.u32 %v5017_v6, 16  ;;  %v5305_v45 = vshll.u32 %v5017_v6, 16  ;;  %7186 = vmatpush.bf16.msrb.mxu1 %v11492_v19  ;;  %v11430_v38 = vld [vmem:[#allocation2 + $0x30] sm:$0xff]  ;;  %v11470_v17 = vld [vmem:[#allocation2 + $0x3c] sm:$0xff] }
 0x2e8   : > { %v4732_v2 = vrot.slane %v4730_v15, 7  ;;  %v4427_v7 = vadd.f32 %v13417_v46, %v4391_v62  ;;  %v13617_v61 = vpop.f32.mrf.mxu1  ;;  %v2970_v56 = vadd.f32 %v15505_v4, %v15504_v55  ;;  %v4959_v62 = vld [vmem:[#allocation2 + $0x8c] sm:$0x1] }
 0x2e9   : > { %v3237_v43 = vpop.f32.mrf.mxu2  ;;  %v5503_v11 = vpack.c.b16 %v5481_v20, %v5480_v22  ;;  %v5304_v15 = vrot.slane %v5302_v18, 4  ;;  %v5998_v18 = vrot.slane %v13499_v26, 5 }
 0x2ea   : > { %v4735_v60 = vor.u32 %v4733_v14, %v4732_v2  ;;  %v4459_v0 = vmax.f32 %v4427_v7, 0.0  ;;  %v3284_v30 = vadd.f32 %v3237_v43, %v15503_v54  ;;  %v3919_v58 = vpop.f32.mrf.mxu3  ;;  %v4736_v25 = vrot.slane %v4732_v2, 4  ;;  %v5903_v43 = vld [vmem:[#allocation2 + $0x54] sm:$0xe] }
 0x2eb   : > { %v4347_v10 = vpop.f32.mrf.mxu0  ;;  %v10860_v6 = vrot.slane %v5903_v43, 9  ;;  %v15507_v43 = vld [vmem:[#allocation20_spill] sm:$0xff] }
 0x2ec   : > { %v4956_v12 = vsel %vm13104_vm11, %v4735_v60, %v4955_v44  ;;  %v4545_v24 = vpack.c.bf16 %v4459_v0, %v4459_v0  ;;  %v3966_v33 = vadd.f32 %v3919_v58, %v3284_v30  ;;  %v13622_v57 = vld [vmem:[#allocation2 + $0x7c] sm:$0xf]  ;;  %v5995_v0 = vrot.slane %v13497_v36, 5 }
 0x2ed   : > { %4957 = vst [vmem:[#allocation2 + $0x84] sm:$0xf] %v4956_v12  ;;  %v13628_v29 = vld [vmem:[#allocation2 + $0x80] sm:$0x1]  ;;  %v5311_v37 = vshll.u32 %v13622_v57, 16  ;;  %v5315_v8 = vshrl.u32 %v13622_v57, 16 }
 0x2ee   : > { %v4738_v1 = vshrl.u32 %v4545_v24, 16  ;;  %v4392_v3 = vadd.f32 %v4345_v34, %v3966_v33  ;;  %5627 = vmatmul.bf16.gmra.mxu1 %v5503_v11  ;;  %v4741_v13 = vshll.u32 %v4545_v24, 16  ;;  %v5307_v34 = vrot.slane %v5305_v45, 5 }
 0x2ef   : > { %v5313_v49 = vrot.slane %v5311_v37, 5  ;;  %v5317_v52 = vrot.slane %v5315_v8, 4  ;;  %v5321_v53 = vshll.u32 %v13628_v29, 16  ;;  %v5997_v36 = vrot.slane %v5995_v0, 4  ;;  %v4962_v37 = vld [vmem:[#allocation2 + $0x90] sm:$0xf] }
 0x2f0   : > { %v4740_v59 = vrot.slane %v4738_v1, 7  ;;  %v4428_v21 = vadd.f32 %v13417_v46, %v4392_v3  ;;  %v13634_v7 = vpop.f32.mrf.mxu1  ;;  %v5308_v51 = vor.u32 %v5307_v34, %v5304_v15  ;;  %v5996_v3 = vsel %vm12191_vm5, %v10860_v6, %v5995_v0  ;;  %v13670_v6 = vld [vmem:[%s15458_s2] ss:$0 sm:$0xff] }
 0x2f1   : > { %v3239_v50 = vpop.f32.mrf.mxu2  ;;  %v5318_v60 = vor.u32 %v5317_v52, %v5313_v49  ;;  %v5323_v33 = vrot.slane %v5321_v53, 5  ;;  %v6087_v52 = vunpack.c.l.b16 %v5996_v3 }
 0x2f2   : > { %v4743_v63 = vor.u32 %v4741_v13, %v4740_v59  ;;  %v4745_v2 = vrot.slane %v4740_v59, 4  ;;  %v4460_v14 = vmax.f32 %v4428_v21, 0.0  ;;  %v3285_v20 = vadd.f32 %v3239_v50, %v2970_v56  ;;  %v3921_v44 = vpop.f32.mrf.mxu3 }
 0x2f3   : > { %v4350_v22 = vpop.f32.mrf.mxu0  ;;  %v5309_v12 = vrot.slane %v5308_v51, 4  ;;  %v5319_v24 = vrot.slane %v5318_v60, 4  ;;  %v15508_v51 = vld [vmem:[#allocation18_spill] sm:$0xff] }
 0x2f4   : > { %v4744_v54 = vsel %vm13152_vm12, %v4736_v25, %v4743_v63  ;;  %v4960_v30 = vsel %vm13161_vm13, %v4745_v2, %v4959_v62  ;;  %v4546_v58 = vpack.c.bf16 %v4460_v14, %v4460_v14  ;;  %v3967_v11 = vadd.f32 %v3921_v44, %v3285_v20  ;;  %v15506_v62 = vld [vmem:[#allocation19_spill] sm:$0xff]  ;;  %v5019_v14 = vld [vmem:[#allocation2 + $0x84] sm:$0xf] }
 0x2f5   : > { %4958 = vst [vmem:[#allocation2 + $0x88] sm:$0xf] %v4744_v54  ;;  %v5314_v56 = vsel %vm11888_vm2, %v5309_v12, %v5313_v49  ;;  %v5324_v1 = vsel %vm11888_vm2, %v5319_v24, %v5323_v33  ;;  %v2972_v60 = vadd.f32 %v15508_v51, %v15507_v43 }
 0x2f6   : > { %4961 = vst [vmem:[#allocation2 + $0x8c] sm:$0x1] %v4960_v30  ;;  %v4747_v55 = vshrl.u32 %v4546_v58, 16  ;;  %v4393_v4 = vadd.f32 %v4347_v10, %v3967_v11  ;;  %5835 = vmatmul.bf16.gmra.mxu2 %v11430_v38  ;;  %6527 = vmatmul.bf16.gmra.mxu0 %v11470_v17  ;;  %v4750_v25 = vshll.u32 %v4546_v58, 16  ;;  %v5483_v45 = vunpack.c.l.b16 %v5324_v1 }
 0x2f7   : > { %6213 = vmatmul.bf16.gmra.mxu3 %v13551_v31  ;;  %v5482_v59 = vunpack.c.l.b16 %v5314_v56  ;;  %v5999_v31 = vsel %vm12191_vm5, %v5997_v36, %v5998_v18  ;;  %v5326_v58 = vshrl.u32 %v5019_v14, 16  ;;  %v5329_v38 = vshll.u32 %v5019_v14, 16 }
 0x2f8   : > { %v4749_v19 = vrot.slane %v4747_v55, 7  ;;  %v4429_v10 = vadd.f32 %v13417_v46, %v4393_v4  ;;  %v13652_v15 = vpop.f32.mrf.mxu1  ;;  %v6088_v53 = vunpack.c.l.b16 %v5999_v31  ;;  %v4966_v4 = vld [vmem:[#allocation2 + $0x98] sm:$0x1] }
 0x2f9   : > { %v3242_v8 = vpop.f32.mrf.mxu2  ;;  %v5504_v49 = vpack.c.b16 %v5483_v45, %v5482_v59  ;;  %v5331_v56 = vrot.slane %v5329_v38, 5  ;;  %v5904_v59 = vld [vmem:[#allocation2 + $0x60] sm:$0xe] }
 0x2fa   : > { %v4752_v13 = vor.u32 %v4750_v25, %v4749_v19  ;;  %v4461_v21 = vmax.f32 %v4429_v10, 0.0  ;;  %v3286_v50 = vadd.f32 %v3242_v8, %v15506_v62  ;;  %v3924_v34 = vpop.f32.mrf.mxu3  ;;  %v13659_v44 = vpack.c.b16 %v6088_v53, %v6087_v52  ;;  %v11431_v53 = vld [vmem:[#allocation2 + $0x3c] sm:$0xff] }
 0x2fb   : > { %v4352_v26 = vpop.f32.mrf.mxu0  ;;  %v4753_v11 = vrot.slane %v4749_v19, 4  ;;  %v6002_v62 = vrot.slane %v13542_v42, 5  ;;  %v10861_v43 = vrot.slane %v5904_v59, 9 }
 0x2fc   : > { %v4963_v46 = vsel %vm13104_vm11, %v4752_v13, %v4962_v37  ;;  %v4547_v63 = vpack.c.bf16 %v4461_v21, %v4461_v21  ;;  %v3968_v2 = vadd.f32 %v3924_v34, %v3286_v50  ;;  %v13657_v20 = vld [vmem:[#allocation2 + $0x88] sm:$0xf] }
 0x2fd   : > { %4964 = vst [vmem:[#allocation2 + $0x90] sm:$0xf] %v4963_v46  ;;  %v13663_v30 = vld [vmem:[#allocation2 + $0x8c] sm:$0x1]  ;;  %v5335_v17 = vshll.u32 %v13657_v20, 16  ;;  %v5339_v12 = vshrl.u32 %v13657_v20, 16 }
 0x2fe   : > { %v4755_v0 = vshrl.u32 %v4547_v63, 16  ;;  %v4394_v54 = vadd.f32 %v4350_v22, %v3968_v2  ;;  %5632 = vmatmul.bf16.gmra.mxu1 %v5504_v49  ;;  %v4758_v33 = vshll.u32 %v4547_v63, 16  ;;  %v5328_v22 = vrot.slane %v5326_v58, 4  ;;  %v11471_v46 = vld [vmem:[#allocation2 + $0x48] sm:$0xff] }
 0x2ff   : > { %v5337_v1 = vrot.slane %v5335_v17, 5  ;;  %v5341_v3 = vrot.slane %v5339_v12, 4  ;;  %v5345_v18 = vshll.u32 %v13663_v30, 16  ;;  %v6004_v42 = vrot.slane %v6002_v62, 4 }
 0x300   : > { %v4757_v24 = vrot.slane %v4755_v0, 7  ;;  %v4430_v55 = vadd.f32 %v13670_v6, %v4394_v54  ;;  %v13674_v45 = vpop.f32.mrf.mxu1  ;;  %v5332_v13 = vor.u32 %v5331_v56, %v5328_v22  ;;  %v6003_v58 = vsel %vm12191_vm5, %v10861_v43, %v6002_v62  ;;  %v15509_v56 = vld [vmem:[#allocation22_spill] sm:$0xff]  ;;  %v15510_v62 = vld [vmem:[#allocation23_spill] sm:$0xff] }
 0x301   : > { %v3244_v36 = vpop.f32.mrf.mxu2  ;;  %v5342_v21 = vor.u32 %v5341_v3, %v5337_v1  ;;  %v5347_v14 = vrot.slane %v5345_v18, 5 }
 0x302   : > { %v4760_v19 = vor.u32 %v4758_v33, %v4757_v24  ;;  %v4762_v25 = vrot.slane %v4757_v24, 4  ;;  %v4462_v10 = vmax.f32 %v4430_v55, 0.0  ;;  %v3287_v37 = vadd.f32 %v3244_v36, %v2972_v60  ;;  %v3926_v8 = vpop.f32.mrf.mxu3  ;;  %v4969_v24 = vld [vmem:[#allocation2 + $0x9c] sm:$0xf] }
 0x303   : > { %v4355_v31 = vpop.f32.mrf.mxu0  ;;  %v5333_v63 = vrot.slane %v5332_v13, 4  ;;  %v5343_v2 = vrot.slane %v5342_v21, 4 }
 0x304   : > { %v4761_v50 = vsel %vm13152_vm12, %v4753_v11, %v4760_v19  ;;  %v4967_v34 = vsel %vm13161_vm13, %v4762_v25, %v4966_v4  ;;  %v4548_v49 = vpack.c.bf16 %v4462_v10, %v4462_v10  ;;  %v3969_v52 = vadd.f32 %v3926_v8, %v3287_v37  ;;  %v5021_v59 = vld [vmem:[#allocation2 + $0x90] sm:$0xf] }
 0x305   : > { %4965 = vst [vmem:[#allocation2 + $0x94] sm:$0xf] %v4761_v50  ;;  %v5338_v0 = vsel %vm11888_vm2, %v5333_v63, %v5337_v1  ;;  %v5348_v54 = vsel %vm11888_vm2, %v5343_v2, %v5347_v14  ;;  %v6005_v11 = vrot.slane %v13544_v5, 5  ;;  %v6089_v19 = vunpack.c.l.b16 %v6003_v58  ;;  %v15511_v50 = vld [vmem:[#allocation21_spill] sm:$0xff]  ;;  %v11491_v63 = vld [vmem:[#allocation3 + $0x108] sm:$0xff] }
 0x306   : > { %4968 = vst [vmem:[#allocation2 + $0x98] sm:$0x1] %v4967_v34  ;;  %v4764_v51 = vshrl.u32 %v4548_v49, 16  ;;  %v4395_v60 = vadd.f32 %v4352_v26, %v3969_v52  ;;  %5840 = vmatmul.bf16.gmra.mxu2 %v11431_v53  ;;  %6532 = vmatmul.bf16.gmra.mxu0 %v11471_v46  ;;  %v4767_v17 = vshll.u32 %v4548_v49, 16  ;;  %v5485_v12 = vunpack.c.l.b16 %v5348_v54  ;;  %v4973_v58 = vld [vmem:[#allocation2 + $0xa4] sm:$0x1] }
 0x307   : > { %6218 = vmatmul.bf16.gmra.mxu3 %v13591_v28  ;;  %v5484_v55 = vunpack.c.l.b16 %v5338_v0  ;;  %v6006_v28 = vsel %vm12191_vm5, %v6004_v42, %v6005_v11  ;;  %v2974_v34 = vadd.f32 %v15511_v50, %v15510_v62  ;;  %v5350_v46 = vshrl.u32 %v5021_v59, 16  ;;  %7187 = vmatpush.bf16.msrb.mxu1 %v11491_v63 }
 0x308   : > { %v4766_v38 = vrot.slane %v4764_v51, 7  ;;  %v4431_v26 = vadd.f32 %v13670_v6, %v4395_v60  ;;  %v6090_v25 = vunpack.c.l.b16 %v6006_v28  ;;  %v5353_v14 = vshll.u32 %v5021_v59, 16  ;;  %v11472_v59 = vld [vmem:[#allocation2 + $0x54] sm:$0xff] }
 0x309   : > { %v3247_v33 = vpop.f32.mrf.mxu2  ;;  %v5505_v18 = vpack.c.b16 %v5485_v12, %v5484_v55  ;;  %v5352_v54 = vrot.slane %v5350_v46, 4 }
 0x30a   : > { %v4769_v22 = vor.u32 %v4767_v17, %v4766_v38  ;;  %v4463_v4 = vmax.f32 %v4431_v26, 0.0  ;;  %v13692_v36 = vpop.f32.mrf.mxu1  ;;  %v3288_v1 = vadd.f32 %v3247_v33, %v15509_v56  ;;  %v3929_v3 = vpop.f32.mrf.mxu3  ;;  %v13699_v21 = vpack.c.b16 %v6090_v25, %v6089_v19 }
 0x30b   : > { %v4357_v5 = vpop.f32.mrf.mxu0  ;;  %v4770_v2 = vrot.slane %v4766_v38, 4 }
 0x30c   : > { %v4970_v10 = vsel %vm13104_vm11, %v4769_v22, %v4969_v24  ;;  %v4549_v37 = vpack.c.bf16 %v4463_v4, %v4463_v4  ;;  %v3970_v8 = vadd.f32 %v3929_v3, %v3288_v1  ;;  %v13697_v13 = vld [vmem:[#allocation2 + $0x94] sm:$0xf]  ;;  %v5905_v4 = vld [vmem:[#allocation2 + $0x6c] sm:$0xe] }
 0x30d   : > { %4971 = vst [vmem:[#allocation2 + $0x9c] sm:$0xf] %v4970_v10  ;;  %v13703_v53 = vld [vmem:[#allocation2 + $0x98] sm:$0x1]  ;;  %v5359_v43 = vshll.u32 %v13697_v13, 16  ;;  %v5363_v51 = vshrl.u32 %v13697_v13, 16 }
 0x30e   : > { %v4772_v49 = vshrl.u32 %v4549_v37, 16  ;;  %v4396_v52 = vadd.f32 %v4355_v31, %v3970_v8  ;;  %5637 = vmatmul.bf16.gmra.mxu1 %v5505_v18  ;;  %v4775_v42 = vshll.u32 %v4549_v37, 16  ;;  %v5355_v31 = vrot.slane %v5353_v14, 5  ;;  %v11432_v8 = vld [vmem:[#allocation2 + $0x48] sm:$0xff] }
 0x30f   : > { %v5361_v17 = vrot.slane %v5359_v43, 5  ;;  %v5365_v26 = vrot.slane %v5363_v51, 4  ;;  %v5369_v12 = vshll.u32 %v13703_v53, 16  ;;  %v6009_v18 = vrot.slane %v13589_v27, 5 }
 0x310   : > { %v4774_v60 = vrot.slane %v4772_v49, 7  ;;  %v4432_v0 = vadd.f32 %v13670_v6, %v4396_v52  ;;  %v5356_v1 = vor.u32 %v5355_v31, %v5352_v54  ;;  %v10862_v49 = vrot.slane %v5905_v4, 9 }
 0x311   : > { %v3249_v11 = vpop.f32.mrf.mxu2  ;;  %v5366_v3 = vor.u32 %v5365_v26, %v5361_v17  ;;  %v6011_v27 = vrot.slane %v6009_v18, 4  ;;  %v6012_v43 = vrot.slane %v13593_v47, 5  ;;  %v15512_v26 = vld [vmem:[#allocation24_spill] sm:$0xff] }
 0x312   : > { %v4777_v38 = vor.u32 %v4775_v42, %v4774_v60  ;;  %v4779_v24 = vrot.slane %v4774_v60, 4  ;;  %v4464_v33 = vmax.f32 %v4432_v0, 0.0  ;;  %v13709_v55 = vpop.f32.mrf.mxu1  ;;  %v3289_v28 = vadd.f32 %v3249_v11, %v2974_v34  ;;  %v3931_v22 = vpop.f32.mrf.mxu3  ;;  %v4976_v0 = vld [vmem:[#allocation2 + $0xa8] sm:$0xf] }
 0x313   : > { %v4360_v56 = vpop.f32.mrf.mxu0  ;;  %v5357_v62 = vrot.slane %v5356_v1, 4  ;;  %v5367_v50 = vrot.slane %v5366_v3, 4  ;;  %v5371_v34 = vrot.slane %v5369_v12, 5  ;;  %v6010_v14 = vsel %vm12191_vm5, %v10862_v49, %v6009_v18 }
 0x314   : > { %v4778_v19 = vsel %vm13152_vm12, %v4770_v2, %v4777_v38  ;;  %v4974_v25 = vsel %vm13161_vm13, %v4779_v24, %v4973_v58  ;;  %v4550_v10 = vpack.c.bf16 %v4464_v33, %v4464_v33  ;;  %v3971_v37 = vadd.f32 %v3931_v22, %v3289_v28  ;;  %v5023_v3 = vld [vmem:[#allocation2 + $0x9c] sm:$0xf] }
 0x315   : > { %4972 = vst [vmem:[#allocation2 + $0xa0] sm:$0xf] %v4778_v19  ;;  %v5362_v63 = vsel %vm11888_vm2, %v5357_v62, %v5361_v17  ;;  %v5372_v2 = vsel %vm11888_vm2, %v5367_v50, %v5371_v34  ;;  %v6091_v33 = vunpack.c.l.b16 %v6010_v14  ;;  %v5374_v50 = vshrl.u32 %v5023_v3, 16 }
 0x316   : > { %4975 = vst [vmem:[#allocation2 + $0xa4] sm:$0x1] %v4974_v25  ;;  %v4781_v52 = vshrl.u32 %v4550_v10, 16  ;;  %v4397_v46 = vadd.f32 %v4357_v5, %v3971_v37  ;;  %5845 = vmatmul.bf16.gmra.mxu2 %v11432_v8  ;;  %6537 = vmatmul.bf16.gmra.mxu0 %v11472_v59  ;;  %v4784_v60 = vshll.u32 %v4550_v10, 16  ;;  %v5487_v42 = vunpack.c.l.b16 %v5372_v2  ;;  %v15513_v25 = vld [vmem:[#allocation26_spill] sm:$0xff]  ;;  %v15514_v10 = vld [vmem:[#allocation25_spill] sm:$0xff] }
 0x317   : > { %6223 = vmatmul.bf16.gmra.mxu3 %v13624_v35  ;;  %v5486_v58 = vunpack.c.l.b16 %v5362_v63  ;;  %v6013_v35 = vsel %vm12191_vm5, %v6011_v27, %v6012_v43  ;;  %v2976_v37 = vadd.f32 %v15514_v10, %v15513_v25  ;;  %v5377_v49 = vshll.u32 %v5023_v3, 16  ;;  %v4980_v43 = vld [vmem:[#allocation2 + $0xb0] sm:$0x1]  ;;  %v11473_v3 = vld [vmem:[#allocation2 + $0x60] sm:$0xff] }
 0x318   : > { %v4783_v51 = vrot.slane %v4781_v52, 7  ;;  %v4433_v5 = vadd.f32 %v13670_v6, %v4397_v46  ;;  %v6092_v28 = vunpack.c.l.b16 %v6013_v35  ;;  %v5376_v14 = vrot.slane %v5374_v50, 4 }
 0x319   : > { %v3252_v54 = vpop.f32.mrf.mxu2  ;;  %v5506_v24 = vpack.c.b16 %v5487_v42, %v5486_v58 }
 0x31a   : > { %v4786_v11 = vor.u32 %v4784_v60, %v4783_v51  ;;  %v4465_v31 = vmax.f32 %v4433_v5, 0.0  ;;  %v13727_v17 = vpop.f32.mrf.mxu1  ;;  %v3290_v12 = vadd.f32 %v3252_v54, %v15512_v26  ;;  %v3934_v38 = vpop.f32.mrf.mxu3  ;;  %v13734_v19 = vpack.c.b16 %v6092_v28, %v6091_v33 }
 0x31b   : > { %v4362_v47 = vpop.f32.mrf.mxu0  ;;  %v4787_v34 = vrot.slane %v4783_v51, 4  ;;  %v5379_v5 = vrot.slane %v5377_v49, 5 }
 0x31c   : > { %v4977_v22 = vsel %vm13104_vm11, %v4786_v11, %v4976_v0  ;;  %v4551_v4 = vpack.c.bf16 %v4465_v31, %v4465_v31  ;;  %v3972_v1 = vadd.f32 %v3934_v38, %v3290_v12  ;;  %v13732_v18 = vld [vmem:[#allocation2 + $0xa0] sm:$0xf] }
 0x31d   : > { %4978 = vst [vmem:[#allocation2 + $0xa8] sm:$0xf] %v4977_v22  ;;  %v13738_v62 = vld [vmem:[#allocation2 + $0xa4] sm:$0x1]  ;;  %v5383_v52 = vshll.u32 %v13732_v18, 16  ;;  %v5387_v46 = vshrl.u32 %v13732_v18, 16  ;;  %v5380_v12 = vor.u32 %v5379_v5, %v5376_v14 }
 0x31e   : > { %v4789_v8 = vshrl.u32 %v4551_v4, 16  ;;  %v4398_v59 = vadd.f32 %v4360_v56, %v3972_v1  ;;  %5642 = vmatmul.bf16.gmra.mxu1 %v5506_v24  ;;  %v4792_v63 = vshll.u32 %v4551_v4, 16  ;;  %v5393_v0 = vshll.u32 %v13738_v62, 16  ;;  %v5906_v24 = vld [vmem:[#allocation2 + $0x78] sm:$0xe] }
 0x31f   : > { %v5385_v42 = vrot.slane %v5383_v52, 5  ;;  %v5389_v56 = vrot.slane %v5387_v46, 4  ;;  %v11433_v1 = vld [vmem:[#allocation2 + $0x54] sm:$0xff]  ;;  %v5381_v25 = vrot.slane %v5380_v12, 4 }
 0x320   : > { %v4791_v27 = vrot.slane %v4789_v8, 7  ;;  %v4434_v2 = vadd.f32 %v13670_v6, %v4398_v59  ;;  %v5395_v8 = vrot.slane %v5393_v0, 5 }
 0x321   : > { %v3254_v60 = vpop.f32.mrf.mxu2  ;;  %v5390_v38 = vor.u32 %v5389_v56, %v5385_v42  ;;  %v5386_v52 = vsel %vm11888_vm2, %v5381_v25, %v5385_v42 }
 0x322   : > { %v4794_v54 = vor.u32 %v4792_v63, %v4791_v27  ;;  %v4796_v51 = vrot.slane %v4791_v27, 4  ;;  %v4466_v58 = vmax.f32 %v4434_v2, 0.0  ;;  %v13744_v35 = vpop.f32.mrf.mxu1  ;;  %v3291_v11 = vadd.f32 %v3254_v60, %v2976_v37  ;;  %v3936_v31 = vpop.f32.mrf.mxu3  ;;  %v11490_v2 = vld [vmem:[#allocation3 + $0x100] sm:$0xff]  ;;  %v4983_v60 = vld [vmem:[#allocation2 + $0xb4] sm:$0xf] }
 0x323   : > { %v4365_v26 = vpop.f32.mrf.mxu0  ;;  %v5391_v10 = vrot.slane %v5390_v38, 4  ;;  %v6016_v37 = vrot.slane %v13622_v57, 5  ;;  %v5488_v56 = vunpack.c.l.b16 %v5386_v52  ;;  %7188 = vmatpush.bf16.msrb.mxu1 %v11490_v2 }
 0x324   : > { %v4795_v33 = vsel %vm13152_vm12, %v4787_v34, %v4794_v54  ;;  %v4981_v28 = vsel %vm13161_vm13, %v4796_v51, %v4980_v43  ;;  %v4552_v22 = vpack.c.bf16 %v4466_v58, %v4466_v58  ;;  %v3973_v4 = vadd.f32 %v3936_v31, %v3291_v11  ;;  %v5025_v49 = vld [vmem:[#allocation2 + $0xa8] sm:$0xf] }
 0x325   : > { %4979 = vst [vmem:[#allocation2 + $0xac] sm:$0xf] %v4795_v33  ;;  %v10863_v34 = vrot.slane %v5906_v24, 9  ;;  %v5396_v46 = vsel %vm11888_vm2, %v5391_v10, %v5395_v8  ;;  %v5398_v27 = vshrl.u32 %v5025_v49, 16  ;;  %v5401_v63 = vshll.u32 %v5025_v49, 16  ;;  %v15515_v51 = vld [vmem:[#allocation27_spill] sm:$0xff] }
 0x326   : > { %4982 = vst [vmem:[#allocation2 + $0xb0] sm:$0x1] %v4981_v28  ;;  %v4798_v59 = vshrl.u32 %v4552_v22, 16  ;;  %v4399_v50 = vadd.f32 %v4362_v47, %v3973_v4  ;;  %5850 = vmatmul.bf16.gmra.mxu2 %v11433_v1  ;;  %6542 = vmatmul.bf16.gmra.mxu0 %v11473_v3  ;;  %v4801_v57 = vshll.u32 %v4552_v22, 16  ;;  %v5489_v47 = vunpack.c.l.b16 %v5396_v46 }
 0x327   : > { %6228 = vmatmul.bf16.gmra.mxu3 %v13659_v44  ;;  %v6018_v0 = vrot.slane %v6016_v37, 4  ;;  %v6019_v44 = vrot.slane %v13628_v29, 5  ;;  %v6017_v31 = vsel %vm12191_vm5, %v10863_v34, %v6016_v37  ;;  %v5400_v24 = vrot.slane %v5398_v27, 4  ;;  %v15516_v34 = vld [vmem:[#allocation9_spill] sm:$0xff] }
 0x328   : > { %v4800_v14 = vrot.slane %v4798_v59, 7  ;;  %v4435_v43 = vadd.f32 %v13670_v6, %v4399_v50  ;;  %v5507_v12 = vpack.c.b16 %v5489_v47, %v5488_v56  ;;  %v5403_v33 = vrot.slane %v5401_v63, 5  ;;  %v11505_v63 = vld [vmem:[#allocation3 + $0x178] sm:$0xff] }
 0x329   : > { %v3257_v5 = vpop.f32.mrf.mxu2  ;;  %v6020_v28 = vsel %vm12191_vm5, %v6018_v0, %v6019_v44  ;;  %v6093_v8 = vunpack.c.l.b16 %v6017_v31  ;;  %v2978_v52 = vadd.f32 %v13548_v41, %v15516_v34  ;;  %7607 = vmatpush.bf16.msra.mxu2 %v11505_v63 }
 0x32a   : > { %v4803_v54 = vor.u32 %v4801_v57, %v4800_v14  ;;  %v4467_v42 = vmax.f32 %v4435_v43, 0.0  ;;  %v3292_v58 = vadd.f32 %v3257_v5, %v15515_v51  ;;  %v3939_v11 = vpop.f32.mrf.mxu3  ;;  %v6094_v25 = vunpack.c.l.b16 %v6020_v28 }
 0x32b   : > { %v4367_v38 = vpop.f32.mrf.mxu0  ;;  %v13765_v29 = vpop.f32.mrf.mxu1  ;;  %v5404_v46 = vor.u32 %v5403_v33, %v5400_v24  ;;  %v4804_v5 = vrot.slane %v4800_v14, 4 }
 0x32c   : > { %v4984_v22 = vsel %vm13104_vm11, %v4803_v54, %v4983_v60  ;;  %v4553_v4 = vpack.c.bf16 %v4467_v42, %v4467_v42  ;;  %v3974_v1 = vadd.f32 %v3939_v11, %v3292_v58  ;;  %v13767_v3 = vld [vmem:[#allocation2 + $0xac] sm:$0xf]  ;;  %v13775_v2 = vpack.c.b16 %v6094_v25, %v6093_v8  ;;  %v11434_v11 = vld [vmem:[#allocation2 + $0x60] sm:$0xff]  ;;  %v11529_v25 = vld [vmem:[#allocation3 + $0x1b8] sm:$0xff] }
 0x32d   : > { %4985 = vst [vmem:[#allocation2 + $0xb4] sm:$0xf] %v4984_v22  ;;  %v5407_v10 = vshll.u32 %v13767_v3, 16  ;;  %v13770_v50 = vld [vmem:[#allocation2 + $0xb0] sm:$0x1]  ;;  %v5411_v49 = vshrl.u32 %v13767_v3, 16  ;;  %7922 = vmatpush.bf16.msra.mxu3 %v11529_v25 }
 0x32e   : > { %v4806_v37 = vshrl.u32 %v4553_v4, 16  ;;  %v4400_v59 = vadd.f32 %v4365_v26, %v3974_v1  ;;  %5647 = vmatmul.bf16.gmra.mxu1 %v5507_v12  ;;  %v4809_v43 = vshll.u32 %v4553_v4, 16  ;;  %v4987_v26 = vld [vmem:[#allocation2 + $0xbc] sm:$0x1]  ;;  %v5417_v0 = vshll.u32 %v13770_v50, 16  ;;  %v11474_v4 = vld [vmem:[#allocation2 + $0x6c] sm:$0xff] }
 0x32f   : > { %v5409_v27 = vrot.slane %v5407_v10, 5  ;;  %v5413_v60 = vrot.slane %v5411_v49, 4  ;;  %v5405_v31 = vrot.slane %v5404_v46, 4 }
 0x330   : > { %v4808_v57 = vrot.slane %v4806_v37, 7  ;;  %v4436_v47 = vadd.f32 %v13670_v6, %v4400_v59  ;;  %v5419_v8 = vrot.slane %v5417_v0, 5 }
 0x331   : > { %v3259_v56 = vpop.f32.mrf.mxu2  ;;  %v5414_v12 = vor.u32 %v5413_v60, %v5409_v27  ;;  %v5410_v49 = vsel %vm11888_vm2, %v5405_v31, %v5409_v27  ;;  %v4990_v60 = vld [vmem:[#allocation2 + $0xc0] sm:$0xf] }
 0x332   : > { %v4811_v44 = vor.u32 %v4809_v43, %v4808_v57  ;;  %v4813_v54 = vrot.slane %v4808_v57, 4  ;;  %v4468_v41 = vmax.f32 %v4436_v47, 0.0  ;;  %v3293_v42 = vadd.f32 %v3259_v56, %v2978_v52  ;;  %v3941_v51 = vpop.f32.mrf.mxu3 }
 0x333   : > { %v13779_v58 = vpop.f32.mrf.mxu0  ;;  %v13785_v28 = vpop.f32.mrf.mxu1  ;;  %v5415_v10 = vrot.slane %v5414_v12, 4  ;;  %v11537_v12 = vld [vmem:[#allocation3 + $0x1f8] sm:$0xff] }
 0x334   : > { %15517 = vst [vmem:[#allocation10_spill] sm:$0xff] %v13779_v58  ;;  %v4812_v24 = vsel %vm13152_vm12, %v4804_v5, %v4811_v44  ;;  %v4988_v14 = vsel %vm13161_vm13, %v4813_v54, %v4987_v26  ;;  %v4554_v33 = vpack.c.bf16 %v4468_v41, %v4468_v41  ;;  %v3975_v22 = vadd.f32 %v3941_v51, %v3293_v42  ;;  %v5027_v1 = vld [vmem:[#allocation2 + $0xb4] sm:$0xf] }
 0x335   : > { %4986 = vst [vmem:[#allocation2 + $0xb8] sm:$0xf] %v4812_v24  ;;  %v5420_v34 = vsel %vm11888_vm2, %v5415_v10, %v5419_v8  ;;  %v5422_v52 = vshrl.u32 %v5027_v1, 16  ;;  %v5425_v46 = vshll.u32 %v5027_v1, 16  ;;  %v5490_v5 = vunpack.c.l.b16 %v5410_v49  ;;  %8604 = vmatpush.bf16.msra.mxu0 %v11537_v12  ;;  %v11545_v1 = vld [vmem:[#allocation3 + $0x238] sm:$0xff] }
 0x336   : > { %4989 = vst [vmem:[#allocation2 + $0xbc] sm:$0x1] %v4988_v14  ;;  %v4815_v37 = vshrl.u32 %v4554_v33, 16  ;;  %v4401_v59 = vadd.f32 %v4367_v38, %v3975_v22  ;;  %5855 = vmatmul.bf16.gmra.mxu2 %v11434_v11  ;;  %6547 = vmatmul.bf16.gmra.mxu0 %v11474_v4  ;;  %v4818_v57 = vshll.u32 %v4554_v33, 16  ;;  %v5491_v47 = vunpack.c.l.b16 %v5420_v34 }
 0x337   : > { %6233 = vmatmul.bf16.gmra.mxu3 %v13699_v21  ;;  %v5424_v54 = vrot.slane %v5422_v52, 4  ;;  %v5427_v31 = vrot.slane %v5425_v46, 5  ;;  %9030 = vmatpush.bf16.msra.mxu1 %v11545_v1 }
 0x338   : > { %v4817_v63 = vrot.slane %v4815_v37, 7  ;;  %v4437_v43 = vadd.f32 %v13670_v6, %v4401_v59  ;;  %v5508_v21 = vpack.c.b16 %v5491_v47, %v5490_v5  ;;  %v4994_v37 = vld [vmem:[#allocation2 + $0xc8] sm:$0x1]  ;;  %v13812_v5 = vld [vmem:[#allocation2 + $0x10] sm:$0xf] }
 0x339   : > { %v5816_v38 = vpop.f32.mrf.mxu2  ;;  %v5428_v8 = vor.u32 %v5427_v31, %v5424_v54  ;;  %v6678_v32 = vshll.u32 %v13812_v5, 16 }
 0x33a   : > { %v4820_v26 = vor.u32 %v4818_v57, %v4817_v63  ;;  %v4469_v56 = vmax.f32 %v4437_v43, 0.0  ;;  %v5817_v27 = vadd.f32 %v5816_v38, %v13570_v16  ;;  %v6194_v0 = vpop.f32.mrf.mxu3  ;;  %v4821_v34 = vrot.slane %v4817_v63, 4 }
 0x33b   : > { %v13794_v44 = vpop.f32.mrf.mxu0  ;;  %v13798_v51 = vpop.f32.mrf.mxu1  ;;  %v6680_v1 = vrot.slane %v6678_v32, 5  ;;  %v11476_v32 = vld [vmem:[#allocation2 + $0x84] sm:$0xff] }
 0x33c   : > { %15518 = vst [vmem:[#allocation11_spill] sm:$0xff] %v13794_v44  ;;  %v4991_v41 = vsel %vm13104_vm11, %v4820_v26, %v4990_v60  ;;  %v4555_v42 = vpack.c.bf16 %v4469_v56, %v4469_v56  ;;  %v13800_v6 = vadd.f32 %v6194_v0, %v5817_v27  ;;  %v13802_v11 = vld [vmem:[#allocation2 + $0xb8] sm:$0xf]  ;;  %v11435_v0 = vld [vmem:[#allocation2 + $0x6c] sm:$0xff]  ;;  %v14011_v44 = vld [vmem:[#allocation2 + $0x40] sm:$0xf] }
 0x33d   : > { %4992 = vst [vmem:[#allocation2 + $0xc0] sm:$0xf] %v4991_v41  ;;  %v13804_v24 = vld [vmem:[#allocation2 + $0xbc] sm:$0x1]  ;;  %v5431_v16 = vshll.u32 %v13802_v11, 16  ;;  %v5435_v14 = vshrl.u32 %v13802_v11, 16 }
 0x33e   : > { %15519 = vst [vmem:[#allocation12_spill] sm:$0xff] %v13800_v6  ;;  %v4823_v33 = vshrl.u32 %v4555_v42, 16  ;;  %5652 = vmatmul.bf16.gmra.mxu1 %v5508_v21  ;;  %v5441_v4 = vshll.u32 %v13804_v24, 16  ;;  %v4826_v10 = vshll.u32 %v4555_v42, 16  ;;  %v11475_v21 = vld [vmem:[#allocation2 + $0x78] sm:$0xff]  ;;  %v6682_v42 = vshrl.u32 %v13812_v5, 16 }
 0x33f   : > { %v5433_v23 = vrot.slane %v5431_v16, 5  ;;  %v5437_v22 = vrot.slane %v5435_v14, 4  ;;  %v6620_v41 = vld [vmem:[#allocation2 + $0xc] sm:$0xf]  ;;  %v8812_v6 = vrot.slane %v14011_v44, 5 }
 0x340   : > { %v4825_v25 = vrot.slane %v4823_v33, 7  ;;  %v5443_v38 = vrot.slane %v5441_v4, 5  ;;  %v6669_v14 = vshrl.u32 %v6620_v41, 16  ;;  %v6672_v33 = vshll.u32 %v6620_v41, 16  ;;  %v11436_v41 = vld [vmem:[#allocation2 + $0x78] sm:$0xff] }
 0x341   : > { %v5818_v59 = vpop.f32.mrf.mxu2  ;;  %v5438_v49 = vor.u32 %v5437_v22, %v5433_v23 }
 0x342   : > { %v4828_v52 = vor.u32 %v4826_v10, %v4825_v25  ;;  %v4830_v46 = vrot.slane %v4825_v25, 4  ;;  %v5819_v57 = vadd.f32 %v5818_v59, %v13600_v9  ;;  %v6196_v43 = vpop.f32.mrf.mxu3  ;;  %v5429_v9 = vrot.slane %v5428_v8, 4  ;;  %v13836_v59 = vld [vmem:[#allocation2 + $0x14] sm:$0x1] }
 0x343   : > { %v13810_v47 = vpop.f32.mrf.mxu0  ;;  %v5439_v60 = vrot.slane %v5438_v49, 4  ;;  %v13818_v27 = vpop.f32.mrf.mxu1  ;;  %v6684_v25 = vrot.slane %v6682_v42, 4  ;;  %v6674_v49 = vrot.slane %v6672_v33, 5  ;;  %v6023_v33 = vrot.slane %v13657_v20, 5 }
 0x344   : > { %15520 = vst [vmem:[#allocation13_spill] sm:$0xff] %v13810_v47  ;;  %v4829_v26 = vsel %vm13152_vm12, %v4821_v34, %v4828_v52  ;;  %v4995_v56 = vsel %vm13161_vm13, %v4830_v46, %v4994_v37  ;;  %v13820_v63 = vadd.f32 %v6196_v43, %v5819_v57  ;;  %v5434_v48 = vsel %vm11888_vm2, %v5429_v9, %v5433_v23  ;;  %v13838_v52 = vld [vmem:[#allocation2 + $0x1c] sm:$0xf]  ;;  %v11504_v46 = vld [vmem:[#allocation3 + $0x170] sm:$0xff]  ;;  %v8727_v47 = vld [vmem:[#allocation2 + $0x30] sm:$0xe] }
 0x345   : > { %4993 = vst [vmem:[#allocation2 + $0xc4] sm:$0xf] %v4829_v26  ;;  %v5444_v54 = vsel %vm11888_vm2, %v5439_v60, %v5443_v38  ;;  %v5492_v16 = vunpack.c.l.b16 %v5434_v48  ;;  %v6685_v34 = vor.u32 %v6684_v25, %v6680_v1  ;;  %7608 = vmatpush.bf16.msra.mxu2 %v11504_v46 }
 0x346   : > { %15521 = vst [vmem:[#allocation14_spill] sm:$0xff] %v13820_v63  ;;  %5860 = vmatmul.bf16.gmra.mxu2 %v11435_v0  ;;  %6552 = vmatmul.bf16.gmra.mxu0 %v11475_v21  ;;  %v5493_v31 = vunpack.c.l.b16 %v5444_v54  ;;  %v6702_v0 = vshll.u32 %v13838_v52, 16  ;;  %v6706_v21 = vshrl.u32 %v13838_v52, 16 }
 0x347   : > { %4996 = vst [vmem:[#allocation2 + $0xc8] sm:$0x1] %v4995_v56  ;;  %6238 = vmatmul.bf16.gmra.mxu3 %v13734_v19  ;;  %v6671_v19 = vrot.slane %v6669_v14, 4  ;;  %v6686_v26 = vrot.slane %v6685_v34, 4  ;;  %v6623_v56 = vld [vmem:[#allocation2 + $0x18] sm:$0xf] }
 0x348   : > { %v5509_v10 = vpack.c.b16 %v5493_v31, %v5492_v16  ;;  %v11528_v31 = vld [vmem:[#allocation3 + $0x1b0] sm:$0xff]  ;;  %v6693_v16 = vshrl.u32 %v6623_v56, 16 }
 0x349   : > { %v5821_v12 = vpop.f32.mrf.mxu2  ;;  %v6675_v43 = vor.u32 %v6674_v49, %v6671_v19  ;;  %7923 = vmatpush.bf16.msra.mxu3 %v11528_v31  ;;  %v13858_v49 = vld [vmem:[#allocation2 + $0x20] sm:$0x1] }
 0x34a   : > { %v5822_v22 = vadd.f32 %v5821_v12, %v13617_v61  ;;  %v6199_v4 = vpop.f32.mrf.mxu3  ;;  %v6688_v61 = vshll.u32 %v13836_v59, 16  ;;  %v6695_v34 = vrot.slane %v6693_v16, 4  ;;  %v6626_v16 = vld [vmem:[#allocation2 + $0x24] sm:$0xf] }
 0x34b   : > { %v13830_v8 = vpop.f32.mrf.mxu0  ;;  %v13832_v23 = vpop.f32.mrf.mxu1  ;;  %v6676_v12 = vrot.slane %v6675_v43, 4  ;;  %v6025_v43 = vrot.slane %v6023_v33, 4 }
 0x34c   : > { %15522 = vst [vmem:[#allocation16_spill] sm:$0xff] %v13830_v8  ;;  %v13834_v37 = vadd.f32 %v6199_v4, %v5822_v22  ;;  %v6690_v42 = vrot.slane %v6688_v61, 5  ;;  %v13853_v22 = vrot.slane %v6702_v0, 5  ;;  %v6708_v4 = vrot.slane %v6706_v21, 4 }
 0x34d   : > { %v6681_v25 = vsel %vm11888_vm2, %v6676_v12, %v6680_v1  ;;  %v6026_v0 = vrot.slane %v13663_v30, 5  ;;  %v6712_v21 = vshll.u32 %v13858_v49, 16 }
 0x34e   : > { %15523 = vst [vmem:[#allocation17_spill] sm:$0xff] %v13834_v37  ;;  %5657 = vmatmul.bf16.gmra.mxu1 %v5509_v10  ;;  %v6691_v14 = vsel %vm11888_vm2, %v6686_v26, %v6690_v42  ;;  %v6709_v20 = vor.u32 %v6708_v4, %v13853_v22  ;;  %v6627_v26 = vld [vmem:[#allocation2 + $0x28] sm:$0xf] }
 0x34f   : > { %v7070_v19 = vunpack.c.l.b16 %v6691_v14  ;;  %v6027_v31 = vsel %vm12191_vm5, %v6025_v43, %v6026_v0  ;;  %v6730_v14 = vshrl.u32 %v6627_v26, 16  ;;  %v11544_v4 = vld [vmem:[#allocation3 + $0x230] sm:$0xff]  ;;  %v6714_v30 = vrot.slane %v6712_v21, 5 }
 0x350   : > { %v6710_v12 = vrot.slane %v6709_v20, 4  ;;  %9031 = vmatpush.bf16.msra.mxu1 %v11544_v4  ;;  %v11437_v4 = vld [vmem:[#allocation2 + $0x84] sm:$0xff] }
 0x351   : > { %v5823_v57 = vpop.f32.mrf.mxu2  ;;  %v6732_v21 = vrot.slane %v6730_v14, 4 }
 0x352   : > { %v5824_v60 = vadd.f32 %v5823_v57, %v13634_v7  ;;  %v6201_v38 = vpop.f32.mrf.mxu3  ;;  %v6696_v7 = vshll.u32 %v6623_v56, 16  ;;  %v6715_v20 = vsel %vm11888_vm2, %v6710_v12, %v6714_v30 }
 0x353   : > { %v13844_v9 = vpop.f32.mrf.mxu0  ;;  %v13846_v54 = vpop.f32.mrf.mxu1  ;;  %v7072_v14 = vunpack.c.l.b16 %v6715_v20 }
 0x354   : > { %15524 = vst [vmem:[#allocation15_spill] sm:$0xff] %v13844_v9  ;;  %v13848_v48 = vadd.f32 %v6201_v38, %v5824_v60  ;;  %v6698_v46 = vrot.slane %v6696_v7, 5  ;;  %v7069_v60 = vunpack.c.l.b16 %v6681_v25  ;;  %v6726_v7 = vshll.u32 %v6627_v26, 16 }
 0x356   : > { %15525 = vst [vmem:[#allocation19_spill] sm:$0xff] %v13848_v48  ;;  %5865 = vmatmul.bf16.gmra.mxu2 %v11436_v41  ;;  %6557 = vmatmul.bf16.gmra.mxu0 %v11476_v32  ;;  %v11536_v41 = vld [vmem:[#allocation3 + $0x1f0] sm:$0xff]  ;;  %v7101_v32 = vpack.c.b16 %v7070_v19, %v7069_v60  ;;  %v13877_v0 = vrot.slane %v6726_v7, 5 }
 0x357   : > { %6243 = vmatmul.bf16.gmra.mxu3 %v13775_v2  ;;  %v5907_v2 = vld [vmem:[#allocation2 + $0x84] sm:$0xe]  ;;  %8605 = vmatpush.bf16.msra.mxu0 %v11536_v41  ;;  %v6628_v60 = vld [vmem:[#allocation2 + $0x2c] sm:$0x1] }
 0x358   : > { %v10864_v42 = vrot.slane %v5907_v2, 9  ;;  %v6720_v2 = vshll.u32 %v6626_v16, 16 }
 0x359   : > { %v5826_v10 = vpop.f32.mrf.mxu2 }
 0x35a   : > { %v5827_v61 = vadd.f32 %v5826_v10, %v13652_v15  ;;  %v6204_v57 = vpop.f32.mrf.mxu3  ;;  %v6699_v15 = vor.u32 %v6698_v46, %v6695_v34  ;;  %v6024_v25 = vsel %vm12191_vm5, %v10864_v42, %v6023_v33  ;;  %v7304_v10 = vld [vmem:[#allocation2 + $0x24] sm:$0xe]  ;;  %v6717_v34 = vshrl.u32 %v6626_v16, 16 }
 0x35b   : > { %v13862_v38 = vpop.f32.mrf.mxu0  ;;  %v13864_v56 = vpop.f32.mrf.mxu1  ;;  %v6095_v33 = vunpack.c.l.b16 %v6024_v25  ;;  %v7382_v42 = vrot.slane %v6627_v26, 5  ;;  %v6030_v26 = vrot.slane %v13697_v13, 5 }
 0x35c   : > { %15526 = vst [vmem:[#allocation20_spill] sm:$0xff] %v13862_v38  ;;  %v13866_v1 = vadd.f32 %v6204_v57, %v5827_v61  ;;  %v6096_v57 = vunpack.c.l.b16 %v6027_v31  ;;  %v6700_v19 = vrot.slane %v6699_v15, 4  ;;  %v6719_v25 = vrot.slane %v6717_v34, 4 }
 0x35d   : > { %v7384_v7 = vrot.slane %v7382_v42, 4  ;;  %v6032_v34 = vrot.slane %v6030_v26, 4 }
 0x35e   : > { %15527 = vst [vmem:[#allocation18_spill] sm:$0xff] %v13866_v1  ;;  %7189 = vmatmul.bf16.vlgmr.msrb.gmra.mxu1 %v7101_v32  ;;  %v11031_v32 = vrot.slane %v7304_v10, 9  ;;  %v6705_v12 = vsel %vm11888_vm2, %v6700_v19, %v13853_v22  ;;  %v6116_v30 = vpack.c.b16 %v6096_v57, %v6095_v33  ;;  %v6722_v10 = vrot.slane %v6720_v2, 5  ;;  %v6629_v57 = vld [vmem:[#allocation2 + $0x30] sm:$0xf] }
 0x35f   : > { %v7071_v22 = vunpack.c.l.b16 %v6705_v12  ;;  %v13901_v12 = vld [vmem:[#allocation2 + $0x38] sm:$0x1]  ;;  %v6632_v1 = vld [vmem:[#allocation2 + $0x3c] sm:$0xf] }
 0x360   : > { %v7383_v16 = vsel %vm12191_vm5, %v11031_v32, %v7382_v42  ;;  %v6736_v42 = vshll.u32 %v6628_v60, 16  ;;  %v6723_v38 = vor.u32 %v6722_v10, %v6719_v25  ;;  %v13910_v10 = vld [vmem:[#allocation2 + $0x1c] sm:$0xf] }
 0x361   : > { %v5828_v61 = vpop.f32.mrf.mxu2  ;;  %v7499_v19 = vunpack.c.l.b16 %v7383_v16  ;;  %v7102_v13 = vpack.c.b16 %v7072_v14, %v7071_v22  ;;  %v6741_v16 = vshrl.u32 %v6629_v57, 16 }
 0x362   : > { %v5829_v46 = vadd.f32 %v5828_v61, %v13674_v45  ;;  %v6206_v43 = vpop.f32.mrf.mxu3  ;;  %v11477_v45 = vld [vmem:[#allocation2 + $0x90] sm:$0xff]  ;;  %v7385_v61 = vrot.slane %v6628_v60, 5 }
 0x363   : > { %v13879_v41 = vpop.f32.mrf.mxu0  ;;  %v13881_v31 = vpop.f32.mrf.mxu1 }
 0x364   : > { %15528 = vst [vmem:[#allocation22_spill] sm:$0xff] %v13879_v41  ;;  %v13883_v15 = vadd.f32 %v6206_v43, %v5829_v46  ;;  %v6733_v46 = vor.u32 %v6732_v21, %v13877_v0  ;;  %v7386_v43 = vsel %vm12191_vm5, %v7384_v7, %v7385_v61  ;;  %v6630_v41 = vld [vmem:[#allocation2 + $0x34] sm:$0xf]  ;;  %v6744_v61 = vshll.u32 %v6629_v57, 16 }
 0x365   : > { %v7500_v33 = vunpack.c.l.b16 %v7386_v43  ;;  %v7389_v22 = vrot.slane %v6630_v41, 5 }
 0x366   : > { %15529 = vst [vmem:[#allocation23_spill] sm:$0xff] %v13883_v15  ;;  %5870 = vmatmul.bf16.gmra.mxu2 %v11437_v4  ;;  %6562 = vmatmul.bf16.gmra.mxu0 %v11477_v45  ;;  %v7305_v4 = vld [vmem:[#allocation2 + $0x30] sm:$0xe]  ;;  %v13899_v7 = vrot.slane %v6733_v46, 4  ;;  %v6754_v15 = vshrl.u32 %v6630_v41, 16 }
 0x367   : > { %6248 = vmatmul.bf16.gmra.mxu3 %v6116_v30  ;;  %v5908_v30 = vld [vmem:[#allocation2 + $0x90] sm:$0xe]  ;;  %v13895_v2 = vpack.c.b16 %v7500_v33, %v7499_v19  ;;  %v11032_v14 = vrot.slane %v7305_v4, 9  ;;  %v6738_v19 = vrot.slane %v6736_v42, 5  ;;  %v6750_v33 = vshll.u32 %v6630_v41, 16  ;;  %v11503_v42 = vld [vmem:[#allocation3 + $0x168] sm:$0xff] }
 0x368   : > { %v7391_v57 = vrot.slane %v7389_v22, 4  ;;  %v8725_v4 = vld [vmem:[#allocation2 + $0x18] sm:$0xe]  ;;  %7609 = vmatpush.bf16.msra.mxu2 %v11503_v42  ;;  %v11438_v42 = vld [vmem:[#allocation2 + $0x90] sm:$0xff] }
 0x369   : > { %v5831_v32 = vpop.f32.mrf.mxu2  ;;  %v7390_v46 = vsel %vm12191_vm5, %v11032_v14, %v7389_v22  ;;  %v13926_v9 = vrot.slane %v6750_v33, 5  ;;  %v6760_v33 = vshll.u32 %v13901_v12, 16 }
 0x36a   : > { %v5832_v20 = vadd.f32 %v5831_v32, %v13692_v36  ;;  %v6209_v45 = vpop.f32.mrf.mxu3  ;;  %v6033_v36 = vrot.slane %v13703_v53, 5  ;;  %v10865_v32 = vrot.slane %v5908_v30, 9  ;;  %v6739_v53 = vsel %vm11888_vm2, %v13899_v7, %v6738_v19 }
 0x36b   : > { %v13897_v21 = vpop.f32.mrf.mxu0  ;;  %v13903_v60 = vpop.f32.mrf.mxu1  ;;  %v6743_v30 = vrot.slane %v6741_v16, 4  ;;  %v11205_v16 = vrot.slane %v8725_v4, 9 }
 0x36c   : > { %15530 = vst [vmem:[#allocation21_spill] sm:$0xff] %v13897_v21  ;;  %v13905_v43 = vadd.f32 %v6209_v45, %v5832_v20  ;;  %v6034_v25 = vsel %vm12191_vm5, %v6032_v34, %v6033_v36  ;;  %v7392_v20 = vrot.slane %v13901_v12, 5  ;;  %v6724_v45 = vrot.slane %v6723_v38, 4  ;;  %v13920_v36 = vld [vmem:[#allocation2 + $0x20] sm:$0x1] }
 0x36d   : > { %v6031_v41 = vsel %vm12191_vm5, %v10865_v32, %v6030_v26  ;;  %v6746_v34 = vrot.slane %v6744_v61, 5  ;;  %v6098_v21 = vunpack.c.l.b16 %v6034_v25  ;;  %v7501_v38 = vunpack.c.l.b16 %v7390_v46 }
 0x36e   : > { %15531 = vst [vmem:[#allocation24_spill] sm:$0xff] %v13905_v43  ;;  %7194 = vmatmul.bf16.gmra.mxu1 %v7102_v13  ;;  %v7393_v14 = vsel %vm12191_vm5, %v7391_v57, %v7392_v20  ;;  %v8791_v43 = vrot.slane %v13910_v10, 5  ;;  %v6756_v26 = vrot.slane %v6754_v15, 4  ;;  %v6097_v32 = vunpack.c.l.b16 %v6031_v41  ;;  %v11527_v15 = vld [vmem:[#allocation3 + $0x1a8] sm:$0xff] }
 0x36f   : > { %v7502_v13 = vunpack.c.l.b16 %v7393_v14  ;;  %v8794_v25 = vrot.slane %v13920_v36, 5  ;;  %v6747_v14 = vor.u32 %v6746_v34, %v6743_v30  ;;  %v13947_v34 = vld [vmem:[#allocation2 + $0x40] sm:$0xf]  ;;  %v6765_v12 = vshrl.u32 %v6632_v1, 16  ;;  %7924 = vmatpush.bf16.msra.mxu3 %v11527_v15 }
 0x370   : > { %v8793_v57 = vrot.slane %v8791_v43, 4  ;;  %v8792_v4 = vsel %vm12191_vm5, %v11205_v16, %v8791_v43  ;;  %v6117_v41 = vpack.c.b16 %v6098_v21, %v6097_v32  ;;  %v6757_v30 = vor.u32 %v6756_v26, %v13926_v9 }
 0x371   : > { %v5833_v22 = vpop.f32.mrf.mxu2  ;;  %v13930_v8 = vpack.c.b16 %v7502_v13, %v7501_v38  ;;  %v6037_v38 = vrot.slane %v13732_v18, 5  ;;  %v7074_v21 = vunpack.c.l.b16 %v6739_v53  ;;  %v8918_v16 = vunpack.c.l.b16 %v8792_v4 }
 0x372   : > { %v5834_v7 = vadd.f32 %v5833_v22, %v13709_v55  ;;  %v6211_v19 = vpop.f32.mrf.mxu3  ;;  %v11478_v55 = vld [vmem:[#allocation2 + $0x9c] sm:$0xff]  ;;  %v6729_v22 = vsel %vm11888_vm2, %v6724_v45, %v13877_v0  ;;  %v8795_v13 = vsel %vm12191_vm5, %v8793_v57, %v8794_v25  ;;  %v13951_v45 = vrot.slane %v6747_v14, 4  ;;  %v8726_v57 = vld [vmem:[#allocation2 + $0x24] sm:$0xe] }
 0x373   : > { %v13928_v61 = vpop.f32.mrf.mxu0  ;;  %15533 = vst [vmem:[#allocation25_spill] sm:$0xff] %v13930_v8  ;;  %v13933_v46 = vpop.f32.mrf.mxu1  ;;  %v8919_v43 = vunpack.c.l.b16 %v8795_v13  ;;  %v7073_v0 = vunpack.c.l.b16 %v6729_v22  ;;  %v13953_v18 = vrot.slane %v6760_v33, 5  ;;  %v6768_v32 = vshll.u32 %v6632_v1, 16  ;;  %v5909_v14 = vld [vmem:[#allocation2 + $0x9c] sm:$0xe] }
 0x374   : > { %15532 = vst [vmem:[#allocation26_spill] sm:$0xff] %v13928_v61  ;;  %v13935_v20 = vadd.f32 %v6211_v19, %v5834_v7  ;;  %v13949_v7 = vld [vmem:[#allocation2 + $0x28] sm:$0xf]  ;;  %v7306_v19 = vld [vmem:[#allocation2 + $0x3c] sm:$0xe]  ;;  %v6039_v26 = vrot.slane %v6037_v38, 4 }
 0x375   : > { %v13958_v61 = vpack.c.b16 %v8919_v43, %v8918_v16  ;;  %v8798_v53 = vrot.slane %v13949_v7, 5  ;;  %v13962_v22 = vrot.slane %v6757_v30, 4  ;;  %v13964_v33 = vrot.slane %v6765_v12, 4  ;;  %v13973_v16 = vld [vmem:[#allocation2 + $0x2c] sm:$0x1] }
 0x376   : > { %15534 = vst [vmem:[#allocation27_spill] sm:$0xff] %v13935_v20  ;;  %5875 = vmatmul.bf16.gmra.mxu2 %v11438_v42  ;;  %6567 = vmatmul.bf16.gmra.mxu0 %v11478_v55  ;;  %v13955_v42 = vld [vmem:[#allocation2 + $0x44] sm:$0x1]  ;;  %v7396_v55 = vrot.slane %v13947_v34, 5  ;;  %v11033_v1 = vrot.slane %v7306_v19, 9  ;;  %v7103_v15 = vpack.c.b16 %v7074_v21, %v7073_v0  ;;  %v6040_v20 = vrot.slane %v13738_v62, 5 }
 0x377   : > { %6253 = vmatmul.bf16.gmra.mxu3 %v6117_v41  ;;  %15535 = vst [vmem:[#allocation9_spill] sm:$0xff] %v13958_v61  ;;  %v11535_v19 = vld [vmem:[#allocation3 + $0x1e8] sm:$0xff]  ;;  %v7399_v62 = vrot.slane %v13955_v42, 5  ;;  %v10866_v61 = vrot.slane %v5909_v14, 9  ;;  %v8800_v48 = vrot.slane %v8798_v53, 4  ;;  %v6774_v14 = vshll.u32 %v13947_v34, 16 }
 0x378   : > { %v7397_v21 = vsel %vm12191_vm5, %v11033_v1, %v7396_v55  ;;  %v7398_v0 = vrot.slane %v7396_v55, 4  ;;  %v6041_v43 = vsel %vm12191_vm5, %v6039_v26, %v6040_v20  ;;  %8606 = vmatpush.bf16.msra.mxu0 %v11535_v19  ;;  %v6778_v20 = vshrl.u32 %v13947_v34, 16  ;;  %v13996_v26 = vld [vmem:[#allocation2 + $0x38] sm:$0x1] }
 0x379   : > { %v5836_v25 = vpop.f32.mrf.mxu2  ;;  %v7503_v1 = vunpack.c.l.b16 %v7397_v21  ;;  %v6763_v34 = vsel %vm11888_vm2, %v13962_v22, %v13953_v18  ;;  %v11479_v18 = vld [vmem:[#allocation2 + $0xa8] sm:$0xff]  ;;  %v14016_v22 = vrot.slane %v6774_v14, 5 }
 0x37a   : > { %v5837_v4 = vadd.f32 %v5836_v25, %v13727_v17  ;;  %v6214_v41 = vpop.f32.mrf.mxu3  ;;  %v13975_v17 = vld [vmem:[#allocation2 + $0x34] sm:$0xf]  ;;  %v11206_v25 = vrot.slane %v8726_v57, 9  ;;  %v7400_v57 = vsel %vm12191_vm5, %v7398_v0, %v7399_v62  ;;  %v6038_v0 = vsel %vm12191_vm5, %v10866_v61, %v6037_v38  ;;  %v6635_v62 = vld [vmem:[#allocation2 + $0x48] sm:$0xf] }
 0x37b   : > { %v13966_v13 = vpop.f32.mrf.mxu0  ;;  %v13977_v30 = vpop.f32.mrf.mxu1  ;;  %v8805_v55 = vrot.slane %v13975_v17, 5  ;;  %v7504_v19 = vunpack.c.l.b16 %v7400_v57  ;;  %v14009_v38 = vld [vmem:[#allocation2 + $0x4c] sm:$0xf]  ;;  %v6099_v63 = vunpack.c.l.b16 %v6038_v0 }
 0x37c   : > { %15536 = vst [vmem:[#allocation28_spill] sm:$0xff] %v13966_v13  ;;  %v13979_v12 = vadd.f32 %v6214_v41, %v5837_v4  ;;  %v13986_v13 = vrot.slane %v6768_v32, 5  ;;  %v8799_v4 = vsel %vm12191_vm5, %v11206_v25, %v8798_v53  ;;  %v8801_v41 = vrot.slane %v13973_v16, 5  ;;  %v11543_v32 = vld [vmem:[#allocation3 + $0x228] sm:$0xff] }
 0x37d   : > { %v11207_v25 = vrot.slane %v8727_v47, 9  ;;  %9032 = vmatpush.bf16.msra.mxu1 %v11543_v32  ;;  %v14006_v8 = vpack.c.b16 %v7504_v19, %v7503_v1  ;;  %v8920_v21 = vunpack.c.l.b16 %v8799_v4  ;;  %v14018_v32 = vrot.slane %v6778_v20, 4  ;;  %v11502_v19 = vld [vmem:[#allocation3 + $0x160] sm:$0xff] }
 0x37e   : > { %15537 = vst [vmem:[#allocation29_spill] sm:$0xff] %v13979_v12  ;;  %7199 = vmatmul.bf16.gmra.mxu1 %v7103_v15  ;;  %v8802_v53 = vsel %vm12191_vm5, %v8800_v48, %v8801_v41  ;;  %v8807_v12 = vrot.slane %v8805_v55, 4  ;;  %v6100_v15 = vunpack.c.l.b16 %v6041_v43  ;;  %v8808_v43 = vrot.slane %v13996_v26, 5  ;;  %v11439_v41 = vld [vmem:[#allocation2 + $0x9c] sm:$0xff]  ;;  %7610 = vmatpush.bf16.msra.mxu2 %v11502_v19 }
 0x37f   : > { %15538 = vst [vmem:[#allocation30_spill] sm:$0xff] %v14006_v8  ;;  %v8921_v47 = vunpack.c.l.b16 %v8802_v53  ;;  %v8806_v48 = vsel %vm12191_vm5, %v11207_v25, %v8805_v55  ;;  %v6789_v4 = vshrl.u32 %v6635_v62, 16  ;;  %v11526_v53 = vld [vmem:[#allocation3 + $0x1a0] sm:$0xff]  ;;  %v6792_v55 = vshll.u32 %v6635_v62, 16 }
 0x380   : > { %v11534_v8 = vld [vmem:[#allocation3 + $0x1e0] sm:$0xff]  ;;  %v8809_v0 = vsel %vm12191_vm5, %v8807_v12, %v8808_v43  ;;  %v6118_v14 = vpack.c.b16 %v6100_v15, %v6099_v63  ;;  %v8922_v58 = vunpack.c.l.b16 %v8806_v48  ;;  %v15541_v62 = vsel %vm11888_vm2, %v13951_v45, %v13926_v9  ;;  %v7307_v15 = vld [vmem:[#allocation2 + $0x48] sm:$0xe]  ;;  %7925 = vmatpush.bf16.msra.mxu3 %v11526_v53  ;;  %v14048_v9 = vld [vmem:[#allocation2 + $0x44] sm:$0x1] }
 0x381   : > { %v5838_v37 = vpop.f32.mrf.mxu2  ;;  %v14026_v25 = vpack.c.b16 %v8921_v47, %v8920_v21  ;;  %v8923_v20 = vunpack.c.l.b16 %v8809_v0  ;;  %v7075_v21 = vunpack.c.l.b16 %v15541_v62  ;;  %v6771_v63 = vor.u32 %v13986_v13, %v13964_v33  ;;  %8607 = vmatpush.bf16.msra.mxu0 %v11534_v8  ;;  %v14050_v33 = vld [vmem:[#allocation2 + $0x50] sm:$0x1]  ;;  %v5910_v0 = vld [vmem:[#allocation2 + $0xa8] sm:$0xe] }
 0x382   : > { %v5839_v57 = vadd.f32 %v5838_v37, %v13744_v35  ;;  %v6216_v61 = vpop.f32.mrf.mxu3  ;;  %v6802_v12 = vshrl.u32 %v14009_v38, 16  ;;  %v6781_v48 = vor.u32 %v14018_v32, %v14016_v22  ;;  %v6784_v43 = vshll.u32 %v13955_v42, 16 }
 0x383   : > { %v14020_v35 = vpop.f32.mrf.mxu1  ;;  %v14024_v1 = vpop.f32.mrf.mxu0  ;;  %15540 = vst [vmem:[#allocation32_spill] sm:$0xff] %v14026_v25  ;;  %v14041_v47 = vpack.c.b16 %v8923_v20, %v8922_v58  ;;  %v14052_v13 = vrot.slane %v6792_v55, 5  ;;  %v7403_v58 = vrot.slane %v14009_v38, 5  ;;  %v11034_v8 = vrot.slane %v7307_v15, 9 }
 0x384   : > { %v14022_v37 = vadd.f32 %v6216_v61, %v5839_v57  ;;  %15539 = vst [vmem:[#allocation31_spill] sm:$0xff] %v14024_v1  ;;  %v6044_v57 = vrot.slane %v13767_v3, 5  ;;  %v6798_v61 = vshll.u32 %v14009_v38, 16  ;;  %v8728_v1 = vld [vmem:[#allocation2 + $0x3c] sm:$0xe]  ;;  %v7076_v3 = vunpack.c.l.b16 %v6763_v34 }
 0x385   : > { %15542 = vst [vmem:[#allocation33_spill] sm:$0xff] %v14041_v47  ;;  %v8814_v34 = vrot.slane %v8812_v6, 4  ;;  %v8815_v55 = vrot.slane %v14048_v9, 5  ;;  %v7405_v47 = vrot.slane %v7403_v58, 4  ;;  %v7406_v15 = vrot.slane %v14050_v33, 5 }
 0x386   : > { %5880 = vmatmul.bf16.gmra.mxu2 %v11439_v41  ;;  %6572 = vmatmul.bf16.gmra.mxu0 %v11479_v18  ;;  %v14046_v41 = vrot.slane %v6789_v4, 4  ;;  %v11208_v18 = vrot.slane %v8728_v1, 9  ;;  %v6046_v42 = vrot.slane %v6044_v57, 4  ;;  %v14056_v53 = vrot.slane %v6798_v61, 5  ;;  %v11501_v1 = vld [vmem:[#allocation3 + $0x158] sm:$0xff] }
 0x387   : > { %6258 = vmatmul.bf16.gmra.mxu3 %v6118_v14  ;;  %v6047_v4 = vrot.slane %v13770_v50, 5  ;;  %v6804_v14 = vrot.slane %v6802_v12, 4  ;;  %v7404_v61 = vsel %vm12191_vm5, %v11034_v8, %v7403_v58  ;;  %v7104_v50 = vpack.c.b16 %v7076_v3, %v7075_v21  ;;  %7611 = vmatpush.bf16.msra.mxu2 %v11501_v1  ;;  %v11524_v3 = vld [vmem:[#allocation3 + $0x190] sm:$0xff] }
 0x388   : > { %v8813_v20 = vsel %vm12191_vm5, %v11208_v18, %v8812_v6  ;;  %v10867_v12 = vrot.slane %v5910_v0, 9  ;;  %v6772_v25 = vrot.slane %v6771_v63, 4  ;;  %v8816_v6 = vsel %vm12191_vm5, %v8814_v34, %v8815_v55  ;;  %v11500_v63 = vld [vmem:[#allocation3 + $0x150] sm:$0xff] }
 0x389   : > { %v5841_v45 = vpop.f32.mrf.mxu2  ;;  %v8924_v8 = vunpack.c.l.b16 %v8813_v20  ;;  %v8925_v58 = vunpack.c.l.b16 %v8816_v6  ;;  %v6808_v21 = vshll.u32 %v14050_v33, 16  ;;  %v11532_v34 = vld [vmem:[#allocation3 + $0x1d0] sm:$0xff]  ;;  %v7505_v0 = vunpack.c.l.b16 %v7404_v61  ;;  %v8043_v33 = vld [vmem:[#allocation2 + $0x18] sm:$0xf] }
 0x38a   : > { %v5842_v19 = vadd.f32 %v5841_v45, %v13765_v29  ;;  %v6219_v32 = vpop.f32.mrf.mxu3  ;;  %v11525_v29 = vld [vmem:[#allocation3 + $0x198] sm:$0xff]  ;;  %v7302_v20 = vld [vmem:[#allocation2 + $0xc] sm:$0xe] }
 0x38b   : > { %v14062_v62 = vpop.f32.mrf.mxu1  ;;  %v11533_v45 = vld [vmem:[#allocation3 + $0x1d8] sm:$0xff]  ;;  %v14071_v18 = vpop.f32.mrf.mxu0  ;;  %7926 = vmatpush.bf16.msra.mxu3 %v11525_v29  ;;  %v14083_v1 = vpack.c.b16 %v8925_v58, %v8924_v8  ;;  %7612 = vmatpush.bf16.msra.mxu2 %v11500_v63  ;;  %v6810_v6 = vrot.slane %v6808_v21, 5  ;;  %v11531_v63 = vld [vmem:[#allocation3 + $0x1c8] sm:$0xff]  ;;  %v6051_v21 = vrot.slane %v13802_v11, 5 }
 0x38c   : > { %v14064_v38 = vadd.f32 %v6219_v32, %v5842_v19  ;;  %15544 = vst [vmem:[#allocation35_spill] sm:$0xff] %v14071_v18  ;;  %v6048_v19 = vsel %vm12191_vm5, %v6046_v42, %v6047_v4  ;;  %v7407_v32 = vsel %vm12191_vm5, %v7405_v47, %v7406_v15  ;;  %8608 = vmatpush.bf16.msra.mxu0 %v11533_v45  ;;  %v6786_v45 = vrot.slane %v6784_v43, 5 }
 0x38d   : > { %v7506_v55 = vunpack.c.l.b16 %v7407_v32  ;;  %v6045_v42 = vsel %vm12191_vm5, %v10867_v12, %v6044_v57  ;;  %v6795_v4 = vor.u32 %v14052_v13, %v14046_v41  ;;  %v6805_v47 = vor.u32 %v6804_v14, %v14056_v53  ;;  %15545 = vst [vmem:[#allocation36_spill] sm:$0xff] %v14083_v1  ;;  %v11440_v13 = vld [vmem:[#allocation2 + $0xa8] sm:$0xff]  ;;  %v11480_v12 = vld [vmem:[#allocation2 + $0xb4] sm:$0xff]  ;;  %v11481_v1 = vld [vmem:[#allocation2 + $0xc0] sm:$0xff] }
 0x38e   : > { %15543 = vst [vmem:[#allocation34_spill] sm:$0xff] %v14064_v38  ;;  %7204 = vmatmul.bf16.gmra.mxu1 %v7104_v50  ;;  %v6782_v38 = vrot.slane %v6781_v48, 4  ;;  %v6102_v29 = vunpack.c.l.b16 %v6048_v19  ;;  %v6777_v57 = vsel %vm11888_vm2, %v6772_v25, %v14016_v22  ;;  %v7368_v41 = vrot.slane %v13812_v5, 5  ;;  %v11499_v22 = vld [vmem:[#allocation3 + $0x148] sm:$0xff] }
 0x38f   : > { %v14085_v15 = vpack.c.b16 %v7506_v55, %v7505_v0  ;;  %7927 = vmatpush.bf16.msra.mxu3 %v11524_v3  ;;  %v6101_v14 = vunpack.c.l.b16 %v6045_v42  ;;  %v11029_v19 = vrot.slane %v7302_v20, 9  ;;  %v6796_v8 = vrot.slane %v6795_v4, 4  ;;  %v11523_v25 = vld [vmem:[#allocation3 + $0x188] sm:$0xff]  ;;  %v14101_v20 = vld [vmem:[#allocation2 + $0x58] sm:$0xf]  ;;  %7613 = vmatpush.bf16.msra.mxu2 %v11499_v22 }
 0x390   : > { %v6787_v43 = vsel %vm11888_vm2, %v6782_v38, %v6786_v45  ;;  %8609 = vmatpush.bf16.msra.mxu0 %v11532_v34  ;;  %v6806_v58 = vrot.slane %v6805_v47, 4  ;;  %v8092_v3 = vshrl.u32 %v8043_v33, 16  ;;  %v8095_v0 = vshll.u32 %v8043_v33, 16  ;;  %v7308_v4 = vld [vmem:[#allocation2 + $0x54] sm:$0xe] }
 0x391   : > { %v5843_v48 = vpop.f32.mrf.mxu2  ;;  %v6119_v5 = vpack.c.b16 %v6102_v29, %v6101_v14  ;;  %v8101_v55 = vshll.u32 %v13910_v10, 16  ;;  %v8105_v42 = vshrl.u32 %v13910_v10, 16  ;;  %v7078_v38 = vunpack.c.l.b16 %v6787_v43  ;;  %v14104_v45 = vld [vmem:[#allocation2 + $0x4c] sm:$0xf]  ;;  %v14118_v14 = vld [vmem:[#allocation2 + $0x5c] sm:$0x1] }
 0x392   : > { %v5844_v61 = vadd.f32 %v5843_v48, %v13785_v28  ;;  %v6221_v50 = vpop.f32.mrf.mxu3  ;;  %v7370_v34 = vrot.slane %v7368_v41, 4  ;;  %v7077_v47 = vunpack.c.l.b16 %v6777_v57  ;;  %v11498_v48 = vld [vmem:[#allocation3 + $0x140] sm:$0xff]  ;;  %v7371_v29 = vrot.slane %v13836_v59, 5 }
 0x393   : > { %v14094_v32 = vpop.f32.mrf.mxu1  ;;  %v7410_v33 = vrot.slane %v14101_v20, 5  ;;  %v14107_v10 = vpop.f32.mrf.mxu0  ;;  %v6801_v11 = vsel %vm11888_vm2, %v6796_v8, %v14056_v53  ;;  %7928 = vmatpush.bf16.msra.mxu3 %v11523_v25  ;;  %v11530_v57 = vld [vmem:[#allocation3 + $0x1c0] sm:$0xff]  ;;  %v14116_v59 = vsel %vm12191_vm5, %v11029_v19, %v7368_v41  ;;  %v8097_v43 = vrot.slane %v8095_v0, 5  ;;  %v5911_v41 = vld [vmem:[#allocation2 + $0xb4] sm:$0xe]  ;;  %7614 = vmatpush.bf16.msra.mxu2 %v11498_v48 }
 0x394   : > { %v14096_v28 = vadd.f32 %v6221_v50, %v5844_v61  ;;  %15547 = vst [vmem:[#allocation38_spill] sm:$0xff] %v14107_v10  ;;  %v6811_v61 = vsel %vm11888_vm2, %v6806_v58, %v6810_v6  ;;  %8610 = vmatpush.bf16.msra.mxu0 %v11531_v63  ;;  %v11522_v50 = vld [vmem:[#allocation3 + $0x180] sm:$0xff]  ;;  %v14120_v22 = vrot.slane %v8101_v55, 5  ;;  %v11035_v53 = vrot.slane %v7308_v4, 9 }
 0x395   : > { %v7105_v58 = vpack.c.b16 %v7078_v38, %v7077_v47  ;;  %v6053_v25 = vrot.slane %v6051_v21, 4  ;;  %v14125_v63 = vsel %vm12191_vm5, %v7370_v34, %v7371_v29  ;;  %v7413_v0 = vrot.slane %v14118_v14, 5  ;;  %v8729_v47 = vld [vmem:[#allocation2 + $0x48] sm:$0xe] }
 0x396   : > { %15546 = vst [vmem:[#allocation37_spill] sm:$0xff] %v14096_v28  ;;  %5885 = vmatmul.bf16.gmra.mxu2 %v11440_v13  ;;  %6577 = vmatmul.bf16.gmra.mxu0 %v11480_v12  ;;  %v8094_v13 = vrot.slane %v8092_v3, 4  ;;  %v7411_v19 = vsel %vm12191_vm5, %v11035_v53, %v7410_v33  ;;  %v7412_v3 = vrot.slane %v7410_v33, 4  ;;  %v8819_v55 = vrot.slane %v14104_v45, 5  ;;  %v14217_v28 = vld [vmem:[#allocation2 + $0x5c] sm:$0x1] }
 0x397   : > { %6263 = vmatmul.bf16.gmra.mxu3 %v6119_v5  ;;  %v8107_v5 = vrot.slane %v8105_v42, 4  ;;  %v6054_v38 = vrot.slane %v13804_v24, 5  ;;  %v14136_v4 = vunpack.c.l.b16 %v6801_v11  ;;  %v14138_v34 = vunpack.c.l.b16 %v6811_v61  ;;  %v14146_v24 = vld [vmem:[#allocation2 + $0x50] sm:$0x1] }
 0x398   : > { %7929 = vmatpush.bf16.msra.mxu3 %v11522_v50  ;;  %8611 = vmatpush.bf16.msra.mxu0 %v11530_v57  ;;  %v8098_v48 = vor.u32 %v8097_v43, %v8094_v13  ;;  %v8111_v33 = vshll.u32 %v13920_v36, 16  ;;  %v10868_v53 = vrot.slane %v5911_v41, 9  ;;  %v7507_v11 = vunpack.c.l.b16 %v7411_v19  ;;  %v11542_v57 = vld [vmem:[#allocation3 + $0x220] sm:$0xff]  ;;  %v8046_v41 = vld [vmem:[#allocation2 + $0x24] sm:$0xf] }
 0x399   : > { %v5846_v12 = vpop.f32.mrf.mxu2  ;;  %v8108_v29 = vor.u32 %v8107_v5, %v14120_v22  ;;  %v7495_v50 = vunpack.c.l.b16 %v14116_v59  ;;  %v11209_v13 = vrot.slane %v8729_v47, 9  ;;  %v8821_v43 = vrot.slane %v8819_v55, 4  ;;  %9033 = vmatpush.bf16.msra.mxu1 %v11542_v57 }
 0x39a   : > { %v5847_v8 = vadd.f32 %v5846_v12, %v13798_v51  ;;  %v6224_v6 = vpop.f32.mrf.mxu3  ;;  %v7414_v12 = vsel %vm12191_vm5, %v7412_v3, %v7413_v0  ;;  %v6052_v36 = vsel %vm12191_vm5, %v10868_v53, %v6051_v21  ;;  %v8099_v0 = vrot.slane %v8098_v48, 4 }
 0x39b   : > { %v14131_v42 = vpop.f32.mrf.mxu1  ;;  %v7508_v61 = vunpack.c.l.b16 %v7414_v12  ;;  %v8820_v59 = vsel %vm12191_vm5, %v11209_v13, %v8819_v55  ;;  %v8109_v12 = vrot.slane %v8108_v29, 4  ;;  %v8113_v53 = vrot.slane %v8111_v33, 5  ;;  %v11441_v13 = vld [vmem:[#allocation2 + $0xb4] sm:$0xff] }
 0x39c   : > { %v14133_v51 = vadd.f32 %v6224_v6, %v5847_v8  ;;  %v6055_v8 = vsel %vm12191_vm5, %v6053_v25, %v6054_v38  ;;  %v7496_v6 = vunpack.c.l.b16 %v14125_v63  ;;  %v14159_v38 = vpop.f32.mrf.mxu0  ;;  %v7303_v63 = vld [vmem:[#allocation2 + $0x18] sm:$0xe]  ;;  %v8116_v5 = vshrl.u32 %v8046_v41, 16 }
 0x39d   : > { %v14154_v25 = vpack.c.b16 %v7508_v61, %v7507_v11  ;;  %v6104_v19 = vunpack.c.l.b16 %v6055_v8  ;;  %15549 = vst [vmem:[#allocation40_spill] sm:$0xff] %v14159_v38  ;;  %v7375_v11 = vrot.slane %v13838_v52, 5  ;;  %v6103_v61 = vunpack.c.l.b16 %v6052_v36  ;;  %v6638_v36 = vld [vmem:[#allocation2 + $0x54] sm:$0xf] }
 0x39e   : > { %15548 = vst [vmem:[#allocation39_spill] sm:$0xff] %v14133_v51  ;;  %7209 = vmatmul.bf16.gmra.mxu1 %v7105_v58  ;;  %v8822_v58 = vrot.slane %v14146_v24, 5  ;;  %v8119_v8 = vshll.u32 %v8046_v41, 16  ;;  %v8104_v52 = vsel %vm11888_vm2, %v8099_v0, %v14120_v22  ;;  %v11030_v41 = vrot.slane %v7303_v63, 9 }
 0x39f   : > { %v6120_v33 = vpack.c.b16 %v6104_v19, %v6103_v61  ;;  %v8129_v38 = vshrl.u32 %v13949_v7, 16  ;;  %v8114_v22 = vsel %vm11888_vm2, %v8109_v12, %v8113_v53  ;;  %v7378_v0 = vrot.slane %v13858_v49, 5  ;;  %v14194_v61 = vld [vmem:[#allocation2 + $0x68] sm:$0x1] }
 0x3a0   : > { %v8823_v48 = vsel %vm12191_vm5, %v8821_v43, %v8822_v58  ;;  %v14174_v43 = vpack.c.b16 %v7496_v6, %v7495_v50  ;;  %v6822_v58 = vshll.u32 %v14101_v20, 16  ;;  %v14186_v50 = vunpack.c.l.b16 %v8104_v52 }
 0x3a1   : > { %v5848_v3 = vpop.f32.mrf.mxu2  ;;  %v8927_v29 = vunpack.c.l.b16 %v8823_v48  ;;  %v14190_v6 = vsel %vm12191_vm5, %v11030_v41, %v7375_v11  ;;  %v14196_v48 = vld [vmem:[#allocation2 + $0x58] sm:$0xf]  ;;  %v6813_v12 = vshrl.u32 %v6638_v36, 16  ;;  %v6816_v53 = vshll.u32 %v6638_v36, 16 }
 0x3a2   : > { %v5849_v21 = vadd.f32 %v5848_v3, %v13818_v27  ;;  %v6226_v47 = vpop.f32.mrf.mxu3  ;;  %v8125_v27 = vshll.u32 %v13949_v7, 16  ;;  %v8926_v3 = vunpack.c.l.b16 %v8820_v59  ;;  %v7309_v59 = vld [vmem:[#allocation2 + $0x60] sm:$0xe]  ;;  %v8118_v7 = vrot.slane %v8116_v5, 4 }
 0x3a3   : > { %v14165_v57 = vpop.f32.mrf.mxu1  ;;  %v8131_v49 = vrot.slane %v8129_v38, 4  ;;  %v11036_v5 = vrot.slane %v7309_v59, 9  ;;  %v7377_v41 = vrot.slane %v7375_v11, 4  ;;  %v8730_v11 = vld [vmem:[#allocation2 + $0x54] sm:$0xe]  ;;  %v6818_v51 = vrot.slane %v6816_v53, 5 }
 0x3a4   : > { %v14167_v55 = vadd.f32 %v6226_v47, %v5849_v21  ;;  %v6826_v21 = vshrl.u32 %v14101_v20, 16  ;;  %v14178_v47 = vld [vmem:[#allocation2 + $0x64] sm:$0xf]  ;;  %v14180_v19 = vpack.c.b16 %v8927_v29, %v8926_v3  ;;  %v8121_v20 = vrot.slane %v8119_v8, 5  ;;  %v14205_v10 = vpop.f32.mrf.mxu0 }
 0x3a5   : > { %v14192_v63 = vrot.slane %v8125_v27, 5  ;;  %15552 = vst [vmem:[#allocation43_spill] sm:$0xff] %v14205_v10  ;;  %v8135_v10 = vshll.u32 %v13973_v16, 16  ;;  %v11210_v53 = vrot.slane %v8730_v11, 9 }
 0x3a6   : > { %15550 = vst [vmem:[#allocation41_spill] sm:$0xff] %v14167_v55  ;;  %5890 = vmatmul.bf16.gmra.mxu2 %v11441_v13  ;;  %6582 = vmatmul.bf16.gmra.mxu0 %v11481_v1  ;;  %v7417_v1 = vrot.slane %v14178_v47, 5  ;;  %v6828_v52 = vrot.slane %v6826_v21, 4  ;;  %v8826_v55 = vrot.slane %v14196_v48, 5  ;;  %v8122_v59 = vor.u32 %v8121_v20, %v8118_v7  ;;  %v8049_v21 = vld [vmem:[#allocation2 + $0x30] sm:$0xf] }
 0x3a7   : > { %15551 = vst [vmem:[#allocation42_spill] sm:$0xff] %v14180_v19  ;;  %6268 = vmatmul.bf16.gmra.mxu3 %v6120_v33  ;;  %v14199_v33 = vrot.slane %v6822_v58, 5  ;;  %v7420_v19 = vrot.slane %v14194_v61, 5  ;;  %v15554_v7 = vpack.c.b16 %v14138_v34, %v14136_v4  ;;  %v8140_v20 = vshrl.u32 %v8049_v21, 16 }
 0x3a8   : > { %v7418_v8 = vsel %vm12191_vm5, %v11036_v5, %v7417_v1  ;;  %v7419_v27 = vrot.slane %v7417_v1, 4  ;;  %v8132_v1 = vor.u32 %v8131_v49, %v14192_v63  ;;  %v6832_v49 = vshll.u32 %v14118_v14, 16 }
 0x3a9   : > { %v5851_v13 = vpop.f32.mrf.mxu2  ;;  %v6829_v18 = vor.u32 %v6828_v52, %v14199_v33  ;;  %v8123_v52 = vrot.slane %v8122_v59, 4  ;;  %v8827_v4 = vsel %vm12191_vm5, %v11210_v53, %v8826_v55  ;;  %v8829_v34 = vrot.slane %v14217_v28, 5 }
 0x3aa   : > { %v5852_v3 = vadd.f32 %v5851_v13, %v13832_v23  ;;  %v6229_v29 = vpop.f32.mrf.mxu3  ;;  %v8493_v23 = vunpack.c.l.b16 %v8114_v22  ;;  %v6815_v13 = vrot.slane %v6813_v12, 4  ;;  %v7421_v5 = vsel %vm12191_vm5, %v7419_v27, %v7420_v19 }
 0x3ab   : > { %v14207_v36 = vpop.f32.mrf.mxu1  ;;  %v7510_v22 = vunpack.c.l.b16 %v7421_v5  ;;  %v8143_v12 = vshll.u32 %v8049_v21, 16  ;;  %v14225_v19 = vsel %vm12191_vm5, %v7377_v41, %v7378_v0  ;;  %v8133_v5 = vrot.slane %v8132_v1, 4 }
 0x3ac   : > { %v14209_v38 = vadd.f32 %v6229_v29, %v5852_v3  ;;  %v7509_v3 = vunpack.c.l.b16 %v7418_v8  ;;  %v8828_v29 = vrot.slane %v8826_v55, 4  ;;  %v6819_v8 = vor.u32 %v6818_v51, %v6815_v13  ;;  %v14252_v53 = vpop.f32.mrf.mxu0 }
 0x3ad   : > { %v8524_v14 = vpack.c.b16 %v8493_v23, %v14186_v50  ;;  %v8128_v0 = vsel %vm11888_vm2, %v8123_v52, %v14192_v63  ;;  %v8137_v41 = vrot.slane %v8135_v10, 5  ;;  %v14237_v59 = vrot.slane %v8140_v20, 4  ;;  %v11506_v23 = vld [vmem:[#allocation2 + $0x18] sm:$0xff]  ;;  %15557 = vst [vmem:[#allocation47_spill] sm:$0xff] %v14252_v53 }
 0x3ae   : > { %15553 = vst [vmem:[#allocation44_spill] sm:$0xff] %v14209_v38  ;;  %7214 = vmatmul.bf16.gmra.mxu1 %v15554_v7  ;;  %v14227_v16 = vpack.c.b16 %v7510_v22, %v7509_v3  ;;  %v6830_v7 = vrot.slane %v6829_v18, 4  ;;  %v14239_v51 = vrot.slane %v8143_v12, 5  ;;  %v8830_v55 = vsel %vm12191_vm5, %v8828_v29, %v8829_v34  ;;  %v8052_v3 = vld [vmem:[#allocation2 + $0x3c] sm:$0xf] }
 0x3af   : > { %v8928_v50 = vunpack.c.l.b16 %v8827_v4  ;;  %v8929_v18 = vunpack.c.l.b16 %v8830_v55  ;;  %v6820_v22 = vrot.slane %v6819_v8, 4  ;;  %v7498_v63 = vunpack.c.l.b16 %v14225_v19  ;;  %v6641_v12 = vld [vmem:[#allocation2 + $0x60] sm:$0xf]  ;;  %v7310_v19 = vld [vmem:[#allocation2 + $0x6c] sm:$0xe] }
 0x3b0   : > { %15555 = vst [vmem:[#allocation45_spill] sm:$0xff] %v14227_v16  ;;  %v8138_v10 = vsel %vm11888_vm2, %v8133_v5, %v8137_v41  ;;  %v14250_v20 = vunpack.c.l.b16 %v8128_v0  ;;  %v6850_v52 = vshrl.u32 %v14178_v47, 16  ;;  %v8153_v4 = vshrl.u32 %v13975_v17, 16 }
 0x3b1   : > { %v5853_v27 = vpop.f32.mrf.mxu2  ;;  %v14261_v8 = vpack.c.b16 %v8929_v18, %v8928_v50  ;;  %v6825_v5 = vsel %vm11888_vm2, %v6820_v22, %v14199_v33  ;;  %v8164_v34 = vshrl.u32 %v8052_v3, 16  ;;  %v6837_v33 = vshrl.u32 %v6641_v12, 16 }
 0x3b2   : > { %v5854_v21 = vadd.f32 %v5853_v27, %v13846_v54  ;;  %v6231_v11 = vpop.f32.mrf.mxu3  ;;  %v6834_v54 = vrot.slane %v6832_v49, 5  ;;  %v6846_v49 = vshll.u32 %v14178_v47, 16  ;;  %v14259_v27 = vld [vmem:[#allocation2 + $0x70] sm:$0xf]  ;;  %v8146_v47 = vor.u32 %v14239_v51, %v14237_v59 }
 0x3b3   : > { %v14243_v13 = vpop.f32.mrf.mxu1  ;;  %15558 = vst [vmem:[#allocation48_spill] sm:$0xff] %v14261_v8  ;;  %v7424_v0 = vrot.slane %v14259_v27, 5  ;;  %v11037_v50 = vrot.slane %v7310_v19, 9  ;;  %v8155_v19 = vrot.slane %v8153_v4, 4  ;;  %v8177_v4 = vshrl.u32 %v14011_v44, 16 }
 0x3b4   : > { %v14245_v1 = vadd.f32 %v6231_v11, %v5854_v21  ;;  %v6835_v29 = vsel %vm11888_vm2, %v6830_v7, %v6834_v54  ;;  %v14268_v21 = vunpack.c.l.b16 %v8138_v10  ;;  %v14272_v11 = vld [vmem:[#allocation2 + $0x74] sm:$0x1]  ;;  %v14274_v7 = vld [vmem:[#allocation2 + $0x64] sm:$0xf]  ;;  %v6840_v54 = vshll.u32 %v6641_v12, 16 }
 0x3b5   : > { %v7082_v55 = vunpack.c.l.b16 %v6835_v29  ;;  %v14278_v22 = vrot.slane %v6846_v49, 5  ;;  %v6852_v10 = vrot.slane %v6850_v52, 4  ;;  %v7425_v59 = vsel %vm12191_vm5, %v11037_v50, %v7424_v0 }
 0x3b6   : > { %15556 = vst [vmem:[#allocation46_spill] sm:$0xff] %v14245_v1  ;;  %7615 = vmatmul.bf16.vlgmr.msra.gmra.mxu2 %v14174_v43  ;;  %8612 = vmatmul.bf16.vlgmr.msra.gmra.mxu0 %v8524_v14  ;;  %v8149_v43 = vshll.u32 %v13975_v17, 16  ;;  %v8167_v14 = vshll.u32 %v8052_v3, 16  ;;  %v7426_v51 = vrot.slane %v7424_v0, 4  ;;  %v7427_v3 = vrot.slane %v14272_v11, 5 }
 0x3b7   : > { %7930 = vmatmul.bf16.vlgmr.msra.gmra.mxu3 %v11506_v23  ;;  %v7081_v23 = vunpack.c.l.b16 %v6825_v5  ;;  %v8833_v58 = vrot.slane %v14274_v7, 5  ;;  %v6839_v49 = vrot.slane %v6837_v33, 4  ;;  %v6842_v53 = vrot.slane %v6840_v54, 5  ;;  %v14291_v1 = vld [vmem:[#allocation2 + $0x68] sm:$0x1]  ;;  %v14295_v33 = vpop.f32.mrf.mxu0 }
 0x3b8   : > { %v8151_v12 = vrot.slane %v8149_v43, 5  ;;  %v7428_v52 = vsel %vm12191_vm5, %v7426_v51, %v7427_v3  ;;  %v6853_v0 = vor.u32 %v6852_v10, %v14278_v22  ;;  %v8169_v50 = vrot.slane %v8167_v14, 5  ;;  %15560 = vst [vmem:[#allocation50_spill] sm:$0xff] %v14295_v33 }
 0x3b9   : > { %v5856_v41 = vpop.f32.mrf.mxu2  ;;  %v7107_v5 = vpack.c.b16 %v7082_v55, %v7081_v23  ;;  %v7511_v38 = vunpack.c.l.b16 %v7425_v59  ;;  %v7512_v16 = vunpack.c.l.b16 %v7428_v52  ;;  %v8173_v43 = vshll.u32 %v14011_v44, 16 }
 0x3ba   : > { %v5857_v17 = vadd.f32 %v5856_v41, %v13864_v56  ;;  %v6234_v18 = vpop.f32.mrf.mxu3  ;;  %v8166_v56 = vrot.slane %v8164_v34, 4  ;;  %v8731_v41 = vld [vmem:[#allocation2 + $0x60] sm:$0xe]  ;;  %v8835_v55 = vrot.slane %v8833_v58, 4  ;;  %v15561_v54 = vunpack.c.l.b16 %v14190_v6 }
 0x3bb   : > { %v14284_v8 = vpop.f32.mrf.mxu1  ;;  %v11211_v34 = vrot.slane %v8731_v41, 9  ;;  %v8525_v14 = vpack.c.b16 %v14268_v21, %v14250_v20  ;;  %v6856_v23 = vshll.u32 %v14194_v61, 16  ;;  %v14302_v10 = vpack.c.b16 %v7512_v16, %v7511_v38 }
 0x3bc   : > { %v14286_v29 = vadd.f32 %v6234_v18, %v5857_v17  ;;  %v11541_v17 = vld [vmem:[#allocation3 + $0x218] sm:$0xff]  ;;  %v7528_v18 = vpack.c.b16 %v7498_v63, %v15561_v54  ;;  %v6843_v51 = vor.u32 %v6842_v53, %v6839_v49  ;;  %v8156_v3 = vor.u32 %v8155_v19, %v8151_v12 }
 0x3bd   : > { %9034 = vmatpush.bf16.msra.mxu1 %v11541_v17  ;;  %v8834_v44 = vsel %vm12191_vm5, %v11211_v34, %v8833_v58  ;;  %v8836_v41 = vrot.slane %v14291_v1, 5  ;;  %v6854_v63 = vrot.slane %v6853_v0, 4  ;;  %v8147_v52 = vrot.slane %v8146_v47, 4 }
 0x3be   : > { %15559 = vst [vmem:[#allocation49_spill] sm:$0xff] %v14286_v29  ;;  %7219 = vmatmul.bf16.gmra.mxu1 %v7107_v5  ;;  %v8159_v20 = vshll.u32 %v13996_v26, 16  ;;  %v8170_v21 = vor.u32 %v8169_v50, %v8166_v56  ;;  %v14309_v61 = vrot.slane %v8173_v43, 5  ;;  %v8179_v38 = vrot.slane %v8177_v4, 4  ;;  %v6644_v50 = vld [vmem:[#allocation2 + $0x6c] sm:$0xf] }
 0x3bf   : > { %v8837_v16 = vsel %vm12191_vm5, %v8835_v55, %v8836_v41  ;;  %v6858_v58 = vrot.slane %v6856_v23, 5  ;;  %v8930_v49 = vunpack.c.l.b16 %v8834_v44  ;;  %v6844_v34 = vrot.slane %v6843_v51, 4  ;;  %v14324_v55 = vld [vmem:[#allocation2 + $0x7c] sm:$0xf] }
 0x3c0   : > { %v8931_v17 = vunpack.c.l.b16 %v8837_v16  ;;  %v8152_v47 = vsel %vm11888_vm2, %v8147_v52, %v8151_v12  ;;  %v8157_v26 = vrot.slane %v8156_v3, 4  ;;  %v8183_v56 = vshll.u32 %v14048_v9, 16  ;;  %v14341_v52 = vpop.f32.mrf.mxu0 }
 0x3c1   : > { %v5858_v59 = vpop.f32.mrf.mxu2  ;;  %v6859_v0 = vsel %vm11888_vm2, %v6854_v63, %v6858_v58  ;;  %v6870_v43 = vshll.u32 %v14259_v27, 16  ;;  %v6874_v4 = vshrl.u32 %v14259_v27, 16  ;;  %v8161_v23 = vrot.slane %v8159_v20, 5  ;;  %v7311_v63 = vld [vmem:[#allocation2 + $0x78] sm:$0xe]  ;;  %15564 = vst [vmem:[#allocation53_spill] sm:$0xff] %v14341_v52 }
 0x3c2   : > { %v5859_v5 = vadd.f32 %v5858_v59, %v13881_v31  ;;  %v6236_v6 = vpop.f32.mrf.mxu3  ;;  %v11507_v31 = vld [vmem:[#allocation2 + $0x24] sm:$0xff]  ;;  %v14326_v54 = vpack.c.b16 %v8931_v17, %v8930_v49  ;;  %v8180_v12 = vor.u32 %v8179_v38, %v14309_v61  ;;  %v6849_v9 = vsel %vm11888_vm2, %v6844_v34, %v14278_v22  ;;  %v14346_v17 = vld [vmem:[#allocation2 + $0x80] sm:$0x1] }
 0x3c3   : > { %v14313_v53 = vpop.f32.mrf.mxu1  ;;  %v8055_v59 = vld [vmem:[#allocation2 + $0x48] sm:$0xf]  ;;  %v7431_v51 = vrot.slane %v14324_v55, 5  ;;  %v7084_v3 = vunpack.c.l.b16 %v6859_v0  ;;  %v8162_v44 = vsel %vm11888_vm2, %v8157_v26, %v8161_v23  ;;  %v6861_v41 = vshrl.u32 %v6644_v50, 16 }
 0x3c4   : > { %v14315_v19 = vadd.f32 %v6236_v6, %v5859_v5  ;;  %15563 = vst [vmem:[#allocation52_spill] sm:$0xff] %v14326_v54  ;;  %v8185_v5 = vrot.slane %v8183_v56, 5  ;;  %v14339_v6 = vld [vmem:[#allocation2 + $0x70] sm:$0xf]  ;;  %v14344_v38 = vrot.slane %v6870_v43, 5  ;;  %v6876_v16 = vrot.slane %v6874_v4, 4 }
 0x3c5   : > { %v7083_v58 = vunpack.c.l.b16 %v6849_v9  ;;  %v8181_v49 = vrot.slane %v8180_v12, 4  ;;  %v8191_v34 = vshll.u32 %v8055_v59, 16  ;;  %v11038_v56 = vrot.slane %v7311_v63, 9 }
 0x3c6   : > { %15562 = vst [vmem:[#allocation51_spill] sm:$0xff] %v14315_v19  ;;  %7620 = vmatmul.bf16.gmra.mxu2 %v7528_v18  ;;  %8617 = vmatmul.bf16.gmra.mxu0 %v8525_v14  ;;  %v14332_v18 = vunpack.c.l.b16 %v8152_v47  ;;  %v14334_v14 = vrot.slane %v8170_v21, 4  ;;  %v6864_v21 = vshll.u32 %v6644_v50, 16  ;;  %v7433_v0 = vrot.slane %v7431_v51, 4 }
 0x3c7   : > { %7935 = vmatmul.bf16.gmra.mxu3 %v11507_v31  ;;  %v8188_v31 = vshrl.u32 %v8055_v59, 16  ;;  %v8840_v23 = vrot.slane %v14339_v6, 5  ;;  %v8197_v50 = vshll.u32 %v14104_v45, 16  ;;  %v8201_v43 = vshrl.u32 %v14104_v45, 16  ;;  %v14365_v45 = vld [vmem:[#allocation2 + $0x74] sm:$0x1] }
 0x3c8   : > { %v6866_v4 = vrot.slane %v6864_v21, 5  ;;  %v6877_v12 = vor.u32 %v6876_v16, %v14344_v38  ;;  %v7432_v9 = vsel %vm12191_vm5, %v11038_v56, %v7431_v51  ;;  %v7434_v59 = vrot.slane %v14346_v17, 5 }
 0x3c9   : > { %v5861_v27 = vpop.f32.mrf.mxu2  ;;  %v8190_v63 = vrot.slane %v8188_v31, 4  ;;  %v8193_v21 = vrot.slane %v8191_v34, 5  ;;  %v8203_v56 = vrot.slane %v8201_v43, 4 }
 0x3ca   : > { %v5862_v22 = vadd.f32 %v5861_v27, %v13903_v60  ;;  %v6239_v20 = vpop.f32.mrf.mxu3  ;;  %v7108_v60 = vpack.c.b16 %v7084_v3, %v7083_v58  ;;  %v6863_v27 = vrot.slane %v6861_v41, 4  ;;  %v8176_v3 = vsel %vm11888_vm2, %v14334_v14, %v14309_v61 }
 0x3cb   : > { %v14348_v47 = vpop.f32.mrf.mxu1  ;;  %v8186_v41 = vsel %vm11888_vm2, %v8181_v49, %v8185_v5  ;;  %v7435_v51 = vsel %vm12191_vm5, %v7433_v0, %v7434_v59  ;;  %v14372_v58 = vrot.slane %v8197_v50, 5  ;;  %v7513_v61 = vunpack.c.l.b16 %v7432_v9  ;;  %v14381_v59 = vpop.f32.mrf.mxu0 }
 0x3cc   : > { %v14350_v26 = vadd.f32 %v6239_v20, %v5862_v22  ;;  %v8497_v22 = vunpack.c.l.b16 %v8162_v44  ;;  %v6880_v20 = vshll.u32 %v14272_v11, 16  ;;  %v8842_v44 = vrot.slane %v8840_v23, 4  ;;  %15566 = vst [vmem:[#allocation55_spill] sm:$0xff] %v14381_v59 }
 0x3cd   : > { %v7514_v14 = vunpack.c.l.b16 %v7435_v51  ;;  %v6867_v31 = vor.u32 %v6866_v4, %v6863_v27  ;;  %v8843_v11 = vrot.slane %v14365_v45, 5  ;;  %v14377_v54 = vunpack.c.l.b16 %v8186_v41  ;;  %v6647_v51 = vld [vmem:[#allocation2 + $0x78] sm:$0xf]  ;;  %v11508_v4 = vld [vmem:[#allocation2 + $0x30] sm:$0xff] }
 0x3ce   : > { %15565 = vst [vmem:[#allocation54_spill] sm:$0xff] %v14350_v26  ;;  %7224 = vmatmul.bf16.gmra.mxu1 %v7108_v60  ;;  %v6878_v60 = vrot.slane %v6877_v12, 4  ;;  %v8526_v34 = vpack.c.b16 %v8497_v22, %v14332_v18  ;;  %v6882_v9 = vrot.slane %v6880_v20, 5  ;;  %v14389_v12 = vunpack.c.l.b16 %v8176_v3 }
 0x3cf   : > { %v14379_v0 = vpack.c.b16 %v7514_v14, %v7513_v61  ;;  %v8844_v27 = vsel %vm12191_vm5, %v8842_v44, %v8843_v11  ;;  %v6894_v18 = vshll.u32 %v14324_v55, 16  ;;  %v6898_v22 = vshrl.u32 %v14324_v55, 16 }
 0x3d0   : > { %v6868_v41 = vrot.slane %v6867_v31, 4  ;;  %v6883_v20 = vsel %vm11888_vm2, %v6878_v60, %v6882_v9  ;;  %v6885_v44 = vshrl.u32 %v6647_v51, 16  ;;  %v6888_v61 = vshll.u32 %v6647_v51, 16 }
 0x3d1   : > { %v5863_v16 = vpop.f32.mrf.mxu2  ;;  %v14406_v60 = vrot.slane %v6894_v18, 5  ;;  %v6900_v11 = vrot.slane %v6898_v22, 4 }
 0x3d2   : > { %v5864_v5 = vadd.f32 %v5863_v16, %v13933_v46  ;;  %v6241_v49 = vpop.f32.mrf.mxu3  ;;  %v8194_v46 = vor.u32 %v8193_v21, %v8190_v63  ;;  %v8732_v16 = vld [vmem:[#allocation2 + $0x6c] sm:$0xe]  ;;  %v8204_v63 = vor.u32 %v8203_v56, %v14372_v58  ;;  %v14397_v21 = vld [vmem:[#allocation2 + $0x88] sm:$0xf]  ;;  %v7086_v56 = vunpack.c.l.b16 %v6883_v20 }
 0x3d3   : > { %v14383_v50 = vpop.f32.mrf.mxu1  ;;  %v11212_v14 = vrot.slane %v8732_v16, 9  ;;  %v6887_v22 = vrot.slane %v6885_v44, 4  ;;  %v6890_v3 = vrot.slane %v6888_v61, 5  ;;  %v14429_v44 = vpop.f32.mrf.mxu0  ;;  %v6904_v61 = vshll.u32 %v14346_v17, 16 }
 0x3d4   : > { %v14385_v43 = vadd.f32 %v6241_v49, %v5864_v5  ;;  %v8195_v55 = vrot.slane %v8194_v46, 4  ;;  %v8207_v5 = vshll.u32 %v14146_v24, 16  ;;  %v7438_v49 = vrot.slane %v14397_v21, 5 }
 0x3d5   : > { %v8841_v9 = vsel %vm12191_vm5, %v11212_v14, %v8840_v23  ;;  %v8933_v46 = vunpack.c.l.b16 %v8844_v27  ;;  %v14422_v23 = vld [vmem:[#allocation2 + $0x54] sm:$0xf]  ;;  %v6891_v17 = vor.u32 %v6890_v3, %v6887_v22 }
 0x3d6   : > { %15567 = vst [vmem:[#allocation56_spill] sm:$0xff] %v14385_v43  ;;  %7625 = vmatmul.bf16.gmra.mxu2 %v13895_v2  ;;  %8622 = vmatmul.bf16.gmra.mxu0 %v8526_v34  ;;  %v6873_v2 = vsel %vm11888_vm2, %v6868_v41, %v14344_v38  ;;  %v7312_v34 = vld [vmem:[#allocation2 + $0x84] sm:$0xe]  ;;  %v8200_v24 = vsel %vm11888_vm2, %v8195_v55, %v14372_v58  ;;  %v8205_v38 = vrot.slane %v8204_v63, 4  ;;  %v14418_v43 = vld [vmem:[#allocation2 + $0x8c] sm:$0x1]  ;;  %v8932_v58 = vunpack.c.l.b16 %v8841_v9 }
 0x3d7   : > { %7940 = vmatmul.bf16.gmra.mxu3 %v11508_v4  ;;  %v15568_v4 = vld [vmem:[#allocation12_spill] sm:$0xff]  ;;  %v15569_v41 = vld [vmem:[#allocation10_spill] sm:$0xff]  ;;  %v7085_v20 = vunpack.c.l.b16 %v6873_v2  ;;  %v11039_v14 = vrot.slane %v7312_v34, 9  ;;  %v6901_v55 = vor.u32 %v6900_v11, %v14406_v60  ;;  %v8209_v2 = vrot.slane %v8207_v5, 5  ;;  %v8733_v34 = vld [vmem:[#allocation2 + $0x78] sm:$0xe] }
 0x3d8   : > { %v6588_v18 = vadd.f32 %v15569_v41, %v15568_v4  ;;  %15571 = vst [vmem:[#allocation10_spill] sm:$0xff] %v14429_v44  ;;  %v14435_v4 = vpack.c.b16 %v8933_v46, %v8932_v58  ;;  %v11540_v11 = vld [vmem:[#allocation3 + $0x210] sm:$0xff]  ;;  %v8212_v5 = vshrl.u32 %v14422_v23, 16  ;;  %v8221_v41 = vshll.u32 %v14196_v48, 16 }
 0x3d9   : > { %v5866_v31 = vpop.f32.mrf.mxu2  ;;  %v7109_v27 = vpack.c.b16 %v7086_v56, %v7085_v20  ;;  %v14439_v56 = vunpack.c.l.b16 %v8200_v24  ;;  %9035 = vmatpush.bf16.msra.mxu1 %v11540_v11  ;;  %v11213_v58 = vrot.slane %v8733_v34, 9 }
 0x3da   : > { %v5867_v51 = vadd.f32 %v5866_v31, %v13977_v30  ;;  %v6244_v16 = vpop.f32.mrf.mxu3  ;;  %v14424_v30 = vld [vmem:[#allocation2 + $0x7c] sm:$0xf]  ;;  %v7440_v31 = vrot.slane %v7438_v49, 4  ;;  %15572 = vst [vmem:[#allocation57_spill] sm:$0xff] %v14435_v4 }
 0x3db   : > { %v7190_v59 = vpop.f32.mrf.mxu1  ;;  %v8847_v9 = vrot.slane %v14424_v30, 5 }
 0x3dc   : > { %v14420_v26 = vadd.f32 %v6244_v16, %v5867_v51  ;;  %v14426_v63 = vadd.f32 %v7190_v59, %v6588_v18  ;;  %v7439_v51 = vsel %vm12191_vm5, %v11039_v14, %v7438_v49  ;;  %v7441_v16 = vrot.slane %v14418_v43, 5  ;;  %v14445_v18 = vld [vmem:[#allocation2 + $0x80] sm:$0x1] }
 0x3dd   : > { %v8210_v59 = vsel %vm11888_vm2, %v8205_v38, %v8209_v2  ;;  %v8225_v49 = vshrl.u32 %v14196_v48, 16  ;;  %v6902_v14 = vrot.slane %v6901_v55, 4  ;;  %v7515_v24 = vunpack.c.l.b16 %v7439_v51  ;;  %v15574_v2 = vld [vmem:[#allocation11_spill] sm:$0xff] }
 0x3de   : > { %15570 = vst [vmem:[#allocation12_spill] sm:$0xff] %v14420_v26  ;;  %7229 = vmatmul.bf16.gmra.mxu1 %v7109_v27  ;;  %v7442_v46 = vsel %vm12191_vm5, %v7440_v31, %v7441_v16  ;;  %v15573_v27 = vld [vmem:[#allocation14_spill] sm:$0xff]  ;;  %v6906_v26 = vrot.slane %v6904_v61, 5  ;;  %v8215_v48 = vshll.u32 %v14422_v23, 16  ;;  %v8848_v31 = vsel %vm12191_vm5, %v11213_v58, %v8847_v9  ;;  %v14464_v61 = vld [vmem:[#allocation2 + $0x88] sm:$0xf] }
 0x3df   : > { %v7516_v38 = vunpack.c.l.b16 %v7442_v46  ;;  %v6589_v4 = vadd.f32 %v15574_v2, %v15573_v27  ;;  %v8849_v16 = vrot.slane %v8847_v9, 4  ;;  %v8850_v55 = vrot.slane %v14445_v18, 5  ;;  %v6650_v46 = vld [vmem:[#allocation2 + $0x84] sm:$0xf]  ;;  %v15577_v58 = vld [vmem:[#allocation25_spill] sm:$0xff] }
 0x3e0   : > { %v14460_v34 = vunpack.c.l.b16 %v8210_v59  ;;  %v14462_v27 = vrot.slane %v8221_v41, 5  ;;  %v6907_v9 = vsel %vm11888_vm2, %v6902_v14, %v6906_v26  ;;  %v15578_v59 = vpack.c.b16 %v14377_v54, %v14389_v12 }
 0x3e1   : > { %v5868_v20 = vpop.f32.mrf.mxu2  ;;  %v14453_v44 = vpack.c.b16 %v7516_v38, %v7515_v24  ;;  %v6892_v24 = vrot.slane %v6891_v17, 4  ;;  %v8851_v38 = vsel %vm12191_vm5, %v8849_v16, %v8850_v55  ;;  %v6918_v41 = vshll.u32 %v14397_v21, 16  ;;  %v14482_v16 = vpop.f32.mrf.mxu0 }
 0x3e2   : > { %v5869_v3 = vadd.f32 %v5868_v20, %v14020_v35  ;;  %v6246_v22 = vpop.f32.mrf.mxu3  ;;  %v8227_v35 = vrot.slane %v8225_v49, 4  ;;  %v11509_v20 = vld [vmem:[#allocation2 + $0x3c] sm:$0xff]  ;;  %v6922_v49 = vshrl.u32 %v14397_v21, 16  ;;  %v8934_v2 = vunpack.c.l.b16 %v8848_v31  ;;  %15579 = vst [vmem:[#allocation25_spill] sm:$0xff] %v14482_v16  ;;  %v8734_v21 = vld [vmem:[#allocation2 + $0x84] sm:$0xe] }
 0x3e3   : > { %15575 = vst [vmem:[#allocation14_spill] sm:$0xff] %v14453_v44  ;;  %v7192_v51 = vpop.f32.mrf.mxu1  ;;  %v6897_v26 = vsel %vm11888_vm2, %v6892_v24, %v14406_v60  ;;  %v6909_v17 = vshrl.u32 %v6650_v46, 16  ;;  %v6912_v14 = vshll.u32 %v6650_v46, 16  ;;  %v8214_v54 = vrot.slane %v8212_v5, 4  ;;  %v15581_v31 = vld [vmem:[#allocation17_spill] sm:$0xff] }
 0x3e4   : > { %v14458_v11 = vadd.f32 %v6246_v22, %v5869_v3  ;;  %v14466_v23 = vadd.f32 %v7192_v51, %v6589_v4  ;;  %v8061_v4 = vld [vmem:[#allocation2 + $0x60] sm:$0xf]  ;;  %v8935_v3 = vunpack.c.l.b16 %v8851_v38  ;;  %v8854_v22 = vrot.slane %v14464_v61, 5  ;;  %v15582_v38 = vld [vmem:[#allocation13_spill] sm:$0xff]  ;;  %v14489_v24 = vld [vmem:[#allocation2 + $0x8c] sm:$0x1] }
 0x3e5   : > { %v8217_v12 = vrot.slane %v8215_v48, 5  ;;  %v8228_v55 = vor.u32 %v8227_v35, %v14462_v27  ;;  %v8239_v60 = vshll.u32 %v8061_v4, 16  ;;  %v7087_v16 = vunpack.c.l.b16 %v6897_v26 }
 0x3e6   : > { %15576 = vst [vmem:[#allocation11_spill] sm:$0xff] %v14458_v11  ;;  %7630 = vmatmul.bf16.gmra.mxu2 %v15577_v58  ;;  %8627 = vmatmul.bf16.gmra.mxu0 %v15578_v59  ;;  %v14485_v51 = vpack.c.b16 %v8935_v3, %v8934_v2  ;;  %v7088_v59 = vunpack.c.l.b16 %v6907_v9  ;;  %v8236_v11 = vshrl.u32 %v8061_v4, 16  ;;  %v14492_v5 = vrot.slane %v6918_v41, 5 }
 0x3e7   : > { %7945 = vmatmul.bf16.gmra.mxu3 %v11509_v20  ;;  %v6590_v20 = vadd.f32 %v15582_v38, %v15581_v31  ;;  %v6924_v48 = vrot.slane %v6922_v49, 4  ;;  %v6911_v35 = vrot.slane %v6909_v17, 4  ;;  %v6914_v2 = vrot.slane %v6912_v14, 5 }
 0x3e8   : > { %15580 = vst [vmem:[#allocation58_spill] sm:$0xff] %v14485_v51  ;;  %v11214_v3 = vrot.slane %v8734_v21, 9  ;;  %v8856_v51 = vrot.slane %v8854_v22, 4  ;;  %v8245_v9 = vshll.u32 %v14274_v7, 16  ;;  %v8249_v4 = vshrl.u32 %v14274_v7, 16 }
 0x3e9   : > { %v5871_v58 = vpop.f32.mrf.mxu2  ;;  %v8857_v31 = vrot.slane %v14489_v24, 5  ;;  %v8218_v26 = vor.u32 %v8217_v12, %v8214_v54  ;;  %v6925_v49 = vor.u32 %v6924_v48, %v14492_v5  ;;  %v14504_v17 = vrot.slane %v8228_v55, 4 }
 0x3ea   : > { %v5872_v46 = vadd.f32 %v5871_v58, %v14062_v62  ;;  %v6249_v52 = vpop.f32.mrf.mxu3  ;;  %v7110_v62 = vpack.c.b16 %v7088_v59, %v7087_v16  ;;  %v8855_v41 = vsel %vm12191_vm5, %v11214_v3, %v8854_v22  ;;  %v6915_v7 = vor.u32 %v6914_v2, %v6911_v35  ;;  %v15586_v35 = vld [vmem:[#allocation19_spill] sm:$0xff]  ;;  %v15587_v2 = vld [vmem:[#allocation16_spill] sm:$0xff] }
 0x3eb   : > { %v7195_v19 = vpop.f32.mrf.mxu1  ;;  %v8858_v14 = vsel %vm12191_vm5, %v8856_v51, %v8857_v31  ;;  %v6928_v21 = vshll.u32 %v14418_v43, 16  ;;  %v14512_v16 = vrot.slane %v8239_v60, 5  ;;  %v14514_v54 = vrot.slane %v8245_v9, 5  ;;  %v14522_v51 = vpop.f32.mrf.mxu0 }
 0x3ec   : > { %v14494_v33 = vadd.f32 %v6249_v52, %v5872_v46  ;;  %v14499_v38 = vadd.f32 %v7195_v19, %v6590_v20  ;;  %v8231_v52 = vshll.u32 %v14217_v28, 16  ;;  %v14510_v19 = vrot.slane %v8236_v11, 4  ;;  %15584 = vst [vmem:[#allocation13_spill] sm:$0xff] %v14522_v51  ;;  %v6654_v46 = vld [vmem:[#allocation2 + $0x94] sm:$0xf] }
 0x3ed   : > { %v14516_v22 = vrot.slane %v8249_v4, 4  ;;  %v8936_v12 = vunpack.c.l.b16 %v8855_v41  ;;  %v8937_v55 = vunpack.c.l.b16 %v8858_v14  ;;  %v8528_v28 = vpack.c.b16 %v14460_v34, %v14439_v56  ;;  %v14535_v34 = vld [vmem:[#allocation2 + $0x94] sm:$0xf]  ;;  %v6653_v41 = vld [vmem:[#allocation2 + $0x90] sm:$0xf] }
 0x3ee   : > { %15583 = vst [vmem:[#allocation17_spill] sm:$0xff] %v14494_v33  ;;  %7234 = vmatmul.bf16.gmra.mxu1 %v7110_v62  ;;  %v14520_v58 = vrot.slane %v8218_v26, 4  ;;  %v6926_v59 = vrot.slane %v6925_v49, 4  ;;  %v14525_v60 = vrot.slane %v8231_v52, 5  ;;  %v6591_v3 = vadd.f32 %v15587_v2, %v15586_v35  ;;  %v14543_v49 = vld [vmem:[#allocation2 + $0x98] sm:$0x1] }
 0x3ef   : > { %v14527_v48 = vpack.c.b16 %v8937_v55, %v8936_v12  ;;  %v6916_v9 = vrot.slane %v6915_v7, 4  ;;  %v6930_v4 = vrot.slane %v6928_v21, 5  ;;  %v8242_v52 = vor.u32 %v14512_v16, %v14510_v19  ;;  %v8735_v7 = vld [vmem:[#allocation2 + $0x90] sm:$0xe]  ;;  %v11510_v12 = vld [vmem:[#allocation2 + $0x48] sm:$0xff]  ;;  %v15589_v55 = vld [vmem:[#allocation18_spill] sm:$0xff] }
 0x3f0   : > { %v8234_v26 = vsel %vm11888_vm2, %v14504_v17, %v14525_v60  ;;  %v8252_v14 = vor.u32 %v14516_v22, %v14514_v54  ;;  %v14553_v35 = vld [vmem:[#allocation2 + $0x98] sm:$0x1]  ;;  %v7445_v17 = vrot.slane %v6654_v46, 5  ;;  %v15591_v60 = vld [vmem:[#allocation30_spill] sm:$0xff]  ;;  %v6946_v16 = vshrl.u32 %v6654_v46, 16 }
 0x3f1   : > { %v5873_v20 = vpop.f32.mrf.mxu2  ;;  %15585 = vst [vmem:[#allocation59_spill] sm:$0xff] %v14527_v48  ;;  %v6931_v19 = vsel %vm11888_vm2, %v6926_v59, %v6930_v4  ;;  %v8861_v22 = vrot.slane %v14535_v34, 5  ;;  %v8864_v59 = vrot.slane %v14553_v35, 5 }
 0x3f2   : > { %v5874_v43 = vadd.f32 %v5873_v20, %v14094_v32  ;;  %v6251_v11 = vpop.f32.mrf.mxu3  ;;  %v7313_v32 = vld [vmem:[#allocation2 + $0x90] sm:$0xe]  ;;  %v15590_v20 = vld [vmem:[#allocation15_spill] sm:$0xff]  ;;  %v7090_v4 = vunpack.c.l.b16 %v6931_v19 }
 0x3f3   : > { %v7197_v31 = vpop.f32.mrf.mxu1  ;;  %v11040_v2 = vrot.slane %v7313_v32, 9  ;;  %v8863_v56 = vrot.slane %v8861_v22, 4  ;;  %v6936_v32 = vshll.u32 %v6653_v41, 16 }
 0x3f4   : > { %v14537_v62 = vadd.f32 %v6251_v11, %v5874_v43  ;;  %v14549_v21 = vadd.f32 %v7197_v31, %v6591_v3  ;;  %v6592_v43 = vadd.f32 %v15590_v20, %v15589_v55  ;;  %v6942_v11 = vshll.u32 %v6654_v46, 16 }
 0x3f5   : > { %v6921_v3 = vsel %vm11888_vm2, %v6916_v9, %v14492_v5  ;;  %v6933_v31 = vshrl.u32 %v6653_v41, 16  ;;  %v7448_v55 = vrot.slane %v14543_v49, 5  ;;  %v11215_v20 = vrot.slane %v8735_v7, 9  ;;  %v14575_v41 = vpop.f32.mrf.mxu0 }
 0x3f6   : > { %15588 = vst [vmem:[#allocation19_spill] sm:$0xff] %v14537_v62  ;;  %7635 = vmatmul.bf16.gmra.mxu2 %v15591_v60  ;;  %8632 = vmatmul.bf16.gmra.mxu0 %v8528_v28  ;;  %v7446_v60 = vsel %vm12191_vm5, %v11040_v2, %v7445_v17  ;;  %v7447_v28 = vrot.slane %v7445_v17, 4  ;;  %v14566_v48 = vrot.slane %v6942_v11, 5  ;;  %v6948_v62 = vrot.slane %v6946_v16, 4 }
 0x3f7   : > { %7950 = vmatmul.bf16.gmra.mxu3 %v11510_v12  ;;  %v8862_v12 = vsel %vm12191_vm5, %v11215_v20, %v8861_v22  ;;  %v8865_v17 = vsel %vm12191_vm5, %v8863_v56, %v8864_v59  ;;  %v7089_v2 = vunpack.c.l.b16 %v6921_v3  ;;  %v7517_v33 = vunpack.c.l.b16 %v7446_v60  ;;  %v8064_v20 = vld [vmem:[#allocation2 + $0x6c] sm:$0xf] }
 0x3f8   : > { %v7449_v7 = vsel %vm12191_vm5, %v7447_v28, %v7448_v55  ;;  %v8939_v19 = vunpack.c.l.b16 %v8865_v17  ;;  %v6935_v22 = vrot.slane %v6933_v31, 4  ;;  %v8938_v16 = vunpack.c.l.b16 %v8862_v12 }
 0x3f9   : > { %v5876_v46 = vpop.f32.mrf.mxu2  ;;  %v7518_v51 = vunpack.c.l.b16 %v7449_v7  ;;  %v7111_v55 = vpack.c.b16 %v7090_v4, %v7089_v2  ;;  %v6938_v28 = vrot.slane %v6936_v32, 5  ;;  %v8503_v56 = vunpack.c.l.b16 %v8234_v26  ;;  %v15594_v2 = vld [vmem:[#allocation23_spill] sm:$0xff] }
 0x3fa   : > { %v5877_v5 = vadd.f32 %v5876_v46, %v14131_v42  ;;  %v6254_v9 = vpop.f32.mrf.mxu3  ;;  %v8255_v42 = vshll.u32 %v14291_v1, 16  ;;  %v6949_v3 = vor.u32 %v6948_v62, %v14566_v48  ;;  %v14585_v60 = vpack.c.b16 %v8939_v19, %v8938_v16  ;;  %v15595_v19 = vld [vmem:[#allocation20_spill] sm:$0xff] }
 0x3fb   : > { %v7200_v11 = vpop.f32.mrf.mxu1  ;;  %v14582_v44 = vpack.c.b16 %v7518_v51, %v7517_v33  ;;  %v8253_v59 = vrot.slane %v8252_v14, 4  ;;  %v8263_v31 = vshll.u32 %v8064_v20, 16  ;;  %v15593_v1 = vsel %vm11888_vm2, %v14520_v58, %v14462_v27 }
 0x3fc   : > { %v14577_v29 = vadd.f32 %v6254_v9, %v5877_v5  ;;  %v14580_v46 = vadd.f32 %v7200_v11, %v6592_v43  ;;  %15592 = vst [vmem:[#allocation16_spill] sm:$0xff] %v14585_v60  ;;  %v11539_v5 = vld [vmem:[#allocation3 + $0x208] sm:$0xff]  ;;  %v8260_v9 = vshrl.u32 %v8064_v20, 16  ;;  %v8502_v43 = vunpack.c.l.b16 %v15593_v1 }
 0x3fd   : > { %v6952_v4 = vshll.u32 %v14543_v49, 16  ;;  %v8243_v33 = vrot.slane %v8242_v52, 4  ;;  %v6939_v26 = vor.u32 %v6938_v28, %v6935_v22  ;;  %v8257_v32 = vrot.slane %v8255_v42, 5  ;;  %9036 = vmatpush.bf16.msra.mxu1 %v11539_v5  ;;  %v6657_v49 = vld [vmem:[#allocation2 + $0xa0] sm:$0xf] }
 0x3fe   : > { %7239 = vmatmul.bf16.gmra.mxu1 %v7111_v55  ;;  %v8529_v14 = vpack.c.b16 %v8503_v56, %v8502_v43  ;;  %v6950_v7 = vrot.slane %v6949_v3, 4  ;;  %v6593_v27 = vadd.f32 %v15595_v19, %v15594_v2  ;;  %v8262_v52 = vrot.slane %v8260_v9, 4  ;;  %v6656_v56 = vld [vmem:[#allocation2 + $0x9c] sm:$0xf]  ;;  %v14607_v3 = vpop.f32.mrf.mxu0 }
 0x3ff   : > { %v8248_v17 = vsel %vm11888_vm2, %v8243_v33, %v14514_v54  ;;  %v8258_v58 = vsel %vm11888_vm2, %v8253_v59, %v8257_v32  ;;  %v8265_v11 = vrot.slane %v8263_v31, 5  ;;  %v8269_v20 = vshll.u32 %v14339_v6, 16  ;;  %v11511_v54 = vld [vmem:[#allocation2 + $0x54] sm:$0xff]  ;;  %v7314_v31 = vld [vmem:[#allocation2 + $0x9c] sm:$0xe] }
 0x400   : > { %v8273_v16 = vshrl.u32 %v14339_v6, 16  ;;  %v6940_v28 = vrot.slane %v6939_v26, 4  ;;  %v6966_v5 = vshll.u32 %v6657_v49, 16  ;;  %v6970_v9 = vshrl.u32 %v6657_v49, 16 }
 0x401   : > { %v5878_v51 = vpop.f32.mrf.mxu2  ;;  %v7452_v1 = vrot.slane %v6657_v49, 5  ;;  %v14612_v43 = vunpack.c.l.b16 %v8248_v17  ;;  %v14614_v6 = vunpack.c.l.b16 %v8258_v58  ;;  %v8266_v33 = vor.u32 %v8265_v11, %v8262_v52  ;;  %v15597_v11 = vld [vmem:[#allocation24_spill] sm:$0xff] }
 0x402   : > { %v5879_v62 = vadd.f32 %v5878_v51, %v14165_v57  ;;  %v6256_v12 = vpop.f32.mrf.mxu3  ;;  %v6954_v57 = vrot.slane %v6952_v4, 5  ;;  %v6658_v4 = vld [vmem:[#allocation2 + $0xa4] sm:$0x1]  ;;  %v6945_v51 = vsel %vm11888_vm2, %v6940_v28, %v14566_v48  ;;  %v14619_v26 = vrot.slane %v8269_v20, 5 }
 0x403   : > { %v7202_v22 = vpop.f32.mrf.mxu1  ;;  %v8275_v32 = vrot.slane %v8273_v16, 4  ;;  %v11041_v2 = vrot.slane %v7314_v31, 9  ;;  %v7454_v19 = vrot.slane %v7452_v1, 4  ;;  %v14622_v58 = vrot.slane %v6966_v5, 5  ;;  %v14627_v16 = vld [vmem:[#allocation2 + $0xa0] sm:$0xf] }
 0x404   : > { %v14601_v42 = vadd.f32 %v6256_v12, %v5879_v62  ;;  %v14605_v55 = vadd.f32 %v7202_v22, %v6593_v27  ;;  %v6955_v59 = vsel %vm11888_vm2, %v6950_v7, %v6954_v57  ;;  %v8067_v7 = vld [vmem:[#allocation2 + $0x78] sm:$0xf]  ;;  %v6972_v49 = vrot.slane %v6970_v9, 4  ;;  %v15598_v22 = vld [vmem:[#allocation22_spill] sm:$0xff] }
 0x405   : > { %v7092_v12 = vunpack.c.l.b16 %v6955_v59  ;;  %v7455_v52 = vrot.slane %v6658_v4, 5  ;;  %v6594_v48 = vadd.f32 %v15598_v22, %v15597_v11  ;;  %v7091_v57 = vunpack.c.l.b16 %v6945_v51 }
 0x406   : > { %15596 = vst [vmem:[#allocation18_spill] sm:$0xff] %v14601_v42  ;;  %7640 = vmatmul.bf16.gmra.mxu2 %v14085_v15  ;;  %8637 = vmatmul.bf16.gmra.mxu0 %v8529_v14  ;;  %v6957_v15 = vshrl.u32 %v6656_v56, 16  ;;  %v6960_v14 = vshll.u32 %v6656_v56, 16  ;;  %v8279_v20 = vshll.u32 %v14365_v45, 16  ;;  %v8284_v59 = vshrl.u32 %v8067_v7, 16  ;;  %v14642_v60 = vpop.f32.mrf.mxu0 }
 0x407   : > { %7955 = vmatmul.bf16.gmra.mxu3 %v11511_v54  ;;  %v7453_v54 = vsel %vm12191_vm5, %v11041_v2, %v7452_v1  ;;  %v7456_v5 = vsel %vm12191_vm5, %v7454_v19, %v7455_v52  ;;  %v7112_v31 = vpack.c.b16 %v7092_v12, %v7091_v57  ;;  %v6973_v11 = vor.u32 %v6972_v49, %v14622_v58 }
 0x408   : > { %v6959_v51 = vrot.slane %v6957_v15, 4  ;;  %v6962_v45 = vrot.slane %v6960_v14, 5  ;;  %v7519_v22 = vunpack.c.l.b16 %v7453_v54  ;;  %v15462_v1 = vrot.slane %v14627_v16, 5  ;;  %15600 = vst [vmem:[#allocation30_spill] sm:$0xff] %v14642_v60 }
 0x409   : > { %v5881_v62 = vpop.f32.mrf.mxu2  ;;  %v8267_v2 = vrot.slane %v8266_v33, 4  ;;  %v6976_v19 = vshll.u32 %v6658_v4, 16  ;;  %v8530_v14 = vpack.c.b16 %v14614_v6, %v14612_v43  ;;  %v8281_v33 = vrot.slane %v8279_v20, 5  ;;  %v15602_v43 = vld [vmem:[#allocation21_spill] sm:$0xff] }
 0x40a   : > { %v5882_v17 = vadd.f32 %v5881_v62, %v14207_v36  ;;  %v6259_v27 = vpop.f32.mrf.mxu3  ;;  %v8276_v36 = vor.u32 %v8275_v32, %v14619_v26  ;;  %v7520_v62 = vunpack.c.l.b16 %v7456_v5  ;;  %v8293_v32 = vshll.u32 %v14424_v30, 16  ;;  %v15601_v5 = vld [vmem:[#allocation27_spill] sm:$0xff] }
 0x40b   : > { %v7205_v28 = vpop.f32.mrf.mxu1  ;;  %v8272_v49 = vsel %vm11888_vm2, %v8267_v2, %v14619_v26  ;;  %v6963_v4 = vor.u32 %v6962_v45, %v6959_v51  ;;  %v6974_v54 = vrot.slane %v6973_v11, 4  ;;  %v6595_v6 = vadd.f32 %v15602_v43, %v15601_v5  ;;  %v6659_v2 = vld [vmem:[#allocation2 + $0xa8] sm:$0xf] }
 0x40c   : > { %v14631_v56 = vadd.f32 %v6259_v27, %v5882_v17  ;;  %v14636_v9 = vadd.f32 %v7205_v28, %v6594_v48  ;;  %v8287_v17 = vshll.u32 %v8067_v7, 16  ;;  %v8297_v27 = vshrl.u32 %v14424_v30, 16  ;;  %v14653_v48 = vld [vmem:[#allocation2 + $0xa4] sm:$0x1]  ;;  %v6660_v28 = vld [vmem:[#allocation2 + $0xac] sm:$0xf] }
 0x40d   : > { %v8277_v52 = vrot.slane %v8276_v36, 4  ;;  %v14644_v12 = vpack.c.b16 %v7520_v62, %v7519_v22  ;;  %v14651_v7 = vrot.slane %v8284_v59, 4  ;;  %v8870_v36 = vrot.slane %v15462_v1, 4  ;;  %v11512_v22 = vld [vmem:[#allocation2 + $0x60] sm:$0xff] }
 0x40e   : > { %15599 = vst [vmem:[#allocation15_spill] sm:$0xff] %v14631_v56  ;;  %7244 = vmatmul.bf16.gmra.mxu1 %v7112_v31  ;;  %v14660_v31 = vrot.slane %v8287_v17, 5  ;;  %v14662_v26 = vrot.slane %v8293_v32, 5  ;;  %v14664_v20 = vrot.slane %v8297_v27, 4  ;;  %v8871_v45 = vrot.slane %v14653_v48, 5 }
 0x40f   : > { %v8282_v51 = vsel %vm11888_vm2, %v8277_v52, %v8281_v33  ;;  %v6994_v17 = vshrl.u32 %v6660_v28, 16  ;;  %v6964_v32 = vrot.slane %v6963_v4, 4  ;;  %v8070_v4 = vld [vmem:[#allocation2 + $0x84] sm:$0xf]  ;;  %v6981_v5 = vshrl.u32 %v6659_v2, 16 }
 0x410   : > { %v14680_v52 = vsel %vm12191_vm5, %v8870_v36, %v8871_v45  ;;  %v14682_v33 = vunpack.c.l.b16 %v8282_v51  ;;  %v6984_v36 = vshll.u32 %v6659_v2, 16  ;;  %v7459_v43 = vrot.slane %v6660_v28, 5  ;;  %v14694_v45 = vpop.f32.mrf.mxu0 }
 0x411   : > { %v5883_v15 = vpop.f32.mrf.mxu2  ;;  %v6996_v51 = vrot.slane %v6994_v17, 4  ;;  %15604 = vst [vmem:[#allocation20_spill] sm:$0xff] %v14694_v45 }
 0x412   : > { %v5884_v30 = vadd.f32 %v5883_v15, %v14243_v13  ;;  %v6261_v57 = vpop.f32.mrf.mxu3  ;;  %v6978_v13 = vrot.slane %v6976_v19, 5  ;;  %v6990_v15 = vshll.u32 %v6660_v28, 16  ;;  %v7315_v19 = vld [vmem:[#allocation2 + $0xa8] sm:$0xe]  ;;  %v7461_v2 = vrot.slane %v7459_v43, 4 }
 0x413   : > { %v7207_v59 = vpop.f32.mrf.mxu1  ;;  %v6986_v42 = vrot.slane %v6984_v36, 5  ;;  %v11538_v36 = vld [vmem:[#allocation3 + $0x200] sm:$0xff] }
 0x414   : > { %v14666_v62 = vadd.f32 %v6261_v57, %v5884_v30  ;;  %v14671_v11 = vadd.f32 %v7207_v59, %v6595_v6  ;;  %v6979_v27 = vsel %vm11888_vm2, %v6974_v54, %v6978_v13  ;;  %v14676_v30 = vunpack.c.l.b16 %v8272_v49  ;;  %v6661_v54 = vld [vmem:[#allocation2 + $0xb0] sm:$0x1]  ;;  %9037 = vmatpush.bf16.msra.mxu1 %v11538_v36 }
 0x415   : > { %v8290_v57 = vor.u32 %v14660_v31, %v14651_v7  ;;  %v6969_v49 = vsel %vm11888_vm2, %v6964_v32, %v14622_v58  ;;  %v7094_v59 = vunpack.c.l.b16 %v6979_v27  ;;  %v14692_v13 = vrot.slane %v6990_v15, 5  ;;  %v8736_v31 = vld [vmem:[#allocation2 + $0x9c] sm:$0xe]  ;;  %v11513_v36 = vld [vmem:[#allocation2 + $0x6c] sm:$0xff] }
 0x416   : > { %15603 = vst [vmem:[#allocation23_spill] sm:$0xff] %v14666_v62  ;;  %7645 = vmatmul.bf16.gmra.mxu2 %v14154_v25  ;;  %8642 = vmatmul.bf16.gmra.mxu0 %v8530_v14  ;;  %v8300_v25 = vor.u32 %v14664_v20, %v14662_v26  ;;  %v8303_v14 = vshll.u32 %v14445_v18, 16  ;;  %v11042_v7 = vrot.slane %v7315_v19, 9  ;;  %v15605_v20 = vld [vmem:[#allocation29_spill] sm:$0xff]  ;;  %v15606_v18 = vld [vmem:[#allocation26_spill] sm:$0xff]  ;;  %v8308_v58 = vshrl.u32 %v8070_v4, 16 }
 0x417   : > { %7960 = vmatmul.bf16.gmra.mxu3 %v11512_v22  ;;  %v6596_v22 = vadd.f32 %v15606_v18, %v15605_v20  ;;  %v8311_v32 = vshll.u32 %v8070_v4, 16  ;;  %v7093_v56 = vunpack.c.l.b16 %v6969_v49  ;;  %v7462_v15 = vrot.slane %v6661_v54, 5 }
 0x418   : > { %v7460_v28 = vsel %vm12191_vm5, %v11042_v7, %v7459_v43  ;;  %v6983_v19 = vrot.slane %v6981_v5, 4  ;;  %v11216_v45 = vrot.slane %v8736_v31, 9  ;;  %v8317_v49 = vshll.u32 %v14464_v61, 16 }
 0x419   : > { %v5886_v6 = vpop.f32.mrf.mxu2  ;;  %v7113_v20 = vpack.c.b16 %v7094_v59, %v7093_v56  ;;  %v7463_v4 = vsel %vm12191_vm5, %v7461_v2, %v7462_v15  ;;  %v15609_v43 = vrot.slane %v14627_v16, 5  ;;  %v7000_v5 = vshll.u32 %v6661_v54, 16 }
 0x41a   : > { %v5887_v1 = vadd.f32 %v5886_v6, %v14284_v8  ;;  %v6264_v62 = vpop.f32.mrf.mxu3  ;;  %v6997_v8 = vor.u32 %v6996_v51, %v14692_v13  ;;  %v7521_v6 = vunpack.c.l.b16 %v7460_v28  ;;  %v7522_v7 = vunpack.c.l.b16 %v7463_v4  ;;  %v14718_v51 = vld [vmem:[#allocation2 + $0xac] sm:$0xf] }
 0x41b   : > { %v7210_v27 = vpop.f32.mrf.mxu1  ;;  %v14715_v56 = vrot.slane %v8290_v57, 4  ;;  %v8321_v59 = vshrl.u32 %v14464_v61, 16  ;;  %v6987_v31 = vor.u32 %v6986_v42, %v6983_v19  ;;  %v14720_v18 = vrot.slane %v8300_v25, 4  ;;  %v6663_v42 = vld [vmem:[#allocation2 + $0xb8] sm:$0xf]  ;;  %v15610_v19 = vld [vmem:[#allocation28_spill] sm:$0xff] }
 0x41c   : > { %v14701_v17 = vadd.f32 %v6264_v62, %v5887_v1  ;;  %v14703_v60 = vadd.f32 %v7210_v27, %v6596_v22  ;;  %v8869_v1 = vsel %vm12191_vm5, %v11216_v45, %v15609_v43  ;;  %v8531_v62 = vpack.c.b16 %v14682_v33, %v14676_v30  ;;  %v14728_v30 = vld [vmem:[#allocation2 + $0xb0] sm:$0x1] }
 0x41d   : > { %v14722_v22 = vrot.slane %v8303_v14, 5  ;;  %v14724_v28 = vpack.c.b16 %v7522_v7, %v7521_v6  ;;  %v6998_v2 = vrot.slane %v6997_v8, 4  ;;  %v14726_v15 = vrot.slane %v8308_v58, 4  ;;  %v6662_v8 = vld [vmem:[#allocation2 + $0xb4] sm:$0xf]  ;;  %v14741_v7 = vpop.f32.mrf.mxu0 }
 0x41e   : > { %15607 = vst [vmem:[#allocation24_spill] sm:$0xff] %v14701_v17  ;;  %7249 = vmatmul.bf16.gmra.mxu1 %v7113_v20  ;;  %v8940_v33 = vunpack.c.l.b16 %v8869_v1  ;;  %v8941_v57 = vunpack.c.l.b16 %v14680_v52  ;;  %v14732_v25 = vrot.slane %v8311_v32, 5  ;;  %v14734_v14 = vrot.slane %v8317_v49, 5  ;;  %v8073_v17 = vld [vmem:[#allocation2 + $0x90] sm:$0xf] }
 0x41f   : > { %15608 = vst [vmem:[#allocation22_spill] sm:$0xff] %v14703_v60  ;;  %v8875_v27 = vrot.slane %v14718_v51, 5  ;;  %v6597_v20 = vadd.f32 %v15610_v19, %v14022_v37  ;;  %v7002_v58 = vrot.slane %v7000_v5, 5  ;;  %v8323_v4 = vrot.slane %v8321_v59, 4  ;;  %v15614_v59 = vld [vmem:[#allocation45_spill] sm:$0xff] }
 0x420   : > { %v14739_v6 = vpack.c.b16 %v8941_v57, %v8940_v33  ;;  %v6988_v43 = vrot.slane %v6987_v31, 4  ;;  %v8878_v49 = vrot.slane %v14728_v30, 5  ;;  %v7014_v5 = vshll.u32 %v6663_v42, 16  ;;  %v7316_v19 = vld [vmem:[#allocation2 + $0xb4] sm:$0xe] }
 0x421   : > { %v5888_v45 = vpop.f32.mrf.mxu2  ;;  %v8877_v32 = vrot.slane %v8875_v27, 4  ;;  %v7003_v37 = vsel %vm11888_vm2, %v6998_v2, %v7002_v58  ;;  %v7005_v33 = vshrl.u32 %v6662_v8, 16  ;;  %v7008_v57 = vshll.u32 %v6662_v8, 16  ;;  %v6664_v58 = vld [vmem:[#allocation2 + $0xbc] sm:$0x1] }
 0x422   : > { %v5889_v61 = vadd.f32 %v5888_v45, %v14313_v53  ;;  %v6266_v54 = vpop.f32.mrf.mxu3  ;;  %15611 = vst [vmem:[#allocation27_spill] sm:$0xff] %v14739_v6  ;;  %v7018_v45 = vshrl.u32 %v6663_v42, 16  ;;  %v8296_v2 = vsel %vm11888_vm2, %v14715_v56, %v14662_v26  ;;  %v8324_v8 = vor.u32 %v8323_v4, %v14734_v14 }
 0x423   : > { %v7212_v52 = vpop.f32.mrf.mxu1  ;;  %v8879_v31 = vsel %vm12191_vm5, %v8877_v32, %v8878_v49  ;;  %v15615_v32 = vld [vmem:[#allocation34_spill] sm:$0xff]  ;;  %v15616_v49 = vld [vmem:[#allocation31_spill] sm:$0xff]  ;;  %v14770_v56 = vrot.slane %v7014_v5, 5 }
 0x424   : > { %v14743_v53 = vadd.f32 %v6266_v54, %v5889_v61  ;;  %v14746_v1 = vadd.f32 %v7212_v52, %v6597_v20  ;;  %v6993_v61 = vsel %vm11888_vm2, %v6988_v43, %v14692_v13  ;;  %v8314_v54 = vor.u32 %v14732_v25, %v14726_v15  ;;  %v8737_v43 = vld [vmem:[#allocation2 + $0xa8] sm:$0xe] }
 0x425   : > { %v7096_v20 = vunpack.c.l.b16 %v7003_v37  ;;  %v8327_v52 = vshll.u32 %v14489_v24, 16  ;;  %v7466_v13 = vrot.slane %v6663_v42, 5  ;;  %v7095_v15 = vunpack.c.l.b16 %v6993_v61 }
 0x426   : > { %15612 = vst [vmem:[#allocation21_spill] sm:$0xff] %v14743_v53  ;;  %7650 = vmatmul.bf16.gmra.mxu2 %v15614_v59  ;;  %8647 = vmatmul.bf16.gmra.mxu0 %v8531_v62  ;;  %v8306_v62 = vsel %vm11888_vm2, %v14720_v18, %v14722_v22  ;;  %v7020_v59 = vrot.slane %v7018_v45, 4  ;;  %v7007_v25 = vrot.slane %v7005_v33, 4  ;;  %v7010_v37 = vrot.slane %v7008_v57, 5  ;;  %v14786_v57 = vpop.f32.mrf.mxu0 }
 0x427   : > { %15613 = vst [vmem:[#allocation29_spill] sm:$0xff] %v14746_v1  ;;  %7965 = vmatmul.bf16.gmra.mxu3 %v11513_v36  ;;  %v6598_v36 = vadd.f32 %v15616_v49, %v15615_v32  ;;  %v11043_v1 = vrot.slane %v7316_v19, 9  ;;  %v7468_v24 = vrot.slane %v7466_v13, 4  ;;  %v7469_v42 = vrot.slane %v6664_v58, 5 }
 0x428   : > { %v11217_v60 = vrot.slane %v8737_v43, 9  ;;  %v7114_v32 = vpack.c.b16 %v7096_v20, %v7095_v15  ;;  %v8509_v5 = vunpack.c.l.b16 %v8306_v62  ;;  %v14777_v49 = vrot.slane %v8324_v8, 4 }
 0x429   : > { %v5891_v26 = vpop.f32.mrf.mxu2  ;;  %v7467_v4 = vsel %vm12191_vm5, %v11043_v1, %v7466_v13  ;;  %v7470_v33 = vsel %vm12191_vm5, %v7468_v24, %v7469_v42  ;;  %v8508_v19 = vunpack.c.l.b16 %v8296_v2  ;;  %v7011_v61 = vor.u32 %v7010_v37, %v7007_v25  ;;  %v14788_v13 = vld [vmem:[#allocation2 + $0xb8] sm:$0xf]  ;;  %v6666_v37 = vld [vmem:[#allocation2 + $0xc4] sm:$0xf] }
 0x42a   : > { %v5892_v18 = vadd.f32 %v5891_v26, %v14348_v47  ;;  %v6269_v22 = vpop.f32.mrf.mxu3  ;;  %v7021_v47 = vor.u32 %v7020_v59, %v14770_v56  ;;  %v8876_v1 = vsel %vm12191_vm5, %v11217_v60, %v8875_v27  ;;  %v7523_v20 = vunpack.c.l.b16 %v7467_v4  ;;  %v15620_v42 = vld [vmem:[#allocation37_spill] sm:$0xff] }
 0x42b   : > { %v7215_v6 = vpop.f32.mrf.mxu1  ;;  %v7524_v62 = vunpack.c.l.b16 %v7470_v33  ;;  %v7024_v8 = vshll.u32 %v6664_v58, 16  ;;  %v14792_v43 = vrot.slane %v8327_v52, 5  ;;  %v8532_v26 = vpack.c.b16 %v8509_v5, %v8508_v19  ;;  %v14804_v58 = vld [vmem:[#allocation2 + $0xbc] sm:$0x1]  ;;  %v15623_v33 = vld [vmem:[#allocation38_spill] sm:$0xff] }
 0x42c   : > { %v14775_v53 = vadd.f32 %v6269_v22, %v5892_v18  ;;  %v14779_v45 = vadd.f32 %v7215_v6, %v6598_v36  ;;  %v14790_v6 = vrot.slane %v8314_v54, 4  ;;  %v8738_v36 = vld [vmem:[#allocation2 + $0xb4] sm:$0xe]  ;;  %v8942_v18 = vunpack.c.l.b16 %v8876_v1 }
 0x42d   : > { %v14794_v59 = vpack.c.b16 %v7524_v62, %v7523_v20  ;;  %v8943_v60 = vunpack.c.l.b16 %v8879_v31  ;;  %v7022_v22 = vrot.slane %v7021_v47, 4  ;;  %v8882_v52 = vrot.slane %v14788_v13, 5  ;;  %v15622_v47 = vld [vmem:[#allocation39_spill] sm:$0xff]  ;;  %v7317_v20 = vld [vmem:[#allocation2 + $0xc0] sm:$0xe] }
 0x42e   : > { %15617 = vst [vmem:[#allocation26_spill] sm:$0xff] %v14775_v53  ;;  %7254 = vmatmul.bf16.gmra.mxu1 %v7114_v32  ;;  %v7012_v31 = vrot.slane %v7011_v61, 4  ;;  %v11218_v24 = vrot.slane %v8738_v36, 9  ;;  %v15621_v32 = vld [vmem:[#allocation35_spill] sm:$0xff]  ;;  %v6600_v1 = vadd.f32 %v15623_v33, %v15622_v47  ;;  %v7026_v19 = vrot.slane %v7024_v8, 5  ;;  %v11514_v8 = vld [vmem:[#allocation2 + $0x78] sm:$0xff] }
 0x42f   : > { %15618 = vst [vmem:[#allocation28_spill] sm:$0xff] %v14779_v45  ;;  %v14808_v4 = vpack.c.b16 %v8943_v60, %v8942_v18  ;;  %v6599_v5 = vadd.f32 %v15621_v32, %v15620_v42  ;;  %v8884_v62 = vrot.slane %v8882_v52, 4  ;;  %v6665_v61 = vld [vmem:[#allocation2 + $0xc0] sm:$0xf]  ;;  %v14819_v18 = vld [vmem:[#allocation2 + $0xc4] sm:$0xf] }
 0x430   : > { %v8883_v36 = vsel %vm12191_vm5, %v11218_v24, %v8882_v52  ;;  %v8885_v60 = vrot.slane %v14804_v58, 5  ;;  %v7027_v42 = vsel %vm11888_vm2, %v7022_v22, %v7026_v19  ;;  %v7042_v32 = vshrl.u32 %v6666_v37, 16  ;;  %v8739_v24 = vld [vmem:[#allocation2 + $0xc0] sm:$0xe]  ;;  %v14834_v19 = vpop.f32.mrf.mxu0 }
 0x431   : > { %v5893_v27 = vpop.f32.mrf.mxu2  ;;  %15619 = vst [vmem:[#allocation45_spill] sm:$0xff] %v14808_v4  ;;  %v7029_v47 = vshrl.u32 %v6665_v61, 16  ;;  %v7032_v33 = vshll.u32 %v6665_v61, 16  ;;  %v8944_v22 = vunpack.c.l.b16 %v8883_v36 }
 0x432   : > { %v5894_v15 = vadd.f32 %v5893_v27, %v14383_v50  ;;  %v6271_v25 = vpop.f32.mrf.mxu3  ;;  %v7017_v50 = vsel %vm11888_vm2, %v7012_v31, %v14770_v56  ;;  %v11044_v56 = vrot.slane %v7317_v20, 9  ;;  %v7473_v31 = vrot.slane %v6666_v37, 5  ;;  %15626 = vst [vmem:[#allocation37_spill] sm:$0xff] %v14834_v19 }
 0x433   : > { %v7217_v2 = vpop.f32.mrf.mxu1  ;;  %v8886_v52 = vsel %vm12191_vm5, %v8884_v62, %v8885_v60  ;;  %v7098_v60 = vunpack.c.l.b16 %v7027_v42  ;;  %v7044_v4 = vrot.slane %v7042_v32, 4  ;;  %v8345_v32 = vshrl.u32 %v14535_v34, 16 }
 0x434   : > { %v14814_v54 = vadd.f32 %v6271_v25, %v5894_v15  ;;  %v14824_v27 = vadd.f32 %v7217_v2, %v6599_v5  ;;  %v14828_v15 = vld [vmem:[#allocation2 + $0xc8] sm:$0x1]  ;;  %v7038_v25 = vshll.u32 %v6666_v37, 16  ;;  %v8889_v2 = vrot.slane %v14819_v18, 5 }
 0x435   : > { %v7097_v5 = vunpack.c.l.b16 %v7017_v50  ;;  %v7476_v37 = vrot.slane %v14828_v15, 5  ;;  %v8945_v20 = vunpack.c.l.b16 %v8886_v52 }
 0x436   : > { %15624 = vst [vmem:[#allocation34_spill] sm:$0xff] %v14814_v54  ;;  %7655 = vmatmul.bf16.gmra.mxu2 %v14302_v10  ;;  %8652 = vmatmul.bf16.gmra.mxu0 %v8532_v26  ;;  %v7474_v10 = vsel %vm12191_vm5, %v11044_v56, %v7473_v31  ;;  %v7475_v26 = vrot.slane %v7473_v31, 4  ;;  %v14841_v45 = vrot.slane %v7038_v25, 5  ;;  %v8891_v50 = vrot.slane %v8889_v2, 4 }
 0x437   : > { %15625 = vst [vmem:[#allocation31_spill] sm:$0xff] %v14824_v27  ;;  %7970 = vmatmul.bf16.gmra.mxu3 %v11514_v8  ;;  %v14836_v27 = vld [vmem:[#allocation2 + $0xc8] sm:$0x1]  ;;  %v11219_v8 = vrot.slane %v8739_v24, 9  ;;  %v14846_v53 = vpack.c.b16 %v8945_v20, %v8944_v22  ;;  %v7525_v56 = vunpack.c.l.b16 %v7474_v10  ;;  %v7031_v24 = vrot.slane %v7029_v47, 4 }
 0x438   : > { %v7477_v54 = vsel %vm12191_vm5, %v7475_v26, %v7476_v37  ;;  %v8892_v42 = vrot.slane %v14836_v27, 5  ;;  %v7115_v22 = vpack.c.b16 %v7098_v60, %v7097_v5  ;;  %v7045_v10 = vor.u32 %v7044_v4, %v14841_v45 }
 0x439   : > { %v7616_v62 = vpop.f32.mrf.mxu2  ;;  %v7526_v31 = vunpack.c.l.b16 %v7477_v54  ;;  %v8890_v52 = vsel %vm12191_vm5, %v11219_v8, %v8889_v2  ;;  %v7034_v2 = vrot.slane %v7032_v33, 5  ;;  %v15627_v47 = vsel %vm11888_vm2, %v14777_v49, %v14792_v43 }
 0x43a   : > { %v7696_v61 = vadd.f32 %v7616_v62, %v14426_v63  ;;  %v7931_v36 = vpop.f32.mrf.mxu3  ;;  %v8341_v63 = vshll.u32 %v14535_v34, 16  ;;  %v8893_v54 = vsel %vm12191_vm5, %v8891_v50, %v8892_v42  ;;  %v8946_v37 = vunpack.c.l.b16 %v8890_v52  ;;  %v15629_v52 = vld [vmem:[#allocation41_spill] sm:$0xff] }
 0x43b   : > { %v7220_v25 = vpop.f32.mrf.mxu1  ;;  %v14857_v26 = vpack.c.b16 %v7526_v31, %v7525_v56  ;;  %v8947_v20 = vunpack.c.l.b16 %v8893_v54  ;;  %v8511_v34 = vunpack.c.l.b16 %v15627_v47  ;;  %v8335_v8 = vshll.u32 %v8073_v17, 16  ;;  %v14875_v56 = vpop.f32.mrf.mxu0 }
 0x43c   : > { %v14851_v19 = vadd.f32 %v7931_v36, %v7696_v61  ;;  %v14855_v62 = vadd.f32 %v7220_v25, %v6600_v1  ;;  %v8332_v1 = vshrl.u32 %v8073_v17, 16  ;;  %v7048_v5 = vshll.u32 %v14828_v15, 16  ;;  %v15630_v15 = vld [vmem:[#allocation40_spill] sm:$0xff] }
 0x43d   : > { %v8343_v60 = vrot.slane %v8341_v63, 5  ;;  %v8347_v61 = vrot.slane %v8345_v32, 4  ;;  %v14868_v36 = vpack.c.b16 %v8947_v20, %v8946_v37  ;;  %v15628_v4 = vsel %vm11888_vm2, %v14790_v6, %v14734_v14  ;;  %v11515_v6 = vld [vmem:[#allocation2 + $0x84] sm:$0xff] }
 0x43e   : > { %7259 = vmatmul.bf16.gmra.mxu1 %v7115_v22  ;;  %v8510_v50 = vunpack.c.l.b16 %v15628_v4  ;;  %v7035_v31 = vor.u32 %v7034_v2, %v7031_v24  ;;  %v7046_v17 = vrot.slane %v7045_v10, 4  ;;  %v6601_v42 = vadd.f32 %v15630_v15, %v15629_v52  ;;  %v15632_v4 = vld [vmem:[#allocation43_spill] sm:$0xff] }
 0x43f   : > { %v8334_v63 = vrot.slane %v8332_v1, 4  ;;  %v7050_v54 = vrot.slane %v7048_v5, 5  ;;  %v8337_v37 = vrot.slane %v8335_v8, 5  ;;  %v8348_v20 = vor.u32 %v8347_v61, %v8343_v60 }
 0x440   : > { %v8533_v25 = vpack.c.b16 %v8511_v34, %v8510_v50  ;;  %v8351_v2 = vshll.u32 %v14553_v35, 16 }
 0x441   : > { %v7618_v33 = vpop.f32.mrf.mxu2  ;;  %v7051_v24 = vsel %vm11888_vm2, %v7046_v17, %v7050_v54  ;;  %v8338_v47 = vor.u32 %v8337_v37, %v8334_v63  ;;  %v8349_v34 = vrot.slane %v8348_v20, 4 }
 0x442   : > { %v7697_v49 = vadd.f32 %v7618_v33, %v14466_v23  ;;  %v7933_v43 = vpop.f32.mrf.mxu3  ;;  %v7036_v23 = vrot.slane %v7035_v31, 4  ;;  %v7100_v8 = vunpack.c.l.b16 %v7051_v24  ;;  %v15631_v33 = vld [vmem:[#allocation44_spill] sm:$0xff] }
 0x443   : > { %v7222_v32 = vpop.f32.mrf.mxu1  ;;  %v6602_v50 = vadd.f32 %v15632_v4, %v15631_v33  ;;  %v8339_v17 = vrot.slane %v8338_v47, 4  ;;  %v15633_v47 = vld [vmem:[#allocation46_spill] sm:$0xff]  ;;  %v11516_v33 = vld [vmem:[#allocation2 + $0x90] sm:$0xff] }
 0x444   : > { %v14880_v22 = vadd.f32 %v7933_v43, %v7697_v49  ;;  %v14882_v14 = vadd.f32 %v7222_v32, %v6601_v42  ;;  %v7041_v10 = vsel %vm11888_vm2, %v7036_v23, %v14841_v45  ;;  %v14894_v43 = vpop.f32.mrf.mxu0  ;;  %v8076_v42 = vld [vmem:[#allocation2 + $0x9c] sm:$0xf] }
 0x445   : > { %v7099_v49 = vunpack.c.l.b16 %v7041_v10  ;;  %v8344_v63 = vsel %vm11888_vm2, %v8339_v17, %v8343_v60  ;;  %v8356_v54 = vshrl.u32 %v8076_v42, 16  ;;  %v8359_v37 = vshll.u32 %v8076_v42, 16 }
 0x446   : > { %7660 = vmatmul.bf16.gmra.mxu2 %v14379_v0  ;;  %8657 = vmatmul.bf16.gmra.mxu0 %v8533_v25  ;;  %v8353_v0 = vrot.slane %v8351_v2, 5  ;;  %v8369_v25 = vshrl.u32 %v14627_v16, 16  ;;  %v8512_v10 = vunpack.c.l.b16 %v8344_v63 }
 0x447   : > { %7975 = vmatmul.bf16.gmra.mxu3 %v11515_v6  ;;  %v7116_v15 = vpack.c.b16 %v7100_v8, %v7099_v49  ;;  %v15635_v49 = vld [vmem:[#allocation14_spill] sm:$0xff] }
 0x448   : > { %v8354_v45 = vsel %vm11888_vm2, %v8349_v34, %v8353_v0  ;;  %v8371_v23 = vrot.slane %v8369_v25, 4  ;;  %v15634_v34 = vld [vmem:[#allocation47_spill] sm:$0xff]  ;;  %v8361_v0 = vrot.slane %v8359_v37, 5  ;;  %v15637_v25 = vld [vmem:[#allocation50_spill] sm:$0xff] }
 0x449   : > { %v7621_v1 = vpop.f32.mrf.mxu2  ;;  %v8513_v32 = vunpack.c.l.b16 %v8354_v45 }
 0x44a   : > { %v7698_v5 = vadd.f32 %v7621_v1, %v14499_v38  ;;  %v7936_v61 = vpop.f32.mrf.mxu3  ;;  %v8365_v38 = vshll.u32 %v14627_v16, 16  ;;  %v6603_v1 = vadd.f32 %v15634_v34, %v15633_v47 }
 0x44b   : > { %v7225_v35 = vpop.f32.mrf.mxu1  ;;  %v8534_v16 = vpack.c.b16 %v8513_v32, %v8512_v10  ;;  %v8393_v10 = vshrl.u32 %v14718_v51, 16 }
 0x44c   : > { %v14896_v31 = vadd.f32 %v7936_v61, %v7698_v5  ;;  %v14900_v52 = vadd.f32 %v7225_v35, %v6602_v50  ;;  %v8367_v6 = vrot.slane %v8365_v38, 5  ;;  %v8358_v61 = vrot.slane %v8356_v54, 4  ;;  %v14913_v50 = vpop.f32.mrf.mxu0  ;;  %v15636_v38 = vld [vmem:[#allocation49_spill] sm:$0xff] }
 0x44d   : > { %v6604_v63 = vadd.f32 %v15637_v25, %v15636_v38 }
 0x44e   : > { %7264 = vmatmul.bf16.gmra.mxu1 %v7116_v15  ;;  %v8372_v4 = vor.u32 %v8371_v23, %v8367_v6  ;;  %v8362_v35 = vor.u32 %v8361_v0, %v8358_v61 }
 0x450   : > { %v8373_v45 = vrot.slane %v8372_v4, 4 }
 0x451   : > { %v7623_v20 = vpop.f32.mrf.mxu2 }
 0x452   : > { %v7699_v24 = vadd.f32 %v7623_v20, %v14549_v21  ;;  %v7938_v2 = vpop.f32.mrf.mxu3  ;;  %v8375_v21 = vshll.u32 %v14653_v48, 16  ;;  %v8363_v20 = vrot.slane %v8362_v35, 4  ;;  %v8079_v48 = vld [vmem:[#allocation2 + $0xa8] sm:$0xf] }
 0x453   : > { %v7227_v8 = vpop.f32.mrf.mxu1  ;;  %v15639_v35 = vld [vmem:[#allocation51_spill] sm:$0xff] }
 0x454   : > { %v14909_v5 = vadd.f32 %v7938_v2, %v7699_v24  ;;  %v14911_v60 = vadd.f32 %v7227_v8, %v6603_v1  ;;  %v8377_v32 = vrot.slane %v8375_v21, 5  ;;  %v8389_v2 = vshll.u32 %v14718_v51, 16  ;;  %v14931_v34 = vpop.f32.mrf.mxu0 }
 0x455   : > { %v8368_v47 = vsel %vm11888_vm2, %v8363_v20, %v8367_v6  ;;  %v8380_v8 = vshrl.u32 %v8079_v48, 16 }
 0x456   : > { %7665 = vmatmul.bf16.gmra.mxu2 %v15635_v49  ;;  %8662 = vmatmul.bf16.gmra.mxu0 %v8534_v16  ;;  %v8378_v24 = vsel %vm11888_vm2, %v8373_v45, %v8377_v32  ;;  %v8383_v16 = vshll.u32 %v8079_v48, 16  ;;  %v8391_v0 = vrot.slane %v8389_v2, 5  ;;  %v8514_v21 = vunpack.c.l.b16 %v8368_v47  ;;  %v15642_v47 = vld [vmem:[#allocation55_spill] sm:$0xff] }
 0x457   : > { %7980 = vmatmul.bf16.gmra.mxu3 %v11516_v33  ;;  %v8515_v1 = vunpack.c.l.b16 %v8378_v24  ;;  %v8395_v33 = vrot.slane %v8393_v10, 4  ;;  %v8382_v6 = vrot.slane %v8380_v8, 4 }
 0x458   : > { %v8385_v38 = vrot.slane %v8383_v16, 5 }
 0x459   : > { %v7626_v17 = vpop.f32.mrf.mxu2  ;;  %v8396_v32 = vor.u32 %v8395_v33, %v8391_v0 }
 0x45a   : > { %v7700_v15 = vadd.f32 %v7626_v17, %v14580_v46  ;;  %v7941_v42 = vpop.f32.mrf.mxu3  ;;  %v15638_v46 = vld [vmem:[#allocation9_spill] sm:$0xff] }
 0x45b   : > { %v7230_v54 = vpop.f32.mrf.mxu1  ;;  %v15640_v17 = vld [vmem:[#allocation53_spill] sm:$0xff]  ;;  %v8397_v24 = vrot.slane %v8396_v32, 4 }
 0x45c   : > { %v14920_v37 = vadd.f32 %v7941_v42, %v7700_v15  ;;  %v14922_v23 = vadd.f32 %v7230_v54, %v6604_v63  ;;  %v6605_v51 = vadd.f32 %v15640_v17, %v15639_v35  ;;  %v8535_v42 = vpack.c.b16 %v8515_v1, %v8514_v21  ;;  %v11517_v63 = vld [vmem:[#allocation2 + $0x9c] sm:$0xff]  ;;  %v14942_v48 = vpop.f32.mrf.mxu0 }
 0x45d   : > { %v8386_v54 = vor.u32 %v8385_v38, %v8382_v6  ;;  %v8417_v21 = vshrl.u32 %v14788_v13, 16 }
 0x45e   : > { %9038 = vmatmul.bf16.vlgmr.msra.gmra.mxu1 %v15638_v46  ;;  %v15641_v46 = vld [vmem:[#allocation54_spill] sm:$0xff] }
 0x45f   : > { %v6606_v1 = vadd.f32 %v15642_v47, %v15641_v46  ;;  %v8419_v38 = vrot.slane %v8417_v21, 4 }
 0x461   : > { %v7628_v61 = vpop.f32.mrf.mxu2 }
 0x462   : > { %v7701_v4 = vadd.f32 %v7628_v61, %v14605_v55  ;;  %v7943_v49 = vpop.f32.mrf.mxu3  ;;  %v8399_v55 = vshll.u32 %v14728_v30, 16 }
 0x463   : > { %v7232_v45 = vpop.f32.mrf.mxu1 }
 0x464   : > { %v14936_v15 = vadd.f32 %v7943_v49, %v7701_v4  ;;  %v14938_v25 = vadd.f32 %v7232_v45, %v6605_v51  ;;  %v8401_v8 = vrot.slane %v8399_v55, 5  ;;  %v8082_v4 = vld [vmem:[#allocation2 + $0xb4] sm:$0xf]  ;;  %v8413_v49 = vshll.u32 %v14788_v13, 16 }
 0x465   : > { %v8404_v51 = vshrl.u32 %v8082_v4, 16  ;;  %v8407_v45 = vshll.u32 %v8082_v4, 16  ;;  %v15644_v55 = vld [vmem:[#allocation56_spill] sm:$0xff] }
 0x466   : > { %7670 = vmatmul.bf16.gmra.mxu2 %v14582_v44  ;;  %8667 = vmatmul.bf16.gmra.mxu0 %v8535_v42  ;;  %v8387_v44 = vrot.slane %v8386_v54, 4  ;;  %v8402_v30 = vsel %vm11888_vm2, %v8397_v24, %v8401_v8  ;;  %v8415_v6 = vrot.slane %v8413_v49, 5  ;;  %v15645_v54 = vld [vmem:[#allocation10_spill] sm:$0xff]  ;;  %v11518_v8 = vld [vmem:[#allocation2 + $0xa8] sm:$0xff]  ;;  %v15646_v4 = vld [vmem:[#allocation12_spill] sm:$0xff] }
 0x467   : > { %7985 = vmatmul.bf16.gmra.mxu3 %v11517_v63  ;;  %v8517_v17 = vunpack.c.l.b16 %v8402_v30  ;;  %v8409_v47 = vrot.slane %v8407_v45, 5  ;;  %v15647_v49 = vld [vmem:[#allocation25_spill] sm:$0xff] }
 0x468   : > { %v8392_v35 = vsel %vm11888_vm2, %v8387_v44, %v8391_v0  ;;  %v8406_v0 = vrot.slane %v8404_v51, 4  ;;  %v6608_v21 = vadd.f32 %v15647_v49, %v15646_v4 }
 0x469   : > { %v7631_v20 = vpop.f32.mrf.mxu2  ;;  %v8516_v32 = vunpack.c.l.b16 %v8392_v35 }
 0x46a   : > { %v7702_v2 = vadd.f32 %v7631_v20, %v14636_v9  ;;  %v7946_v10 = vpop.f32.mrf.mxu3  ;;  %v15643_v9 = vld [vmem:[#allocation32_spill] sm:$0xff]  ;;  %v6607_v20 = vadd.f32 %v15645_v54, %v15644_v55  ;;  %v8410_v44 = vor.u32 %v8409_v47, %v8406_v0  ;;  %v15649_v0 = vld [vmem:[#allocation11_spill] sm:$0xff]  ;;  %v15650_v47 = vld [vmem:[#allocation13_spill] sm:$0xff] }
 0x46b   : > { %v7235_v16 = vpop.f32.mrf.mxu1  ;;  %v8536_v46 = vpack.c.b16 %v8517_v17, %v8516_v32 }
 0x46c   : > { %v14947_v61 = vadd.f32 %v7946_v10, %v7702_v2  ;;  %v14949_v33 = vadd.f32 %v7235_v16, %v6606_v1  ;;  %v14961_v2 = vpop.f32.mrf.mxu0  ;;  %v8420_v16 = vor.u32 %v8419_v38, %v8415_v6  ;;  %v8411_v17 = vrot.slane %v8410_v44, 4  ;;  %v11519_v44 = vld [vmem:[#allocation2 + $0xb4] sm:$0xff] }
 0x46e   : > { %9043 = vmatmul.bf16.gmra.mxu1 %v15643_v9  ;;  %v8421_v30 = vrot.slane %v8420_v16, 4  ;;  %v8416_v32 = vsel %vm11888_vm2, %v8411_v17, %v8415_v6  ;;  %v8447_v6 = vshll.u32 %v14836_v27, 16  ;;  %v15651_v17 = vld [vmem:[#allocation17_spill] sm:$0xff] }
 0x471   : > { %v7633_v42 = vpop.f32.mrf.mxu2 }
 0x472   : > { %v7703_v63 = vadd.f32 %v7633_v42, %v14671_v11  ;;  %v7948_v24 = vpop.f32.mrf.mxu3  ;;  %v8423_v11 = vshll.u32 %v14804_v58, 16  ;;  %v8437_v42 = vshll.u32 %v14819_v18, 16  ;;  %v8085_v58 = vld [vmem:[#allocation2 + $0xc0] sm:$0xf] }
 0x473   : > { %v7237_v13 = vpop.f32.mrf.mxu1  ;;  %v8428_v54 = vshrl.u32 %v8085_v58, 16 }
 0x474   : > { %v14963_v10 = vadd.f32 %v7948_v24, %v7703_v63  ;;  %v14965_v1 = vadd.f32 %v7237_v13, %v6607_v20  ;;  %v8425_v9 = vrot.slane %v8423_v11, 5  ;;  %v14977_v38 = vpop.f32.mrf.mxu0  ;;  %v15648_v63 = vld [vmem:[#allocation33_spill] sm:$0xff]  ;;  %v8431_v20 = vshll.u32 %v8085_v58, 16 }
 0x475   : > { %v8439_v24 = vrot.slane %v8437_v42, 5  ;;  %v8449_v42 = vrot.slane %v8447_v6, 5 }
 0x476   : > { %7675 = vmatmul.bf16.gmra.mxu2 %v14644_v12  ;;  %8672 = vmatmul.bf16.gmra.mxu0 %v8536_v46  ;;  %v8426_v45 = vsel %vm11888_vm2, %v8421_v30, %v8425_v9  ;;  %v8441_v12 = vshrl.u32 %v14819_v18, 16  ;;  %v8518_v46 = vunpack.c.l.b16 %v8416_v32  ;;  %v8430_v30 = vrot.slane %v8428_v54, 4 }
 0x477   : > { %7990 = vmatmul.bf16.gmra.mxu3 %v11518_v8  ;;  %v8519_v55 = vunpack.c.l.b16 %v8426_v45  ;;  %v6609_v8 = vadd.f32 %v15650_v47, %v15649_v0  ;;  %v8433_v4 = vrot.slane %v8431_v20, 5  ;;  %v6610_v45 = vadd.f32 %v14575_v41, %v15651_v17  ;;  %v11520_v0 = vld [vmem:[#allocation2 + $0xc0] sm:$0xff] }
 0x478   : > { %v8443_v13 = vrot.slane %v8441_v12, 4 }
 0x479   : > { %v8537_v11 = vpack.c.b16 %v8519_v55, %v8518_v46  ;;  %v8434_v9 = vor.u32 %v8433_v4, %v8430_v30 }
 0x47a   : > { %v8444_v49 = vor.u32 %v8443_v13, %v8439_v24  ;;  %v15653_v13 = vld [vmem:[#allocation19_spill] sm:$0xff] }
 0x47b   : > { %v7240_v35 = vpop.f32.mrf.mxu1  ;;  %v6611_v41 = vadd.f32 %v14607_v3, %v15653_v13 }
 0x47c   : > { %v14971_v51 = vadd.f32 %v7240_v35, %v6608_v21  ;;  %v14988_v21 = vpop.f32.mrf.mxu0  ;;  %v8445_v35 = vrot.slane %v8444_v49, 4 }
 0x47e   : > { %9048 = vmatmul.bf16.gmra.mxu1 %v15648_v63  ;;  %v8435_v63 = vrot.slane %v8434_v9, 4  ;;  %v8450_v32 = vsel %vm11888_vm2, %v8445_v35, %v8449_v42 }
 0x47f   : > { %v8521_v55 = vunpack.c.l.b16 %v8450_v32 }
 0x480   : > { %v8440_v27 = vsel %vm11888_vm2, %v8435_v63, %v8439_v24  ;;  %v15654_v63 = vld [vmem:[#allocation30_spill] sm:$0xff] }
 0x481   : > { %v8520_v20 = vunpack.c.l.b16 %v8440_v27 }
 0x483   : > { %v7242_v16 = vpop.f32.mrf.mxu1  ;;  %v8538_v47 = vpack.c.b16 %v8521_v55, %v8520_v20 }
 0x484   : > { %v14984_v18 = vadd.f32 %v7242_v16, %v6609_v8  ;;  %v14999_v54 = vpop.f32.mrf.mxu0  ;;  %v8088_v16 = vld [vmem:[#allocation2 + $0xcc] sm:$0xf] }
 0x485   : > { %v8452_v24 = vshrl.u32 %v8088_v16, 16  ;;  %v8455_v30 = vshll.u32 %v8088_v16, 16 }
 0x486   : > { %7680 = vmatmul.bf16.gmra.mxu2 %v14724_v28  ;;  %8677 = vmatmul.bf16.gmra.mxu0 %v8537_v11  ;;  %v15652_v28 = vld [vmem:[#allocation36_spill] sm:$0xff] }
 0x487   : > { %7995 = vmatmul.bf16.gmra.mxu3 %v11519_v44  ;;  %v15005_v11 = vld [vmem:[#allocation2 + $0xd0] sm:$0xf]  ;;  %v15007_v44 = vld [vmem:[#allocation2 + $0xd4] sm:$0x1]  ;;  %v8454_v6 = vrot.slane %v8452_v24, 4  ;;  %v8457_v9 = vrot.slane %v8455_v30, 5 }
 0x488   : > { %v8461_v4 = vshll.u32 %v15005_v11, 16  ;;  %v8465_v49 = vshrl.u32 %v15005_v11, 16  ;;  %v8471_v3 = vshll.u32 %v15007_v44, 16  ;;  %v15656_v24 = vld [vmem:[#allocation18_spill] sm:$0xff] }
 0x48a   : > { %v8463_v35 = vrot.slane %v8461_v4, 5  ;;  %v8467_v17 = vrot.slane %v8465_v49, 4  ;;  %v11521_v4 = vld [vmem:[#allocation2 + $0xcc] sm:$0xff] }
 0x48b   : > { %v7245_v12 = vpop.f32.mrf.mxu1 }
 0x48c   : > { %v14992_v58 = vadd.f32 %v7245_v12, %v6610_v45  ;;  %v8458_v45 = vor.u32 %v8457_v9, %v8454_v6  ;;  %v8468_v42 = vor.u32 %v8467_v17, %v8463_v35  ;;  %v8473_v12 = vrot.slane %v8471_v3, 5  ;;  %v15015_v32 = vpop.f32.mrf.mxu0  ;;  %v15658_v9 = vld [vmem:[#allocation15_spill] sm:$0xff] }
 0x48e   : > { %9053 = vmatmul.bf16.gmra.mxu1 %v15652_v28  ;;  %v8459_v27 = vrot.slane %v8458_v45, 4  ;;  %v8469_v55 = vrot.slane %v8468_v42, 4  ;;  %v15659_v42 = vld [vmem:[#allocation48_spill] sm:$0xff] }
 0x490   : > { %v8464_v13 = vsel %vm11888_vm2, %v8459_v27, %v8463_v35  ;;  %v6614_v35 = vadd.f32 %v14741_v7, %v15658_v9  ;;  %v15661_v27 = vld [vmem:[#allocation24_spill] sm:$0xff]  ;;  %v15664_v7 = vld [vmem:[#allocation21_spill] sm:$0xff] }
 0x493   : > { %v7247_v46 = vpop.f32.mrf.mxu1 }
 0x494   : > { %v15003_v8 = vadd.f32 %v7247_v46, %v6611_v41  ;;  %v8474_v41 = vsel %vm11888_vm2, %v8469_v55, %v8473_v12  ;;  %v15655_v46 = vld [vmem:[#allocation42_spill] sm:$0xff]  ;;  %v15028_v6 = vpop.f32.mrf.mxu0  ;;  %v15660_v12 = vld [vmem:[#allocation23_spill] sm:$0xff]  ;;  %v15662_v55 = vld [vmem:[#allocation37_spill] sm:$0xff] }
 0x496   : > { %7685 = vmatmul.bf16.gmra.mxu2 %v14794_v59  ;;  %8682 = vmatmul.bf16.gmra.mxu0 %v8538_v47  ;;  %v6612_v59 = vadd.f32 %v15654_v63, %v14577_v29  ;;  %v8523_v47 = vunpack.c.l.b16 %v8474_v41  ;;  %v15657_v29 = vld [vmem:[#allocation20_spill] sm:$0xff]  ;;  %v6615_v63 = vadd.f32 %v14786_v57, %v15660_v12 }
 0x497   : > { %8000 = vmatmul.bf16.gmra.mxu3 %v11520_v0  ;;  %v8522_v0 = vunpack.c.l.b16 %v8464_v13  ;;  %v6613_v30 = vadd.f32 %v15657_v29, %v15656_v24  ;;  %v11253_v24 = vld [vmem:[%s11856_s6 + $0xc] sm:$0xf]  ;;  %v11254_v12 = vld [vmem:[%s11856_s6 + $0x10] sm:$0xf] }
 0x498   : > { %v9200_v57 = vshrl.u32 %v11253_v24, 16  ;;  %v9203_v29 = vshll.u32 %v11253_v24, 16 }
 0x499   : > { %v8539_v16 = vpack.c.b16 %v8523_v47, %v8522_v0  ;;  %v6617_v0 = vadd.f32 %v14875_v56, %v15664_v7  ;;  %v9213_v56 = vshrl.u32 %v11254_v12, 16 }
 0x49b   : > { %v7250_v28 = vpop.f32.mrf.mxu1 }
 0x49c   : > { %v15017_v20 = vadd.f32 %v7250_v28, %v6612_v59 }
 0x49e   : > { %9058 = vmatmul.bf16.gmra.mxu1 %v15655_v46  ;;  %v15663_v46 = vld [vmem:[#allocation52_spill] sm:$0xff] }
 0x4a3   : > { %v7252_v49 = vpop.f32.mrf.mxu1 }
 0x4a4   : > { %v15026_v3 = vadd.f32 %v7252_v49, %v6613_v30  ;;  %v15665_v30 = vld [vmem:[#allocation26_spill] sm:$0xff] }
 0x4a6   : > { %7690 = vmatmul.bf16.gmra.mxu2 %v14857_v26  ;;  %8687 = vmatmul.bf16.gmra.mxu0 %v8539_v16  ;;  %v6616_v26 = vadd.f32 %v15662_v55, %v15661_v27  ;;  %v15668_v27 = vld [vmem:[#allocation34_spill] sm:$0xff] }
 0x4a7   : > { %8005 = vmatmul.bf16.gmra.mxu3 %v11521_v4  ;;  %v6618_v4 = vadd.f32 %v14894_v43, %v15665_v30  ;;  %v6619_v55 = vadd.f32 %v14913_v50, %v15668_v27  ;;  %v9215_v43 = vrot.slane %v9213_v56, 4  ;;  %v8693_v50 = vadd.f32 %v14931_v34, %v14851_v19  ;;  %v11257_v19 = vld [vmem:[%s11856_s6 + $0x1c] sm:$0xf] }
 0x4ab   : > { %v7255_v17 = vpop.f32.mrf.mxu1 }
 0x4ac   : > { %v15033_v45 = vadd.f32 %v7255_v17, %v6614_v35  ;;  %v9202_v35 = vrot.slane %v9200_v57, 4  ;;  %v9205_v17 = vrot.slane %v9203_v29, 5 }
 0x4ae   : > { %9063 = vmatmul.bf16.gmra.mxu1 %v15659_v42  ;;  %v15667_v42 = vld [vmem:[#allocation57_spill] sm:$0xff] }
 0x4b3   : > { %v7257_v59 = vpop.f32.mrf.mxu1 }
 0x4b4   : > { %v15038_v28 = vadd.f32 %v7257_v59, %v6615_v63  ;;  %v9206_v63 = vor.u32 %v9205_v17, %v9202_v35  ;;  %v9209_v59 = vshll.u32 %v11254_v12, 16 }
 0x4b6   : > { %v9211_v7 = vrot.slane %v9209_v59, 5 }
 0x4b8   : > { %v9216_v24 = vor.u32 %v9215_v43, %v9211_v7  ;;  %v15077_v43 = vpop.f32.mrf.mxu2 }
 0x4ba   : > { %v9217_v12 = vrot.slane %v9216_v24, 4  ;;  %v8694_v24 = vadd.f32 %v14942_v48, %v14880_v22 }
 0x4bb   : > { %v7260_v13 = vpop.f32.mrf.mxu1 }
 0x4bc   : > { %v15042_v41 = vadd.f32 %v7260_v13, %v6616_v26 }
 0x4be   : > { %9068 = vmatmul.bf16.gmra.mxu1 %v15663_v46  ;;  %v9207_v46 = vrot.slane %v9206_v63, 4 }
 0x4c0   : > { %v9212_v57 = vsel %vm11888_vm2, %v9207_v46, %v9211_v7 }
 0x4c3   : > { %v7262_v47 = vpop.f32.mrf.mxu1 }
 0x4c4   : > { %v15047_v16 = vadd.f32 %v7262_v47, %v6617_v0  ;;  %v11255_v0 = vld [vmem:[%s11856_s6 + $0x14] sm:$0x1]  ;;  %v11256_v47 = vld [vmem:[%s11856_s6 + $0x18] sm:$0xf] }
 0x4c5   : > { %v9219_v29 = vshll.u32 %v11255_v0, 16  ;;  %v9224_v30 = vshrl.u32 %v11256_v47, 16  ;;  %v9233_v0 = vshll.u32 %v11257_v19, 16 }
 0x4c7   : > { %v9221_v56 = vrot.slane %v9219_v29, 5  ;;  %v9226_v63 = vrot.slane %v9224_v30, 4 }
 0x4c9   : > { %v9222_v46 = vsel %vm11888_vm2, %v9217_v12, %v9221_v56  ;;  %v11259_v12 = vld [vmem:[%s11856_s6 + $0x24] sm:$0xf]  ;;  %v15089_v56 = vpop.f32.mrf.mxu3 }
 0x4ca   : > { %v9652_v30 = vunpack.c.l.bf16 %v9222_v46  ;;  %v15097_v46 = vpop.f32.mrf.mxu2 }
 0x4cb   : > { %v7265_v49 = vpop.f32.mrf.mxu1 }
 0x4cc   : > { %v15052_v9 = vadd.f32 %v7265_v49, %v6618_v4  ;;  %v9227_v4 = vshll.u32 %v11256_v47, 16  ;;  %v15069_v49 = vld [vmem:[%s15460_s4] ss:$0 sm:$0xff] }
 0x4ce   : > { %15666 = vst [vmem:[#allocation35_spill] sm:$0xff] %v15052_v9  ;;  %9073 = vmatmul.bf16.gmra.mxu1 %v15667_v42  ;;  %v9651_v42 = vunpack.c.l.bf16 %v9212_v57  ;;  %v9229_v59 = vrot.slane %v9227_v4, 5  ;;  %v15673_v9 = vld [vmem:[#allocation27_spill] sm:$0xff] }
 0x4d0   : > { %v9230_v7 = vor.u32 %v9229_v59, %v9226_v63 }
 0x4d3   : > { %v7267_v26 = vpop.f32.mrf.mxu1 }
 0x4d4   : > { %v15058_v13 = vadd.f32 %v7267_v26, %v6619_v55  ;;  %v15670_v55 = vld [vmem:[#allocation58_spill] sm:$0xff]  ;;  %v9237_v26 = vshrl.u32 %v11257_v19, 16  ;;  %v15093_v19 = vpop.f32.mrf.mxu0 }
 0x4d6   : > { %15669 = vst [vmem:[#allocation39_spill] sm:$0xff] %v15058_v13  ;;  %v9239_v4 = vrot.slane %v9237_v26, 4  ;;  %v8695_v26 = vadd.f32 %v14961_v2, %v14896_v31 }
 0x4db   : > { %v9039_v35 = vpop.f32.mrf.mxu1 }
 0x4dc   : > { %v9119_v17 = vadd.f32 %v9039_v35, %v8693_v50  ;;  %v9231_v50 = vrot.slane %v9230_v7, 4  ;;  %v9235_v35 = vrot.slane %v9233_v0, 5 }
 0x4de   : > { %v9619_v27 = vadd.f32 %v15069_v49, %v9119_v17  ;;  %9078 = vmatmul.bf16.gmra.mxu1 %v15670_v55  ;;  %v9240_v59 = vor.u32 %v9239_v4, %v9235_v35  ;;  %v9236_v22 = vsel %vm11888_vm2, %v9231_v50, %v9235_v35  ;;  %v9251_v55 = vshll.u32 %v11259_v12, 16  ;;  %v15671_v50 = vld [vmem:[#allocation59_spill] sm:$0xff] }
 0x4df   : > { %v11260_v35 = vld [vmem:[%s11856_s6 + $0x28] sm:$0xf] }
 0x4e0   : > { %v9683_v34 = vadd.f32 %v9651_v42, %v9619_v27  ;;  %v11258_v42 = vld [vmem:[%s11856_s6 + $0x20] sm:$0x1]  ;;  %v9248_v27 = vshrl.u32 %v11259_v12, 16  ;;  %v15103_v12 = vpop.f32.mrf.mxu3 }
 0x4e1   : > { %v9243_v48 = vshll.u32 %v11258_v42, 16  ;;  %v9261_v42 = vshrl.u32 %v11260_v35, 16 }
 0x4e2   : > { %v9715_v47 = vmax.f32 %v9683_v34, 0.0 }
 0x4e3   : > { %v9041_v57 = vpop.f32.mrf.mxu1 }
 0x4e4   : > { %9747 = vst [vmem:[%s15083_s26] sm:$0xff] %v9715_v47  ;;  %v9120_v29 = vadd.f32 %v9041_v57, %v8694_v24  ;;  %v9653_v47 = vunpack.c.l.bf16 %v9236_v22  ;;  %v9241_v24 = vrot.slane %v9240_v59, 4  ;;  %v9245_v57 = vrot.slane %v9243_v48, 5 }
 0x4e5   : > { %v8696_v22 = vadd.f32 %v14977_v38, %v14909_v5 }
 0x4e6   : > { %v9620_v17 = vadd.f32 %v15069_v49, %v9120_v29  ;;  %v9250_v29 = vrot.slane %v9248_v27, 4  ;;  %v9246_v31 = vsel %vm11888_vm2, %v9241_v24, %v9245_v57  ;;  %v15109_v27 = vpop.f32.mrf.mxu0  ;;  %v11261_v57 = vld [vmem:[%s11856_s6 + $0x2c] sm:$0x1] }
 0x4e7   : > { %v9267_v38 = vshll.u32 %v11261_v57, 16 }
 0x4e8   : > { %v9684_v63 = vadd.f32 %v9652_v30, %v9620_v17  ;;  %v9253_v30 = vrot.slane %v9251_v55, 5 }
 0x4ea   : > { %v9716_v34 = vmax.f32 %v9684_v63, 0.0  ;;  %v9254_v2 = vor.u32 %v9253_v30, %v9250_v29  ;;  %v9257_v63 = vshll.u32 %v11260_v35, 16  ;;  %v11262_v29 = vld [vmem:[%s11856_s6 + $0x30] sm:$0xf] }
 0x4eb   : > { %v9044_v7 = vpop.f32.mrf.mxu1  ;;  %v9275_v35 = vshll.u32 %v11262_v29, 16 }
 0x4ec   : > { %9748 = vst [vmem:[%s15083_s26 + $0x8] sm:$0xff] %v9716_v34  ;;  %v9121_v0 = vadd.f32 %v9044_v7, %v8695_v26  ;;  %v9654_v34 = vunpack.c.l.bf16 %v9246_v31  ;;  %v9263_v26 = vrot.slane %v9261_v42, 4  ;;  %v15112_v7 = vpop.f32.mrf.mxu2  ;;  %v8697_v42 = vadd.f32 %v14988_v21, %v14920_v37  ;;  %v15121_v31 = vpop.f32.mrf.mxu3 }
 0x4ee   : > { %v9621_v4 = vadd.f32 %v15069_v49, %v9121_v0  ;;  %9083 = vmatmul.bf16.gmra.mxu1 %v15671_v50  ;;  %v9255_v0 = vrot.slane %v9254_v2, 4  ;;  %v9272_v50 = vshrl.u32 %v11262_v29, 16 }
 0x4f0   : > { %v9685_v17 = vadd.f32 %v9653_v47, %v9621_v4  ;;  %v9259_v47 = vrot.slane %v9257_v63, 5 }
 0x4f2   : > { %v9717_v59 = vmax.f32 %v9685_v17, 0.0  ;;  %v9264_v4 = vor.u32 %v9263_v26, %v9259_v47  ;;  %v9260_v5 = vsel %vm11888_vm2, %v9255_v0, %v9259_v47  ;;  %v15124_v26 = vpop.f32.mrf.mxu0  ;;  %v15672_v47 = vld [vmem:[#allocation16_spill] sm:$0xff] }
 0x4f3   : > { %v9046_v48 = vpop.f32.mrf.mxu1 }
 0x4f4   : > { %9749 = vst [vmem:[%s15083_s26 + $0x10] sm:$0xff] %v9717_v59  ;;  %v9122_v55 = vadd.f32 %v9046_v48, %v8696_v22  ;;  %v9655_v59 = vunpack.c.l.bf16 %v9260_v5  ;;  %v9265_v22 = vrot.slane %v9264_v4, 4  ;;  %v9269_v48 = vrot.slane %v9267_v38, 5  ;;  %v15129_v57 = vpop.f32.mrf.mxu2 }
 0x4f5   : > { %v8698_v38 = vadd.f32 %v14999_v54, %v14936_v15 }
 0x4f6   : > { %v9622_v24 = vadd.f32 %v15069_v49, %v9122_v55  ;;  %v9274_v55 = vrot.slane %v9272_v50, 4  ;;  %v9270_v21 = vsel %vm11888_vm2, %v9265_v22, %v9269_v48  ;;  %v11264_v48 = vld [vmem:[%s11856_s6 + $0x38] sm:$0x1] }
 0x4f8   : > { %v9686_v30 = vadd.f32 %v9654_v34, %v9622_v24  ;;  %v9277_v34 = vrot.slane %v9275_v35, 5  ;;  %v11263_v24 = vld [vmem:[%s11856_s6 + $0x34] sm:$0xf] }
 0x4f9   : > { %v9285_v4 = vshrl.u32 %v11263_v24, 16 }
 0x4fa   : > { %v9718_v17 = vmax.f32 %v9686_v30, 0.0  ;;  %v9278_v29 = vor.u32 %v9277_v34, %v9274_v55  ;;  %v9281_v30 = vshll.u32 %v11263_v24, 16  ;;  %v15141_v55 = vpop.f32.mrf.mxu0 }
 0x4fb   : > { %v9049_v2 = vpop.f32.mrf.mxu1 }
 0x4fc   : > { %9750 = vst [vmem:[%s15083_s26 + $0x18] sm:$0xff] %v9718_v17  ;;  %v9123_v63 = vadd.f32 %v9049_v2, %v8697_v42  ;;  %v9656_v17 = vunpack.c.l.bf16 %v9270_v21  ;;  %v15136_v42 = vpop.f32.mrf.mxu3  ;;  %v9279_v2 = vrot.slane %v9278_v29, 4  ;;  %v15143_v54 = vpop.f32.mrf.mxu2  ;;  %v9291_v21 = vshll.u32 %v11264_v48, 16 }
 0x4fe   : > { %v9623_v0 = vadd.f32 %v15069_v49, %v9123_v63  ;;  %9088 = vmatmul.bf16.gmra.mxu1 %v15672_v47  ;;  %v9283_v63 = vrot.slane %v9281_v30, 5  ;;  %v8699_v30 = vadd.f32 %v15015_v32, %v14947_v61 }
 0x500   : > { %v9687_v37 = vadd.f32 %v9655_v59, %v9623_v0  ;;  %v9287_v59 = vrot.slane %v9285_v4, 4  ;;  %v11265_v0 = vld [vmem:[%s11856_s6 + $0x3c] sm:$0xf]  ;;  %v9284_v24 = vsel %vm11888_vm2, %v9279_v2, %v9283_v63 }
 0x501   : > { %v9296_v47 = vshrl.u32 %v11265_v0, 16  ;;  %v9299_v15 = vshll.u32 %v11265_v0, 16  ;;  %v11266_v0 = vld [vmem:[%s11856_s6 + $0x40] sm:$0xf] }
 0x502   : > { %v9719_v5 = vmax.f32 %v9687_v37, 0.0  ;;  %v9288_v37 = vor.u32 %v9287_v59, %v9283_v63  ;;  %v9305_v48 = vshll.u32 %v11266_v0, 16  ;;  %v9309_v32 = vshrl.u32 %v11266_v0, 16 }
 0x503   : > { %v9051_v50 = vpop.f32.mrf.mxu1 }
 0x504   : > { %9751 = vst [vmem:[%s15083_s26 + $0x20] sm:$0xff] %v9719_v5  ;;  %v9124_v35 = vadd.f32 %v9051_v50, %v8698_v38  ;;  %v9657_v38 = vunpack.c.l.bf16 %v9284_v24  ;;  %v9298_v50 = vrot.slane %v9296_v47, 4  ;;  %v15153_v2 = vpop.f32.mrf.mxu3 }
 0x506   : > { %v9624_v22 = vadd.f32 %v15069_v49, %v9124_v35  ;;  %v9301_v35 = vrot.slane %v9299_v15, 5  ;;  %v15159_v15 = vpop.f32.mrf.mxu0 }
 0x508   : > { %v9688_v34 = vadd.f32 %v9656_v17, %v9624_v22  ;;  %v9289_v17 = vrot.slane %v9288_v37, 4  ;;  %v9293_v22 = vrot.slane %v9291_v21, 5  ;;  %v9302_v59 = vor.u32 %v9301_v35, %v9298_v50  ;;  %v15163_v37 = vpop.f32.mrf.mxu2  ;;  %v11267_v50 = vld [vmem:[%s11856_s6 + $0x44] sm:$0x1]  ;;  %v11268_v35 = vld [vmem:[%s11856_s6 + $0x48] sm:$0xf] }
 0x509   : > { %v9315_v0 = vshll.u32 %v11267_v50, 16 }
 0x50a   : > { %v9720_v29 = vmax.f32 %v9688_v34, 0.0  ;;  %v9294_v61 = vsel %vm11888_vm2, %v9289_v17, %v9293_v22  ;;  %v15674_v34 = vld [vmem:[#allocation22_spill] sm:$0xff] }
 0x50b   : > { %v9054_v4 = vpop.f32.mrf.mxu1  ;;  %v7704_v47 = vadd.f32 %v15077_v43, %v15674_v34 }
 0x50c   : > { %9752 = vst [vmem:[%s15083_s26 + $0x28] sm:$0xff] %v9720_v29  ;;  %v9125_v5 = vadd.f32 %v9054_v4, %v8699_v30  ;;  %v9658_v29 = vunpack.c.l.bf16 %v9294_v61  ;;  %v9303_v30 = vrot.slane %v9302_v59, 4  ;;  %v9307_v4 = vrot.slane %v9305_v48, 5  ;;  %v15675_v59 = vld [vmem:[#allocation29_spill] sm:$0xff] }
 0x50d   : > { %v9323_v61 = vshll.u32 %v11268_v35, 16  ;;  %v7705_v48 = vadd.f32 %v15097_v46, %v15675_v59 }
 0x50e   : > { %v9625_v13 = vadd.f32 %v15069_v49, %v9125_v5  ;;  %9093 = vmatmul.bf16.gmra.mxu1 %v15673_v9  ;;  %v8700_v9 = vadd.f32 %v15028_v6, %v14963_v10  ;;  %v9311_v5 = vrot.slane %v9309_v32, 4  ;;  %v9308_v10 = vsel %vm11888_vm2, %v9303_v30, %v9307_v4  ;;  %v15172_v6 = vpop.f32.mrf.mxu3 }
 0x510   : > { %v9689_v63 = vadd.f32 %v9657_v38, %v9625_v13  ;;  %v8019_v38 = vadd.f32 %v15089_v56, %v7704_v47  ;;  %v9312_v22 = vor.u32 %v9311_v5, %v9307_v4  ;;  %v15177_v47 = vpop.f32.mrf.mxu0  ;;  %v9325_v4 = vrot.slane %v9323_v61, 5 }
 0x511   : > { %v8020_v5 = vadd.f32 %v15103_v12, %v7705_v48 }
 0x512   : > { %v9721_v24 = vmax.f32 %v9689_v63, 0.0  ;;  %v9320_v63 = vshrl.u32 %v11268_v35, 16  ;;  %v8701_v32 = vadd.f32 %v15093_v19, %v8019_v38  ;;  %v11269_v19 = vld [vmem:[%s11856_s6 + $0x4c] sm:$0xf] }
 0x513   : > { %v9056_v13 = vpop.f32.mrf.mxu1  ;;  %v8702_v12 = vadd.f32 %v15109_v27, %v8020_v5 }
 0x514   : > { %9753 = vst [vmem:[%s15083_s26 + $0x30] sm:$0xff] %v9721_v24  ;;  %v9126_v21 = vadd.f32 %v9056_v13, %v8700_v9  ;;  %v9659_v9 = vunpack.c.l.bf16 %v9308_v10  ;;  %v15180_v13 = vpop.f32.mrf.mxu2  ;;  %v9322_v30 = vrot.slane %v9320_v63, 4  ;;  %v9333_v10 = vshrl.u32 %v11269_v19, 16 }
 0x516   : > { %v9626_v43 = vadd.f32 %v15069_v49, %v9126_v21  ;;  %v9313_v21 = vrot.slane %v9312_v22, 4  ;;  %v9326_v35 = vor.u32 %v9325_v4, %v9322_v30  ;;  %v15677_v22 = vld [vmem:[#allocation28_spill] sm:$0xff]  ;;  %v15191_v61 = vpop.f32.mrf.mxu3 }
 0x517   : > { %v11270_v30 = vld [vmem:[%s11856_s6 + $0x50] sm:$0x1] }
 0x518   : > { %v9690_v17 = vadd.f32 %v9658_v29, %v9626_v43  ;;  %v9317_v29 = vrot.slane %v9315_v0, 5  ;;  %v15676_v43 = vld [vmem:[#allocation45_spill] sm:$0xff]  ;;  %v7706_v0 = vadd.f32 %v15112_v7, %v15677_v22 }
 0x51a   : > { %v9722_v56 = vmax.f32 %v9690_v17, 0.0  ;;  %v9318_v50 = vsel %vm11888_vm2, %v9313_v21, %v9317_v29  ;;  %v9329_v17 = vshll.u32 %v11269_v19, 16  ;;  %v8021_v21 = vadd.f32 %v15121_v31, %v7706_v0  ;;  %v15196_v29 = vpop.f32.mrf.mxu0 }
 0x51b   : > { %v9059_v34 = vpop.f32.mrf.mxu1 }
 0x51c   : > { %9754 = vst [vmem:[%s15083_s26 + $0x38] sm:$0xff] %v9722_v56  ;;  %v9127_v24 = vadd.f32 %v9059_v34, %v8701_v32  ;;  %v9660_v56 = vunpack.c.l.bf16 %v9318_v50  ;;  %v9327_v32 = vrot.slane %v9326_v35, 4  ;;  %v9331_v34 = vrot.slane %v9329_v17, 5  ;;  %v15200_v4 = vpop.f32.mrf.mxu2  ;;  %v15678_v50 = vld [vmem:[#allocation31_spill] sm:$0xff] }
 0x51d   : > { %v7707_v35 = vadd.f32 %v15129_v57, %v15678_v50  ;;  %v8703_v17 = vadd.f32 %v15124_v26, %v8021_v21 }
 0x51e   : > { %v9627_v46 = vadd.f32 %v15069_v49, %v9127_v24  ;;  %9098 = vmatmul.bf16.gmra.mxu1 %v15676_v43  ;;  %v9335_v24 = vrot.slane %v9333_v10, 4  ;;  %v9332_v43 = vsel %vm11888_vm2, %v9327_v32, %v9331_v34  ;;  %v11272_v32 = vld [vmem:[%s11856_s6 + $0x58] sm:$0xf] }
 0x51f   : > { %v9661_v0 = vunpack.c.l.bf16 %v9332_v43  ;;  %v9353_v21 = vshll.u32 %v11272_v32, 16 }
 0x520   : > { %v9691_v38 = vadd.f32 %v9659_v9, %v9627_v46  ;;  %v11271_v9 = vld [vmem:[%s11856_s6 + $0x54] sm:$0xf]  ;;  %v9336_v19 = vor.u32 %v9335_v24, %v9331_v34  ;;  %v8022_v34 = vadd.f32 %v15136_v42, %v7707_v35  ;;  %v7708_v42 = vadd.f32 %v15143_v54, %v14855_v62 }
 0x521   : > { %v9344_v5 = vshrl.u32 %v11271_v9, 16  ;;  %v9347_v46 = vshll.u32 %v11271_v9, 16  ;;  %v9355_v50 = vrot.slane %v9353_v21, 5 }
 0x522   : > { %v9723_v63 = vmax.f32 %v9691_v38, 0.0  ;;  %v9339_v38 = vshll.u32 %v11270_v30, 16  ;;  %v15214_v57 = vpop.f32.mrf.mxu0 }
 0x523   : > { %v9061_v59 = vpop.f32.mrf.mxu1 }
 0x524   : > { %9755 = vst [vmem:[%s15083_s26 + $0x40] sm:$0xff] %v9723_v63  ;;  %v9128_v48 = vadd.f32 %v9061_v59, %v8702_v12  ;;  %v9346_v63 = vrot.slane %v9344_v5, 4  ;;  %v9349_v12 = vrot.slane %v9347_v46, 5  ;;  %v15208_v59 = vpop.f32.mrf.mxu3  ;;  %v8704_v46 = vadd.f32 %v15141_v55, %v8022_v34 }
 0x526   : > { %v9628_v7 = vadd.f32 %v15069_v49, %v9128_v48  ;;  %v9337_v48 = vrot.slane %v9336_v19, 4  ;;  %v9350_v9 = vor.u32 %v9349_v12, %v9346_v63 }
 0x528   : > { %v9692_v27 = vadd.f32 %v9660_v56, %v9628_v7  ;;  %v9341_v56 = vrot.slane %v9339_v38, 5  ;;  %v15216_v7 = vpop.f32.mrf.mxu2  ;;  %v9351_v38 = vrot.slane %v9350_v9, 4  ;;  %v8896_v9 = vrot.slane %v15005_v11, 5 }
 0x529   : > { %v8899_v11 = vrot.slane %v15007_v44, 5 }
 0x52a   : > { %v9724_v31 = vmax.f32 %v9692_v27, 0.0  ;;  %v9342_v30 = vsel %vm11888_vm2, %v9337_v48, %v9341_v56  ;;  %v9357_v27 = vshrl.u32 %v11272_v32, 16  ;;  %v9356_v55 = vsel %vm11888_vm2, %v9351_v38, %v9355_v50  ;;  %v15234_v32 = vpop.f32.mrf.mxu0 }
 0x52b   : > { %v9064_v10 = vpop.f32.mrf.mxu1  ;;  %v9662_v19 = vunpack.c.l.bf16 %v9342_v30  ;;  %v7709_v56 = vadd.f32 %v15163_v37, %v14882_v14  ;;  %v9663_v30 = vunpack.c.l.bf16 %v9356_v55 }
 0x52c   : > { %9756 = vst [vmem:[%s15083_s26 + $0x48] sm:$0xff] %v9724_v31  ;;  %v9129_v22 = vadd.f32 %v9064_v10, %v8703_v17  ;;  %v9359_v35 = vrot.slane %v9357_v27, 4  ;;  %v8023_v31 = vadd.f32 %v15153_v2, %v7708_v42  ;;  %v11273_v10 = vld [vmem:[%s11856_s6 + $0x5c] sm:$0x1]  ;;  %v8740_v27 = vld [vmem:[#allocation2 + $0xcc] sm:$0xe] }
 0x52d   : > { %v9363_v63 = vshll.u32 %v11273_v10, 16  ;;  %v8024_v14 = vadd.f32 %v15172_v6, %v7709_v56  ;;  %v7710_v10 = vadd.f32 %v15180_v13, %v14900_v52 }
 0x52e   : > { %v9629_v24 = vadd.f32 %v15069_v49, %v9129_v22  ;;  %9103 = vmatmul.bf16.gmra.mxu1 %v14846_v53  ;;  %v11274_v22 = vld [vmem:[%s11856_s6 + $0x60] sm:$0xf]  ;;  %v9360_v54 = vor.u32 %v9359_v35, %v9355_v50  ;;  %v8705_v34 = vadd.f32 %v15159_v15, %v8023_v31  ;;  %v11275_v15 = vld [vmem:[%s11856_s6 + $0x64] sm:$0xf] }
 0x52f   : > { %v9368_v12 = vshrl.u32 %v11274_v22, 16  ;;  %v9371_v48 = vshll.u32 %v11274_v22, 16  ;;  %v9381_v6 = vshrl.u32 %v11275_v15, 16  ;;  %v8706_v22 = vadd.f32 %v15177_v47, %v8024_v14 }
 0x530   : > { %v9693_v26 = vadd.f32 %v9661_v0, %v9629_v24  ;;  %v15228_v0 = vpop.f32.mrf.mxu3  ;;  %v15237_v24 = vpop.f32.mrf.mxu2  ;;  %v9361_v42 = vrot.slane %v9360_v54, 4  ;;  %v8025_v47 = vadd.f32 %v15191_v61, %v7710_v10 }
 0x531   : > { %v9383_v13 = vrot.slane %v9381_v6, 4  ;;  %v11278_v6 = vld [vmem:[%s11856_s6 + $0x70] sm:$0xf] }
 0x532   : > { %v9725_v5 = vmax.f32 %v9693_v26, 0.0  ;;  %v15257_v54 = vpop.f32.mrf.mxu0  ;;  %v8707_v61 = vadd.f32 %v15196_v29, %v8025_v47 }
 0x533   : > { %v9066_v53 = vpop.f32.mrf.mxu1 }
 0x534   : > { %9757 = vst [vmem:[%s15083_s26 + $0x50] sm:$0xff] %v9725_v5  ;;  %v9130_v43 = vadd.f32 %v9066_v53, %v8704_v46  ;;  %v9365_v5 = vrot.slane %v9363_v63, 5  ;;  %v9370_v46 = vrot.slane %v9368_v12, 4  ;;  %v9373_v53 = vrot.slane %v9371_v48, 5 }
 0x536   : > { %v9630_v17 = vadd.f32 %v15069_v49, %v9130_v43  ;;  %v11220_v43 = vrot.slane %v8740_v27, 9  ;;  %v9366_v35 = vsel %vm11888_vm2, %v9361_v42, %v9365_v5  ;;  %v9374_v31 = vor.u32 %v9373_v53, %v9370_v46 }
 0x537   : > { %v9664_v12 = vunpack.c.l.bf16 %v9366_v35  ;;  %v9387_v46 = vshll.u32 %v11276_v39, 16  ;;  %v7711_v53 = vadd.f32 %v15200_v4, %v14911_v60 }
 0x538   : > { %v9694_v62 = vadd.f32 %v9662_v19, %v9630_v17  ;;  %v8898_v19 = vrot.slane %v8896_v9, 4  ;;  %v15246_v50 = vpop.f32.mrf.mxu3  ;;  %v9377_v17 = vshll.u32 %v11275_v15, 16  ;;  %v8897_v44 = vsel %vm12191_vm5, %v11220_v43, %v8896_v9  ;;  %v15260_v48 = vpop.f32.mrf.mxu2 }
 0x539   : > { %v9375_v56 = vrot.slane %v9374_v31, 4  ;;  %v8026_v10 = vadd.f32 %v15208_v59, %v7711_v53 }
 0x53a   : > { %v9726_v2 = vmax.f32 %v9694_v62, 0.0  ;;  %v8900_v55 = vsel %vm12191_vm5, %v8898_v19, %v8899_v11  ;;  %v9379_v52 = vrot.slane %v9377_v17, 5  ;;  %v9389_v17 = vrot.slane %v9387_v46, 5 }
 0x53b   : > { %v9069_v26 = vpop.f32.mrf.mxu1  ;;  %v8949_v9 = vunpack.c.l.b16 %v8900_v55  ;;  %v9405_v55 = vshrl.u32 %v11278_v6, 16 }
 0x53c   : > { %9758 = vst [vmem:[%s15083_s26 + $0x58] sm:$0xff] %v9726_v2  ;;  %v9131_v21 = vadd.f32 %v9069_v26, %v8705_v34  ;;  %v11277_v2 = vld [vmem:[%s11856_s6 + $0x6c] sm:$0xf]  ;;  %v8948_v26 = vunpack.c.l.b16 %v8897_v44  ;;  %v9380_v42 = vsel %vm11888_vm2, %v9375_v56, %v9379_v52  ;;  %v9384_v5 = vor.u32 %v9383_v13, %v9379_v52 }
 0x53d   : > { %v9395_v27 = vshll.u32 %v11277_v2, 16  ;;  %v9665_v11 = vunpack.c.l.bf16 %v9380_v42 }
 0x53e   : > { %v9631_v37 = vadd.f32 %v15069_v49, %v9131_v21  ;;  %9108 = vmatmul.bf16.gmra.mxu1 %v14868_v36  ;;  %v9385_v31 = vrot.slane %v9384_v5, 4 }
 0x53f   : > { %v9397_v35 = vrot.slane %v9395_v27, 5 }
 0x540   : > { %v9695_v38 = vadd.f32 %v9663_v30, %v9631_v37  ;;  %v9392_v30 = vshrl.u32 %v11277_v2, 16  ;;  %v8965_v37 = vpack.c.b16 %v8949_v9, %v8948_v26  ;;  %v15271_v15 = vpop.f32.mrf.mxu3  ;;  %v15279_v29 = vpop.f32.mrf.mxu2  ;;  %v9390_v44 = vsel %vm11888_vm2, %v9385_v31, %v9389_v17 }
 0x541   : > { %v9666_v13 = vunpack.c.l.bf16 %v9390_v44  ;;  %v9407_v26 = vrot.slane %v9405_v55, 4 }
 0x542   : > { %v9727_v36 = vmax.f32 %v9695_v38, 0.0  ;;  %v9394_v38 = vrot.slane %v9392_v30, 4  ;;  %v11280_v30 = vld [vmem:[%s11856_s6 + $0x78] sm:$0xf] }
 0x543   : > { %v9071_v62 = vpop.f32.mrf.mxu1  ;;  %v9416_v46 = vshrl.u32 %v11280_v30, 16  ;;  %v9419_v53 = vshll.u32 %v11280_v30, 16 }
 0x544   : > { %9759 = vst [vmem:[%s15083_s26 + $0x60] sm:$0xff] %v9727_v36  ;;  %v9132_v63 = vadd.f32 %v9071_v62, %v8706_v22  ;;  %v15276_v36 = vpop.f32.mrf.mxu0  ;;  %v9398_v22 = vor.u32 %v9397_v35, %v9394_v38  ;;  %v9401_v62 = vshll.u32 %v11278_v6, 16 }
 0x545   : > { %v9418_v35 = vrot.slane %v9416_v46, 4  ;;  %v9421_v31 = vrot.slane %v9419_v53, 5 }
 0x546   : > { %v9632_v34 = vadd.f32 %v15069_v49, %v9132_v63  ;;  %v7712_v63 = vadd.f32 %v15216_v7, %v14922_v23  ;;  %v9399_v2 = vrot.slane %v9398_v22, 4  ;;  %v9403_v47 = vrot.slane %v9401_v62, 5 }
 0x547   : > { %v7714_v62 = vadd.f32 %v15260_v48, %v14949_v33  ;;  %v11282_v48 = vld [vmem:[%s11856_s6 + $0x80] sm:$0x1] }
 0x548   : > { %v9696_v21 = vadd.f32 %v9664_v12, %v9632_v34  ;;  %v8708_v12 = vadd.f32 %v15214_v57, %v8026_v10  ;;  %v15287_v34 = vpop.f32.mrf.mxu3  ;;  %v8027_v9 = vadd.f32 %v15228_v0, %v7712_v63  ;;  %v9404_v57 = vsel %vm11888_vm2, %v9399_v2, %v9403_v47  ;;  %v15297_v27 = vpop.f32.mrf.mxu2  ;;  %v11281_v10 = vld [vmem:[%s11856_s6 + $0x7c] sm:$0xf] }
 0x549   : > { %v9408_v42 = vor.u32 %v9407_v26, %v9403_v47  ;;  %v7713_v0 = vadd.f32 %v15237_v24, %v14938_v25  ;;  %v9425_v24 = vshll.u32 %v11281_v10, 16  ;;  %v9429_v22 = vshrl.u32 %v11281_v10, 16  ;;  %v11283_v47 = vld [vmem:[%s11856_s6 + $0x84] sm:$0xf] }
 0x54a   : > { %v9728_v14 = vmax.f32 %v9696_v21, 0.0  ;;  %v11279_v21 = vld [vmem:[%s11856_s6 + $0x74] sm:$0x1]  ;;  %v8029_v26 = vadd.f32 %v15271_v15, %v7714_v62  ;;  %v7716_v10 = vadd.f32 %v15297_v27, %v14971_v51 }
 0x54b   : > { %v9074_v43 = vpop.f32.mrf.mxu1  ;;  %v9411_v5 = vshll.u32 %v11279_v21, 16  ;;  %v8028_v17 = vadd.f32 %v15246_v50, %v7713_v0  ;;  %v9431_v2 = vrot.slane %v9429_v22, 4  ;;  %v9443_v21 = vshll.u32 %v11283_v47, 16 }
 0x54c   : > { %9760 = vst [vmem:[%s15083_s26 + $0x68] sm:$0xff] %v9728_v14  ;;  %v9133_v19 = vadd.f32 %v9074_v43, %v8707_v61  ;;  %v15293_v23 = vpop.f32.mrf.mxu0  ;;  %v8709_v61 = vadd.f32 %v15234_v32, %v8027_v9  ;;  %v9422_v32 = vor.u32 %v9421_v31, %v9418_v35  ;;  %v8711_v46 = vadd.f32 %v15276_v36, %v8029_v26 }
 0x54d   : > { %v9413_v38 = vrot.slane %v9411_v5, 5  ;;  %v8710_v50 = vadd.f32 %v15257_v54, %v8028_v17 }
 0x54e   : > { %v9633_v60 = vadd.f32 %v15069_v49, %v9133_v19  ;;  %9113 = vmatmul.bf16.gmra.mxu1 %v8965_v37  ;;  %v9667_v19 = vunpack.c.l.bf16 %v9404_v57  ;;  %v9435_v57 = vshll.u32 %v11282_v48, 16 }
 0x550   : > { %v9697_v4 = vadd.f32 %v9665_v11, %v9633_v60  ;;  %v9409_v11 = vrot.slane %v9408_v42, 4  ;;  %v7981_v60 = vpop.f32.mrf.mxu3  ;;  %v15313_v63 = vpop.f32.mrf.mxu2  ;;  %v7715_v42 = vadd.f32 %v15279_v29, %v14965_v1 }
 0x551   : > { %v7717_v48 = vadd.f32 %v15313_v63, %v14984_v18 }
 0x552   : > { %v9729_v59 = vmax.f32 %v9697_v4, 0.0  ;;  %v9414_v25 = vsel %vm11888_vm2, %v9409_v11, %v9413_v38  ;;  %v9437_v11 = vrot.slane %v9435_v57, 5  ;;  %v11284_v38 = vld [vmem:[%s11856_s6 + $0x88] sm:$0xf]  ;;  %v8030_v35 = vadd.f32 %v15287_v34, %v7715_v42 }
 0x553   : > { %v9076_v56 = vpop.f32.mrf.mxu1  ;;  %v9449_v36 = vshll.u32 %v11284_v38, 16 }
 0x554   : > { %9761 = vst [vmem:[%s15083_s26 + $0x70] sm:$0xff] %v9729_v59  ;;  %v9134_v52 = vadd.f32 %v9076_v56, %v8708_v12  ;;  %v15310_v44 = vpop.f32.mrf.mxu0  ;;  %v9668_v56 = vunpack.c.l.bf16 %v9414_v25  ;;  %v8712_v25 = vadd.f32 %v15293_v23, %v8030_v35 }
 0x556   : > { %v9634_v39 = vadd.f32 %v15069_v49, %v9134_v52  ;;  %v9423_v52 = vrot.slane %v9422_v32, 4 }
 0x558   : > { %v9698_v7 = vadd.f32 %v9666_v13, %v9634_v39  ;;  %v9427_v13 = vrot.slane %v9425_v24, 5  ;;  %v9440_v39 = vshrl.u32 %v11283_v47, 16  ;;  %v7983_v54 = vpop.f32.mrf.mxu3 }
 0x55a   : > { %v9730_v14 = vmax.f32 %v9698_v7, 0.0  ;;  %v9428_v30 = vsel %vm11888_vm2, %v9423_v52, %v9427_v13  ;;  %v9432_v7 = vor.u32 %v9431_v2, %v9427_v13  ;;  %v11285_v52 = vld [vmem:[%s11856_s6 + $0x8c] sm:$0x1]  ;;  %v11286_v13 = vld [vmem:[%s11856_s6 + $0x90] sm:$0xf] }
 0x55b   : > { %v9079_v37 = vpop.f32.mrf.mxu1  ;;  %v9459_v47 = vshll.u32 %v11285_v52, 16  ;;  %v9464_v26 = vshrl.u32 %v11286_v13, 16 }
 0x55c   : > { %9762 = vst [vmem:[%s15083_s26 + $0x78] sm:$0xff] %v9730_v14  ;;  %v9135_v43 = vadd.f32 %v9079_v37, %v8709_v61  ;;  %v15325_v53 = vpop.f32.mrf.mxu0  ;;  %v9669_v14 = vunpack.c.l.bf16 %v9428_v30  ;;  %v9442_v61 = vrot.slane %v9440_v39, 4  ;;  %v9445_v37 = vrot.slane %v9443_v21, 5 }
 0x55d   : > { %v9461_v42 = vrot.slane %v9459_v47, 5 }
 0x55e   : > { %v9635_v6 = vadd.f32 %v15069_v49, %v9135_v43  ;;  %v7671_v43 = vpop.f32.mrf.mxu2  ;;  %v9446_v31 = vor.u32 %v9445_v37, %v9442_v61 }
 0x560   : > { %v9699_v4 = vadd.f32 %v9667_v19, %v9635_v6  ;;  %v9433_v19 = vrot.slane %v9432_v7, 4  ;;  %v9453_v6 = vshrl.u32 %v11284_v38, 16  ;;  %v7986_v32 = vpop.f32.mrf.mxu3  ;;  %v9447_v62 = vrot.slane %v9446_v31, 4 }
 0x561   : > { %v7718_v38 = vadd.f32 %v7671_v43, %v14992_v58 }
 0x562   : > { %v9731_v55 = vmax.f32 %v9699_v4, 0.0  ;;  %v9438_v17 = vsel %vm11888_vm2, %v9433_v19, %v9437_v11 }
 0x563   : > { %v9081_v59 = vpop.f32.mrf.mxu1  ;;  %v9670_v22 = vunpack.c.l.bf16 %v9438_v17 }
 0x564   : > { %9763 = vst [vmem:[%s15083_s26 + $0x80] sm:$0xff] %v9731_v55  ;;  %v9136_v12 = vadd.f32 %v9081_v59, %v8710_v50  ;;  %v9451_v55 = vrot.slane %v9449_v36, 5  ;;  %v9455_v50 = vrot.slane %v9453_v6, 4  ;;  %v8031_v59 = vadd.f32 %v7981_v60, %v7716_v10  ;;  %v11289_v10 = vld [vmem:[%s11856_s6 + $0x9c] sm:$0xf] }
 0x565   : > { %v9491_v58 = vshll.u32 %v11289_v10, 16 }
 0x566   : > { %v9636_v33 = vadd.f32 %v15069_v49, %v9136_v12  ;;  %v8668_v12 = vpop.f32.mrf.mxu0  ;;  %v7673_v2 = vpop.f32.mrf.mxu2  ;;  %v9452_v23 = vsel %vm11888_vm2, %v9447_v62, %v9451_v55  ;;  %v9456_v27 = vor.u32 %v9455_v50, %v9451_v55  ;;  %v9488_v62 = vshrl.u32 %v11289_v10, 16 }
 0x567   : > { %v9671_v30 = vunpack.c.l.bf16 %v9452_v23  ;;  %v7719_v50 = vadd.f32 %v7673_v2, %v15003_v8  ;;  %v9493_v47 = vrot.slane %v9491_v58, 5 }
 0x568   : > { %v9700_v9 = vadd.f32 %v9668_v56, %v9636_v33  ;;  %v9467_v33 = vshll.u32 %v11286_v13, 16  ;;  %v7988_v7 = vpop.f32.mrf.mxu3  ;;  %v9457_v57 = vrot.slane %v9456_v27, 4  ;;  %v9490_v27 = vrot.slane %v9488_v62, 4 }
 0x56a   : > { %v9732_v5 = vmax.f32 %v9700_v9, 0.0  ;;  %v8713_v9 = vadd.f32 %v15310_v44, %v8031_v59  ;;  %v9462_v44 = vsel %vm11888_vm2, %v9457_v57, %v9461_v42 }
 0x56b   : > { %v9084_v15 = vpop.f32.mrf.mxu1  ;;  %v9672_v31 = vunpack.c.l.bf16 %v9462_v44 }
 0x56c   : > { %9764 = vst [vmem:[%s15083_s26 + $0x88] sm:$0xff] %v9732_v5  ;;  %v9137_v0 = vadd.f32 %v9084_v15, %v8711_v46  ;;  %v9466_v5 = vrot.slane %v9464_v26, 4  ;;  %v9469_v46 = vrot.slane %v9467_v33, 5  ;;  %v8032_v15 = vadd.f32 %v7983_v54, %v7717_v48  ;;  %v11290_v48 = vld [vmem:[%s11856_s6 + $0xa0] sm:$0xf] }
 0x56d   : > { %v9497_v8 = vshll.u32 %v11290_v48, 16 }
 0x56e   : > { %v9637_v1 = vadd.f32 %v15069_v49, %v9137_v0  ;;  %v8670_v61 = vpop.f32.mrf.mxu0  ;;  %v7676_v18 = vpop.f32.mrf.mxu2  ;;  %v9470_v63 = vor.u32 %v9469_v46, %v9466_v5 }
 0x56f   : > { %v7720_v57 = vadd.f32 %v7676_v18, %v15017_v20  ;;  %v11291_v18 = vld [vmem:[%s11856_s6 + $0xa4] sm:$0x1] }
 0x570   : > { %v9701_v29 = vadd.f32 %v9669_v14, %v9637_v1  ;;  %v11287_v14 = vld [vmem:[%s11856_s6 + $0x94] sm:$0xf]  ;;  %v8714_v1 = vadd.f32 %v15325_v53, %v8032_v15  ;;  %v9471_v36 = vrot.slane %v9470_v63, 4 }
 0x571   : > { %v9473_v19 = vshll.u32 %v11287_v14, 16  ;;  %v9477_v11 = vshrl.u32 %v11287_v14, 16  ;;  %v9499_v14 = vrot.slane %v9497_v8, 5 }
 0x572   : > { %v9733_v4 = vmax.f32 %v9701_v29, 0.0 }
 0x573   : > { %v9086_v24 = vpop.f32.mrf.mxu1  ;;  %v9475_v17 = vrot.slane %v9473_v19, 5  ;;  %v9479_v6 = vrot.slane %v9477_v11, 4  ;;  %v15369_v19 = vld [vmem:[%s15460_s4] ss:$0 sm:$0xff] }
 0x574   : > { %9765 = vst [vmem:[%s15083_s26 + $0x90] sm:$0xff] %v9733_v4  ;;  %v9138_v34 = vadd.f32 %v9086_v24, %v8712_v25  ;;  %v8033_v4 = vadd.f32 %v7986_v32, %v7718_v38  ;;  %v11288_v24 = vld [vmem:[%s11856_s6 + $0x98] sm:$0x1] }
 0x575   : > { %v9476_v53 = vsel %vm11888_vm2, %v9471_v36, %v9475_v17  ;;  %v9480_v43 = vor.u32 %v9479_v6, %v9475_v17  ;;  %v9483_v55 = vshll.u32 %v11288_v24, 16 }
 0x576   : > { %v9638_v56 = vadd.f32 %v15069_v49, %v9138_v34  ;;  %v7991_v34 = vpop.f32.mrf.mxu3  ;;  %v8673_v59 = vpop.f32.mrf.mxu0  ;;  %v8715_v52 = vadd.f32 %v8668_v12, %v8033_v4  ;;  %v9673_v23 = vunpack.c.l.bf16 %v9476_v53 }
 0x577   : > { %v7678_v32 = vpop.f32.mrf.mxu2  ;;  %v9481_v26 = vrot.slane %v9480_v43, 4  ;;  %v9485_v33 = vrot.slane %v9483_v55, 5  ;;  %v8035_v63 = vadd.f32 %v7991_v34, %v7720_v57  ;;  %v11293_v55 = vld [vmem:[%s11856_s6 + $0xac] sm:$0xf] }
 0x578   : > { %v9702_v51 = vadd.f32 %v9670_v22, %v9638_v56 }
 0x579   : > { %v9486_v12 = vsel %vm11888_vm2, %v9481_v26, %v9485_v33  ;;  %v8717_v17 = vadd.f32 %v8673_v59, %v8035_v63 }
 0x57a   : > { %v9734_v60 = vmax.f32 %v9702_v51, 0.0 }
 0x57b   : > { %v9089_v39 = vpop.f32.mrf.mxu1 }
 0x57c   : > { %9766 = vst [vmem:[%s15083_s26 + $0x98] sm:$0xff] %v9734_v60  ;;  %v9139_v21 = vadd.f32 %v9089_v39, %v8713_v9  ;;  %v8034_v60 = vadd.f32 %v7988_v7, %v7719_v50 }
 0x57e   : > { %v9639_v0 = vadd.f32 %v15069_v49, %v9139_v21  ;;  %v9494_v21 = vor.u32 %v9493_v47, %v9490_v27  ;;  %v7993_v2 = vpop.f32.mrf.mxu3  ;;  %v8716_v5 = vadd.f32 %v8670_v61, %v8034_v60  ;;  %v8675_v15 = vpop.f32.mrf.mxu0  ;;  %v11292_v61 = vld [vmem:[%s11856_s6 + $0xa8] sm:$0xf] }
 0x580   : > { %v9703_v37 = vadd.f32 %v9671_v30, %v9639_v0  ;;  %v9501_v30 = vshrl.u32 %v11290_v48, 16  ;;  %v9674_v0 = vunpack.c.l.bf16 %v9486_v12 }
 0x582   : > { %v9735_v35 = vmax.f32 %v9703_v37, 0.0  ;;  %v7681_v37 = vpop.f32.mrf.mxu2  ;;  %v9503_v44 = vrot.slane %v9501_v30, 4 }
 0x583   : > { %v9091_v54 = vpop.f32.mrf.mxu1 }
 0x584   : > { %9767 = vst [vmem:[%s15083_s26 + $0xa0] sm:$0xff] %v9735_v35  ;;  %v9140_v29 = vadd.f32 %v9091_v54, %v8714_v1  ;;  %v9504_v35 = vor.u32 %v9503_v44, %v9499_v14  ;;  %v9507_v1 = vshll.u32 %v11291_v18, 16  ;;  %v9512_v54 = vshrl.u32 %v11292_v61, 16 }
 0x586   : > { %v9640_v25 = vadd.f32 %v15069_v49, %v9140_v29  ;;  %v9515_v29 = vshll.u32 %v11292_v61, 16  ;;  %v7996_v6 = vpop.f32.mrf.mxu3  ;;  %v9505_v24 = vrot.slane %v9504_v35, 4  ;;  %v9509_v34 = vrot.slane %v9507_v1, 5  ;;  %v8678_v53 = vpop.f32.mrf.mxu0 }
 0x588   : > { %v9704_v22 = vadd.f32 %v9672_v31, %v9640_v25  ;;  %v7721_v31 = vadd.f32 %v7678_v32, %v15026_v3  ;;  %v9517_v62 = vrot.slane %v9515_v29, 5  ;;  %v9510_v3 = vsel %vm11888_vm2, %v9505_v24, %v9509_v34 }
 0x589   : > { %v9525_v32 = vshrl.u32 %v11293_v55, 16  ;;  %v9676_v26 = vunpack.c.l.bf16 %v9510_v3 }
 0x58a   : > { %v9736_v56 = vmax.f32 %v9704_v22, 0.0  ;;  %v9514_v22 = vrot.slane %v9512_v54, 4  ;;  %v8036_v58 = vadd.f32 %v7993_v2, %v7721_v31  ;;  %v7683_v50 = vpop.f32.mrf.mxu2  ;;  %v11294_v2 = vld [vmem:[%s11856_s6 + $0xb0] sm:$0x1] }
 0x58b   : > { %v9094_v13 = vpop.f32.mrf.mxu1 }
 0x58c   : > { %9768 = vst [vmem:[%s15083_s26 + $0xa8] sm:$0xff] %v9736_v56  ;;  %v9141_v51 = vadd.f32 %v9094_v13, %v8715_v52  ;;  %v9518_v59 = vor.u32 %v9517_v62, %v9514_v22  ;;  %v9521_v52 = vshll.u32 %v11293_v55, 16  ;;  %v7722_v13 = vadd.f32 %v7681_v37, %v15033_v45 }
 0x58e   : > { %v9641_v9 = vadd.f32 %v15069_v49, %v9141_v51  ;;  %v9495_v49 = vrot.slane %v9494_v21, 4  ;;  %v7998_v33 = vpop.f32.mrf.mxu3  ;;  %v9519_v48 = vrot.slane %v9518_v59, 4  ;;  %v9523_v60 = vrot.slane %v9521_v52, 5  ;;  %v8680_v12 = vpop.f32.mrf.mxu0 }
 0x58f   : > { %v8037_v21 = vadd.f32 %v7996_v6, %v7722_v13 }
 0x590   : > { %v9705_v39 = vadd.f32 %v9673_v23, %v9641_v9  ;;  %v9500_v38 = vsel %vm11888_vm2, %v9495_v49, %v9499_v14  ;;  %v8718_v23 = vadd.f32 %v8675_v15, %v8036_v58  ;;  %v9527_v9 = vrot.slane %v9525_v32, 4 }
 0x591   : > { %v9675_v25 = vunpack.c.l.bf16 %v9500_v38  ;;  %v9531_v15 = vshll.u32 %v11294_v2, 16  ;;  %v8719_v49 = vadd.f32 %v8678_v53, %v8037_v21 }
 0x592   : > { %v9737_v42 = vmax.f32 %v9705_v39, 0.0  ;;  %v11295_v39 = vld [vmem:[%s11856_s6 + $0xb4] sm:$0xf] }
 0x593   : > { %v9096_v46 = vpop.f32.mrf.mxu1  ;;  %v9536_v57 = vshrl.u32 %v11295_v39, 16  ;;  %v9539_v45 = vshll.u32 %v11295_v39, 16  ;;  %v9533_v61 = vrot.slane %v9531_v15, 5 }
 0x594   : > { %9769 = vst [vmem:[%s15083_s26 + $0xb0] sm:$0xff] %v9737_v42  ;;  %v9142_v7 = vadd.f32 %v9096_v46, %v8716_v5  ;;  %v7686_v42 = vpop.f32.mrf.mxu2  ;;  %v9524_v5 = vsel %vm11888_vm2, %v9519_v48, %v9523_v60  ;;  %v9528_v46 = vor.u32 %v9527_v9, %v9523_v60 }
 0x595   : > { %v9677_v44 = vunpack.c.l.bf16 %v9524_v5  ;;  %v9538_v63 = vrot.slane %v9536_v57, 4  ;;  %v7724_v6 = vadd.f32 %v7686_v42, %v15042_v41  ;;  %v11299_v57 = vld [vmem:[%s11856_s6 + $0xc4] sm:$0xf] }
 0x596   : > { %v9642_v20 = vadd.f32 %v15369_v19, %v9142_v7  ;;  %v7723_v7 = vadd.f32 %v7683_v50, %v15038_v28  ;;  %v9529_v18 = vrot.slane %v9528_v46, 4  ;;  %v8001_v1 = vpop.f32.mrf.mxu3  ;;  %v11297_v50 = vld [vmem:[%s11856_s6 + $0xbc] sm:$0x1]  ;;  %v9569_v46 = vshll.u32 %v11299_v57, 16 }
 0x597   : > { %v9555_v32 = vshll.u32 %v11297_v50, 16  ;;  %v9573_v15 = vshrl.u32 %v11299_v57, 16 }
 0x598   : > { %v9706_v11 = vadd.f32 %v9674_v0, %v9642_v20  ;;  %v9541_v20 = vrot.slane %v9539_v45, 5  ;;  %v8038_v38 = vadd.f32 %v7998_v33, %v7723_v7  ;;  %v9534_v28 = vsel %vm11888_vm2, %v9529_v18, %v9533_v61  ;;  %v15679_v7 = vld [vmem:[#allocation35_spill] sm:$0xff] }
 0x599   : > { %v9678_v22 = vunpack.c.l.bf16 %v9534_v28  ;;  %v9557_v21 = vrot.slane %v9555_v32, 5  ;;  %v9571_v61 = vrot.slane %v9569_v46, 5 }
 0x59a   : > { %v9738_v36 = vmax.f32 %v9706_v11, 0.0  ;;  %v11296_v11 = vld [vmem:[%s11856_s6 + $0xb8] sm:$0xf]  ;;  %v9542_v29 = vor.u32 %v9541_v20, %v9538_v63 }
 0x59b   : > { %v9099_v10 = vpop.f32.mrf.mxu1  ;;  %v9545_v31 = vshll.u32 %v11296_v11, 16 }
 0x59c   : > { %9770 = vst [vmem:[%s15083_s26 + $0xb8] sm:$0xff] %v9738_v36  ;;  %v9143_v4 = vadd.f32 %v9099_v10, %v8717_v17  ;;  %v9549_v36 = vshrl.u32 %v11296_v11, 16  ;;  %v8683_v17 = vpop.f32.mrf.mxu0  ;;  %v9543_v62 = vrot.slane %v9542_v29, 4  ;;  %v9575_v11 = vrot.slane %v9573_v15, 4 }
 0x59d   : > { %v9547_v58 = vrot.slane %v9545_v31, 5 }
 0x59e   : > { %v9643_v43 = vadd.f32 %v15369_v19, %v9143_v4  ;;  %v8720_v4 = vadd.f32 %v8680_v12, %v8038_v38  ;;  %v9551_v53 = vrot.slane %v9549_v36, 4  ;;  %v8003_v59 = vpop.f32.mrf.mxu3  ;;  %v9576_v28 = vor.u32 %v9575_v11, %v9571_v61 }
 0x59f   : > { %v9548_v41 = vsel %vm11888_vm2, %v9543_v62, %v9547_v58 }
 0x5a0   : > { %v9707_v56 = vadd.f32 %v9675_v25, %v9643_v43  ;;  %v7688_v25 = vpop.f32.mrf.mxu2  ;;  %v8039_v43 = vadd.f32 %v8001_v1, %v7724_v6  ;;  %v9552_v52 = vor.u32 %v9551_v53, %v9547_v58  ;;  %v9679_v48 = vunpack.c.l.bf16 %v9548_v41  ;;  %v11300_v1 = vld [vmem:[%s11856_s6 + $0xc8] sm:$0x1] }
 0x5a1   : > { %v9579_v36 = vshll.u32 %v11300_v1, 16  ;;  %v15680_v6 = vld [vmem:[#allocation39_spill] sm:$0xff]  ;;  %v9577_v62 = vrot.slane %v9576_v28, 4 }
 0x5a2   : > { %v9739_v51 = vmax.f32 %v9707_v56, 0.0  ;;  %v11298_v56 = vld [vmem:[%s11856_s6 + $0xc0] sm:$0xf]  ;;  %v9553_v39 = vrot.slane %v9552_v52, 4  ;;  %s11546_s6 = sshll.u32 %s11805_s22, 8  ;;  %s9780_s22 = scalar_lea.sflag [#allocation5], %s232_s23 }
 0x5a3   : > { %v9101_v27 = vpop.f32.mrf.mxu1  ;;  %v9560_v13 = vshrl.u32 %v11298_v56, 16  ;;  %v9581_v58 = vrot.slane %v9579_v36, 5  ;;  %s9791_s10 = scalar_lea.hbm %s15461_s5, %s11546_s6 }
 0x5a4   : > { %9771 = vst [vmem:[%s15083_s26 + $0xc0] sm:$0xff] %v9739_v51  ;;  %v9144_v47 = vadd.f32 %v9101_v27, %v8718_v23  ;;  %v9563_v51 = vshll.u32 %v11298_v56, 16  ;;  %v7725_v23 = vadd.f32 %v7688_v25, %v15047_v16  ;;  %v8685_v60 = vpop.f32.mrf.mxu0  ;;  %v9558_v16 = vsel %vm11888_vm2, %v9553_v39, %v9557_v21  ;;  %s9794_s12 = sshll.u32 %s9791_s10, 4  ;;  %s9795_s12 = int_to_ptr.hbm [resolvable:$true] %s9794_s12 }
 0x5a5   : > { %v9680_v63 = vunpack.c.l.bf16 %v9558_v16  ;;  %v9582_v56 = vsel %vm11888_vm2, %v9577_v62, %v9581_v58  ;;  %s11694_s13 = sshra.s32 %s9795_s12, 4  ;;  %s11695_s13 = int_to_ptr.hbm [resolvable:$true] %s11694_s13 }
 0x5a6   : > { %v9644_v8 = vadd.f32 %v15369_v19, %v9144_v47  ;;  %v8721_v47 = vadd.f32 %v8683_v17, %v8039_v43  ;;  %v9565_v2 = vrot.slane %v9563_v51, 5  ;;  %v8040_v12 = vadd.f32 %v8003_v59, %v7725_v23  ;;  %v8006_v42 = vpop.f32.mrf.mxu3  ;;  %s11696_s14 = scalar_lea.hbm %s11695_s13, 256  ;;  %p11701_p3 = scmp.lt.s32.totalorder %s11695_s13, %s15461_s5 }
 0x5a7   : > { %v9682_v32 = vunpack.c.l.bf16 %v9582_v56  ;;  %p11697_p0 = scmp.ne.s32.totalorder %s11695_s13, %s11696_s14  ;;  %p11702_p4 = scmp.lt.s32.totalorder %s11700_s17, %s11696_s14 }
 0x5a8   : > { %v9708_v30 = vadd.f32 %v9676_v26, %v9644_v8  ;;  %v7691_v9 = vpop.f32.mrf.mxu2  ;;  %v9562_v8 = vrot.slane %v9560_v13, 4 }
 0x5a9   : > { %p11698_p1 = pnand %p11697_p0, %p11822_p5  ;;  %p11703_p7 = por %p11702_p4, %p11701_p3 }
 0x5aa   : > { %v9740_v0 = vmax.f32 %v9708_v30, 0.0  ;;  %v9566_v5 = vor.u32 %v9565_v2, %v9562_v8 }
 0x5ab   : > { %v9104_v14 = vpop.f32.mrf.mxu1  ;;  %p11699_p2 = pneg %p11698_p1 }
 0x5ac   : > { %9772 = vst [vmem:[%s15083_s26 + $0xc8] sm:$0xff] %v9740_v0  ;;  %v9145_v37 = vadd.f32 %v9104_v14, %v8719_v49  ;;  %v7726_v0 = vadd.f32 %v7691_v9, %v15679_v7  ;;  %v8722_v14 = vadd.f32 %v8685_v60, %v8040_v12  ;;  %v8688_v20 = vpop.f32.mrf.mxu0  ;;  %v9567_v18 = vrot.slane %v9566_v5, 4 }
 0x5ad   : > { %p11704_p8 = pnand %p11703_p7, %p11699_p2 }
 0x5ae   : > { %v9645_v35 = vadd.f32 %v15369_v19, %v9145_v37  ;;  %v8041_v38 = vadd.f32 %v8006_v42, %v7726_v0  ;;  %v9572_v31 = vsel %vm11888_vm2, %v9567_v18, %v9571_v61  ;;  %v8008_v25 = vpop.f32.mrf.mxu3 }
 0x5b0   : > { %v9709_v54 = vadd.f32 %v9677_v44, %v9645_v35  ;;  %v8723_v17 = vadd.f32 %v8688_v20, %v8041_v38 }
 0x5b2   : > { %v9741_v10 = vmax.f32 %v9709_v54, 0.0  ;;  %v7693_v54 = vpop.f32.mrf.mxu2 }
 0x5b3   : > { %v9106_v24 = vpop.f32.mrf.mxu1 }
 0x5b4   : > { %9773 = vst [vmem:[%s15083_s26 + $0xd0] sm:$0xff] %v9741_v10  ;;  %v9146_v34 = vadd.f32 %v9106_v24, %v8720_v4  ;;  %v7727_v10 = vadd.f32 %v7693_v54, %v15680_v6 }
 0x5b6   : > { %v9646_v55 = vadd.f32 %v15369_v19, %v9146_v34  ;;  %v8042_v53 = vadd.f32 %v8008_v25, %v7727_v10 }
 0x5b8   : > { %v9710_v3 = vadd.f32 %v9678_v22, %v9646_v55  ;;  %v9681_v22 = vunpack.c.l.bf16 %v9572_v31  ;;  %v8690_v55 = vpop.f32.mrf.mxu0 }
 0x5ba   : > { %v9742_v27 = vmax.f32 %v9710_v3, 0.0  ;;  %v8724_v3 = vadd.f32 %v8690_v55, %v8042_v53 }
 0x5bb   : > { %v9109_v26 = vpop.f32.mrf.mxu1 }
 0x5bc   : > { %9774 = vst [vmem:[%s15083_s26 + $0xd8] sm:$0xff] %v9742_v27  ;;  %v9147_v33 = vadd.f32 %v9109_v26, %v8721_v47 }
 0x5be   : > { %v9647_v30 = vadd.f32 %v15369_v19, %v9147_v33 }
 0x5c0   : > { %v9711_v45 = vadd.f32 %v9679_v48, %v9647_v30 }
 0x5c2   : > { %v9743_v49 = vmax.f32 %v9711_v45, 0.0 }
 0x5c3   : > { %v9111_v37 = vpop.f32.mrf.mxu1 }
 0x5c4   : > { %9775 = vst [vmem:[%s15083_s26 + $0xe0] sm:$0xff] %v9743_v49  ;;  %v9148_v44 = vadd.f32 %v9111_v37, %v8722_v14 }
 0x5c6   : > { %v9648_v35 = vadd.f32 %v15369_v19, %v9148_v44 }
 0x5c8   : > { %v9712_v29 = vadd.f32 %v9680_v63, %v9648_v35 }
 0x5ca   : > { %v9744_v4 = vmax.f32 %v9712_v29, 0.0 }
 0x5cb   : > { %v9114_v24 = vpop.f32.mrf.mxu1 }
 0x5cc   : > { %9776 = vst [vmem:[%s15083_s26 + $0xe8] sm:$0xff] %v9744_v4  ;;  %v9149_v34 = vadd.f32 %v9114_v24, %v8723_v17 }
 0x5ce   : > { %v9649_v43 = vadd.f32 %v15369_v19, %v9149_v34 }
 0x5d0   : > { %v9713_v50 = vadd.f32 %v9681_v22, %v9649_v43 }
 0x5d2   : > { %v9745_v41 = vmax.f32 %v9713_v50, 0.0 }
 0x5d3   : > { %v9116_v59 = vpop.f32.mrf.mxu1 }
 0x5d4   : > { %9777 = vst [vmem:[%s15083_s26 + $0xf0] sm:$0xff] %v9745_v41  ;;  %v9150_v52 = vadd.f32 %v9116_v59, %v8724_v3 }
 0x5d6   : > { %v9650_v13 = vadd.f32 %v15369_v19, %v9150_v52 }
 0x5d8   : > { %v9714_v40 = vadd.f32 %v9682_v32, %v9650_v13 }
 0x5da   : > { %v9746_v51 = vmax.f32 %v9714_v40, 0.0 }
 0x5dc   : > { %9778 = vst [vmem:[%s15083_s26 + $0xf8] sm:$0xff] %v9746_v51 }
 0x5dd   : > { %11707 = shalt.err (!%p11704_p8)
}
 0x5de   : > { %s11752_s23 = smov 128   ;;  %s11753_s26 = smov 8  }
 0x5df   : > { %11568 = dma.vmem_to_hbm [thread:$0]  (%p11822_p5), %s9793_s11, 4096, %s9795_s12, %s9780_s22, %s11752_s23, %s11752_s23, %s11753_s26  }
 0x5e0 PF: > { %p11580_p9 = scmp.ge.s32.totalorder %s11746_s21, 2  ;;  %s9809_s7 = sand.u32 1, %s11734_s18  }
 0x5e1   : > { %s9810_s6 = scalar_lea.sflag [#allocation5], %s9809_s7 }
 0x5e2   : > { %p11575_p10 = pnand %p11580_p9, %p11826_p6 }
 0x5e4   : > { %p11576_p11 = pneg %p11575_p10 }
 0x5e6   : > { %11729 = dma.done.wait (%p11576_p11), %s9810_s6, 4096  }
 0x5e7   : > { %11731 = vsyncadd (%p11576_p11), %s9810_s6, 4294963200  ;;  %p16_p12 = scmp.ge.s32.totalorder %s11809_s24, 4   ;;  %s15681_s18 = smov %s11738_s19 }
 0x5e8   : > { %s15682_s19 = smov %s11742_s20  ;;  %s15683_s20 = smov %s11820_s27 }
 0x5e9   : > { %s15684_s21 = smov %s11809_s24  ;;  %18 = sbr.rel (!%p16_p12) target bundleno = 4 (0x4), region = 100 }
 0x5ee   :  { %9816 = vsyncpa [#allocation4], 1 }
 0x5ef   :  { %9818 = vsyncpa [#allocation4 + $0x1], 1 }
 0x5f0   :  { %9819 = vsyncpa [#allocation5], 1 }
 0x5f1   :  { %9821 = vsyncpa [#allocation5 + $0x1], 1 }

</bundles_post_ra>
